<compile_context>
chip_gen: v7x
topology: tpu7x:2x2x1
jax: 0.10.0
libtpu: 0.0.40
codegen_flags: <defaults>
</compile_context>

<pallas_src>
import math
from functools import partial

import jax
import jax.numpy as jnp
from jax import lax
from jax.experimental import pallas as pl
from jax.experimental.pallas import tpu as pltpu

# ----------------------------------------------------------------------------
# Small-but-consistent configuration (module defaults scaled down for the demo)
# ----------------------------------------------------------------------------
BATCH = 2
NUM_SAMPLES = 16000          # 1 second of 16 kHz audio
SR = 16000
N_FFT = 512
WIN_LENGTH = 400
HOP = 160
N_MELS = 16                  # module default 80, shrunk
F_MIN, F_MAX = 20.0, 7600.0

ENCODER_DIM = 32             # module default 256, shrunk
NUM_LAYERS = 2               # module default 6, shrunk
NUM_HEADS = 2                # module default 4, shrunk
FF_EXPANSION = 2             # module default 8, shrunk
CONV_EXPANSION = 2
CONV_KERNEL = 15
NUM_OUT = 32                 # module default 192, shrunk
ATT_BOTTLENECK = 256         # hard-coded 256 in the module's attention head

OUTPUT_DIM = ENCODER_DIM * NUM_LAYERS   # MFA concat of all encoder layers

VMEM_LIMIT = 32 * 1024 * 1024           # explicit scoped-VMEM limit (v5e/v6e/v7x safe)


# ----------------------------------------------------------------------------
# Pallas kernels
# ----------------------------------------------------------------------------
def _round_up(x, m):
    return (x + m - 1) // m * m


_ACTIVATIONS = {
    'none':  lambda x: x,
    'relu':  lambda x: jnp.maximum(x, 0.0),
    'swish': lambda x: x * jax.nn.sigmoid(x),
    'tanh':  jnp.tanh,
}


def _matmul_bias_act_kernel(a_ref, b_ref, bias_ref, o_ref, *, activation):
    """(tm,tk)x(tk,tn) -> accumulate into resident (tm,tn) output block.
    Bias add + activation fused into the last-K store phase (epilogue is free
    while the kernel is MXU-bound)."""
    k = pl.program_id(2)

    @pl.when(k == 0)
    def _init():
        o_ref[...] = jnp.zeros_like(o_ref)

    o_ref[...] += jnp.dot(a_ref[...], b_ref[...],
                          preferred_element_type=jnp.float32)

    @pl.when(k == pl.num_programs(2) - 1)
    def _epilogue():
        y = o_ref[...] + bias_ref[...]
        o_ref[...] = _ACTIVATIONS[activation](y)


def _pick_tiles(M, N, K):
    """Whole-dim tiles when small, 256/512 tiles (parallel M/N, K last) when big."""
    Mp0 = _round_up(M, 8)
    tm, Mp = (Mp0, Mp0) if Mp0 <= 512 else (256, _round_up(M, 256))
    Np0 = _round_up(N, 128)
    tn, Np = (Np0, Np0) if Np0 <= 1024 else (512, _round_up(N, 512))
    Kp0 = _round_up(K, 128)
    tk, Kp = (Kp0, Kp0) if Kp0 <= 1024 else (512, _round_up(K, 512))
    return (tm, Mp), (tn, Np), (tk, Kp)


def pallas_matmul(a, b, bias=None, activation='none', compute_dtype=jnp.bfloat16):
    """(M,K) @ (K,N) [+ bias, activation] -> (M,N) f32.

    bf16 operands (MXU-friendly, halves DMA bytes), f32 accumulation directly
    in the output block; M/N parallel grid axes (megacore / 2nd TC), K last."""
    M, K = a.shape
    K2, N = b.shape
    assert K == K2
    (tm, Mp), (tn, Np), (tk, Kp) = _pick_tiles(M, N, K)

    a_p = a.astype(compute_dtype)
    b_p = b.astype(compute_dtype)
    if (Mp, Kp) != (M, K):
        a_p = jnp.pad(a_p, ((0, Mp - M), (0, Kp - K)))
    if (Kp, Np) != (K, N):
        b_p = jnp.pad(b_p, ((0, Kp - K), (0, Np - N)))
    if bias is None:
        bias_p = jnp.zeros((1, Np), jnp.float32)
    else:
        bias_p = bias.astype(jnp.float32).reshape(1, N)
        if Np != N:
            bias_p = jnp.pad(bias_p, ((0, 0), (0, Np - N)))

    grid = (Mp // tm, Np // tn, Kp // tk)
    out = pl.pallas_call(
        partial(_matmul_bias_act_kernel, activation=activation),
        out_shape=jax.ShapeDtypeStruct((Mp, Np), jnp.float32),
        grid_spec=pltpu.PrefetchScalarGridSpec(
            num_scalar_prefetch=0,
            grid=grid,
            in_specs=[pl.BlockSpec((tm, tk), lambda i, j, k: (i, k)),
                      pl.BlockSpec((tk, tn), lambda i, j, k: (k, j)),
                      pl.BlockSpec((1, tn), lambda i, j, k: (0, j))],
            out_specs=pl.BlockSpec((tm, tn), lambda i, j, k: (i, j)),
        ),
        compiler_params=pltpu.CompilerParams(
            dimension_semantics=("parallel", "parallel", "arbitrary"),
            vmem_limit_bytes=VMEM_LIMIT),
    )(a_p, b_p, bias_p)
    if (Mp, Np) != (M, N):
        out = out[:M, :N]
    return out


def _bmm_kernel(a_ref, b_ref, o_ref):
    o_ref[...] = jnp.dot(a_ref[...], b_ref[...],
                         preferred_element_type=jnp.float32)


def pallas_bmm(a, b, compute_dtype=jnp.bfloat16):
    """Batched matmul (G,M,K) @ (G,K,N) -> (G,M,N) f32; grid over G (parallel)."""
    G, M, K = a.shape
    _, _, N = b.shape
    Mp, Kp, Np = _round_up(M, 8), _round_up(K, 128), _round_up(N, 128)
    a_p = a.astype(compute_dtype)
    b_p = b.astype(compute_dtype)
    if (Mp, Kp) != (M, K):
        a_p = jnp.pad(a_p, ((0, 0), (0, Mp - M), (0, Kp - K)))
    if (Kp, Np) != (K, N):
        b_p = jnp.pad(b_p, ((0, 0), (0, Kp - K), (0, Np - N)))
    out = pl.pallas_call(
        _bmm_kernel,
        out_shape=jax.ShapeDtypeStruct((G, Mp, Np), jnp.float32),
        grid_spec=pltpu.PrefetchScalarGridSpec(
            num_scalar_prefetch=0,
            grid=(G,),
            in_specs=[pl.BlockSpec((None, Mp, Kp), lambda g: (g, 0, 0)),
                      pl.BlockSpec((None, Kp, Np), lambda g: (g, 0, 0))],
            out_specs=pl.BlockSpec((None, Mp, Np), lambda g: (g, 0, 0)),
        ),
        compiler_params=pltpu.CompilerParams(
            dimension_semantics=("parallel",),
            vmem_limit_bytes=VMEM_LIMIT),
    )(a_p, b_p)
    if (Mp, Np) != (M, N):
        out = out[:, :M, :N]
    return out


def _dwconv_swish_kernel(x_ref, w_ref, b_ref, o_ref, *, K, T):
    """Depthwise conv taps + (folded-BN) bias + swish. Weights read once."""
    w = w_ref[...]                                  # (K, C): single load
    acc = x_ref[0:T, :] * w[0:1, :]
    for k in range(1, K):                           # static taps, unrolled MACs
        acc = acc + x_ref[k:k + T, :] * w[k:k + 1, :]
    acc = acc + b_ref[...]
    o_ref[...] = acc * jax.nn.sigmoid(acc)          # swish fused in-kernel


def pallas_depthwise_conv_swish(x, w, b):
    """Depthwise conv1d ('same' pad) + bias + swish.  x:(B,T,C) w:(K,C) b:(C,)."""
    x = x.astype(jnp.float32)
    w = w.astype(jnp.float32)
    b = b.astype(jnp.float32).reshape(1, -1)
    B, T, C = x.shape
    K = w.shape[0]
    pad = (K - 1) // 2
    xp = jnp.pad(x, ((0, 0), (pad, pad), (0, 0)))
    # TODO(synk): for very long utterances, tile T with haloed pl.Element blocks
    # instead of holding the full (T+K-1, C) slab per batch in VMEM.
    return pl.pallas_call(
        partial(_dwconv_swish_kernel, K=K, T=T),
        out_shape=jax.ShapeDtypeStruct((B, T, C), jnp.float32),
        grid_spec=pltpu.PrefetchScalarGridSpec(
            num_scalar_prefetch=0,
            grid=(B,),
            in_specs=[pl.BlockSpec((None, T + 2 * pad, C), lambda bb: (bb, 0, 0)),
                      pl.BlockSpec((K, C), lambda bb: (0, 0)),
                      pl.BlockSpec((1, C), lambda bb: (0, 0))],
            out_specs=pl.BlockSpec((None, T, C), lambda bb: (bb, 0, 0)),
        ),
        compiler_params=pltpu.CompilerParams(
            dimension_semantics=("parallel",),
            vmem_limit_bytes=VMEM_LIMIT),
    )(xp, w, b)


def _asp_kernel(x_ref, w_ref, mu_ref, sg_ref):
    x = x_ref[...]                                  # (B, T, C): C on lanes
    w = w_ref[...]
    mu = jnp.sum(x * w, axis=1)                     # reduce over T (sublanes)
    ex2 = jnp.sum(x * x * w, axis=1)
    mu_ref[...] = mu
    sg_ref[...] = jnp.sqrt(jnp.maximum(ex2 - mu * mu, 1e-4))


def pallas_asp(x, w):
    """Attentive statistics pooling, channel-LAST. x, w: (B,T,C) -> (B,C),(B,C)."""
    B, T, C = x.shape
    vmem = pl.BlockSpec(memory_space=pltpu.MemorySpace.VMEM)
    mu, sg = pl.pallas_call(
        _asp_kernel,
        out_shape=(jax.ShapeDtypeStruct((B, C), jnp.float32),
                   jax.ShapeDtypeStruct((B, C), jnp.float32)),
        in_specs=[vmem, vmem],
        out_specs=(vmem, vmem),
        compiler_params=pltpu.CompilerParams(vmem_limit_bytes=VMEM_LIMIT),
    )(x.astype(jnp.float32), w.astype(jnp.float32))
    return mu, sg


# ----------------------------------------------------------------------------
# Plain-JAX glue (elementwise / reshape / normalization helpers)
# ----------------------------------------------------------------------------
def linear(x, w, b=None, activation='none'):
    shp = x.shape
    y = pallas_matmul(x.reshape(-1, shp[-1]), w, bias=b, activation=activation)
    return y.reshape(shp[:-1] + (w.shape[1],))


def layer_norm(x, g, b, eps=1e-5):
    m = jnp.mean(x, axis=-1, keepdims=True)
    v = jnp.var(x, axis=-1, keepdims=True)
    return (x - m) / jnp.sqrt(v + eps) * g + b


def batchnorm_eval(x, p, eps=1e-5):
    # channel on the last axis
    return (x - p['rm']) / jnp.sqrt(p['rv'] + eps) * p['g'] + p['b']


def sinusoid_pe(length, d_model):
    pos = jnp.arange(length, dtype=jnp.float32)[:, None]
    div = jnp.exp(jnp.arange(0, d_model, 2, dtype=jnp.float32) *
                  (-math.log(10000.0) / d_model))
    pe = jnp.zeros((length, d_model), jnp.float32)
    pe = pe.at[:, 0::2].set(jnp.sin(pos * div))
    pe = pe.at[:, 1::2].set(jnp.cos(pos * div))
    return pe


def relative_shift(pos_score):
    B, H, T1, T2 = pos_score.shape
    zeros = jnp.zeros((B, H, T1, 1), pos_score.dtype)
    padded = jnp.concatenate([zeros, pos_score], axis=-1)
    padded = padded.reshape(B, H, T2 + 1, T1)
    return padded[:, :, 1:].reshape(B, H, T1, T2)


def conv2d_stride2_relu(x, w, b):
    """conv2d kernel=3 stride=2 no pad + ReLU.  Handed to XLA (not the hot path;
    a K=9 im2col GEMM wastes ~93% of each MXU pass)."""
    y = lax.conv_general_dilated(x, w, window_strides=(2, 2), padding='VALID',
                                 dimension_numbers=('NCHW', 'OIHW', 'NCHW'))
    return jax.nn.relu(y + b[None, :, None, None])


# ----------------------------------------------------------------------------
# Mel front-end constants (PreEmphasis + MelSpectrogram, computed via GEMMs)
# ----------------------------------------------------------------------------
def hamming_window_padded():
    n = jnp.arange(WIN_LENGTH, dtype=jnp.float32)
    w = 0.54 - 0.46 * jnp.cos(2.0 * jnp.pi * n / WIN_LENGTH)  # periodic
    lpad = (N_FFT - WIN_LENGTH) // 2
    return jnp.pad(w, (lpad, N_FFT - WIN_LENGTH - lpad))


def dft_matrix():
    """[cos | sin] fused into one (N_FFT, 2*(N_FFT//2+1)) matrix -> one GEMM."""
    n = jnp.arange(N_FFT, dtype=jnp.float32)[:, None]
    f = jnp.arange(N_FFT // 2 + 1, dtype=jnp.float32)[None, :]
    ang = 2.0 * jnp.pi * n * f / N_FFT
    return jnp.concatenate([jnp.cos(ang), jnp.sin(ang)], axis=1)


def mel_filterbank():
    def hz_to_mel(f):
        return 2595.0 * jnp.log10(1.0 + f / 700.0)

    def mel_to_hz(m):
        return 700.0 * (10.0 ** (m / 2595.0) - 1.0)

    n_freqs = N_FFT // 2 + 1
    all_freqs = jnp.linspace(0.0, SR / 2, n_freqs)
    m_pts = jnp.linspace(hz_to_mel(jnp.float32(F_MIN)),
                         hz_to_mel(jnp.float32(F_MAX)), N_MELS + 2)
    f_pts = mel_to_hz(m_pts)
    f_diff = f_pts[1:] - f_pts[:-1]
    slopes = f_pts[None, :] - all_freqs[:, None]
    down = -slopes[:, :-2] / f_diff[:-1]
    up = slopes[:, 2:] / f_diff[1:]
    return jnp.maximum(0.0, jnp.minimum(down, up))   # (n_freqs, n_mels), HTK, norm=None


def preemphasis(x, coef=0.97):
    xpad = jnp.concatenate([x[:, 1:2], x], axis=1)   # reflect-pad 1 on the left
    return xpad[:, 1:] - coef * xpad[:, :-1]


def frame_signal(x):
    B, S = x.shape
    pad = N_FFT // 2
    xp = jnp.pad(x, ((0, 0), (pad, pad)), mode='reflect')
    n_frames = 1 + S // HOP
    idx = jnp.arange(n_frames)[:, None] * HOP + jnp.arange(N_FFT)[None, :]
    return xp[:, idx]                                 # (B, n_frames, N_FFT)


# ----------------------------------------------------------------------------
# Conformer encoder pieces
# ----------------------------------------------------------------------------
def feed_forward(x, p):
    h = layer_norm(x, p['ln']['g'], p['ln']['b'])
    h = linear(h, p['w1'], p['b1'], activation='swish')   # bias+swish fused epilogue
    h = linear(h, p['w2'], p['b2'])
    return h


def mhsa_module(x, p, pe):
    B, T, D = x.shape
    H = NUM_HEADS
    dh = D // H
    xn = layer_norm(x, p['ln']['g'], p['ln']['b'])

    # Fused Q/K/V/pos projection: one lane-dense (., 4D)=128-wide GEMM.
    rows = jnp.concatenate([xn.reshape(B * T, D), pe], axis=0)   # ((B+1)*T, D)
    y = pallas_matmul(rows, p['w_qkvp'], bias=p['b_qkvp'])
    qkv = y[:B * T]
    q = qkv[:, 0 * D:1 * D].reshape(B, T, H, dh)
    k = qkv[:, 1 * D:2 * D].reshape(B, T, H, dh).transpose(0, 2, 1, 3)
    v = qkv[:, 2 * D:3 * D].reshape(B, T, H, dh).transpose(0, 2, 1, 3)
    pos = y[B * T:, 3 * D:4 * D].reshape(T, H, dh)               # pos_proj, no bias
    pos = jnp.broadcast_to(pos[None], (B, T, H, dh)).transpose(0, 2, 1, 3)

    qu = (q + p['u'][None, None]).transpose(0, 2, 1, 3)          # (B,H,T,dh)
    qv = (q + p['v'][None, None]).transpose(0, 2, 1, 3)

    # Content + positional scores as ONE batched GEMM (stack along the G axis).
    lhs = jnp.concatenate([qu, qv], axis=0).reshape(2 * B * H, T, dh)
    rhs = jnp.concatenate([k.transpose(0, 1, 3, 2),
                           pos.transpose(0, 1, 3, 2)], axis=0).reshape(2 * B * H, dh, T)
    scores = pallas_bmm(lhs, rhs).reshape(2, B, H, T, T)
    content, pos_score = scores[0], scores[1]
    pos_score = relative_shift(pos_score)

    score = (content + pos_score) / math.sqrt(D)
    attn = jax.nn.softmax(score, axis=-1)
    ctx = pallas_bmm(attn.reshape(B * H, T, T),
                     v.reshape(B * H, T, dh)).reshape(B, H, T, dh)
    ctx = ctx.transpose(0, 2, 1, 3).reshape(B, T, D)
    return linear(ctx, p['wo'], p['bo'])


def conv_module(x, p):
    B, T, D = x.shape
    h = layer_norm(x, p['ln']['g'], p['ln']['b'])
    h = linear(h, p['pw1_w'], p['pw1_b'])                 # (B,T,2D) pointwise conv
    a, g = h[..., :D], h[..., D:]
    h = a * jax.nn.sigmoid(g)                             # GLU over channels
    # eval-mode BatchNorm folded into depthwise weights/bias; swish fused in-kernel
    s = p['bn']['g'] * lax.rsqrt(p['bn']['rv'] + 1e-5)
    dw_w = p['dw_w'] * s[None, :]
    dw_b = p['bn']['b'] - p['bn']['rm'] * s
    h = pallas_depthwise_conv_swish(h, dw_w, dw_b)        # depthwise k=15, same pad
    h = linear(h, p['pw2_w'], p['pw2_b'])
    return h


def conformer_block(x, p, pe):
    x = x + 0.5 * feed_forward(x, p['ff1'])               # half-step residual
    x = x + mhsa_module(x, p['mhsa'], pe)
    x = x + conv_module(x, p['conv'])
    x = x + 0.5 * feed_forward(x, p['ff2'])
    return layer_norm(x, p['ln']['g'], p['ln']['b'])


# ----------------------------------------------------------------------------
# Full Conformer forward
# ----------------------------------------------------------------------------
def conformer_forward(params, wav):
    c = params['const']
    # ---- torchfbank: PreEmphasis + MelSpectrogram, then log + CMN over time
    x = preemphasis(wav)
    frames = frame_signal(x)                              # (B, Tm, N_FFT)
    B, Tm, _ = frames.shape
    fw = (frames * c['window'][None, None, :]).reshape(B * Tm, N_FFT)
    nf = N_FFT // 2 + 1
    spec = pallas_matmul(fw, c['dft'], compute_dtype=jnp.float32)  # fused [re|im]
    re, im = spec[:, :nf], spec[:, nf:]
    power = re * re + im * im                             # (B*Tm, n_freqs)
    mel = pallas_matmul(power, c['mel_fb'],
                        compute_dtype=jnp.float32).reshape(B, Tm, N_MELS)
    logmel = jnp.log(mel + 1e-6)
    logmel = logmel - jnp.mean(logmel, axis=1, keepdims=True)   # CMN over time
    # TODO(synk): SpecAugment only runs when aug=True; omitted (aug=False path).

    # ---- ConformerEncoder: Conv2dSubsampling + input projection + blocks (MFA concat)
    h4 = logmel[:, None, :, :]                            # (B,1,T,n_mels)
    h4 = conv2d_stride2_relu(h4, params['sub_w1'], params['sub_b1'])
    h4 = conv2d_stride2_relu(h4, params['sub_w2'], params['sub_b2'])
    Bc, Cc, To, Fo = h4.shape
    h = h4.transpose(0, 2, 1, 3).reshape(Bc, To, Cc * Fo)
    h = linear(h, params['proj_w'], params['proj_b'])     # (B, T', D)

    pe = sinusoid_pe(To, ENCODER_DIM)                     # computed once per forward
    layer_outs = []
    for lp in params['layers']:
        h = conformer_block(h, lp, pe)
        layer_outs.append(h)
    enc = jnp.concatenate(layer_outs, axis=-1)            # (B, T', C) channel-LAST

    # ---- attentive statistics pooling head (kept channel-last, no transpose)
    mean_t = jnp.mean(enc, axis=1, keepdims=True)
    var_t = jnp.var(enc, axis=1, keepdims=True, ddof=1)   # torch.var (unbiased)
    std_t = jnp.sqrt(jnp.maximum(var_t, 1e-4))
    global_x = jnp.concatenate(
        [enc,
         jnp.broadcast_to(mean_t, enc.shape),
         jnp.broadcast_to(std_t, enc.shape)], axis=-1)    # (B, T', 3C)

    a = linear(global_x, params['att_w1'], params['att_b1'],
               activation='relu')                         # 1x1 conv == matmul (+ReLU)
    a = batchnorm_eval(a, params['att_bn'])
    a = jnp.tanh(a)
    a = linear(a, params['att_w2'], params['att_b2'])     # (B, T', C)
    w = jax.nn.softmax(a, axis=1)                         # softmax over time

    mu, sg = pallas_asp(enc, w)
    feat = jnp.concatenate([mu, sg], axis=1)              # (B, 2C)

    # eval-mode bn1 and bn2 folded into the final fc GEMM
    s1 = params['bn1']['g'] * lax.rsqrt(params['bn1']['rv'] + 1e-5)
    t1 = params['bn1']['b'] - params['bn1']['rm'] * s1
    s2 = params['bn2']['g'] * lax.rsqrt(params['bn2']['rv'] + 1e-5)
    t2 = params['bn2']['b'] - params['bn2']['rm'] * s2
    w_fc = (s1[:, None] * params['fc_w']) * s2[None, :]
    b_fc = (t1 @ params['fc_w'] + params['fc_b']) * s2 + t2
    out = pallas_matmul(feat, w_fc, bias=b_fc)
    return out


# ----------------------------------------------------------------------------
# Deterministic parameter initialization
# ----------------------------------------------------------------------------
def init_params(key):
    keys = iter(jax.random.split(key, 128))

    def nrm(shape, scale=0.05):
        return (scale * jax.random.normal(next(keys), shape)).astype(jnp.float32)

    def zeros(c):
        return jnp.zeros((c,), jnp.float32)

    def bn_p(c):
        return {'g': jnp.ones((c,), jnp.float32), 'b': zeros(c),
                'rm': zeros(c), 'rv': jnp.ones((c,), jnp.float32)}

    def ln_p(c):
        return {'g': jnp.ones((c,), jnp.float32), 'b': zeros(c)}

    D, H, L = ENCODER_DIM, NUM_HEADS, NUM_LAYERS
    FFD = D * FF_EXPANSION
    FD = ((N_MELS - 1) // 2 - 1) // 2
    C_out = D * L

    layers = []
    for _ in range(L):
        ff1 = dict(ln=ln_p(D), w1=nrm((D, FFD)), b1=zeros(FFD),
                   w2=nrm((FFD, D)), b2=zeros(D))
        ff2 = dict(ln=ln_p(D), w1=nrm((D, FFD)), b1=zeros(FFD),
                   w2=nrm((FFD, D)), b2=zeros(D))
        # q/k/v/pos weights concatenated once at init -> lane-dense fused GEMM
        wq, wk, wv, wp = nrm((D, D)), nrm((D, D)), nrm((D, D)), nrm((D, D))
        mhsa = dict(ln=ln_p(D),
                    w_qkvp=jnp.concatenate([wq, wk, wv, wp], axis=1),   # (D, 4D)
                    b_qkvp=zeros(4 * D),        # [bq|bk|bv|0] (pos_proj has no bias)
                    wo=nrm((D, D)), bo=zeros(D),
                    u=nrm((H, D // H)), v=nrm((H, D // H)))
        conv = dict(ln=ln_p(D),
                    pw1_w=nrm((D, D * CONV_EXPANSION)), pw1_b=zeros(D * CONV_EXPANSION),
                    dw_w=nrm((CONV_KERNEL, D)),
                    bn=bn_p(D),
                    pw2_w=nrm((D, D)), pw2_b=zeros(D))
        layers.append(dict(ff1=ff1, mhsa=mhsa, conv=conv, ff2=ff2, ln=ln_p(D)))

    params = dict(
        sub_w1=nrm((D, 1, 3, 3)), sub_b1=zeros(D),
        sub_w2=nrm((D, D, 3, 3)), sub_b2=zeros(D),
        proj_w=nrm((D * FD, D)), proj_b=zeros(D),
        layers=layers,
        att_w1=nrm((3 * C_out, ATT_BOTTLENECK)), att_b1=zeros(ATT_BOTTLENECK),
        att_bn=bn_p(ATT_BOTTLENECK),
        att_w2=nrm((ATT_BOTTLENECK, C_out)), att_b2=zeros(C_out),
        bn1=bn_p(2 * C_out),
        fc_w=nrm((2 * C_out, NUM_OUT)), fc_b=zeros(NUM_OUT),
        bn2=bn_p(NUM_OUT),
        const=dict(window=hamming_window_padded(),
                   dft=dft_matrix(), mel_fb=mel_filterbank()),
    )
    return params


# ----------------------------------------------------------------------------
if __name__ == "__main__":
    root = jax.random.PRNGKey(0)
    pkey, dkey = jax.random.split(root)
    params = init_params(pkey)
    wav = jax.random.normal(dkey, (BATCH, NUM_SAMPLES), dtype=jnp.float32)

    fwd = jax.jit(conformer_forward)
    out = fwd(params, wav)
    out = jax.block_until_ready(out)

    assert out.shape == (BATCH, NUM_OUT), out.shape
    assert bool(jnp.all(jnp.isfinite(out)))
    print("KERNEL_OK")
</pallas_src>

<mosaic_0001>
module attributes {stable_mosaic.version = 11 : i64} {
  func.func @_matmul_bias_act_kernel(%arg0: i32, %arg1: i32, %arg2: i32, %arg3: memref<208x512xf32, #tpu.memory_space<vmem>>, %arg4: memref<512x640xf32, #tpu.memory_space<vmem>>, %arg5: memref<1x640xf32, #tpu.memory_space<vmem>>, %arg6: memref<208x640xf32, #tpu.memory_space<vmem>>) attributes {dimension_semantics = [#tpu.dimension_semantics<parallel>, #tpu.dimension_semantics<parallel>, #tpu.dimension_semantics<arbitrary>], iteration_bounds = array<i64: 1, 1, 1>, scalar_prefetch = 0 : i64, scratch_operands = 0 : i64, tpu.core_type = #tpu.core_type<tc>, window_params = [{transform_indices = @transform_0, window_bounds = array<i64: 208, 512>}, {transform_indices = @transform_1, window_bounds = array<i64: 512, 640>}, {transform_indices = @transform_2, window_bounds = array<i64: 1, 640>}, {transform_indices = @transform_3, window_bounds = array<i64: 208, 640>}]} {
    %c0_i32 = arith.constant 0 : i32
    %0 = arith.cmpi eq, %arg2, %c0_i32 : i32
    %1 = arith.extui %0 : i1 to i32
    %c0_i32_0 = arith.constant 0 : i32
    %2 = arith.cmpi ne, %1, %c0_i32_0 : i32
    scf.if %2 {
      %cst_10 = arith.constant 0.000000e+00 : f32
      %12 = vector.broadcast %cst_10 : f32 to vector<208x640xf32>
      %c0_11 = arith.constant 0 : index
      %c0_12 = arith.constant 0 : index
      %13 = vector.load %arg6[%c0_11, %c0_12] : memref<208x640xf32, #tpu.memory_space<vmem>>, vector<208x640xf32>
      tpu.vector_store %arg6[%c0_11, %c0_12], %12 {strides = array<i32>} : memref<208x640xf32, #tpu.memory_space<vmem>>, vector<208x640xf32>,
    } else {
    }
    %c0 = arith.constant 0 : index
    %c0_1 = arith.constant 0 : index
    %3 = vector.load %arg6[%c0, %c0_1] : memref<208x640xf32, #tpu.memory_space<vmem>>, vector<208x640xf32>
    %c0_2 = arith.constant 0 : index
    %c0_3 = arith.constant 0 : index
    %4 = vector.load %arg3[%c0_2, %c0_3] : memref<208x512xf32, #tpu.memory_space<vmem>>, vector<208x512xf32>
    %c0_4 = arith.constant 0 : index
    %c0_5 = arith.constant 0 : index
    %5 = vector.load %arg4[%c0_4, %c0_5] : memref<512x640xf32, #tpu.memory_space<vmem>>, vector<512x640xf32>
    %cst = arith.constant dense<0.000000e+00> : vector<208x640xf32>
    %6 = tpu.matmul %4, %5, %cst {dimension_numbers = #tpu.dot_dimension_numbers<[1], [0], [0], [1], [0, 0, 1, 1], [], []>} : vector<208x512xf32>, vector<512x640xf32>, vector<208x640xf32> -> vector<208x640xf32>
    %7 = arith.addf %3, %6 : vector<208x640xf32>
    %c0_6 = arith.constant 0 : index
    %c0_7 = arith.constant 0 : index
    %8 = vector.load %arg6[%c0_6, %c0_7] : memref<208x640xf32, #tpu.memory_space<vmem>>, vector<208x640xf32>
    tpu.vector_store %arg6[%c0_6, %c0_7], %7 {strides = array<i32>} : memref<208x640xf32, #tpu.memory_space<vmem>>, vector<208x640xf32>,
    %c0_i32_8 = arith.constant 0 : i32
    %9 = arith.cmpi eq, %arg2, %c0_i32_8 : i32
    %10 = arith.extui %9 : i1 to i32
    %c0_i32_9 = arith.constant 0 : i32
    %11 = arith.cmpi ne, %10, %c0_i32_9 : i32
    scf.if %11 {
      %c0_10 = arith.constant 0 : index
      %c0_11 = arith.constant 0 : index
      %12 = vector.load %arg6[%c0_10, %c0_11] : memref<208x640xf32, #tpu.memory_space<vmem>>, vector<208x640xf32>
      %c0_12 = arith.constant 0 : index
      %c0_13 = arith.constant 0 : index
      %13 = vector.load %arg5[%c0_12, %c0_13] : memref<1x640xf32, #tpu.memory_space<vmem>>, vector<1x640xf32>
      %14 = vector.broadcast %13 : vector<1x640xf32> to vector<208x640xf32>
      %15 = arith.addf %12, %14 : vector<208x640xf32>
      %c0_14 = arith.constant 0 : index
      %c0_15 = arith.constant 0 : index
      %16 = vector.load %arg6[%c0_14, %c0_15] : memref<208x640xf32, #tpu.memory_space<vmem>>, vector<208x640xf32>
      tpu.vector_store %arg6[%c0_14, %c0_15], %15 {strides = array<i32>} : memref<208x640xf32, #tpu.memory_space<vmem>>, vector<208x640xf32>,
    } else {
    }
    return
  }
  func.func @transform_0(%arg0: i32, %arg1: i32, %arg2: i32) -> (i32, i32) {
    %c0_i32 = arith.constant 0 : i32
    return %arg0, %arg2 : i32, i32
  }
  func.func @transform_1(%arg0: i32, %arg1: i32, %arg2: i32) -> (i32, i32) {
    %c0_i32 = arith.constant 0 : i32
    return %arg2, %arg1 : i32, i32
  }
  func.func @transform_2(%arg0: i32, %arg1: i32, %arg2: i32) -> (i32, i32) {
    %c0_i32 = arith.constant 0 : i32
    %c0_i32_0 = arith.constant 0 : i32
    return %c0_i32, %arg1 : i32, i32
  }
  func.func @transform_3(%arg0: i32, %arg1: i32, %arg2: i32) -> (i32, i32) {
    %c0_i32 = arith.constant 0 : i32
    return %arg0, %arg1 : i32, i32
  }
}

module attributes {stable_mosaic.version = 11 : i64} {
  func.func @_matmul_bias_act_kernel(%arg0: i32, %arg1: i32, %arg2: i32, %arg3: memref<208x384xf32, #tpu.memory_space<vmem>>, %arg4: memref<384x128xf32, #tpu.memory_space<vmem>>, %arg5: memref<1x128xf32, #tpu.memory_space<vmem>>, %arg6: memref<208x128xf32, #tpu.memory_space<vmem>>) attributes {dimension_semantics = [#tpu.dimension_semantics<parallel>, #tpu.dimension_semantics<parallel>, #tpu.dimension_semantics<arbitrary>], iteration_bounds = array<i64: 1, 1, 1>, scalar_prefetch = 0 : i64, scratch_operands = 0 : i64, tpu.core_type = #tpu.core_type<tc>, window_params = [{transform_indices = @transform_0, window_bounds = array<i64: 208, 384>}, {transform_indices = @transform_1, window_bounds = array<i64: 384, 128>}, {transform_indices = @transform_2, window_bounds = array<i64: 1, 128>}, {transform_indices = @transform_3, window_bounds = array<i64: 208, 128>}]} {
    %c0_i32 = arith.constant 0 : i32
    %0 = arith.cmpi eq, %arg2, %c0_i32 : i32
    %1 = arith.extui %0 : i1 to i32
    %c0_i32_0 = arith.constant 0 : i32
    %2 = arith.cmpi ne, %1, %c0_i32_0 : i32
    scf.if %2 {
      %cst_10 = arith.constant 0.000000e+00 : f32
      %12 = vector.broadcast %cst_10 : f32 to vector<208x128xf32>
      %c0_11 = arith.constant 0 : index
      %c0_12 = arith.constant 0 : index
      %13 = vector.load %arg6[%c0_11, %c0_12] : memref<208x128xf32, #tpu.memory_space<vmem>>, vector<208x128xf32>
      tpu.vector_store %arg6[%c0_11, %c0_12], %12 {strides = array<i32>} : memref<208x128xf32, #tpu.memory_space<vmem>>, vector<208x128xf32>,
    } else {
    }
    %c0 = arith.constant 0 : index
    %c0_1 = arith.constant 0 : index
    %3 = vector.load %arg6[%c0, %c0_1] : memref<208x128xf32, #tpu.memory_space<vmem>>, vector<208x128xf32>
    %c0_2 = arith.constant 0 : index
    %c0_3 = arith.constant 0 : index
    %4 = vector.load %arg3[%c0_2, %c0_3] : memref<208x384xf32, #tpu.memory_space<vmem>>, vector<208x384xf32>
    %c0_4 = arith.constant 0 : index
    %c0_5 = arith.constant 0 : index
    %5 = vector.load %arg4[%c0_4, %c0_5] : memref<384x128xf32, #tpu.memory_space<vmem>>, vector<384x128xf32>
    %cst = arith.constant dense<0.000000e+00> : vector<208x128xf32>
    %6 = tpu.matmul %4, %5, %cst {dimension_numbers = #tpu.dot_dimension_numbers<[1], [0], [0], [1], [0, 0, 1, 1], [], []>} : vector<208x384xf32>, vector<384x128xf32>, vector<208x128xf32> -> vector<208x128xf32>
    %7 = arith.addf %3, %6 : vector<208x128xf32>
    %c0_6 = arith.constant 0 : index
    %c0_7 = arith.constant 0 : index
    %8 = vector.load %arg6[%c0_6, %c0_7] : memref<208x128xf32, #tpu.memory_space<vmem>>, vector<208x128xf32>
    tpu.vector_store %arg6[%c0_6, %c0_7], %7 {strides = array<i32>} : memref<208x128xf32, #tpu.memory_space<vmem>>, vector<208x128xf32>,
    %c0_i32_8 = arith.constant 0 : i32
    %9 = arith.cmpi eq, %arg2, %c0_i32_8 : i32
    %10 = arith.extui %9 : i1 to i32
    %c0_i32_9 = arith.constant 0 : i32
    %11 = arith.cmpi ne, %10, %c0_i32_9 : i32
    scf.if %11 {
      %c0_10 = arith.constant 0 : index
      %c0_11 = arith.constant 0 : index
      %12 = vector.load %arg6[%c0_10, %c0_11] : memref<208x128xf32, #tpu.memory_space<vmem>>, vector<208x128xf32>
      %c0_12 = arith.constant 0 : index
      %c0_13 = arith.constant 0 : index
      %13 = vector.load %arg5[%c0_12, %c0_13] : memref<1x128xf32, #tpu.memory_space<vmem>>, vector<1x128xf32>
      %14 = vector.broadcast %13 : vector<1x128xf32> to vector<208x128xf32>
      %15 = arith.addf %12, %14 : vector<208x128xf32>
      %c0_14 = arith.constant 0 : index
      %c0_15 = arith.constant 0 : index
      %16 = vector.load %arg6[%c0_14, %c0_15] : memref<208x128xf32, #tpu.memory_space<vmem>>, vector<208x128xf32>
      tpu.vector_store %arg6[%c0_14, %c0_15], %15 {strides = array<i32>} : memref<208x128xf32, #tpu.memory_space<vmem>>, vector<208x128xf32>,
    } else {
    }
    return
  }
  func.func @transform_0(%arg0: i32, %arg1: i32, %arg2: i32) -> (i32, i32) {
    %c0_i32 = arith.constant 0 : i32
    return %arg0, %arg2 : i32, i32
  }
  func.func @transform_1(%arg0: i32, %arg1: i32, %arg2: i32) -> (i32, i32) {
    %c0_i32 = arith.constant 0 : i32
    return %arg2, %arg1 : i32, i32
  }
  func.func @transform_2(%arg0: i32, %arg1: i32, %arg2: i32) -> (i32, i32) {
    %c0_i32 = arith.constant 0 : i32
    %c0_i32_0 = arith.constant 0 : i32
    return %c0_i32, %arg1 : i32, i32
  }
  func.func @transform_3(%arg0: i32, %arg1: i32, %arg2: i32) -> (i32, i32) {
    %c0_i32 = arith.constant 0 : i32
    return %arg0, %arg1 : i32, i32
  }
}

module attributes {stable_mosaic.version = 11 : i64} {
  func.func @_matmul_bias_act_kernel(%arg0: i32, %arg1: i32, %arg2: i32, %arg3: memref<48x128xbf16, #tpu.memory_space<vmem>>, %arg4: memref<128x128xbf16, #tpu.memory_space<vmem>>, %arg5: memref<1x128xf32, #tpu.memory_space<vmem>>, %arg6: memref<48x128xf32, #tpu.memory_space<vmem>>) attributes {dimension_semantics = [#tpu.dimension_semantics<parallel>, #tpu.dimension_semantics<parallel>, #tpu.dimension_semantics<arbitrary>], iteration_bounds = array<i64: 1, 1, 1>, scalar_prefetch = 0 : i64, scratch_operands = 0 : i64, tpu.core_type = #tpu.core_type<tc>, window_params = [{transform_indices = @transform_0, window_bounds = array<i64: 48, 128>}, {transform_indices = @transform_1, window_bounds = array<i64: 128, 128>}, {transform_indices = @transform_2, window_bounds = array<i64: 1, 128>}, {transform_indices = @transform_3, window_bounds = array<i64: 48, 128>}]} {
    %c0_i32 = arith.constant 0 : i32
    %0 = arith.cmpi eq, %arg2, %c0_i32 : i32
    %1 = arith.extui %0 : i1 to i32
    %c0_i32_0 = arith.constant 0 : i32
    %2 = arith.cmpi ne, %1, %c0_i32_0 : i32
    scf.if %2 {
      %cst_10 = arith.constant 0.000000e+00 : f32
      %12 = vector.broadcast %cst_10 : f32 to vector<48x128xf32>
      %c0_11 = arith.constant 0 : index
      %c0_12 = arith.constant 0 : index
      %13 = vector.load %arg6[%c0_11, %c0_12] : memref<48x128xf32, #tpu.memory_space<vmem>>, vector<48x128xf32>
      tpu.vector_store %arg6[%c0_11, %c0_12], %12 {strides = array<i32>} : memref<48x128xf32, #tpu.memory_space<vmem>>, vector<48x128xf32>,
    } else {
    }
    %c0 = arith.constant 0 : index
    %c0_1 = arith.constant 0 : index
    %3 = vector.load %arg6[%c0, %c0_1] : memref<48x128xf32, #tpu.memory_space<vmem>>, vector<48x128xf32>
    %c0_2 = arith.constant 0 : index
    %c0_3 = arith.constant 0 : index
    %4 = vector.load %arg3[%c0_2, %c0_3] : memref<48x128xbf16, #tpu.memory_space<vmem>>, vector<48x128xbf16>
    %c0_4 = arith.constant 0 : index
    %c0_5 = arith.constant 0 : index
    %5 = vector.load %arg4[%c0_4, %c0_5] : memref<128x128xbf16, #tpu.memory_space<vmem>>, vector<128x128xbf16>
    %cst = arith.constant dense<0.000000e+00> : vector<48x128xf32>
    %6 = tpu.matmul %4, %5, %cst {dimension_numbers = #tpu.dot_dimension_numbers<[1], [0], [0], [1], [0, 0, 1, 1], [], []>} : vector<48x128xbf16>, vector<128x128xbf16>, vector<48x128xf32> -> vector<48x128xf32>
    %7 = arith.addf %3, %6 : vector<48x128xf32>
    %c0_6 = arith.constant 0 : index
    %c0_7 = arith.constant 0 : index
    %8 = vector.load %arg6[%c0_6, %c0_7] : memref<48x128xf32, #tpu.memory_space<vmem>>, vector<48x128xf32>
    tpu.vector_store %arg6[%c0_6, %c0_7], %7 {strides = array<i32>} : memref<48x128xf32, #tpu.memory_space<vmem>>, vector<48x128xf32>,
    %c0_i32_8 = arith.constant 0 : i32
    %9 = arith.cmpi eq, %arg2, %c0_i32_8 : i32
    %10 = arith.extui %9 : i1 to i32
    %c0_i32_9 = arith.constant 0 : i32
    %11 = arith.cmpi ne, %10, %c0_i32_9 : i32
    scf.if %11 {
      %c0_10 = arith.constant 0 : index
      %c0_11 = arith.constant 0 : index
      %12 = vector.load %arg6[%c0_10, %c0_11] : memref<48x128xf32, #tpu.memory_space<vmem>>, vector<48x128xf32>
      %c0_12 = arith.constant 0 : index
      %c0_13 = arith.constant 0 : index
      %13 = vector.load %arg5[%c0_12, %c0_13] : memref<1x128xf32, #tpu.memory_space<vmem>>, vector<1x128xf32>
      %14 = vector.broadcast %13 : vector<1x128xf32> to vector<48x128xf32>
      %15 = arith.addf %12, %14 : vector<48x128xf32>
      %c0_14 = arith.constant 0 : index
      %c0_15 = arith.constant 0 : index
      %16 = vector.load %arg6[%c0_14, %c0_15] : memref<48x128xf32, #tpu.memory_space<vmem>>, vector<48x128xf32>
      tpu.vector_store %arg6[%c0_14, %c0_15], %15 {strides = array<i32>} : memref<48x128xf32, #tpu.memory_space<vmem>>, vector<48x128xf32>,
    } else {
    }
    return
  }
  func.func @transform_0(%arg0: i32, %arg1: i32, %arg2: i32) -> (i32, i32) {
    %c0_i32 = arith.constant 0 : i32
    return %arg0, %arg2 : i32, i32
  }
  func.func @transform_1(%arg0: i32, %arg1: i32, %arg2: i32) -> (i32, i32) {
    %c0_i32 = arith.constant 0 : i32
    return %arg2, %arg1 : i32, i32
  }
  func.func @transform_2(%arg0: i32, %arg1: i32, %arg2: i32) -> (i32, i32) {
    %c0_i32 = arith.constant 0 : i32
    %c0_i32_0 = arith.constant 0 : i32
    return %c0_i32, %arg1 : i32, i32
  }
  func.func @transform_3(%arg0: i32, %arg1: i32, %arg2: i32) -> (i32, i32) {
    %c0_i32 = arith.constant 0 : i32
    return %arg0, %arg1 : i32, i32
  }
}

module attributes {stable_mosaic.version = 11 : i64} {
  func.func @_matmul_bias_act_kernel(%arg0: i32, %arg1: i32, %arg2: i32, %arg3: memref<48x128xbf16, #tpu.memory_space<vmem>>, %arg4: memref<128x128xbf16, #tpu.memory_space<vmem>>, %arg5: memref<1x128xf32, #tpu.memory_space<vmem>>, %arg6: memref<48x128xf32, #tpu.memory_space<vmem>>) attributes {dimension_semantics = [#tpu.dimension_semantics<parallel>, #tpu.dimension_semantics<parallel>, #tpu.dimension_semantics<arbitrary>], iteration_bounds = array<i64: 1, 1, 1>, scalar_prefetch = 0 : i64, scratch_operands = 0 : i64, tpu.core_type = #tpu.core_type<tc>, window_params = [{transform_indices = @transform_0, window_bounds = array<i64: 48, 128>}, {transform_indices = @transform_1, window_bounds = array<i64: 128, 128>}, {transform_indices = @transform_2, window_bounds = array<i64: 1, 128>}, {transform_indices = @transform_3, window_bounds = array<i64: 48, 128>}]} {
    %c0_i32 = arith.constant 0 : i32
    %0 = arith.cmpi eq, %arg2, %c0_i32 : i32
    %1 = arith.extui %0 : i1 to i32
    %c0_i32_0 = arith.constant 0 : i32
    %2 = arith.cmpi ne, %1, %c0_i32_0 : i32
    scf.if %2 {
      %cst_10 = arith.constant 0.000000e+00 : f32
      %12 = vector.broadcast %cst_10 : f32 to vector<48x128xf32>
      %c0_11 = arith.constant 0 : index
      %c0_12 = arith.constant 0 : index
      %13 = vector.load %arg6[%c0_11, %c0_12] : memref<48x128xf32, #tpu.memory_space<vmem>>, vector<48x128xf32>
      tpu.vector_store %arg6[%c0_11, %c0_12], %12 {strides = array<i32>} : memref<48x128xf32, #tpu.memory_space<vmem>>, vector<48x128xf32>,
    } else {
    }
    %c0 = arith.constant 0 : index
    %c0_1 = arith.constant 0 : index
    %3 = vector.load %arg6[%c0, %c0_1] : memref<48x128xf32, #tpu.memory_space<vmem>>, vector<48x128xf32>
    %c0_2 = arith.constant 0 : index
    %c0_3 = arith.constant 0 : index
    %4 = vector.load %arg3[%c0_2, %c0_3] : memref<48x128xbf16, #tpu.memory_space<vmem>>, vector<48x128xbf16>
    %c0_4 = arith.constant 0 : index
    %c0_5 = arith.constant 0 : index
    %5 = vector.load %arg4[%c0_4, %c0_5] : memref<128x128xbf16, #tpu.memory_space<vmem>>, vector<128x128xbf16>
    %cst = arith.constant dense<0.000000e+00> : vector<48x128xf32>
    %6 = tpu.matmul %4, %5, %cst {dimension_numbers = #tpu.dot_dimension_numbers<[1], [0], [0], [1], [0, 0, 1, 1], [], []>} : vector<48x128xbf16>, vector<128x128xbf16>, vector<48x128xf32> -> vector<48x128xf32>
    %7 = arith.addf %3, %6 : vector<48x128xf32>
    %c0_6 = arith.constant 0 : index
    %c0_7 = arith.constant 0 : index
    %8 = vector.load %arg6[%c0_6, %c0_7] : memref<48x128xf32, #tpu.memory_space<vmem>>, vector<48x128xf32>
    tpu.vector_store %arg6[%c0_6, %c0_7], %7 {strides = array<i32>} : memref<48x128xf32, #tpu.memory_space<vmem>>, vector<48x128xf32>,
    %c0_i32_8 = arith.constant 0 : i32
    %9 = arith.cmpi eq, %arg2, %c0_i32_8 : i32
    %10 = arith.extui %9 : i1 to i32
    %c0_i32_9 = arith.constant 0 : i32
    %11 = arith.cmpi ne, %10, %c0_i32_9 : i32
    scf.if %11 {
      %c0_10 = arith.constant 0 : index
      %c0_11 = arith.constant 0 : index
      %12 = vector.load %arg6[%c0_10, %c0_11] : memref<48x128xf32, #tpu.memory_space<vmem>>, vector<48x128xf32>
      %c0_12 = arith.constant 0 : index
      %c0_13 = arith.constant 0 : index
      %13 = vector.load %arg5[%c0_12, %c0_13] : memref<1x128xf32, #tpu.memory_space<vmem>>, vector<1x128xf32>
      %14 = vector.broadcast %13 : vector<1x128xf32> to vector<48x128xf32>
      %15 = arith.addf %12, %14 : vector<48x128xf32>
      %16 = arith.negf %15 : vector<48x128xf32>
      %17 = math.exp %16 : vector<48x128xf32>
      %cst_14 = arith.constant 1.000000e+00 : f32
      %18 = vector.broadcast %cst_14 : f32 to vector<48x128xf32>
      %19 = arith.addf %18, %17 : vector<48x128xf32>
      %20 = arith.divf %18, %19 : vector<48x128xf32>
      %21 = arith.mulf %15, %20 : vector<48x128xf32>
      %c0_15 = arith.constant 0 : index
      %c0_16 = arith.constant 0 : index
      %22 = vector.load %arg6[%c0_15, %c0_16] : memref<48x128xf32, #tpu.memory_space<vmem>>, vector<48x128xf32>
      tpu.vector_store %arg6[%c0_15, %c0_16], %21 {strides = array<i32>} : memref<48x128xf32, #tpu.memory_space<vmem>>, vector<48x128xf32>,
    } else {
    }
    return
  }
  func.func @transform_0(%arg0: i32, %arg1: i32, %arg2: i32) -> (i32, i32) {
    %c0_i32 = arith.constant 0 : i32
    return %arg0, %arg2 : i32, i32
  }
  func.func @transform_1(%arg0: i32, %arg1: i32, %arg2: i32) -> (i32, i32) {
    %c0_i32 = arith.constant 0 : i32
    return %arg2, %arg1 : i32, i32
  }
  func.func @transform_2(%arg0: i32, %arg1: i32, %arg2: i32) -> (i32, i32) {
    %c0_i32 = arith.constant 0 : i32
    %c0_i32_0 = arith.constant 0 : i32
    return %c0_i32, %arg1 : i32, i32
  }
  func.func @transform_3(%arg0: i32, %arg1: i32, %arg2: i32) -> (i32, i32) {
    %c0_i32 = arith.constant 0 : i32
    return %arg0, %arg1 : i32, i32
  }
}

module attributes {stable_mosaic.version = 11 : i64} {
  func.func @_matmul_bias_act_kernel(%arg0: i32, %arg1: i32, %arg2: i32, %arg3: memref<72x128xbf16, #tpu.memory_space<vmem>>, %arg4: memref<128x128xbf16, #tpu.memory_space<vmem>>, %arg5: memref<1x128xf32, #tpu.memory_space<vmem>>, %arg6: memref<72x128xf32, #tpu.memory_space<vmem>>) attributes {dimension_semantics = [#tpu.dimension_semantics<parallel>, #tpu.dimension_semantics<parallel>, #tpu.dimension_semantics<arbitrary>], iteration_bounds = array<i64: 1, 1, 1>, scalar_prefetch = 0 : i64, scratch_operands = 0 : i64, tpu.core_type = #tpu.core_type<tc>, window_params = [{transform_indices = @transform_0, window_bounds = array<i64: 72, 128>}, {transform_indices = @transform_1, window_bounds = array<i64: 128, 128>}, {transform_indices = @transform_2, window_bounds = array<i64: 1, 128>}, {transform_indices = @transform_3, window_bounds = array<i64: 72, 128>}]} {
    %c0_i32 = arith.constant 0 : i32
    %0 = arith.cmpi eq, %arg2, %c0_i32 : i32
    %1 = arith.extui %0 : i1 to i32
    %c0_i32_0 = arith.constant 0 : i32
    %2 = arith.cmpi ne, %1, %c0_i32_0 : i32
    scf.if %2 {
      %cst_10 = arith.constant 0.000000e+00 : f32
      %12 = vector.broadcast %cst_10 : f32 to vector<72x128xf32>
      %c0_11 = arith.constant 0 : index
      %c0_12 = arith.constant 0 : index
      %13 = vector.load %arg6[%c0_11, %c0_12] : memref<72x128xf32, #tpu.memory_space<vmem>>, vector<72x128xf32>
      tpu.vector_store %arg6[%c0_11, %c0_12], %12 {strides = array<i32>} : memref<72x128xf32, #tpu.memory_space<vmem>>, vector<72x128xf32>,
    } else {
    }
    %c0 = arith.constant 0 : index
    %c0_1 = arith.constant 0 : index
    %3 = vector.load %arg6[%c0, %c0_1] : memref<72x128xf32, #tpu.memory_space<vmem>>, vector<72x128xf32>
    %c0_2 = arith.constant 0 : index
    %c0_3 = arith.constant 0 : index
    %4 = vector.load %arg3[%c0_2, %c0_3] : memref<72x128xbf16, #tpu.memory_space<vmem>>, vector<72x128xbf16>
    %c0_4 = arith.constant 0 : index
    %c0_5 = arith.constant 0 : index
    %5 = vector.load %arg4[%c0_4, %c0_5] : memref<128x128xbf16, #tpu.memory_space<vmem>>, vector<128x128xbf16>
    %cst = arith.constant dense<0.000000e+00> : vector<72x128xf32>
    %6 = tpu.matmul %4, %5, %cst {dimension_numbers = #tpu.dot_dimension_numbers<[1], [0], [0], [1], [0, 0, 1, 1], [], []>} : vector<72x128xbf16>, vector<128x128xbf16>, vector<72x128xf32> -> vector<72x128xf32>
    %7 = arith.addf %3, %6 : vector<72x128xf32>
    %c0_6 = arith.constant 0 : index
    %c0_7 = arith.constant 0 : index
    %8 = vector.load %arg6[%c0_6, %c0_7] : memref<72x128xf32, #tpu.memory_space<vmem>>, vector<72x128xf32>
    tpu.vector_store %arg6[%c0_6, %c0_7], %7 {strides = array<i32>} : memref<72x128xf32, #tpu.memory_space<vmem>>, vector<72x128xf32>,
    %c0_i32_8 = arith.constant 0 : i32
    %9 = arith.cmpi eq, %arg2, %c0_i32_8 : i32
    %10 = arith.extui %9 : i1 to i32
    %c0_i32_9 = arith.constant 0 : i32
    %11 = arith.cmpi ne, %10, %c0_i32_9 : i32
    scf.if %11 {
      %c0_10 = arith.constant 0 : index
      %c0_11 = arith.constant 0 : index
      %12 = vector.load %arg6[%c0_10, %c0_11] : memref<72x128xf32, #tpu.memory_space<vmem>>, vector<72x128xf32>
      %c0_12 = arith.constant 0 : index
      %c0_13 = arith.constant 0 : index
      %13 = vector.load %arg5[%c0_12, %c0_13] : memref<1x128xf32, #tpu.memory_space<vmem>>, vector<1x128xf32>
      %14 = vector.broadcast %13 : vector<1x128xf32> to vector<72x128xf32>
      %15 = arith.addf %12, %14 : vector<72x128xf32>
      %c0_14 = arith.constant 0 : index
      %c0_15 = arith.constant 0 : index
      %16 = vector.load %arg6[%c0_14, %c0_15] : memref<72x128xf32, #tpu.memory_space<vmem>>, vector<72x128xf32>
      tpu.vector_store %arg6[%c0_14, %c0_15], %15 {strides = array<i32>} : memref<72x128xf32, #tpu.memory_space<vmem>>, vector<72x128xf32>,
    } else {
    }
    return
  }
  func.func @transform_0(%arg0: i32, %arg1: i32, %arg2: i32) -> (i32, i32) {
    %c0_i32 = arith.constant 0 : i32
    return %arg0, %arg2 : i32, i32
  }
  func.func @transform_1(%arg0: i32, %arg1: i32, %arg2: i32) -> (i32, i32) {
    %c0_i32 = arith.constant 0 : i32
    return %arg2, %arg1 : i32, i32
  }
  func.func @transform_2(%arg0: i32, %arg1: i32, %arg2: i32) -> (i32, i32) {
    %c0_i32 = arith.constant 0 : i32
    %c0_i32_0 = arith.constant 0 : i32
    return %c0_i32, %arg1 : i32, i32
  }
  func.func @transform_3(%arg0: i32, %arg1: i32, %arg2: i32) -> (i32, i32) {
    %c0_i32 = arith.constant 0 : i32
    return %arg0, %arg1 : i32, i32
  }
}

module attributes {stable_mosaic.version = 11 : i64} {
  func.func @_bmm_kernel(%arg0: i32, %arg1: memref<1x24x128xbf16, #tpu.memory_space<vmem>>, %arg2: memref<1x128x128xbf16, #tpu.memory_space<vmem>>, %arg3: memref<1x24x128xf32, #tpu.memory_space<vmem>>) attributes {dimension_semantics = [#tpu.dimension_semantics<parallel>], iteration_bounds = array<i64: 8>, scalar_prefetch = 0 : i64, scratch_operands = 0 : i64, tpu.core_type = #tpu.core_type<tc>, window_params = [{transform_indices = @transform_0, window_bounds = array<i64: 1, 24, 128>}, {transform_indices = @transform_1, window_bounds = array<i64: 1, 128, 128>}, {transform_indices = @transform_2, window_bounds = array<i64: 1, 24, 128>}]} {
    %c0 = arith.constant 0 : index
    %c0_0 = arith.constant 0 : index
    %c0_1 = arith.constant 0 : index
    %0 = vector.load %arg1[%c0, %c0_0, %c0_1] : memref<1x24x128xbf16, #tpu.memory_space<vmem>>, vector<1x24x128xbf16>
    %1 = vector.shape_cast %0 : vector<1x24x128xbf16> to vector<24x128xbf16>
    %c0_2 = arith.constant 0 : index
    %c0_3 = arith.constant 0 : index
    %c0_4 = arith.constant 0 : index
    %2 = vector.load %arg2[%c0_2, %c0_3, %c0_4] : memref<1x128x128xbf16, #tpu.memory_space<vmem>>, vector<1x128x128xbf16>
    %3 = vector.shape_cast %2 : vector<1x128x128xbf16> to vector<128x128xbf16>
    %cst = arith.constant dense<0.000000e+00> : vector<24x128xf32>
    %4 = tpu.matmul %1, %3, %cst {dimension_numbers = #tpu.dot_dimension_numbers<[1], [0], [0], [1], [0, 0, 1, 1], [], []>} : vector<24x128xbf16>, vector<128x128xbf16>, vector<24x128xf32> -> vector<24x128xf32>
    %c0_5 = arith.constant 0 : index
    %c0_6 = arith.constant 0 : index
    %c0_7 = arith.constant 0 : index
    %5 = vector.load %arg3[%c0_5, %c0_6, %c0_7] : memref<1x24x128xf32, #tpu.memory_space<vmem>>, vector<1x24x128xf32>
    %6 = vector.shape_cast %5 : vector<1x24x128xf32> to vector<24x128xf32>
    %7 = vector.shape_cast %4 : vector<24x128xf32> to vector<1x24x128xf32>
    tpu.vector_store %arg3[%c0_5, %c0_6, %c0_7], %7 {strides = array<i32>} : memref<1x24x128xf32, #tpu.memory_space<vmem>>, vector<1x24x128xf32>,
    return
  }
  func.func @transform_0(%arg0: i32) -> (i32, i32, i32) {
    %c0_i32 = arith.constant 0 : i32
    %c0_i32_0 = arith.constant 0 : i32
    %c0_i32_1 = arith.constant 0 : i32
    return %arg0, %c0_i32, %c0_i32_0 : i32, i32, i32
  }
  func.func @transform_1(%arg0: i32) -> (i32, i32, i32) {
    %c0_i32 = arith.constant 0 : i32
    %c0_i32_0 = arith.constant 0 : i32
    %c0_i32_1 = arith.constant 0 : i32
    return %arg0, %c0_i32, %c0_i32_0 : i32, i32, i32
  }
  func.func @transform_2(%arg0: i32) -> (i32, i32, i32) {
    %c0_i32 = arith.constant 0 : i32
    %c0_i32_0 = arith.constant 0 : i32
    %c0_i32_1 = arith.constant 0 : i32
    return %arg0, %c0_i32, %c0_i32_0 : i32, i32, i32
  }
}

module attributes {stable_mosaic.version = 11 : i64} {
  func.func @_bmm_kernel(%arg0: i32, %arg1: memref<1x24x128xbf16, #tpu.memory_space<vmem>>, %arg2: memref<1x128x128xbf16, #tpu.memory_space<vmem>>, %arg3: memref<1x24x128xf32, #tpu.memory_space<vmem>>) attributes {dimension_semantics = [#tpu.dimension_semantics<parallel>], iteration_bounds = array<i64: 4>, scalar_prefetch = 0 : i64, scratch_operands = 0 : i64, tpu.core_type = #tpu.core_type<tc>, window_params = [{transform_indices = @transform_0, window_bounds = array<i64: 1, 24, 128>}, {transform_indices = @transform_1, window_bounds = array<i64: 1, 128, 128>}, {transform_indices = @transform_2, window_bounds = array<i64: 1, 24, 128>}]} {
    %c0 = arith.constant 0 : index
    %c0_0 = arith.constant 0 : index
    %c0_1 = arith.constant 0 : index
    %0 = vector.load %arg1[%c0, %c0_0, %c0_1] : memref<1x24x128xbf16, #tpu.memory_space<vmem>>, vector<1x24x128xbf16>
    %1 = vector.shape_cast %0 : vector<1x24x128xbf16> to vector<24x128xbf16>
    %c0_2 = arith.constant 0 : index
    %c0_3 = arith.constant 0 : index
    %c0_4 = arith.constant 0 : index
    %2 = vector.load %arg2[%c0_2, %c0_3, %c0_4] : memref<1x128x128xbf16, #tpu.memory_space<vmem>>, vector<1x128x128xbf16>
    %3 = vector.shape_cast %2 : vector<1x128x128xbf16> to vector<128x128xbf16>
    %cst = arith.constant dense<0.000000e+00> : vector<24x128xf32>
    %4 = tpu.matmul %1, %3, %cst {dimension_numbers = #tpu.dot_dimension_numbers<[1], [0], [0], [1], [0, 0, 1, 1], [], []>} : vector<24x128xbf16>, vector<128x128xbf16>, vector<24x128xf32> -> vector<24x128xf32>
    %c0_5 = arith.constant 0 : index
    %c0_6 = arith.constant 0 : index
    %c0_7 = arith.constant 0 : index
    %5 = vector.load %arg3[%c0_5, %c0_6, %c0_7] : memref<1x24x128xf32, #tpu.memory_space<vmem>>, vector<1x24x128xf32>
    %6 = vector.shape_cast %5 : vector<1x24x128xf32> to vector<24x128xf32>
    %7 = vector.shape_cast %4 : vector<24x128xf32> to vector<1x24x128xf32>
    tpu.vector_store %arg3[%c0_5, %c0_6, %c0_7], %7 {strides = array<i32>} : memref<1x24x128xf32, #tpu.memory_space<vmem>>, vector<1x24x128xf32>,
    return
  }
  func.func @transform_0(%arg0: i32) -> (i32, i32, i32) {
    %c0_i32 = arith.constant 0 : i32
    %c0_i32_0 = arith.constant 0 : i32
    %c0_i32_1 = arith.constant 0 : i32
    return %arg0, %c0_i32, %c0_i32_0 : i32, i32, i32
  }
  func.func @transform_1(%arg0: i32) -> (i32, i32, i32) {
    %c0_i32 = arith.constant 0 : i32
    %c0_i32_0 = arith.constant 0 : i32
    %c0_i32_1 = arith.constant 0 : i32
    return %arg0, %c0_i32, %c0_i32_0 : i32, i32, i32
  }
  func.func @transform_2(%arg0: i32) -> (i32, i32, i32) {
    %c0_i32 = arith.constant 0 : i32
    %c0_i32_0 = arith.constant 0 : i32
    %c0_i32_1 = arith.constant 0 : i32
    return %arg0, %c0_i32, %c0_i32_0 : i32, i32, i32
  }
}

module attributes {stable_mosaic.version = 11 : i64} {
  func.func @_dwconv_swish_kernel(%arg0: i32, %arg1: memref<1x38x32xf32, #tpu.memory_space<vmem>>, %arg2: memref<15x32xf32, #tpu.memory_space<vmem>>, %arg3: memref<1x32xf32, #tpu.memory_space<vmem>>, %arg4: memref<1x24x32xf32, #tpu.memory_space<vmem>>) attributes {dimension_semantics = [#tpu.dimension_semantics<parallel>], iteration_bounds = array<i64: 2>, scalar_prefetch = 0 : i64, scratch_operands = 0 : i64, tpu.core_type = #tpu.core_type<tc>, window_params = [{transform_indices = @transform_0, window_bounds = array<i64: 1, 38, 32>}, {pipeline_mode = #tpu.pipeline_mode<synchronous>, transform_indices = @transform_1, window_bounds = array<i64: 15, 32>}, {pipeline_mode = #tpu.pipeline_mode<synchronous>, transform_indices = @transform_2, window_bounds = array<i64: 1, 32>}, {transform_indices = @transform_3, window_bounds = array<i64: 1, 24, 32>}]} {
    %c0 = arith.constant 0 : index
    %c0_0 = arith.constant 0 : index
    %0 = vector.load %arg2[%c0, %c0_0] : memref<15x32xf32, #tpu.memory_space<vmem>>, vector<15x32xf32>
    %c0_1 = arith.constant 0 : index
    %c0_2 = arith.constant 0 : index
    %c0_3 = arith.constant 0 : index
    %1 = vector.load %arg1[%c0_1, %c0_2, %c0_3] : memref<1x38x32xf32, #tpu.memory_space<vmem>>, vector<1x24x32xf32>
    %2 = vector.shape_cast %1 : vector<1x24x32xf32> to vector<24x32xf32>
    %3 = vector.extract_strided_slice %0 {offsets = [0, 0], sizes = [1, 32], strides = [1, 1]} : vector<15x32xf32> to vector<1x32xf32>
    %4 = vector.broadcast %3 : vector<1x32xf32> to vector<24x32xf32>
    %5 = arith.mulf %2, %4 : vector<24x32xf32>
    %c0_4 = arith.constant 0 : index
    %c1 = arith.constant 1 : index
    %c0_5 = arith.constant 0 : index
    %6 = vector.load %arg1[%c0_4, %c1, %c0_5] : memref<1x38x32xf32, #tpu.memory_space<vmem>>, vector<1x24x32xf32>
    %7 = vector.shape_cast %6 : vector<1x24x32xf32> to vector<24x32xf32>
    %8 = vector.extract_strided_slice %0 {offsets = [1, 0], sizes = [1, 32], strides = [1, 1]} : vector<15x32xf32> to vector<1x32xf32>
    %9 = vector.broadcast %8 : vector<1x32xf32> to vector<24x32xf32>
    %10 = arith.mulf %7, %9 : vector<24x32xf32>
    %11 = arith.addf %5, %10 : vector<24x32xf32>
    %c0_6 = arith.constant 0 : index
    %c2 = arith.constant 2 : index
    %c0_7 = arith.constant 0 : index
    %12 = vector.load %arg1[%c0_6, %c2, %c0_7] : memref<1x38x32xf32, #tpu.memory_space<vmem>>, vector<1x24x32xf32>
    %13 = vector.shape_cast %12 : vector<1x24x32xf32> to vector<24x32xf32>
    %14 = vector.extract_strided_slice %0 {offsets = [2, 0], sizes = [1, 32], strides = [1, 1]} : vector<15x32xf32> to vector<1x32xf32>
    %15 = vector.broadcast %14 : vector<1x32xf32> to vector<24x32xf32>
    %16 = arith.mulf %13, %15 : vector<24x32xf32>
    %17 = arith.addf %11, %16 : vector<24x32xf32>
    %c0_8 = arith.constant 0 : index
    %c3 = arith.constant 3 : index
    %c0_9 = arith.constant 0 : index
    %18 = vector.load %arg1[%c0_8, %c3, %c0_9] : memref<1x38x32xf32, #tpu.memory_space<vmem>>, vector<1x24x32xf32>
    %19 = vector.shape_cast %18 : vector<1x24x32xf32> to vector<24x32xf32>
    %20 = vector.extract_strided_slice %0 {offsets = [3, 0], sizes = [1, 32], strides = [1, 1]} : vector<15x32xf32> to vector<1x32xf32>
    %21 = vector.broadcast %20 : vector<1x32xf32> to vector<24x32xf32>
    %22 = arith.mulf %19, %21 : vector<24x32xf32>
    %23 = arith.addf %17, %22 : vector<24x32xf32>
    %c0_10 = arith.constant 0 : index
    %c4 = arith.constant 4 : index
    %c0_11 = arith.constant 0 : index
    %24 = vector.load %arg1[%c0_10, %c4, %c0_11] : memref<1x38x32xf32, #tpu.memory_space<vmem>>, vector<1x24x32xf32>
    %25 = vector.shape_cast %24 : vector<1x24x32xf32> to vector<24x32xf32>
    %26 = vector.extract_strided_slice %0 {offsets = [4, 0], sizes = [1, 32], strides = [1, 1]} : vector<15x32xf32> to vector<1x32xf32>
    %27 = vector.broadcast %26 : vector<1x32xf32> to vector<24x32xf32>
    %28 = arith.mulf %25, %27 : vector<24x32xf32>
    %29 = arith.addf %23, %28 : vector<24x32xf32>
    %c0_12 = arith.constant 0 : index
    %c5 = arith.constant 5 : index
    %c0_13 = arith.constant 0 : index
    %30 = vector.load %arg1[%c0_12, %c5, %c0_13] : memref<1x38x32xf32, #tpu.memory_space<vmem>>, vector<1x24x32xf32>
    %31 = vector.shape_cast %30 : vector<1x24x32xf32> to vector<24x32xf32>
    %32 = vector.extract_strided_slice %0 {offsets = [5, 0], sizes = [1, 32], strides = [1, 1]} : vector<15x32xf32> to vector<1x32xf32>
    %33 = vector.broadcast %32 : vector<1x32xf32> to vector<24x32xf32>
    %34 = arith.mulf %31, %33 : vector<24x32xf32>
    %35 = arith.addf %29, %34 : vector<24x32xf32>
    %c0_14 = arith.constant 0 : index
    %c6 = arith.constant 6 : index
    %c0_15 = arith.constant 0 : index
    %36 = vector.load %arg1[%c0_14, %c6, %c0_15] : memref<1x38x32xf32, #tpu.memory_space<vmem>>, vector<1x24x32xf32>
    %37 = vector.shape_cast %36 : vector<1x24x32xf32> to vector<24x32xf32>
    %38 = vector.extract_strided_slice %0 {offsets = [6, 0], sizes = [1, 32], strides = [1, 1]} : vector<15x32xf32> to vector<1x32xf32>
    %39 = vector.broadcast %38 : vector<1x32xf32> to vector<24x32xf32>
    %40 = arith.mulf %37, %39 : vector<24x32xf32>
    %41 = arith.addf %35, %40 : vector<24x32xf32>
    %c0_16 = arith.constant 0 : index
    %c7 = arith.constant 7 : index
    %c0_17 = arith.constant 0 : index
    %42 = vector.load %arg1[%c0_16, %c7, %c0_17] : memref<1x38x32xf32, #tpu.memory_space<vmem>>, vector<1x24x32xf32>
    %43 = vector.shape_cast %42 : vector<1x24x32xf32> to vector<24x32xf32>
    %44 = vector.extract_strided_slice %0 {offsets = [7, 0], sizes = [1, 32], strides = [1, 1]} : vector<15x32xf32> to vector<1x32xf32>
    %45 = vector.broadcast %44 : vector<1x32xf32> to vector<24x32xf32>
    %46 = arith.mulf %43, %45 : vector<24x32xf32>
    %47 = arith.addf %41, %46 : vector<24x32xf32>
    %c0_18 = arith.constant 0 : index
    %c8 = arith.constant 8 : index
    %c0_19 = arith.constant 0 : index
    %48 = vector.load %arg1[%c0_18, %c8, %c0_19] : memref<1x38x32xf32, #tpu.memory_space<vmem>>, vector<1x24x32xf32>
    %49 = vector.shape_cast %48 : vector<1x24x32xf32> to vector<24x32xf32>
    %50 = vector.extract_strided_slice %0 {offsets = [8, 0], sizes = [1, 32], strides = [1, 1]} : vector<15x32xf32> to vector<1x32xf32>
    %51 = vector.broadcast %50 : vector<1x32xf32> to vector<24x32xf32>
    %52 = arith.mulf %49, %51 : vector<24x32xf32>
    %53 = arith.addf %47, %52 : vector<24x32xf32>
    %c0_20 = arith.constant 0 : index
    %c9 = arith.constant 9 : index
    %c0_21 = arith.constant 0 : index
    %54 = vector.load %arg1[%c0_20, %c9, %c0_21] : memref<1x38x32xf32, #tpu.memory_space<vmem>>, vector<1x24x32xf32>
    %55 = vector.shape_cast %54 : vector<1x24x32xf32> to vector<24x32xf32>
    %56 = vector.extract_strided_slice %0 {offsets = [9, 0], sizes = [1, 32], strides = [1, 1]} : vector<15x32xf32> to vector<1x32xf32>
    %57 = vector.broadcast %56 : vector<1x32xf32> to vector<24x32xf32>
    %58 = arith.mulf %55, %57 : vector<24x32xf32>
    %59 = arith.addf %53, %58 : vector<24x32xf32>
    %c0_22 = arith.constant 0 : index
    %c10 = arith.constant 10 : index
    %c0_23 = arith.constant 0 : index
    %60 = vector.load %arg1[%c0_22, %c10, %c0_23] : memref<1x38x32xf32, #tpu.memory_space<vmem>>, vector<1x24x32xf32>
    %61 = vector.shape_cast %60 : vector<1x24x32xf32> to vector<24x32xf32>
    %62 = vector.extract_strided_slice %0 {offsets = [10, 0], sizes = [1, 32], strides = [1, 1]} : vector<15x32xf32> to vector<1x32xf32>
    %63 = vector.broadcast %62 : vector<1x32xf32> to vector<24x32xf32>
    %64 = arith.mulf %61, %63 : vector<24x32xf32>
    %65 = arith.addf %59, %64 : vector<24x32xf32>
    %c0_24 = arith.constant 0 : index
    %c11 = arith.constant 11 : index
    %c0_25 = arith.constant 0 : index
    %66 = vector.load %arg1[%c0_24, %c11, %c0_25] : memref<1x38x32xf32, #tpu.memory_space<vmem>>, vector<1x24x32xf32>
    %67 = vector.shape_cast %66 : vector<1x24x32xf32> to vector<24x32xf32>
    %68 = vector.extract_strided_slice %0 {offsets = [11, 0], sizes = [1, 32], strides = [1, 1]} : vector<15x32xf32> to vector<1x32xf32>
    %69 = vector.broadcast %68 : vector<1x32xf32> to vector<24x32xf32>
    %70 = arith.mulf %67, %69 : vector<24x32xf32>
    %71 = arith.addf %65, %70 : vector<24x32xf32>
    %c0_26 = arith.constant 0 : index
    %c12 = arith.constant 12 : index
    %c0_27 = arith.constant 0 : index
    %72 = vector.load %arg1[%c0_26, %c12, %c0_27] : memref<1x38x32xf32, #tpu.memory_space<vmem>>, vector<1x24x32xf32>
    %73 = vector.shape_cast %72 : vector<1x24x32xf32> to vector<24x32xf32>
    %74 = vector.extract_strided_slice %0 {offsets = [12, 0], sizes = [1, 32], strides = [1, 1]} : vector<15x32xf32> to vector<1x32xf32>
    %75 = vector.broadcast %74 : vector<1x32xf32> to vector<24x32xf32>
    %76 = arith.mulf %73, %75 : vector<24x32xf32>
    %77 = arith.addf %71, %76 : vector<24x32xf32>
    %c0_28 = arith.constant 0 : index
    %c13 = arith.constant 13 : index
    %c0_29 = arith.constant 0 : index
    %78 = vector.load %arg1[%c0_28, %c13, %c0_29] : memref<1x38x32xf32, #tpu.memory_space<vmem>>, vector<1x24x32xf32>
    %79 = vector.shape_cast %78 : vector<1x24x32xf32> to vector<24x32xf32>
    %80 = vector.extract_strided_slice %0 {offsets = [13, 0], sizes = [1, 32], strides = [1, 1]} : vector<15x32xf32> to vector<1x32xf32>
    %81 = vector.broadcast %80 : vector<1x32xf32> to vector<24x32xf32>
    %82 = arith.mulf %79, %81 : vector<24x32xf32>
    %83 = arith.addf %77, %82 : vector<24x32xf32>
    %c0_30 = arith.constant 0 : index
    %c14 = arith.constant 14 : index
    %c0_31 = arith.constant 0 : index
    %84 = vector.load %arg1[%c0_30, %c14, %c0_31] : memref<1x38x32xf32, #tpu.memory_space<vmem>>, vector<1x24x32xf32>
    %85 = vector.shape_cast %84 : vector<1x24x32xf32> to vector<24x32xf32>
    %86 = vector.extract_strided_slice %0 {offsets = [14, 0], sizes = [1, 32], strides = [1, 1]} : vector<15x32xf32> to vector<1x32xf32>
    %87 = vector.broadcast %86 : vector<1x32xf32> to vector<24x32xf32>
    %88 = arith.mulf %85, %87 : vector<24x32xf32>
    %89 = arith.addf %83, %88 : vector<24x32xf32>
    %c0_32 = arith.constant 0 : index
    %c0_33 = arith.constant 0 : index
    %90 = vector.load %arg3[%c0_32, %c0_33] : memref<1x32xf32, #tpu.memory_space<vmem>>, vector<1x32xf32>
    %91 = vector.broadcast %90 : vector<1x32xf32> to vector<24x32xf32>
    %92 = arith.addf %89, %91 : vector<24x32xf32>
    %93 = arith.negf %92 : vector<24x32xf32>
    %94 = math.exp %93 : vector<24x32xf32>
    %cst = arith.constant 1.000000e+00 : f32
    %95 = vector.broadcast %cst : f32 to vector<24x32xf32>
    %96 = arith.addf %95, %94 : vector<24x32xf32>
    %97 = arith.divf %95, %96 : vector<24x32xf32>
    %98 = arith.mulf %92, %97 : vector<24x32xf32>
    %c0_34 = arith.constant 0 : index
    %c0_35 = arith.constant 0 : index
    %c0_36 = arith.constant 0 : index
    %99 = vector.load %arg4[%c0_34, %c0_35, %c0_36] : memref<1x24x32xf32, #tpu.memory_space<vmem>>, vector<1x24x32xf32>
    %100 = vector.shape_cast %99 : vector<1x24x32xf32> to vector<24x32xf32>
    %101 = vector.shape_cast %98 : vector<24x32xf32> to vector<1x24x32xf32>
    tpu.vector_store %arg4[%c0_34, %c0_35, %c0_36], %101 {strides = array<i32>} : memref<1x24x32xf32, #tpu.memory_space<vmem>>, vector<1x24x32xf32>,
    return
  }
  func.func @transform_0(%arg0: i32) -> (i32, i32, i32) {
    %c0_i32 = arith.constant 0 : i32
    %c0_i32_0 = arith.constant 0 : i32
    %c0_i32_1 = arith.constant 0 : i32
    return %arg0, %c0_i32, %c0_i32_0 : i32, i32, i32
  }
  func.func @transform_1(%arg0: i32) -> (i32, i32) {
    %c0_i32 = arith.constant 0 : i32
    %c0_i32_0 = arith.constant 0 : i32
    %c0_i32_1 = arith.constant 0 : i32
    return %c0_i32, %c0_i32_0 : i32, i32
  }
  func.func @transform_2(%arg0: i32) -> (i32, i32) {
    %c0_i32 = arith.constant 0 : i32
    %c0_i32_0 = arith.constant 0 : i32
    %c0_i32_1 = arith.constant 0 : i32
    return %c0_i32, %c0_i32_0 : i32, i32
  }
  func.func @transform_3(%arg0: i32) -> (i32, i32, i32) {
    %c0_i32 = arith.constant 0 : i32
    %c0_i32_0 = arith.constant 0 : i32
    %c0_i32_1 = arith.constant 0 : i32
    return %arg0, %c0_i32, %c0_i32_0 : i32, i32, i32
  }
}

module attributes {stable_mosaic.version = 11 : i64} {
  func.func @_matmul_bias_act_kernel(%arg0: i32, %arg1: i32, %arg2: i32, %arg3: memref<48x256xbf16, #tpu.memory_space<vmem>>, %arg4: memref<256x256xbf16, #tpu.memory_space<vmem>>, %arg5: memref<1x256xf32, #tpu.memory_space<vmem>>, %arg6: memref<48x256xf32, #tpu.memory_space<vmem>>) attributes {dimension_semantics = [#tpu.dimension_semantics<parallel>, #tpu.dimension_semantics<parallel>, #tpu.dimension_semantics<arbitrary>], iteration_bounds = array<i64: 1, 1, 1>, scalar_prefetch = 0 : i64, scratch_operands = 0 : i64, tpu.core_type = #tpu.core_type<tc>, window_params = [{transform_indices = @transform_0, window_bounds = array<i64: 48, 256>}, {transform_indices = @transform_1, window_bounds = array<i64: 256, 256>}, {transform_indices = @transform_2, window_bounds = array<i64: 1, 256>}, {transform_indices = @transform_3, window_bounds = array<i64: 48, 256>}]} {
    %c0_i32 = arith.constant 0 : i32
    %0 = arith.cmpi eq, %arg2, %c0_i32 : i32
    %1 = arith.extui %0 : i1 to i32
    %c0_i32_0 = arith.constant 0 : i32
    %2 = arith.cmpi ne, %1, %c0_i32_0 : i32
    scf.if %2 {
      %cst_10 = arith.constant 0.000000e+00 : f32
      %12 = vector.broadcast %cst_10 : f32 to vector<48x256xf32>
      %c0_11 = arith.constant 0 : index
      %c0_12 = arith.constant 0 : index
      %13 = vector.load %arg6[%c0_11, %c0_12] : memref<48x256xf32, #tpu.memory_space<vmem>>, vector<48x256xf32>
      tpu.vector_store %arg6[%c0_11, %c0_12], %12 {strides = array<i32>} : memref<48x256xf32, #tpu.memory_space<vmem>>, vector<48x256xf32>,
    } else {
    }
    %c0 = arith.constant 0 : index
    %c0_1 = arith.constant 0 : index
    %3 = vector.load %arg6[%c0, %c0_1] : memref<48x256xf32, #tpu.memory_space<vmem>>, vector<48x256xf32>
    %c0_2 = arith.constant 0 : index
    %c0_3 = arith.constant 0 : index
    %4 = vector.load %arg3[%c0_2, %c0_3] : memref<48x256xbf16, #tpu.memory_space<vmem>>, vector<48x256xbf16>
    %c0_4 = arith.constant 0 : index
    %c0_5 = arith.constant 0 : index
    %5 = vector.load %arg4[%c0_4, %c0_5] : memref<256x256xbf16, #tpu.memory_space<vmem>>, vector<256x256xbf16>
    %cst = arith.constant dense<0.000000e+00> : vector<48x256xf32>
    %6 = tpu.matmul %4, %5, %cst {dimension_numbers = #tpu.dot_dimension_numbers<[1], [0], [0], [1], [0, 0, 1, 1], [], []>} : vector<48x256xbf16>, vector<256x256xbf16>, vector<48x256xf32> -> vector<48x256xf32>
    %7 = arith.addf %3, %6 : vector<48x256xf32>
    %c0_6 = arith.constant 0 : index
    %c0_7 = arith.constant 0 : index
    %8 = vector.load %arg6[%c0_6, %c0_7] : memref<48x256xf32, #tpu.memory_space<vmem>>, vector<48x256xf32>
    tpu.vector_store %arg6[%c0_6, %c0_7], %7 {strides = array<i32>} : memref<48x256xf32, #tpu.memory_space<vmem>>, vector<48x256xf32>,
    %c0_i32_8 = arith.constant 0 : i32
    %9 = arith.cmpi eq, %arg2, %c0_i32_8 : i32
    %10 = arith.extui %9 : i1 to i32
    %c0_i32_9 = arith.constant 0 : i32
    %11 = arith.cmpi ne, %10, %c0_i32_9 : i32
    scf.if %11 {
      %c0_10 = arith.constant 0 : index
      %c0_11 = arith.constant 0 : index
      %12 = vector.load %arg6[%c0_10, %c0_11] : memref<48x256xf32, #tpu.memory_space<vmem>>, vector<48x256xf32>
      %c0_12 = arith.constant 0 : index
      %c0_13 = arith.constant 0 : index
      %13 = vector.load %arg5[%c0_12, %c0_13] : memref<1x256xf32, #tpu.memory_space<vmem>>, vector<1x256xf32>
      %14 = vector.broadcast %13 : vector<1x256xf32> to vector<48x256xf32>
      %15 = arith.addf %12, %14 : vector<48x256xf32>
      %cst_14 = arith.constant 0.000000e+00 : f32
      %16 = vector.broadcast %cst_14 : f32 to vector<48x256xf32>
      %17 = arith.maximumf %15, %16 : vector<48x256xf32>
      %c0_15 = arith.constant 0 : index
      %c0_16 = arith.constant 0 : index
      %18 = vector.load %arg6[%c0_15, %c0_16] : memref<48x256xf32, #tpu.memory_space<vmem>>, vector<48x256xf32>
      tpu.vector_store %arg6[%c0_15, %c0_16], %17 {strides = array<i32>} : memref<48x256xf32, #tpu.memory_space<vmem>>, vector<48x256xf32>,
    } else {
    }
    return
  }
  func.func @transform_0(%arg0: i32, %arg1: i32, %arg2: i32) -> (i32, i32) {
    %c0_i32 = arith.constant 0 : i32
    return %arg0, %arg2 : i32, i32
  }
  func.func @transform_1(%arg0: i32, %arg1: i32, %arg2: i32) -> (i32, i32) {
    %c0_i32 = arith.constant 0 : i32
    return %arg2, %arg1 : i32, i32
  }
  func.func @transform_2(%arg0: i32, %arg1: i32, %arg2: i32) -> (i32, i32) {
    %c0_i32 = arith.constant 0 : i32
    %c0_i32_0 = arith.constant 0 : i32
    return %c0_i32, %arg1 : i32, i32
  }
  func.func @transform_3(%arg0: i32, %arg1: i32, %arg2: i32) -> (i32, i32) {
    %c0_i32 = arith.constant 0 : i32
    return %arg0, %arg1 : i32, i32
  }
}

module attributes {stable_mosaic.version = 11 : i64} {
  func.func @_matmul_bias_act_kernel(%arg0: i32, %arg1: i32, %arg2: i32, %arg3: memref<48x256xbf16, #tpu.memory_space<vmem>>, %arg4: memref<256x128xbf16, #tpu.memory_space<vmem>>, %arg5: memref<1x128xf32, #tpu.memory_space<vmem>>, %arg6: memref<48x128xf32, #tpu.memory_space<vmem>>) attributes {dimension_semantics = [#tpu.dimension_semantics<parallel>, #tpu.dimension_semantics<parallel>, #tpu.dimension_semantics<arbitrary>], iteration_bounds = array<i64: 1, 1, 1>, scalar_prefetch = 0 : i64, scratch_operands = 0 : i64, tpu.core_type = #tpu.core_type<tc>, window_params = [{transform_indices = @transform_0, window_bounds = array<i64: 48, 256>}, {transform_indices = @transform_1, window_bounds = array<i64: 256, 128>}, {transform_indices = @transform_2, window_bounds = array<i64: 1, 128>}, {transform_indices = @transform_3, window_bounds = array<i64: 48, 128>}]} {
    %c0_i32 = arith.constant 0 : i32
    %0 = arith.cmpi eq, %arg2, %c0_i32 : i32
    %1 = arith.extui %0 : i1 to i32
    %c0_i32_0 = arith.constant 0 : i32
    %2 = arith.cmpi ne, %1, %c0_i32_0 : i32
    scf.if %2 {
      %cst_10 = arith.constant 0.000000e+00 : f32
      %12 = vector.broadcast %cst_10 : f32 to vector<48x128xf32>
      %c0_11 = arith.constant 0 : index
      %c0_12 = arith.constant 0 : index
      %13 = vector.load %arg6[%c0_11, %c0_12] : memref<48x128xf32, #tpu.memory_space<vmem>>, vector<48x128xf32>
      tpu.vector_store %arg6[%c0_11, %c0_12], %12 {strides = array<i32>} : memref<48x128xf32, #tpu.memory_space<vmem>>, vector<48x128xf32>,
    } else {
    }
    %c0 = arith.constant 0 : index
    %c0_1 = arith.constant 0 : index
    %3 = vector.load %arg6[%c0, %c0_1] : memref<48x128xf32, #tpu.memory_space<vmem>>, vector<48x128xf32>
    %c0_2 = arith.constant 0 : index
    %c0_3 = arith.constant 0 : index
    %4 = vector.load %arg3[%c0_2, %c0_3] : memref<48x256xbf16, #tpu.memory_space<vmem>>, vector<48x256xbf16>
    %c0_4 = arith.constant 0 : index
    %c0_5 = arith.constant 0 : index
    %5 = vector.load %arg4[%c0_4, %c0_5] : memref<256x128xbf16, #tpu.memory_space<vmem>>, vector<256x128xbf16>
    %cst = arith.constant dense<0.000000e+00> : vector<48x128xf32>
    %6 = tpu.matmul %4, %5, %cst {dimension_numbers = #tpu.dot_dimension_numbers<[1], [0], [0], [1], [0, 0, 1, 1], [], []>} : vector<48x256xbf16>, vector<256x128xbf16>, vector<48x128xf32> -> vector<48x128xf32>
    %7 = arith.addf %3, %6 : vector<48x128xf32>
    %c0_6 = arith.constant 0 : index
    %c0_7 = arith.constant 0 : index
    %8 = vector.load %arg6[%c0_6, %c0_7] : memref<48x128xf32, #tpu.memory_space<vmem>>, vector<48x128xf32>
    tpu.vector_store %arg6[%c0_6, %c0_7], %7 {strides = array<i32>} : memref<48x128xf32, #tpu.memory_space<vmem>>, vector<48x128xf32>,
    %c0_i32_8 = arith.constant 0 : i32
    %9 = arith.cmpi eq, %arg2, %c0_i32_8 : i32
    %10 = arith.extui %9 : i1 to i32
    %c0_i32_9 = arith.constant 0 : i32
    %11 = arith.cmpi ne, %10, %c0_i32_9 : i32
    scf.if %11 {
      %c0_10 = arith.constant 0 : index
      %c0_11 = arith.constant 0 : index
      %12 = vector.load %arg6[%c0_10, %c0_11] : memref<48x128xf32, #tpu.memory_space<vmem>>, vector<48x128xf32>
      %c0_12 = arith.constant 0 : index
      %c0_13 = arith.constant 0 : index
      %13 = vector.load %arg5[%c0_12, %c0_13] : memref<1x128xf32, #tpu.memory_space<vmem>>, vector<1x128xf32>
      %14 = vector.broadcast %13 : vector<1x128xf32> to vector<48x128xf32>
      %15 = arith.addf %12, %14 : vector<48x128xf32>
      %c0_14 = arith.constant 0 : index
      %c0_15 = arith.constant 0 : index
      %16 = vector.load %arg6[%c0_14, %c0_15] : memref<48x128xf32, #tpu.memory_space<vmem>>, vector<48x128xf32>
      tpu.vector_store %arg6[%c0_14, %c0_15], %15 {strides = array<i32>} : memref<48x128xf32, #tpu.memory_space<vmem>>, vector<48x128xf32>,
    } else {
    }
    return
  }
  func.func @transform_0(%arg0: i32, %arg1: i32, %arg2: i32) -> (i32, i32) {
    %c0_i32 = arith.constant 0 : i32
    return %arg0, %arg2 : i32, i32
  }
  func.func @transform_1(%arg0: i32, %arg1: i32, %arg2: i32) -> (i32, i32) {
    %c0_i32 = arith.constant 0 : i32
    return %arg2, %arg1 : i32, i32
  }
  func.func @transform_2(%arg0: i32, %arg1: i32, %arg2: i32) -> (i32, i32) {
    %c0_i32 = arith.constant 0 : i32
    %c0_i32_0 = arith.constant 0 : i32
    return %c0_i32, %arg1 : i32, i32
  }
  func.func @transform_3(%arg0: i32, %arg1: i32, %arg2: i32) -> (i32, i32) {
    %c0_i32 = arith.constant 0 : i32
    return %arg0, %arg1 : i32, i32
  }
}

module attributes {stable_mosaic.version = 11 : i64} {
  func.func @_asp_kernel(%arg0: memref<2x24x64xf32, #tpu.memory_space<vmem>>, %arg1: memref<2x24x64xf32, #tpu.memory_space<vmem>>, %arg2: memref<2x64xf32, #tpu.memory_space<vmem>>, %arg3: memref<2x64xf32, #tpu.memory_space<vmem>>) attributes {dimension_semantics = [], scalar_prefetch = 0 : i64, scratch_operands = 0 : i64, tpu.core_type = #tpu.core_type<tc>} {
    %c0 = arith.constant 0 : index
    %c0_0 = arith.constant 0 : index
    %c0_1 = arith.constant 0 : index
    %0 = vector.load %arg0[%c0, %c0_0, %c0_1] : memref<2x24x64xf32, #tpu.memory_space<vmem>>, vector<2x24x64xf32>
    %c0_2 = arith.constant 0 : index
    %c0_3 = arith.constant 0 : index
    %c0_4 = arith.constant 0 : index
    %1 = vector.load %arg1[%c0_2, %c0_3, %c0_4] : memref<2x24x64xf32, #tpu.memory_space<vmem>>, vector<2x24x64xf32>
    %2 = arith.mulf %0, %1 : vector<2x24x64xf32>
    %cst = arith.constant dense<0.000000e+00> : vector<2x64xf32>
    %3 = vector.multi_reduction <add>, %2, %cst [1] : vector<2x24x64xf32> to vector<2x64xf32>
    %4 = arith.mulf %0, %0 : vector<2x24x64xf32>
    %5 = arith.mulf %4, %1 : vector<2x24x64xf32>
    %cst_5 = arith.constant dense<0.000000e+00> : vector<2x64xf32>
    %6 = vector.multi_reduction <add>, %5, %cst_5 [1] : vector<2x24x64xf32> to vector<2x64xf32>
    %c0_6 = arith.constant 0 : index
    %c0_7 = arith.constant 0 : index
    %7 = vector.load %arg2[%c0_6, %c0_7] : memref<2x64xf32, #tpu.memory_space<vmem>>, vector<2x64xf32>
    tpu.vector_store %arg2[%c0_6, %c0_7], %3 {strides = array<i32>} : memref<2x64xf32, #tpu.memory_space<vmem>>, vector<2x64xf32>,
    %8 = arith.mulf %3, %3 : vector<2x64xf32>
    %9 = arith.subf %6, %8 : vector<2x64xf32>
    %cst_8 = arith.constant 9.99999974E-5 : f32
    %10 = vector.broadcast %cst_8 : f32 to vector<2x64xf32>
    %11 = arith.maximumf %9, %10 : vector<2x64xf32>
    %12 = math.sqrt %11 : vector<2x64xf32>
    %c0_9 = arith.constant 0 : index
    %c0_10 = arith.constant 0 : index
    %13 = vector.load %arg3[%c0_9, %c0_10] : memref<2x64xf32, #tpu.memory_space<vmem>>, vector<2x64xf32>
    tpu.vector_store %arg3[%c0_9, %c0_10], %12 {strides = array<i32>} : memref<2x64xf32, #tpu.memory_space<vmem>>, vector<2x64xf32>,
    return
  }
}

module attributes {stable_mosaic.version = 11 : i64} {
  func.func @_matmul_bias_act_kernel(%arg0: i32, %arg1: i32, %arg2: i32, %arg3: memref<8x128xbf16, #tpu.memory_space<vmem>>, %arg4: memref<128x128xbf16, #tpu.memory_space<vmem>>, %arg5: memref<1x128xf32, #tpu.memory_space<vmem>>, %arg6: memref<8x128xf32, #tpu.memory_space<vmem>>) attributes {dimension_semantics = [#tpu.dimension_semantics<parallel>, #tpu.dimension_semantics<parallel>, #tpu.dimension_semantics<arbitrary>], iteration_bounds = array<i64: 1, 1, 1>, scalar_prefetch = 0 : i64, scratch_operands = 0 : i64, tpu.core_type = #tpu.core_type<tc>, window_params = [{transform_indices = @transform_0, window_bounds = array<i64: 8, 128>}, {transform_indices = @transform_1, window_bounds = array<i64: 128, 128>}, {transform_indices = @transform_2, window_bounds = array<i64: 1, 128>}, {transform_indices = @transform_3, window_bounds = array<i64: 8, 128>}]} {
    %c0_i32 = arith.constant 0 : i32
    %0 = arith.cmpi eq, %arg2, %c0_i32 : i32
    %1 = arith.extui %0 : i1 to i32
    %c0_i32_0 = arith.constant 0 : i32
    %2 = arith.cmpi ne, %1, %c0_i32_0 : i32
    scf.if %2 {
      %cst_10 = arith.constant 0.000000e+00 : f32
      %12 = vector.broadcast %cst_10 : f32 to vector<8x128xf32>
      %c0_11 = arith.constant 0 : index
      %c0_12 = arith.constant 0 : index
      %13 = vector.load %arg6[%c0_11, %c0_12] : memref<8x128xf32, #tpu.memory_space<vmem>>, vector<8x128xf32>
      tpu.vector_store %arg6[%c0_11, %c0_12], %12 {strides = array<i32>} : memref<8x128xf32, #tpu.memory_space<vmem>>, vector<8x128xf32>,
    } else {
    }
    %c0 = arith.constant 0 : index
    %c0_1 = arith.constant 0 : index
    %3 = vector.load %arg6[%c0, %c0_1] : memref<8x128xf32, #tpu.memory_space<vmem>>, vector<8x128xf32>
    %c0_2 = arith.constant 0 : index
    %c0_3 = arith.constant 0 : index
    %4 = vector.load %arg3[%c0_2, %c0_3] : memref<8x128xbf16, #tpu.memory_space<vmem>>, vector<8x128xbf16>
    %c0_4 = arith.constant 0 : index
    %c0_5 = arith.constant 0 : index
    %5 = vector.load %arg4[%c0_4, %c0_5] : memref<128x128xbf16, #tpu.memory_space<vmem>>, vector<128x128xbf16>
    %cst = arith.constant dense<0.000000e+00> : vector<8x128xf32>
    %6 = tpu.matmul %4, %5, %cst {dimension_numbers = #tpu.dot_dimension_numbers<[1], [0], [0], [1], [0, 0, 1, 1], [], []>} : vector<8x128xbf16>, vector<128x128xbf16>, vector<8x128xf32> -> vector<8x128xf32>
    %7 = arith.addf %3, %6 : vector<8x128xf32>
    %c0_6 = arith.constant 0 : index
    %c0_7 = arith.constant 0 : index
    %8 = vector.load %arg6[%c0_6, %c0_7] : memref<8x128xf32, #tpu.memory_space<vmem>>, vector<8x128xf32>
    tpu.vector_store %arg6[%c0_6, %c0_7], %7 {strides = array<i32>} : memref<8x128xf32, #tpu.memory_space<vmem>>, vector<8x128xf32>,
    %c0_i32_8 = arith.constant 0 : i32
    %9 = arith.cmpi eq, %arg2, %c0_i32_8 : i32
    %10 = arith.extui %9 : i1 to i32
    %c0_i32_9 = arith.constant 0 : i32
    %11 = arith.cmpi ne, %10, %c0_i32_9 : i32
    scf.if %11 {
      %c0_10 = arith.constant 0 : index
      %c0_11 = arith.constant 0 : index
      %12 = vector.load %arg6[%c0_10, %c0_11] : memref<8x128xf32, #tpu.memory_space<vmem>>, vector<8x128xf32>
      %c0_12 = arith.constant 0 : index
      %c0_13 = arith.constant 0 : index
      %13 = vector.load %arg5[%c0_12, %c0_13] : memref<1x128xf32, #tpu.memory_space<vmem>>, vector<1x128xf32>
      %14 = vector.broadcast %13 : vector<1x128xf32> to vector<8x128xf32>
      %15 = arith.addf %12, %14 : vector<8x128xf32>
      %c0_14 = arith.constant 0 : index
      %c0_15 = arith.constant 0 : index
      %16 = vector.load %arg6[%c0_14, %c0_15] : memref<8x128xf32, #tpu.memory_space<vmem>>, vector<8x128xf32>
      tpu.vector_store %arg6[%c0_14, %c0_15], %15 {strides = array<i32>} : memref<8x128xf32, #tpu.memory_space<vmem>>, vector<8x128xf32>,
    } else {
    }
    return
  }
  func.func @transform_0(%arg0: i32, %arg1: i32, %arg2: i32) -> (i32, i32) {
    %c0_i32 = arith.constant 0 : i32
    return %arg0, %arg2 : i32, i32
  }
  func.func @transform_1(%arg0: i32, %arg1: i32, %arg2: i32) -> (i32, i32) {
    %c0_i32 = arith.constant 0 : i32
    return %arg2, %arg1 : i32, i32
  }
  func.func @transform_2(%arg0: i32, %arg1: i32, %arg2: i32) -> (i32, i32) {
    %c0_i32 = arith.constant 0 : i32
    %c0_i32_0 = arith.constant 0 : i32
    return %c0_i32, %arg1 : i32, i32
  }
  func.func @transform_3(%arg0: i32, %arg1: i32, %arg2: i32) -> (i32, i32) {
    %c0_i32 = arith.constant 0 : i32
    return %arg0, %arg1 : i32, i32
  }
}

</mosaic_0001>

<bundles_post_ra>
// kernel: conformer_forward.30
= control target key start
LH: loop header
LB: loop body
LE: loop exit
PB: predicated region body
PF: predicated region fallthrough
CT: control target
= control target key end

     0   :  { %v926_v0 = vmov 0.0|0.0   ;;  %s1501_s1 = inlined_call_operand.vmem [shape: f32[384,128], index: 1, kind: input, shape index: {}]   ;;  %s1502_s0 = inlined_call_operand.vmem [shape: f32[208,384], index: 0, kind: input, shape index: {}]   ;;  %s1503_s2 = inlined_call_operand.vmem [shape: f32[1,128], index: 2, kind: input, shape index: {}]   ;;  %s1504_s3 = inlined_call_operand.vmem [shape: f32[208,128], index: 3, kind: output, shape index: {}]  }
   0x1   :  { %844 = vmatprep.subr.bf16.mxu0 %v926_v0  ;;  %v148_v1 = vld [vmem:[%s1501_s1] sm:$0xff]  ;;  %v149_v2 = vld [vmem:[%s1501_s1 + $0x8] sm:$0xff]  ;;  %v150_v3 = vld [vmem:[%s1501_s1 + $0x10] sm:$0xff] }
   0x2   :  { %v845_v4 = vpack.c.bf16 %v149_v2, %v148_v1  ;;  %v151_v5 = vld [vmem:[%s1501_s1 + $0x18] sm:$0xff]  ;;  %v152_v7 = vld [vmem:[%s1501_s1 + $0x20] sm:$0xff]  ;;  %v153_v8 = vld [vmem:[%s1501_s1 + $0x28] sm:$0xff] }
   0x3   :  { %v848_v6 = vpack.c.bf16 %v151_v5, %v150_v3  ;;  %v180_v9 = vld [vmem:[%s1501_s1 + $0x100] sm:$0xff]  ;;  %v181_v10 = vld [vmem:[%s1501_s1 + $0x108] sm:$0xff]  ;;  %v182_v12 = vld [vmem:[%s1501_s1 + $0x110] sm:$0xff]  ;;  %v851_v13 = vpack.c.bf16 %v153_v8, %v152_v7 }
   0x4   :  { %846 = vmatpush1.bf16.msra.mxu0 %v845_v4  ;;  %v892_v11 = vpack.c.bf16 %v181_v10, %v180_v9  ;;  %v154_v14 = vld [vmem:[%s1501_s1 + $0x30] sm:$0xff]  ;;  %v183_v15 = vld [vmem:[%s1501_s1 + $0x118] sm:$0xff]  ;;  %v184_v18 = vld [vmem:[%s1501_s1 + $0x120] sm:$0xff] }
   0x5   :  { %847 = vmatprep.subr.bf16.mxu0 %v926_v0  ;;  %v155_v16 = vld [vmem:[%s1501_s1 + $0x38] sm:$0xff]  ;;  %v896_v17 = vpack.c.bf16 %v183_v15, %v182_v12  ;;  %v185_v19 = vld [vmem:[%s1501_s1 + $0x128] sm:$0xff]  ;;  %v186_v22 = vld [vmem:[%s1501_s1 + $0x130] sm:$0xff] }
   0x6   :  { %893 = vmatprep.subr.bf16.mxu1 %v892_v11  ;;  %v900_v20 = vpack.c.bf16 %v185_v19, %v184_v18  ;;  %v854_v21 = vpack.c.bf16 %v155_v16, %v154_v14  ;;  %v187_v23 = vld [vmem:[%s1501_s1 + $0x138] sm:$0xff]  ;;  %v156_v24 = vld [vmem:[%s1501_s1 + $0x40] sm:$0xff]  ;;  %v157_v25 = vld [vmem:[%s1501_s1 + $0x48] sm:$0xff] }
   0x7   :  { %895 = vmatpush3.bf16.msra.mxu1 %v892_v11  ;;  %v904_v26 = vpack.c.bf16 %v187_v23, %v186_v22  ;;  %v857_v27 = vpack.c.bf16 %v157_v25, %v156_v24  ;;  %v158_v28 = vld [vmem:[%s1501_s1 + $0x50] sm:$0xff]  ;;  %v188_v29 = vld [vmem:[%s1501_s1 + $0x140] sm:$0xff]  ;;  %v189_v30 = vld [vmem:[%s1501_s1 + $0x148] sm:$0xff] }
   0x8   :  { %849 = vmatpush1.bf16.msra.mxu0 %v848_v6  ;;  %897 = vmatprep.subr.bf16.mxu1 %v896_v17  ;;  %v159_v31 = vld [vmem:[%s1501_s1 + $0x58] sm:$0xff]  ;;  %v72_v32 = vld [vmem:[%s1502_s0 + $0x10] sm:$0xff]  ;;  %v71_v33 = vld [vmem:[%s1502_s0 + $0x8] sm:$0xff]  ;;  %v908_v34 = vpack.c.bf16 %v189_v30, %v188_v29 }
   0x9   :  { %850 = vmatprep.subr.bf16.mxu0 %v926_v0  ;;  %805 = vmatprep.mubr.f32.mxu1 %v72_v32  ;;  %v860_v35 = vpack.c.bf16 %v159_v31, %v158_v28  ;;  %v190_v36 = vld [vmem:[%s1501_s1 + $0x150] sm:$0xff]  ;;  %v191_v37 = vld [vmem:[%s1501_s1 + $0x158] sm:$0xff]  ;;  %v160_v38 = vld [vmem:[%s1501_s1 + $0x60] sm:$0xff] }
   0xa   :  { %260 = vmatprep.mubr.f32.mxu0 %v71_v33  ;;  %v161_v39 = vld [vmem:[%s1501_s1 + $0x68] sm:$0xff]  ;;  %v912_v40 = vpack.c.bf16 %v191_v37, %v190_v36  ;;  %v192_v42 = vld [vmem:[%s1501_s1 + $0x160] sm:$0xff]  ;;  %v162_v44 = vld [vmem:[%s1501_s1 + $0x70] sm:$0xff] }
   0xb   :  { %899 = vmatpush3.bf16.msra.mxu1 %v896_v17  ;;  %v863_v41 = vpack.c.bf16 %v161_v39, %v160_v38  ;;  %v193_v43 = vld [vmem:[%s1501_s1 + $0x168] sm:$0xff]  ;;  %v163_v45 = vld [vmem:[%s1501_s1 + $0x78] sm:$0xff]  ;;  %v194_v48 = vld [vmem:[%s1501_s1 + $0x170] sm:$0xff] }
   0xc   :  { %852 = vmatpush1.bf16.msra.mxu0 %v851_v13  ;;  %901 = vmatprep.subr.bf16.mxu1 %v900_v20  ;;  %v916_v46 = vpack.c.bf16 %v193_v43, %v192_v42  ;;  %v866_v47 = vpack.c.bf16 %v163_v45, %v162_v44  ;;  %v195_v49 = vld [vmem:[%s1501_s1 + $0x178] sm:$0xff]  ;;  %v164_v50 = vld [vmem:[%s1501_s1 + $0x80] sm:$0xff]  ;;  %v165_v51 = vld [vmem:[%s1501_s1 + $0x88] sm:$0xff] }
   0xd   :  { %853 = vmatprep.subr.bf16.mxu0 %v926_v0  ;;  %v920_v52 = vpack.c.bf16 %v195_v49, %v194_v48  ;;  %v869_v53 = vpack.c.bf16 %v165_v51, %v164_v50  ;;  %v166_v54 = vld [vmem:[%s1501_s1 + $0x90] sm:$0xff]  ;;  %v167_v55 = vld [vmem:[%s1501_s1 + $0x98] sm:$0xff]  ;;  %v168_v57 = vld [vmem:[%s1501_s1 + $0xa0] sm:$0xff] }
   0xe   :  { %v872_v56 = vpack.c.bf16 %v167_v55, %v166_v54  ;;  %v169_v58 = vld [vmem:[%s1501_s1 + $0xa8] sm:$0xff]  ;;  %v78_v60 = vld [vmem:[%s1502_s0 + $0x40] sm:$0xff]  ;;  %v170_v62 = vld [vmem:[%s1501_s1 + $0xb0] sm:$0xff] }
   0xf   :  { %903 = vmatpush3.bf16.msra.mxu1 %v900_v20  ;;  %v75_v59 = vld [vmem:[%s1502_s0 + $0x28] sm:$0xff]  ;;  %v875_v61 = vpack.c.bf16 %v169_v58, %v168_v57  ;;  %v171_v63 = vld [vmem:[%s1501_s1 + $0xb8] sm:$0xff]  ;;  %v84_v2 = vld [vmem:[%s1502_s0 + $0x70] sm:$0xff] }
  0x10   :  { %855 = vmatpush1.bf16.msra.mxu0 %v854_v21  ;;  %905 = vmatprep.subr.bf16.mxu1 %v904_v26  ;;  %v81_v1 = vld [vmem:[%s1502_s0 + $0x58] sm:$0xff]  ;;  %v878_v3 = vpack.c.bf16 %v171_v63, %v170_v62  ;;  %v172_v4 = vld [vmem:[%s1501_s1 + $0xc0] sm:$0xff]  ;;  %v173_v5 = vld [vmem:[%s1501_s1 + $0xc8] sm:$0xff] }
  0x11   :  { %856 = vmatprep.subr.bf16.mxu0 %v926_v0  ;;  %v87_v6 = vld [vmem:[%s1502_s0 + $0x88] sm:$0xff]  ;;  %v90_v7 = vld [vmem:[%s1502_s0 + $0xa0] sm:$0xff]  ;;  %v881_v8 = vpack.c.bf16 %v173_v5, %v172_v4  ;;  %v174_v9 = vld [vmem:[%s1501_s1 + $0xd0] sm:$0xff] }
  0x12   :  { %v175_v10 = vld [vmem:[%s1501_s1 + $0xd8] sm:$0xff]  ;;  %v96_v12 = vld [vmem:[%s1502_s0 + $0xd0] sm:$0xff]  ;;  %v176_v14 = vld [vmem:[%s1501_s1 + $0xe0] sm:$0xff] }
  0x13   :  { %907 = vmatpush3.bf16.msra.mxu1 %v904_v26  ;;  %v93_v11 = vld [vmem:[%s1502_s0 + $0xb8] sm:$0xff]  ;;  %v884_v13 = vpack.c.bf16 %v175_v10, %v174_v9  ;;  %v177_v15 = vld [vmem:[%s1501_s1 + $0xe8] sm:$0xff]  ;;  %v102_v17 = vld [vmem:[%s1502_s0 + $0x100] sm:$0xff] }
  0x14   :  { %858 = vmatpush1.bf16.msra.mxu0 %v857_v27  ;;  %909 = vmatprep.subr.bf16.mxu1 %v908_v34  ;;  %v99_v16 = vld [vmem:[%s1502_s0 + $0xe8] sm:$0xff]  ;;  %v887_v18 = vpack.c.bf16 %v177_v15, %v176_v14  ;;  %v178_v19 = vld [vmem:[%s1501_s1 + $0xf0] sm:$0xff]  ;;  %v179_v20 = vld [vmem:[%s1501_s1 + $0xf8] sm:$0xff] }
  0x15   :  { %859 = vmatprep.subr.bf16.mxu0 %v926_v0  ;;  %v105_v21 = vld [vmem:[%s1502_s0 + $0x118] sm:$0xff]  ;;  %v108_v22 = vld [vmem:[%s1502_s0 + $0x130] sm:$0xff]  ;;  %v890_v23 = vpack.c.bf16 %v179_v20, %v178_v19  ;;  %v111_v24 = vld [vmem:[%s1502_s0 + $0x148] sm:$0xff] }
  0x16   :  { %v114_v25 = vld [vmem:[%s1502_s0 + $0x160] sm:$0xff]  ;;  %v120_v28 = vld [vmem:[%s1502_s0 + $0x190] sm:$0xff]  ;;  %v73_v29 = vld [vmem:[%s1502_s0 + $0x18] sm:$0xff] }
  0x17   :  { %911 = vmatpush3.bf16.msra.mxu1 %v908_v34  ;;  %v70_v26 = vld [vmem:[%s1502_s0] sm:$0xff]  ;;  %v77_v30 = vld [vmem:[%s1502_s0 + $0x38] sm:$0xff]  ;;  %v123_v31 = vld [vmem:[%s1502_s0 + $0x1a8] sm:$0xff] }
  0x18   :  { %861 = vmatpush1.bf16.msra.mxu0 %v860_v35  ;;  %913 = vmatprep.subr.bf16.mxu1 %v912_v40  ;;  %v74_v27 = vld [vmem:[%s1502_s0 + $0x20] sm:$0xff]  ;;  %v76_v33 = vld [vmem:[%s1502_s0 + $0x30] sm:$0xff]  ;;  %v129_v35 = vld [vmem:[%s1502_s0 + $0x1d8] sm:$0xff] }
  0x19   :  { %862 = vmatprep.subr.bf16.mxu0 %v926_v0  ;;  %v126_v32 = vld [vmem:[%s1502_s0 + $0x1c0] sm:$0xff]  ;;  %v80_v34 = vld [vmem:[%s1502_s0 + $0x50] sm:$0xff]  ;;  %v79_v37 = vld [vmem:[%s1502_s0 + $0x48] sm:$0xff] }
  0x1a   :  { %v132_v36 = vld [vmem:[%s1502_s0 + $0x1f0] sm:$0xff]  ;;  %v83_v38 = vld [vmem:[%s1502_s0 + $0x68] sm:$0xff]  ;;  %v86_v42 = vld [vmem:[%s1502_s0 + $0x80] sm:$0xff] }
  0x1b   :  { %915 = vmatpush3.bf16.msra.mxu1 %v912_v40  ;;  %v135_v39 = vld [vmem:[%s1502_s0 + $0x208] sm:$0xff]  ;;  %v138_v40 = vld [vmem:[%s1502_s0 + $0x220] sm:$0xff]  ;;  %v141_v43 = vld [vmem:[%s1502_s0 + $0x238] sm:$0xff] }
  0x1c   :  { %864 = vmatpush1.bf16.msra.mxu0 %v863_v41  ;;  %917 = vmatprep.subr.bf16.mxu1 %v916_v46  ;;  %v82_v41 = vld [vmem:[%s1502_s0 + $0x60] sm:$0xff]  ;;  %v144_v44 = vld [vmem:[%s1502_s0 + $0x250] sm:$0xff]  ;;  %v85_v45 = vld [vmem:[%s1502_s0 + $0x78] sm:$0xff] }
  0x1d   :  { %865 = vmatprep.subr.bf16.mxu0 %v926_v0  ;;  %v88_v48 = vld [vmem:[%s1502_s0 + $0x90] sm:$0xff]  ;;  %v91_v50 = vld [vmem:[%s1502_s0 + $0xa8] sm:$0xff]  ;;  %v97_v54 = vld [vmem:[%s1502_s0 + $0xd8] sm:$0xff] }
  0x1e   :  { %v92_v49 = vld [vmem:[%s1502_s0 + $0xb0] sm:$0xff]  ;;  %v95_v51 = vld [vmem:[%s1502_s0 + $0xc8] sm:$0xff]  ;;  %v101_v55 = vld [vmem:[%s1502_s0 + $0xf8] sm:$0xff] }
  0x1f   :  { %919 = vmatpush3.bf16.msra.mxu1 %v916_v46  ;;  %v89_v46 = vld [vmem:[%s1502_s0 + $0x98] sm:$0xff]  ;;  %v104_v57 = vld [vmem:[%s1502_s0 + $0x110] sm:$0xff]  ;;  %v103_v58 = vld [vmem:[%s1502_s0 + $0x108] sm:$0xff] }
  0x20   :  { %867 = vmatpush1.bf16.msra.mxu0 %v866_v47  ;;  %921 = vmatprep.subr.bf16.mxu1 %v920_v52  ;;  %v147_v47 = vld [vmem:[%s1502_s0 + $0x268] sm:$0xff]  ;;  %v109_v62 = vld [vmem:[%s1502_s0 + $0x138] sm:$0xff]  ;;  %v118_v5 = vld [vmem:[%s1502_s0 + $0x180] sm:$0xff] }
  0x21   :  { %868 = vmatprep.subr.bf16.mxu0 %v926_v0  ;;  %v113_v63 = vld [vmem:[%s1502_s0 + $0x158] sm:$0xff]  ;;  %v119_v4 = vld [vmem:[%s1502_s0 + $0x188] sm:$0xff]  ;;  %v124_v9 = vld [vmem:[%s1502_s0 + $0x1b0] sm:$0xff] }
  0x22   :  { %v128_v10 = vld [vmem:[%s1502_s0 + $0x1d0] sm:$0xff]  ;;  %v134_v14 = vld [vmem:[%s1502_s0 + $0x200] sm:$0xff]  ;;  %v133_v15 = vld [vmem:[%s1502_s0 + $0x1f8] sm:$0xff] }
  0x23   :  { %923 = vmatpush3.bf16.msra.mxu1 %v920_v52  ;;  %v94_v52 = vld [vmem:[%s1502_s0 + $0xc0] sm:$0xff]  ;;  %v139_v19 = vld [vmem:[%s1502_s0 + $0x228] sm:$0xff] }
  0x24   :  { %870 = vmatpush1.bf16.msra.mxu0 %v869_v53  ;;  %v98_v53 = vld [vmem:[%s1502_s0 + $0xe0] sm:$0xff]  ;;  %v143_v20 = vld [vmem:[%s1502_s0 + $0x248] sm:$0xff] }
  0x25   :  { %871 = vmatprep.subr.bf16.mxu0 %v926_v0 }
  0x26   :  { %806 = vmatmul.mubr.f32.vlgmr.msra.gmra.mrb[0].mxu1 %v75_v59  ;;  %v107_v59 = vld [vmem:[%s1502_s0 + $0x128] sm:$0xff] }
  0x27   :  { %808 = vmatprep.mubr.f32.mxu1 %v78_v60  ;;  %v106_v60 = vld [vmem:[%s1502_s0 + $0x120] sm:$0xff] }
  0x28   :  { %873 = vmatpush1.bf16.msra.mxu0 %v872_v56  ;;  %v100_v56 = vld [vmem:[%s1502_s0 + $0xf0] sm:$0xff] }
  0x29   :  { %874 = vmatprep.subr.bf16.mxu0 %v926_v0 }
  0x2a   :  { %809 = vmatmul.mubr.f32.gmra.mrb[2].mxu1 %v81_v1  ;;  %v112_v1 = vld [vmem:[%s1502_s0 + $0x150] sm:$0xff] }
  0x2b   :  { %811 = vmatprep.mubr.f32.mxu1 %v84_v2  ;;  %v116_v2 = vld [vmem:[%s1502_s0 + $0x170] sm:$0xff] }
  0x2c   :  { %876 = vmatpush1.bf16.msra.mxu0 %v875_v61  ;;  %v110_v61 = vld [vmem:[%s1502_s0 + $0x140] sm:$0xff] }
  0x2d   :  { %877 = vmatprep.subr.bf16.mxu0 %v926_v0 }
  0x2e   :  { %812 = vmatmul.mubr.f32.gmra.mrb[4].mxu1 %v87_v6  ;;  %v122_v6 = vld [vmem:[%s1502_s0 + $0x1a0] sm:$0xff] }
  0x2f   :  { %814 = vmatprep.mubr.f32.mxu1 %v90_v7  ;;  %v121_v7 = vld [vmem:[%s1502_s0 + $0x198] sm:$0xff] }
  0x30   :  { %879 = vmatpush1.bf16.msra.mxu0 %v878_v3  ;;  %v115_v3 = vld [vmem:[%s1502_s0 + $0x168] sm:$0xff] }
  0x31   :  { %880 = vmatprep.subr.bf16.mxu0 %v926_v0 }
  0x32   :  { %815 = vmatmul.mubr.f32.gmra.mrb[6].mxu1 %v93_v11  ;;  %v127_v11 = vld [vmem:[%s1502_s0 + $0x1c8] sm:$0xff] }
  0x33   :  { %817 = vmatprep.mubr.f32.mxu1 %v96_v12  ;;  %v131_v12 = vld [vmem:[%s1502_s0 + $0x1e8] sm:$0xff] }
  0x34   :  { %882 = vmatpush1.bf16.msra.mxu0 %v881_v8  ;;  %v125_v8 = vld [vmem:[%s1502_s0 + $0x1b8] sm:$0xff] }
  0x35   :  { %883 = vmatprep.subr.bf16.mxu0 %v926_v0 }
  0x36   :  { %818 = vmatmul.mubr.f32.gmra.mrb[8].mxu1 %v99_v16  ;;  %v137_v16 = vld [vmem:[%s1502_s0 + $0x218] sm:$0xff] }
  0x37   :  { %820 = vmatprep.mubr.f32.mxu1 %v102_v17  ;;  %v136_v17 = vld [vmem:[%s1502_s0 + $0x210] sm:$0xff] }
  0x38   :  { %885 = vmatpush1.bf16.msra.mxu0 %v884_v13  ;;  %v130_v13 = vld [vmem:[%s1502_s0 + $0x1e0] sm:$0xff] }
  0x39   :  { %886 = vmatprep.subr.bf16.mxu0 %v926_v0 }
  0x3a   :  { %821 = vmatmul.mubr.f32.gmra.mrb[10].mxu1 %v105_v21  ;;  %v142_v21 = vld [vmem:[%s1502_s0 + $0x240] sm:$0xff] }
  0x3b   :  { %823 = vmatprep.mubr.f32.mxu1 %v108_v22  ;;  %v146_v22 = vld [vmem:[%s1502_s0 + $0x260] sm:$0xff] }
  0x3c   :  { %888 = vmatpush1.bf16.msra.mxu0 %v887_v18  ;;  %v140_v18 = vld [vmem:[%s1502_s0 + $0x230] sm:$0xff] }
  0x3d   :  { %889 = vmatprep.subr.bf16.mxu0 %v926_v0  ;;  %v117_v0 = vld [vmem:[%s1502_s0 + $0x178] sm:$0xff] }
  0x3e   :  { %824 = vmatmul.mubr.f32.gmra.mrb[12].mxu1 %v111_v24 }
  0x3f   :  { %826 = vmatprep.mubr.f32.mxu1 %v114_v25 }
  0x40   :  { %891 = vmatpush1.bf16.msra.mxu0 %v890_v23  ;;  %v145_v23 = vld [vmem:[%s1502_s0 + $0x258] sm:$0xff] }
  0x42   :  { %827 = vmatmul.mubr.f32.gmra.mrb[14].mxu1 %v117_v0 }
  0x43   :  { %261 = vmatmul.mubr.f32.vlgmr.msra.gmra.mrb[0].mxu0 %v70_v26  ;;  %829 = vmatprep.mubr.f32.mxu1 %v120_v28 }
  0x44   :  { %265 = vmatprep.mubr.f32.mxu0 %v74_v27 }
  0x46   :  { %830 = vmatmul.mubr.f32.gmra.mrb[16].mxu1 %v123_v31 }
  0x47   :  { %266 = vmatmul.mubr.f32.gmra.mrb[2].mxu0 %v73_v29  ;;  %832 = vmatprep.mubr.f32.mxu1 %v126_v32 }
  0x48   :  { %270 = vmatprep.mubr.f32.mxu0 %v77_v30 }
  0x4a   :  { %833 = vmatmul.mubr.f32.gmra.mrb[18].mxu1 %v129_v35 }
  0x4b   :  { %271 = vmatmul.mubr.f32.gmra.mrb[4].mxu0 %v76_v33  ;;  %835 = vmatprep.mubr.f32.mxu1 %v132_v36 }
  0x4c   :  { %275 = vmatprep.mubr.f32.mxu0 %v80_v34 }
  0x4e   :  { %836 = vmatmul.mubr.f32.gmra.mrb[20].mxu1 %v135_v39 }
  0x4f   :  { %276 = vmatmul.mubr.f32.gmra.mrb[6].mxu0 %v79_v37  ;;  %838 = vmatprep.mubr.f32.mxu1 %v138_v40  ;;  %v1354_v40 = vld [vmem:[%s1503_s2] ss:$0 sm:$0xff] }
  0x50   :  { %280 = vmatprep.mubr.f32.mxu0 %v83_v38 }
  0x52   :  { %839 = vmatmul.mubr.f32.gmra.mrb[22].mxu1 %v141_v43 }
  0x53   :  { %281 = vmatmul.mubr.f32.gmra.mrb[8].mxu0 %v82_v41  ;;  %841 = vmatprep.mubr.f32.mxu1 %v144_v44 }
  0x54   :  { %285 = vmatprep.mubr.f32.mxu0 %v86_v42 }
  0x56   :  { %842 = vmatmul.mubr.f32.gmra.mrb[24].mxu1 %v147_v47 }
  0x57   :  { %286 = vmatmul.mubr.f32.gmra.mrb[10].mxu0 %v85_v45 }
  0x58   :  { %290 = vmatprep.mubr.f32.mxu0 %v89_v46 }
  0x5b   :  { %291 = vmatmul.mubr.f32.gmra.mrb[12].mxu0 %v88_v48 }
  0x5c   :  { %295 = vmatprep.mubr.f32.mxu0 %v92_v49 }
  0x5f   :  { %296 = vmatmul.mubr.f32.gmra.mrb[14].mxu0 %v91_v50 }
  0x60   :  { %300 = vmatprep.mubr.f32.mxu0 %v95_v51 }
  0x63   :  { %301 = vmatmul.mubr.f32.gmra.mrb[16].mxu0 %v94_v52 }
  0x64   :  { %305 = vmatprep.mubr.f32.mxu0 %v98_v53 }
  0x67   :  { %306 = vmatmul.mubr.f32.gmra.mrb[18].mxu0 %v97_v54 }
  0x68   :  { %310 = vmatprep.mubr.f32.mxu0 %v101_v55 }
  0x6b   :  { %311 = vmatmul.mubr.f32.gmra.mrb[20].mxu0 %v100_v56 }
  0x6c   :  { %315 = vmatprep.mubr.f32.mxu0 %v104_v57 }
  0x6f   :  { %316 = vmatmul.mubr.f32.gmra.mrb[22].mxu0 %v103_v58 }
  0x70   :  { %320 = vmatprep.mubr.f32.mxu0 %v107_v59 }
  0x73   :  { %321 = vmatmul.mubr.f32.gmra.mrb[24].mxu0 %v106_v60 }
  0x74   :  { %325 = vmatprep.mubr.f32.mxu0 %v110_v61 }
  0x77   :  { %326 = vmatmul.mubr.f32.gmra.mrb[26].mxu0 %v109_v62 }
  0x78   :  { %330 = vmatprep.mubr.f32.mxu0 %v113_v63 }
  0x7b   :  { %331 = vmatmul.mubr.f32.gmra.mrb[28].mxu0 %v112_v1 }
  0x7c   :  { %335 = vmatprep.mubr.f32.mxu0 %v116_v2 }
  0x7f   :  { %336 = vmatmul.mubr.f32.gmra.mrb[30].mxu0 %v115_v3 }
  0x80   :  { %340 = vmatprep.mubr.f32.mxu0 %v119_v4 }
  0x83   :  { %341 = vmatmul.mubr.f32.gmra.mrb[32].mxu0 %v118_v5 }
  0x84   :  { %345 = vmatprep.mubr.f32.mxu0 %v122_v6 }
  0x87   :  { %346 = vmatmul.mubr.f32.gmra.mrb[34].mxu0 %v121_v7 }
  0x88   :  { %350 = vmatprep.mubr.f32.mxu0 %v125_v8 }
  0x8b   :  { %351 = vmatmul.mubr.f32.gmra.mrb[36].mxu0 %v124_v9 }
  0x8c   :  { %355 = vmatprep.mubr.f32.mxu0 %v128_v10 }
  0x8f   :  { %356 = vmatmul.mubr.f32.gmra.mrb[38].mxu0 %v127_v11 }
  0x90   :  { %360 = vmatprep.mubr.f32.mxu0 %v131_v12 }
  0x93   :  { %361 = vmatmul.mubr.f32.gmra.mrb[40].mxu0 %v130_v13 }
  0x94   :  { %365 = vmatprep.mubr.f32.mxu0 %v134_v14 }
  0x97   :  { %366 = vmatmul.mubr.f32.gmra.mrb[42].mxu0 %v133_v15 }
  0x98   :  { %370 = vmatprep.mubr.f32.mxu0 %v137_v16 }
  0x9b   :  { %371 = vmatmul.mubr.f32.gmra.mrb[44].mxu0 %v136_v17 }
  0x9c   :  { %375 = vmatprep.mubr.f32.mxu0 %v140_v18 }
  0x9f   :  { %376 = vmatmul.mubr.f32.gmra.mrb[46].mxu0 %v139_v19 }
  0xa0   :  { %380 = vmatprep.mubr.f32.mxu0 %v143_v20 }
  0xa3   :  { %381 = vmatmul.mubr.f32.gmra.mrb[48].mxu0 %v142_v21 }
  0xa4   :  { %385 = vmatprep.mubr.f32.mxu0 %v146_v22 }
  0xa7   :  { %386 = vmatmul.mubr.f32.gmra.mrb[50].mxu0 %v145_v23 }
  0xf9   :  { %v807_v24 = vpop.f32.mrb[0].mxu1 }
  0xfa   :  { %v457_v25 = vpop.f32.mrb[1].mxu1 }
  0xfd   :  { %v810_v26 = vpop.f32.mrb[2].mxu1 }
  0xfe   :  { %v467_v27 = vpop.f32.mrb[3].mxu1 }
 0x101   :  { %v813_v0 = vpop.f32.mrb[4].mxu1 }
 0x102   :  { %v477_v28 = vpop.f32.mrb[5].mxu1 }
 0x105   :  { %v816_v29 = vpop.f32.mrb[6].mxu1 }
 0x106   :  { %v487_v30 = vpop.f32.mrb[7].mxu1 }
 0x109   :  { %v1341_v31 = vpop.f32.mrb[8].mxu1 }
 0x10a   :  { %v497_v32 = vpop.f32.mrb[9].mxu1 }
 0x10d   :  { %v1343_v33 = vpop.f32.mrb[10].mxu1 }
 0x10e   :  { %v1345_v34 = vpop.f32.mrb[11].mxu1 }
 0x111   :  { %v1347_v35 = vpop.f32.mrb[12].mxu1 }
 0x112   :  { %v1349_v36 = vpop.f32.mrb[13].mxu1 }
 0x115   :  { %v1356_v41 = vpop.f32.mrb[14].mxu1 }
 0x116   :  { %v262_v37 = vpop.f32.mrb[0].mxu0  ;;  %v1358_v42 = vpop.f32.mrb[15].mxu1 }
 0x117   :  { %v458_v38 = vadd.f32 %v457_v25, %v262_v37  ;;  %v264_v39 = vpop.f32.mrb[1].mxu0 }
 0x119   :  { %v674_v44 = vadd.f32 %v1354_v40, %v458_v38  ;;  %v1361_v47 = vpop.f32.mrb[16].mxu1 }
 0x11a   :  { %v267_v43 = vpop.f32.mrb[2].mxu0  ;;  %v1366_v48 = vpop.f32.mrb[17].mxu1 }
 0x11b   :  { %v463_v45 = vadd.f32 %v807_v24, %v267_v43  ;;  %v269_v46 = vpop.f32.mrb[3].mxu0  ;;  %700 = vst [vmem:[%s1504_s3] sm:$0xff] %v674_v44 }
 0x11d   :  { %v675_v50 = vadd.f32 %v1354_v40, %v463_v45  ;;  %v1369_v53 = vpop.f32.mrb[18].mxu1 }
 0x11e   :  { %v272_v49 = vpop.f32.mrb[4].mxu0  ;;  %v1374_v54 = vpop.f32.mrb[19].mxu1 }
 0x11f   :  { %v468_v51 = vadd.f32 %v467_v27, %v272_v49  ;;  %v274_v52 = vpop.f32.mrb[5].mxu0  ;;  %701 = vst [vmem:[%s1504_s3 + $0x8] sm:$0xff] %v675_v50 }
 0x121   :  { %v676_v56 = vadd.f32 %v1354_v40, %v468_v51  ;;  %v1377_v59 = vpop.f32.mrb[20].mxu1 }
 0x122   :  { %v277_v55 = vpop.f32.mrb[6].mxu0  ;;  %v1382_v60 = vpop.f32.mrb[21].mxu1 }
 0x123   :  { %v473_v57 = vadd.f32 %v810_v26, %v277_v55  ;;  %v279_v58 = vpop.f32.mrb[7].mxu0  ;;  %702 = vst [vmem:[%s1504_s3 + $0x10] sm:$0xff] %v676_v56 }
 0x125   :  { %v677_v62 = vadd.f32 %v1354_v40, %v473_v57  ;;  %v1385_v2 = vpop.f32.mrb[22].mxu1 }
 0x126   :  { %v282_v61 = vpop.f32.mrb[8].mxu0  ;;  %v1390_v3 = vpop.f32.mrb[23].mxu1 }
 0x127   :  { %v478_v63 = vadd.f32 %v477_v28, %v282_v61  ;;  %v284_v1 = vpop.f32.mrb[9].mxu0  ;;  %703 = vst [vmem:[%s1504_s3 + $0x18] sm:$0xff] %v677_v62 }
 0x129   :  { %v678_v5 = vadd.f32 %v1354_v40, %v478_v63  ;;  %v1393_v8 = vpop.f32.mrb[24].mxu1 }
 0x12a   :  { %v287_v4 = vpop.f32.mrb[10].mxu0  ;;  %v1398_v9 = vpop.f32.mrb[25].mxu1 }
 0x12b   :  { %v483_v6 = vadd.f32 %v813_v0, %v287_v4  ;;  %v289_v7 = vpop.f32.mrb[11].mxu0  ;;  %704 = vst [vmem:[%s1504_s3 + $0x20] sm:$0xff] %v678_v5 }
 0x12d   :  { %v679_v11 = vadd.f32 %v1354_v40, %v483_v6 }
 0x12e   :  { %v292_v10 = vpop.f32.mrb[12].mxu0 }
 0x12f   :  { %v488_v12 = vadd.f32 %v487_v30, %v292_v10  ;;  %v294_v13 = vpop.f32.mrb[13].mxu0  ;;  %705 = vst [vmem:[%s1504_s3 + $0x28] sm:$0xff] %v679_v11 }
 0x131   :  { %v680_v15 = vadd.f32 %v1354_v40, %v488_v12 }
 0x132   :  { %v297_v14 = vpop.f32.mrb[14].mxu0 }
 0x133   :  { %v493_v16 = vadd.f32 %v816_v29, %v297_v14  ;;  %v299_v17 = vpop.f32.mrb[15].mxu0  ;;  %706 = vst [vmem:[%s1504_s3 + $0x30] sm:$0xff] %v680_v15 }
 0x135   :  { %v681_v19 = vadd.f32 %v1354_v40, %v493_v16 }
 0x136   :  { %v302_v18 = vpop.f32.mrb[16].mxu0 }
 0x137   :  { %v498_v20 = vadd.f32 %v497_v32, %v302_v18  ;;  %v304_v21 = vpop.f32.mrb[17].mxu0  ;;  %707 = vst [vmem:[%s1504_s3 + $0x38] sm:$0xff] %v681_v19 }
 0x139   :  { %v682_v23 = vadd.f32 %v1354_v40, %v498_v20 }
 0x13a   :  { %v307_v22 = vpop.f32.mrb[18].mxu0 }
 0x13b   :  { %v503_v24 = vadd.f32 %v1341_v31, %v307_v22  ;;  %v309_v25 = vpop.f32.mrb[19].mxu0  ;;  %708 = vst [vmem:[%s1504_s3 + $0x40] sm:$0xff] %v682_v23 }
 0x13d   :  { %v683_v27 = vadd.f32 %v1354_v40, %v503_v24 }
 0x13e   :  { %v312_v26 = vpop.f32.mrb[20].mxu0 }
 0x13f   :  { %v508_v0 = vadd.f32 %v1345_v34, %v312_v26  ;;  %v314_v28 = vpop.f32.mrb[21].mxu0  ;;  %709 = vst [vmem:[%s1504_s3 + $0x48] sm:$0xff] %v683_v27 }
 0x141   :  { %v684_v30 = vadd.f32 %v1354_v40, %v508_v0 }
 0x142   :  { %v317_v29 = vpop.f32.mrb[22].mxu0 }
 0x143   :  { %v513_v31 = vadd.f32 %v1343_v33, %v317_v29  ;;  %v319_v32 = vpop.f32.mrb[23].mxu0  ;;  %710 = vst [vmem:[%s1504_s3 + $0x50] sm:$0xff] %v684_v30 }
 0x145   :  { %v685_v38 = vadd.f32 %v1354_v40, %v513_v31 }
 0x146   :  { %v322_v37 = vpop.f32.mrb[24].mxu0 }
 0x147   :  { %v518_v34 = vadd.f32 %v1349_v36, %v322_v37  ;;  %v324_v39 = vpop.f32.mrb[25].mxu0  ;;  %711 = vst [vmem:[%s1504_s3 + $0x58] sm:$0xff] %v685_v38 }
 0x149   :  { %v686_v44 = vadd.f32 %v1354_v40, %v518_v34 }
 0x14a   :  { %v327_v43 = vpop.f32.mrb[26].mxu0 }
 0x14b   :  { %v523_v33 = vadd.f32 %v1347_v35, %v327_v43  ;;  %v329_v45 = vpop.f32.mrb[27].mxu0  ;;  %712 = vst [vmem:[%s1504_s3 + $0x60] sm:$0xff] %v686_v44 }
 0x14d   :  { %v687_v49 = vadd.f32 %v1354_v40, %v523_v33 }
 0x14e   :  { %v332_v46 = vpop.f32.mrb[28].mxu0 }
 0x14f   :  { %v528_v36 = vadd.f32 %v1358_v42, %v332_v46  ;;  %v334_v50 = vpop.f32.mrb[29].mxu0  ;;  %713 = vst [vmem:[%s1504_s3 + $0x68] sm:$0xff] %v687_v49 }
 0x151   :  { %v688_v52 = vadd.f32 %v1354_v40, %v528_v36 }
 0x152   :  { %v337_v51 = vpop.f32.mrb[30].mxu0 }
 0x153   :  { %v533_v35 = vadd.f32 %v1356_v41, %v337_v51  ;;  %v339_v55 = vpop.f32.mrb[31].mxu0  ;;  %714 = vst [vmem:[%s1504_s3 + $0x70] sm:$0xff] %v688_v52 }
 0x155   :  { %v689_v57 = vadd.f32 %v1354_v40, %v533_v35 }
 0x156   :  { %v342_v56 = vpop.f32.mrb[32].mxu0 }
 0x157   :  { %v538_v42 = vadd.f32 %v1366_v48, %v342_v56  ;;  %v344_v58 = vpop.f32.mrb[33].mxu0  ;;  %715 = vst [vmem:[%s1504_s3 + $0x78] sm:$0xff] %v689_v57 }
 0x159   :  { %v690_v62 = vadd.f32 %v1354_v40, %v538_v42 }
 0x15a   :  { %v347_v61 = vpop.f32.mrb[34].mxu0 }
 0x15b   :  { %v543_v41 = vadd.f32 %v1361_v47, %v347_v61  ;;  %v349_v63 = vpop.f32.mrb[35].mxu0  ;;  %716 = vst [vmem:[%s1504_s3 + $0x80] sm:$0xff] %v690_v62 }
 0x15d   :  { %v691_v4 = vadd.f32 %v1354_v40, %v543_v41 }
 0x15e   :  { %v352_v1 = vpop.f32.mrb[36].mxu0 }
 0x15f   :  { %v548_v48 = vadd.f32 %v1374_v54, %v352_v1  ;;  %v354_v5 = vpop.f32.mrb[37].mxu0  ;;  %717 = vst [vmem:[%s1504_s3 + $0x88] sm:$0xff] %v691_v4 }
 0x161   :  { %v692_v7 = vadd.f32 %v1354_v40, %v548_v48 }
 0x162   :  { %v357_v6 = vpop.f32.mrb[38].mxu0 }
 0x163   :  { %v553_v47 = vadd.f32 %v1369_v53, %v357_v6  ;;  %v359_v10 = vpop.f32.mrb[39].mxu0  ;;  %718 = vst [vmem:[%s1504_s3 + $0x90] sm:$0xff] %v692_v7 }
 0x165   :  { %v693_v12 = vadd.f32 %v1354_v40, %v553_v47 }
 0x166   :  { %v362_v11 = vpop.f32.mrb[40].mxu0 }
 0x167   :  { %v558_v54 = vadd.f32 %v1382_v60, %v362_v11  ;;  %v364_v13 = vpop.f32.mrb[41].mxu0  ;;  %719 = vst [vmem:[%s1504_s3 + $0x98] sm:$0xff] %v693_v12 }
 0x169   :  { %v694_v15 = vadd.f32 %v1354_v40, %v558_v54 }
 0x16a   :  { %v367_v14 = vpop.f32.mrb[42].mxu0 }
 0x16b   :  { %v563_v53 = vadd.f32 %v1377_v59, %v367_v14  ;;  %v369_v16 = vpop.f32.mrb[43].mxu0  ;;  %720 = vst [vmem:[%s1504_s3 + $0xa0] sm:$0xff] %v694_v15 }
 0x16d   :  { %v695_v18 = vadd.f32 %v1354_v40, %v563_v53 }
 0x16e   :  { %v372_v17 = vpop.f32.mrb[44].mxu0 }
 0x16f   :  { %v568_v60 = vadd.f32 %v1390_v3, %v372_v17  ;;  %v374_v19 = vpop.f32.mrb[45].mxu0  ;;  %721 = vst [vmem:[%s1504_s3 + $0xa8] sm:$0xff] %v695_v18 }
 0x171   :  { %v696_v21 = vadd.f32 %v1354_v40, %v568_v60 }
 0x172   :  { %v377_v20 = vpop.f32.mrb[46].mxu0 }
 0x173   :  { %v573_v59 = vadd.f32 %v1385_v2, %v377_v20  ;;  %v379_v22 = vpop.f32.mrb[47].mxu0  ;;  %722 = vst [vmem:[%s1504_s3 + $0xb0] sm:$0xff] %v696_v21 }
 0x175   :  { %v697_v24 = vadd.f32 %v1354_v40, %v573_v59 }
 0x176   :  { %v382_v23 = vpop.f32.mrb[48].mxu0 }
 0x177   :  { %v578_v3 = vadd.f32 %v1398_v9, %v382_v23  ;;  %v384_v25 = vpop.f32.mrb[49].mxu0  ;;  %723 = vst [vmem:[%s1504_s3 + $0xb8] sm:$0xff] %v697_v24 }
 0x179   :  { %v698_v27 = vadd.f32 %v1354_v40, %v578_v3 }
 0x17a   :  { %v387_v26 = vpop.f32.mrb[50].mxu0 }
 0x17b   :  { %v583_v2 = vadd.f32 %v1393_v8, %v387_v26  ;;  %v389_v0 = vpop.f32.mrb[51].mxu0  ;;  %724 = vst [vmem:[%s1504_s3 + $0xc0] sm:$0xff] %v698_v27 }
 0x17d   :  { %v699_v28 = vadd.f32 %v1354_v40, %v583_v2 }
 0x17f   :  { %725 = vst [vmem:[%s1504_s3 + $0xc8] sm:$0xff] %v699_v28 }

// kernel: conformer_forward.29
= control target key start
LH: loop header
LB: loop body
LE: loop exit
PB: predicated region body
PF: predicated region fallthrough
CT: control target
= control target key end

     0   :  { %s5485_s1 = inlined_call_operand.vmem [shape: f32[512,640], index: 1, kind: input, shape index: {}]   ;;  %s5486_s0 = inlined_call_operand.vmem [shape: f32[208,512], index: 0, kind: input, shape index: {}]   ;;  %s5487_s2 = inlined_call_operand.vmem [shape: f32[1,640], index: 2, kind: input, shape index: {}]   ;;  %s5488_s3 = inlined_call_operand.vmem [shape: f32[208,640], index: 3, kind: output, shape index: {}]  }
   0x1   :  { %v383_v0 = vld [vmem:[%s5485_s1 + $0x8] sm:$0xff]  ;;  %v388_v1 = vld [vmem:[%s5485_s1 + $0x30] sm:$0xff]  ;;  %v385_v2 = vld [vmem:[%s5485_s1 + $0x18] sm:$0xff] }
   0x2   :  { %v2660_v3 = vpack.c.bf16 %v388_v1, %v383_v0  ;;  %v390_v4 = vld [vmem:[%s5485_s1 + $0x40] sm:$0xff]  ;;  %v387_v6 = vld [vmem:[%s5485_s1 + $0x28] sm:$0xff]  ;;  %v384_v9 = vld [vmem:[%s5485_s1 + $0x10] sm:$0xff] }
   0x3   :  { %v382_v5 = vld [vmem:[%s5485_s1] sm:$0xff]  ;;  %v2788_v7 = vpack.c.bf16 %v390_v4, %v385_v2  ;;  %v389_v10 = vld [vmem:[%s5485_s1 + $0x38] sm:$0xff]  ;;  %v395_v14 = vld [vmem:[%s5485_s1 + $0x68] sm:$0xff] }
   0x4   :  { %v2662_v8 = vpack.c.bf16 %v387_v6, %v382_v5  ;;  %v393_v11 = vld [vmem:[%s5485_s1 + $0x58] sm:$0xff]  ;;  %2661 = vmatprep.subr.bf16.mxu0 %v2660_v3  ;;  %v2790_v12 = vpack.c.bf16 %v389_v10, %v384_v9  ;;  %v398_v13 = vld [vmem:[%s5485_s1 + $0x80] sm:$0xff]  ;;  %v400_v15 = vld [vmem:[%s5485_s1 + $0x90] sm:$0xff] }
   0x5   :  { %2789 = vmatprep.subr.bf16.mxu1 %v2788_v7  ;;  %v2664_v16 = vpack.c.bf16 %v398_v13, %v393_v11  ;;  %v2792_v17 = vpack.c.bf16 %v400_v15, %v395_v14  ;;  %v392_v18 = vld [vmem:[%s5485_s1 + $0x50] sm:$0xff]  ;;  %v397_v19 = vld [vmem:[%s5485_s1 + $0x78] sm:$0xff]  ;;  %v394_v20 = vld [vmem:[%s5485_s1 + $0x60] sm:$0xff] }
   0x6   :  { %2663 = vmatpush1.bf16.msra.mxu0 %v2662_v8  ;;  %2791 = vmatpush1.bf16.msra.mxu1 %v2790_v12  ;;  %v2666_v21 = vpack.c.bf16 %v397_v19, %v392_v18  ;;  %v399_v22 = vld [vmem:[%s5485_s1 + $0x88] sm:$0xff]  ;;  %v408_v24 = vld [vmem:[%s5485_s1 + $0xd0] sm:$0xff]  ;;  %v405_v27 = vld [vmem:[%s5485_s1 + $0xb8] sm:$0xff] }
   0x7   :  { %v403_v23 = vld [vmem:[%s5485_s1 + $0xa8] sm:$0xff]  ;;  %2665 = vmatprep.subr.bf16.mxu0 %v2664_v16  ;;  %2793 = vmatprep.subr.bf16.mxu1 %v2792_v17  ;;  %v2794_v25 = vpack.c.bf16 %v399_v22, %v394_v20  ;;  %v410_v28 = vld [vmem:[%s5485_s1 + $0xe0] sm:$0xff]  ;;  %v404_v32 = vld [vmem:[%s5485_s1 + $0xb0] sm:$0xff] }
   0x8   :  { %v2668_v26 = vpack.c.bf16 %v408_v24, %v403_v23  ;;  %v402_v29 = vld [vmem:[%s5485_s1 + $0xa0] sm:$0xff]  ;;  %v2796_v30 = vpack.c.bf16 %v410_v28, %v405_v27  ;;  %v407_v31 = vld [vmem:[%s5485_s1 + $0xc8] sm:$0xff]  ;;  %v409_v33 = vld [vmem:[%s5485_s1 + $0xd8] sm:$0xff] }
   0x9   :  { %v2670_v34 = vpack.c.bf16 %v407_v31, %v402_v29  ;;  %v413_v35 = vld [vmem:[%s5485_s1 + $0xf8] sm:$0xff]  ;;  %v418_v36 = vld [vmem:[%s5485_s1 + $0x120] sm:$0xff]  ;;  %v415_v37 = vld [vmem:[%s5485_s1 + $0x108] sm:$0xff]  ;;  %v2798_v38 = vpack.c.bf16 %v409_v33, %v404_v32 }
   0xa   :  { %2667 = vmatpush1.bf16.msra.mxu0 %v2666_v21  ;;  %2795 = vmatpush1.bf16.msra.mxu1 %v2794_v25  ;;  %v2672_v39 = vpack.c.bf16 %v418_v36, %v413_v35  ;;  %v420_v40 = vld [vmem:[%s5485_s1 + $0x130] sm:$0xff]  ;;  %v417_v42 = vld [vmem:[%s5485_s1 + $0x118] sm:$0xff]  ;;  %v414_v44 = vld [vmem:[%s5485_s1 + $0x100] sm:$0xff] }
   0xb   :  { %2669 = vmatprep.subr.bf16.mxu0 %v2668_v26  ;;  %v412_v41 = vld [vmem:[%s5485_s1 + $0xf0] sm:$0xff]  ;;  %2797 = vmatprep.subr.bf16.mxu1 %v2796_v30  ;;  %v2800_v43 = vpack.c.bf16 %v420_v40, %v415_v37  ;;  %v419_v45 = vld [vmem:[%s5485_s1 + $0x128] sm:$0xff]  ;;  %v425_v48 = vld [vmem:[%s5485_s1 + $0x158] sm:$0xff] }
   0xc   :  { %v423_v46 = vld [vmem:[%s5485_s1 + $0x148] sm:$0xff]  ;;  %v428_v47 = vld [vmem:[%s5485_s1 + $0x170] sm:$0xff]  ;;  %v430_v49 = vld [vmem:[%s5485_s1 + $0x180] sm:$0xff]  ;;  %v2674_v50 = vpack.c.bf16 %v417_v42, %v412_v41  ;;  %v2802_v51 = vpack.c.bf16 %v419_v45, %v414_v44 }
   0xd   :  { %v2676_v52 = vpack.c.bf16 %v428_v47, %v423_v46  ;;  %v422_v53 = vld [vmem:[%s5485_s1 + $0x140] sm:$0xff]  ;;  %v427_v54 = vld [vmem:[%s5485_s1 + $0x168] sm:$0xff]  ;;  %v424_v55 = vld [vmem:[%s5485_s1 + $0x150] sm:$0xff]  ;;  %v2804_v56 = vpack.c.bf16 %v430_v49, %v425_v48 }
   0xe   :  { %2671 = vmatpush1.bf16.msra.mxu0 %v2670_v34  ;;  %2799 = vmatpush1.bf16.msra.mxu1 %v2798_v38  ;;  %v429_v57 = vld [vmem:[%s5485_s1 + $0x178] sm:$0xff]  ;;  %v438_v59 = vld [vmem:[%s5485_s1 + $0x1c0] sm:$0xff]  ;;  %v435_v60 = vld [vmem:[%s5485_s1 + $0x1a8] sm:$0xff]  ;;  %v2678_v62 = vpack.c.bf16 %v427_v54, %v422_v53 }
   0xf   :  { %2673 = vmatprep.subr.bf16.mxu0 %v2672_v39  ;;  %2801 = vmatprep.subr.bf16.mxu1 %v2800_v43  ;;  %v433_v58 = vld [vmem:[%s5485_s1 + $0x198] sm:$0xff]  ;;  %v440_v61 = vld [vmem:[%s5485_s1 + $0x1d0] sm:$0xff]  ;;  %v2806_v63 = vpack.c.bf16 %v429_v57, %v424_v55  ;;  %v434_v3 = vld [vmem:[%s5485_s1 + $0x1a0] sm:$0xff] }
  0x10   :  { %v2680_v0 = vpack.c.bf16 %v438_v59, %v433_v58  ;;  %v432_v1 = vld [vmem:[%s5485_s1 + $0x190] sm:$0xff]  ;;  %v437_v2 = vld [vmem:[%s5485_s1 + $0x1b8] sm:$0xff]  ;;  %v2808_v4 = vpack.c.bf16 %v440_v61, %v435_v60  ;;  %v439_v5 = vld [vmem:[%s5485_s1 + $0x1c8] sm:$0xff] }
  0x11   :  { %v443_v6 = vld [vmem:[%s5485_s1 + $0x1e8] sm:$0xff]  ;;  %v448_v7 = vld [vmem:[%s5485_s1 + $0x210] sm:$0xff]  ;;  %v445_v8 = vld [vmem:[%s5485_s1 + $0x1f8] sm:$0xff]  ;;  %v2682_v10 = vpack.c.bf16 %v437_v2, %v432_v1  ;;  %v2810_v11 = vpack.c.bf16 %v439_v5, %v434_v3 }
  0x12   :  { %2675 = vmatpush1.bf16.msra.mxu0 %v2674_v50  ;;  %2803 = vmatpush1.bf16.msra.mxu1 %v2802_v51  ;;  %v450_v9 = vld [vmem:[%s5485_s1 + $0x220] sm:$0xff]  ;;  %v2684_v12 = vpack.c.bf16 %v448_v7, %v443_v6  ;;  %v447_v14 = vld [vmem:[%s5485_s1 + $0x208] sm:$0xff]  ;;  %v444_v15 = vld [vmem:[%s5485_s1 + $0x1f0] sm:$0xff] }
  0x13   :  { %2677 = vmatprep.subr.bf16.mxu0 %v2676_v52  ;;  %2805 = vmatprep.subr.bf16.mxu1 %v2804_v56  ;;  %v442_v13 = vld [vmem:[%s5485_s1 + $0x1e0] sm:$0xff]  ;;  %v2812_v16 = vpack.c.bf16 %v450_v9, %v445_v8  ;;  %v449_v17 = vld [vmem:[%s5485_s1 + $0x218] sm:$0xff]  ;;  %v455_v20 = vld [vmem:[%s5485_s1 + $0x248] sm:$0xff] }
  0x14   :  { %v453_v18 = vld [vmem:[%s5485_s1 + $0x238] sm:$0xff]  ;;  %v458_v19 = vld [vmem:[%s5485_s1 + $0x260] sm:$0xff]  ;;  %v460_v21 = vld [vmem:[%s5485_s1 + $0x270] sm:$0xff]  ;;  %v2686_v22 = vpack.c.bf16 %v447_v14, %v442_v13  ;;  %v2814_v23 = vpack.c.bf16 %v449_v17, %v444_v15 }
  0x15   :  { %v2688_v24 = vpack.c.bf16 %v458_v19, %v453_v18  ;;  %v452_v25 = vld [vmem:[%s5485_s1 + $0x230] sm:$0xff]  ;;  %v457_v26 = vld [vmem:[%s5485_s1 + $0x258] sm:$0xff]  ;;  %v454_v27 = vld [vmem:[%s5485_s1 + $0x240] sm:$0xff]  ;;  %v2816_v28 = vpack.c.bf16 %v460_v21, %v455_v20 }
  0x16   :  { %2679 = vmatpush1.bf16.msra.mxu0 %v2678_v62  ;;  %2807 = vmatpush1.bf16.msra.mxu1 %v2806_v63  ;;  %v459_v29 = vld [vmem:[%s5485_s1 + $0x268] sm:$0xff]  ;;  %v468_v31 = vld [vmem:[%s5485_s1 + $0x2b0] sm:$0xff]  ;;  %v465_v32 = vld [vmem:[%s5485_s1 + $0x298] sm:$0xff]  ;;  %v2690_v34 = vpack.c.bf16 %v457_v26, %v452_v25 }
  0x17   :  { %2681 = vmatprep.subr.bf16.mxu0 %v2680_v0  ;;  %2809 = vmatprep.subr.bf16.mxu1 %v2808_v4  ;;  %v463_v30 = vld [vmem:[%s5485_s1 + $0x288] sm:$0xff]  ;;  %v470_v33 = vld [vmem:[%s5485_s1 + $0x2c0] sm:$0xff]  ;;  %v2818_v35 = vpack.c.bf16 %v459_v29, %v454_v27  ;;  %v464_v39 = vld [vmem:[%s5485_s1 + $0x290] sm:$0xff] }
  0x18   :  { %v2692_v36 = vpack.c.bf16 %v468_v31, %v463_v30  ;;  %v462_v37 = vld [vmem:[%s5485_s1 + $0x280] sm:$0xff]  ;;  %v467_v38 = vld [vmem:[%s5485_s1 + $0x2a8] sm:$0xff]  ;;  %v2820_v40 = vpack.c.bf16 %v470_v33, %v465_v32  ;;  %v469_v41 = vld [vmem:[%s5485_s1 + $0x2b8] sm:$0xff] }
  0x19   :  { %v473_v42 = vld [vmem:[%s5485_s1 + $0x2d8] sm:$0xff]  ;;  %v478_v43 = vld [vmem:[%s5485_s1 + $0x300] sm:$0xff]  ;;  %v475_v44 = vld [vmem:[%s5485_s1 + $0x2e8] sm:$0xff]  ;;  %v2694_v46 = vpack.c.bf16 %v467_v38, %v462_v37  ;;  %v2822_v47 = vpack.c.bf16 %v469_v41, %v464_v39 }
  0x1a   :  { %2683 = vmatpush1.bf16.msra.mxu0 %v2682_v10  ;;  %2811 = vmatpush1.bf16.msra.mxu1 %v2810_v11  ;;  %v480_v45 = vld [vmem:[%s5485_s1 + $0x310] sm:$0xff]  ;;  %v2696_v48 = vpack.c.bf16 %v478_v43, %v473_v42  ;;  %v477_v50 = vld [vmem:[%s5485_s1 + $0x2f8] sm:$0xff]  ;;  %v474_v51 = vld [vmem:[%s5485_s1 + $0x2e0] sm:$0xff] }
  0x1b   :  { %2685 = vmatprep.subr.bf16.mxu0 %v2684_v12  ;;  %2813 = vmatprep.subr.bf16.mxu1 %v2812_v16  ;;  %v472_v49 = vld [vmem:[%s5485_s1 + $0x2d0] sm:$0xff]  ;;  %v2824_v52 = vpack.c.bf16 %v480_v45, %v475_v44  ;;  %v479_v53 = vld [vmem:[%s5485_s1 + $0x308] sm:$0xff]  ;;  %v485_v56 = vld [vmem:[%s5485_s1 + $0x338] sm:$0xff] }
  0x1c   :  { %v483_v54 = vld [vmem:[%s5485_s1 + $0x328] sm:$0xff]  ;;  %v488_v55 = vld [vmem:[%s5485_s1 + $0x350] sm:$0xff]  ;;  %v490_v57 = vld [vmem:[%s5485_s1 + $0x360] sm:$0xff]  ;;  %v2698_v58 = vpack.c.bf16 %v477_v50, %v472_v49  ;;  %v2826_v59 = vpack.c.bf16 %v479_v53, %v474_v51 }
  0x1d   :  { %v2700_v60 = vpack.c.bf16 %v488_v55, %v483_v54  ;;  %v482_v61 = vld [vmem:[%s5485_s1 + $0x320] sm:$0xff]  ;;  %v487_v62 = vld [vmem:[%s5485_s1 + $0x348] sm:$0xff]  ;;  %v484_v63 = vld [vmem:[%s5485_s1 + $0x330] sm:$0xff]  ;;  %v2828_v0 = vpack.c.bf16 %v490_v57, %v485_v56 }
  0x1e   :  { %2687 = vmatpush1.bf16.msra.mxu0 %v2686_v22  ;;  %2815 = vmatpush1.bf16.msra.mxu1 %v2814_v23  ;;  %v489_v1 = vld [vmem:[%s5485_s1 + $0x358] sm:$0xff]  ;;  %v498_v3 = vld [vmem:[%s5485_s1 + $0x3a0] sm:$0xff]  ;;  %v495_v4 = vld [vmem:[%s5485_s1 + $0x388] sm:$0xff]  ;;  %v2702_v6 = vpack.c.bf16 %v487_v62, %v482_v61 }
  0x1f   :  { %2689 = vmatprep.subr.bf16.mxu0 %v2688_v24  ;;  %2817 = vmatprep.subr.bf16.mxu1 %v2816_v28  ;;  %v493_v2 = vld [vmem:[%s5485_s1 + $0x378] sm:$0xff]  ;;  %v500_v5 = vld [vmem:[%s5485_s1 + $0x3b0] sm:$0xff]  ;;  %v2830_v8 = vpack.c.bf16 %v489_v1, %v484_v63  ;;  %v494_v11 = vld [vmem:[%s5485_s1 + $0x380] sm:$0xff] }
  0x20   :  { %v492_v7 = vld [vmem:[%s5485_s1 + $0x370] sm:$0xff]  ;;  %v2704_v9 = vpack.c.bf16 %v498_v3, %v493_v2  ;;  %v497_v10 = vld [vmem:[%s5485_s1 + $0x398] sm:$0xff]  ;;  %v499_v12 = vld [vmem:[%s5485_s1 + $0x3a8] sm:$0xff]  ;;  %v2832_v13 = vpack.c.bf16 %v500_v5, %v495_v4 }
  0x21   :  { %v503_v14 = vld [vmem:[%s5485_s1 + $0x3c8] sm:$0xff]  ;;  %v508_v15 = vld [vmem:[%s5485_s1 + $0x3f0] sm:$0xff]  ;;  %v505_v17 = vld [vmem:[%s5485_s1 + $0x3d8] sm:$0xff]  ;;  %v2706_v19 = vpack.c.bf16 %v497_v10, %v492_v7  ;;  %v2834_v20 = vpack.c.bf16 %v499_v12, %v494_v11 }
  0x22   :  { %2691 = vmatpush1.bf16.msra.mxu0 %v2690_v34  ;;  %2819 = vmatpush1.bf16.msra.mxu1 %v2818_v35  ;;  %v279_v16 = vld [vmem:[%s5486_s0 + $0x8] sm:$0xff]  ;;  %v510_v18 = vld [vmem:[%s5485_s1 + $0x400] sm:$0xff]  ;;  %v2708_v21 = vpack.c.bf16 %v508_v15, %v503_v14  ;;  %v504_v24 = vld [vmem:[%s5485_s1 + $0x3d0] sm:$0xff] }
  0x23   :  { %2693 = vmatprep.subr.bf16.mxu0 %v2692_v36  ;;  %2821 = vmatprep.subr.bf16.mxu1 %v2820_v40  ;;  %v502_v22 = vld [vmem:[%s5485_s1 + $0x3c0] sm:$0xff]  ;;  %v507_v23 = vld [vmem:[%s5485_s1 + $0x3e8] sm:$0xff]  ;;  %v2836_v25 = vpack.c.bf16 %v510_v18, %v505_v17  ;;  %v509_v26 = vld [vmem:[%s5485_s1 + $0x3f8] sm:$0xff] }
  0x24   :  { %766 = vmatprep.mubr.f32.mxu0 %v279_v16  ;;  %1208 = vmatprep.mubr.f32.mxu1 %v279_v16  ;;  %v513_v27 = vld [vmem:[%s5485_s1 + $0x418] sm:$0xff]  ;;  %v518_v28 = vld [vmem:[%s5485_s1 + $0x440] sm:$0xff]  ;;  %v515_v29 = vld [vmem:[%s5485_s1 + $0x428] sm:$0xff]  ;;  %v2710_v31 = vpack.c.bf16 %v507_v23, %v502_v22  ;;  %v2838_v32 = vpack.c.bf16 %v509_v26, %v504_v24 }
  0x25   :  { %v520_v30 = vld [vmem:[%s5485_s1 + $0x450] sm:$0xff]  ;;  %v2712_v33 = vpack.c.bf16 %v518_v28, %v513_v27  ;;  %v517_v35 = vld [vmem:[%s5485_s1 + $0x438] sm:$0xff]  ;;  %v514_v36 = vld [vmem:[%s5485_s1 + $0x420] sm:$0xff] }
  0x26   :  { %2695 = vmatpush1.bf16.msra.mxu0 %v2694_v46  ;;  %2823 = vmatpush1.bf16.msra.mxu1 %v2822_v47  ;;  %v512_v34 = vld [vmem:[%s5485_s1 + $0x410] sm:$0xff]  ;;  %v2840_v37 = vpack.c.bf16 %v520_v30, %v515_v29  ;;  %v519_v38 = vld [vmem:[%s5485_s1 + $0x448] sm:$0xff]  ;;  %v525_v41 = vld [vmem:[%s5485_s1 + $0x478] sm:$0xff] }
  0x27   :  { %2697 = vmatprep.subr.bf16.mxu0 %v2696_v48  ;;  %2825 = vmatprep.subr.bf16.mxu1 %v2824_v52  ;;  %v523_v39 = vld [vmem:[%s5485_s1 + $0x468] sm:$0xff]  ;;  %v528_v40 = vld [vmem:[%s5485_s1 + $0x490] sm:$0xff]  ;;  %v530_v42 = vld [vmem:[%s5485_s1 + $0x4a0] sm:$0xff]  ;;  %v2714_v43 = vpack.c.bf16 %v517_v35, %v512_v34  ;;  %v2842_v44 = vpack.c.bf16 %v519_v38, %v514_v36 }
  0x28   :  { %v2716_v45 = vpack.c.bf16 %v528_v40, %v523_v39  ;;  %v522_v46 = vld [vmem:[%s5485_s1 + $0x460] sm:$0xff]  ;;  %v527_v47 = vld [vmem:[%s5485_s1 + $0x488] sm:$0xff]  ;;  %v524_v48 = vld [vmem:[%s5485_s1 + $0x470] sm:$0xff]  ;;  %v2844_v49 = vpack.c.bf16 %v530_v42, %v525_v41 }
  0x29   :  { %v529_v50 = vld [vmem:[%s5485_s1 + $0x498] sm:$0xff]  ;;  %v538_v52 = vld [vmem:[%s5485_s1 + $0x4e0] sm:$0xff]  ;;  %v535_v53 = vld [vmem:[%s5485_s1 + $0x4c8] sm:$0xff]  ;;  %v2718_v55 = vpack.c.bf16 %v527_v47, %v522_v46 }
  0x2a   :  { %2699 = vmatpush1.bf16.msra.mxu0 %v2698_v58  ;;  %2827 = vmatpush1.bf16.msra.mxu1 %v2826_v59  ;;  %v533_v51 = vld [vmem:[%s5485_s1 + $0x4b8] sm:$0xff]  ;;  %v540_v54 = vld [vmem:[%s5485_s1 + $0x4f0] sm:$0xff]  ;;  %v2846_v56 = vpack.c.bf16 %v529_v50, %v524_v48  ;;  %v539_v62 = vld [vmem:[%s5485_s1 + $0x4e8] sm:$0xff] }
  0x2b   :  { %2701 = vmatprep.subr.bf16.mxu0 %v2700_v60  ;;  %2829 = vmatprep.subr.bf16.mxu1 %v2828_v0  ;;  %v2720_v57 = vpack.c.bf16 %v538_v52, %v533_v51  ;;  %v532_v58 = vld [vmem:[%s5485_s1 + $0x4b0] sm:$0xff]  ;;  %v537_v59 = vld [vmem:[%s5485_s1 + $0x4d8] sm:$0xff]  ;;  %v534_v60 = vld [vmem:[%s5485_s1 + $0x4c0] sm:$0xff]  ;;  %v2848_v61 = vpack.c.bf16 %v540_v54, %v535_v53 }
  0x2c   :  { %v543_v63 = vld [vmem:[%s5485_s1 + $0x508] sm:$0xff]  ;;  %v548_v0 = vld [vmem:[%s5485_s1 + $0x530] sm:$0xff]  ;;  %v545_v1 = vld [vmem:[%s5485_s1 + $0x518] sm:$0xff]  ;;  %v2722_v3 = vpack.c.bf16 %v537_v59, %v532_v58  ;;  %v2850_v4 = vpack.c.bf16 %v539_v62, %v534_v60 }
  0x2d   :  { %v550_v2 = vld [vmem:[%s5485_s1 + $0x540] sm:$0xff]  ;;  %v2724_v5 = vpack.c.bf16 %v548_v0, %v543_v63  ;;  %v547_v7 = vld [vmem:[%s5485_s1 + $0x528] sm:$0xff]  ;;  %v549_v10 = vld [vmem:[%s5485_s1 + $0x538] sm:$0xff] }
  0x2e   :  { %2703 = vmatpush1.bf16.msra.mxu0 %v2702_v6  ;;  %2831 = vmatpush1.bf16.msra.mxu1 %v2830_v8  ;;  %v542_v6 = vld [vmem:[%s5485_s1 + $0x500] sm:$0xff]  ;;  %v2852_v8 = vpack.c.bf16 %v550_v2, %v545_v1  ;;  %v553_v11 = vld [vmem:[%s5485_s1 + $0x558] sm:$0xff]  ;;  %v555_v15 = vld [vmem:[%s5485_s1 + $0x568] sm:$0xff] }
  0x2f   :  { %2705 = vmatprep.subr.bf16.mxu0 %v2704_v9  ;;  %2833 = vmatprep.subr.bf16.mxu1 %v2832_v13  ;;  %v544_v9 = vld [vmem:[%s5485_s1 + $0x510] sm:$0xff]  ;;  %v558_v12 = vld [vmem:[%s5485_s1 + $0x580] sm:$0xff]  ;;  %v2726_v14 = vpack.c.bf16 %v547_v7, %v542_v6  ;;  %v283_v18 = vld [vmem:[%s5486_s0 + $0x28] sm:$0xff] }
  0x30   :  { %v278_v13 = vld [vmem:[%s5486_s0] sm:$0xff]  ;;  %v560_v16 = vld [vmem:[%s5485_s1 + $0x590] sm:$0xff]  ;;  %v2854_v17 = vpack.c.bf16 %v549_v10, %v544_v9  ;;  %v559_v24 = vld [vmem:[%s5485_s1 + $0x588] sm:$0xff] }
  0x31   :  { %v554_v22 = vld [vmem:[%s5485_s1 + $0x560] sm:$0xff]  ;;  %v2856_v23 = vpack.c.bf16 %v560_v16, %v555_v15  ;;  %v568_v26 = vld [vmem:[%s5485_s1 + $0x5d0] sm:$0xff]  ;;  %v565_v28 = vld [vmem:[%s5485_s1 + $0x5b8] sm:$0xff] }
  0x32   :  { %2707 = vmatpush1.bf16.msra.mxu0 %v2706_v19  ;;  %2835 = vmatpush1.bf16.msra.mxu1 %v2834_v20  ;;  %v2728_v19 = vpack.c.bf16 %v558_v12, %v553_v11  ;;  %v552_v20 = vld [vmem:[%s5485_s1 + $0x550] sm:$0xff]  ;;  %v282_v27 = vld [vmem:[%s5486_s0 + $0x20] sm:$0xff]  ;;  %v287_v30 = vld [vmem:[%s5486_s0 + $0x48] sm:$0xff] }
  0x33   :  { %2709 = vmatprep.subr.bf16.mxu0 %v2708_v21  ;;  %2837 = vmatprep.subr.bf16.mxu1 %v2836_v25  ;;  %v557_v21 = vld [vmem:[%s5485_s1 + $0x578] sm:$0xff]  ;;  %v563_v25 = vld [vmem:[%s5485_s1 + $0x5a8] sm:$0xff]  ;;  %v570_v29 = vld [vmem:[%s5485_s1 + $0x5e0] sm:$0xff] }
  0x34   :  { %v562_v34 = vld [vmem:[%s5485_s1 + $0x5a0] sm:$0xff]  ;;  %v567_v35 = vld [vmem:[%s5485_s1 + $0x5c8] sm:$0xff]  ;;  %v564_v36 = vld [vmem:[%s5485_s1 + $0x5b0] sm:$0xff] }
  0x35   :  { %v569_v38 = vld [vmem:[%s5485_s1 + $0x5d8] sm:$0xff]  ;;  %v578_v40 = vld [vmem:[%s5485_s1 + $0x620] sm:$0xff]  ;;  %v575_v42 = vld [vmem:[%s5485_s1 + $0x608] sm:$0xff] }
  0x36   :  { %2711 = vmatpush1.bf16.msra.mxu0 %v2710_v31  ;;  %2839 = vmatpush1.bf16.msra.mxu1 %v2838_v32  ;;  %v2730_v31 = vpack.c.bf16 %v557_v21, %v552_v20  ;;  %v2858_v32 = vpack.c.bf16 %v559_v24, %v554_v22  ;;  %v573_v39 = vld [vmem:[%s5485_s1 + $0x5f8] sm:$0xff]  ;;  %v286_v41 = vld [vmem:[%s5486_s0 + $0x40] sm:$0xff]  ;;  %v2862_v46 = vpack.c.bf16 %v569_v38, %v564_v36  ;;  %v572_v48 = vld [vmem:[%s5485_s1 + $0x5f0] sm:$0xff] }
  0x37   :  { %2713 = vmatprep.subr.bf16.mxu0 %v2712_v33  ;;  %2841 = vmatprep.subr.bf16.mxu1 %v2840_v37  ;;  %v2732_v33 = vpack.c.bf16 %v568_v26, %v563_v25  ;;  %v2860_v37 = vpack.c.bf16 %v570_v29, %v565_v28  ;;  %v2736_v47 = vpack.c.bf16 %v578_v40, %v573_v39  ;;  %v574_v50 = vld [vmem:[%s5485_s1 + $0x600] sm:$0xff]  ;;  %v579_v52 = vld [vmem:[%s5485_s1 + $0x628] sm:$0xff]  ;;  %v588_v54 = vld [vmem:[%s5485_s1 + $0x670] sm:$0xff] }
  0x38   :  { %v583_v53 = vld [vmem:[%s5485_s1 + $0x648] sm:$0xff]  ;;  %v2866_v60 = vpack.c.bf16 %v579_v52, %v574_v50  ;;  %v582_v62 = vld [vmem:[%s5485_s1 + $0x640] sm:$0xff]  ;;  %v584_v0 = vld [vmem:[%s5485_s1 + $0x650] sm:$0xff] }
  0x39   :  { %v295_v58 = vld [vmem:[%s5486_s0 + $0x88] sm:$0xff]  ;;  %v589_v2 = vld [vmem:[%s5485_s1 + $0x678] sm:$0xff]  ;;  %v600_v7 = vld [vmem:[%s5485_s1 + $0x6d0] sm:$0xff] }
  0x3a   :  { %2715 = vmatpush1.bf16.msra.mxu0 %v2714_v43  ;;  %2843 = vmatpush1.bf16.msra.mxu1 %v2842_v44  ;;  %v580_v43 = vld [vmem:[%s5485_s1 + $0x630] sm:$0xff]  ;;  %v291_v44 = vld [vmem:[%s5486_s0 + $0x68] sm:$0xff]  ;;  %v2870_v10 = vpack.c.bf16 %v589_v2, %v584_v0  ;;  %v605_v20 = vld [vmem:[%s5485_s1 + $0x6f8] sm:$0xff] }
  0x3b   :  { %2717 = vmatprep.subr.bf16.mxu0 %v2716_v45  ;;  %2845 = vmatprep.subr.bf16.mxu1 %v2844_v49  ;;  %v2734_v45 = vpack.c.bf16 %v567_v35, %v562_v34  ;;  %v577_v49 = vld [vmem:[%s5485_s1 + $0x618] sm:$0xff]  ;;  %v2864_v51 = vpack.c.bf16 %v580_v43, %v575_v42  ;;  %v587_v63 = vld [vmem:[%s5485_s1 + $0x668] sm:$0xff]  ;;  %v592_v12 = vld [vmem:[%s5485_s1 + $0x690] sm:$0xff] }
  0x3c   :  { %v2738_v59 = vpack.c.bf16 %v577_v49, %v572_v48  ;;  %v595_v6 = vld [vmem:[%s5485_s1 + $0x6a8] sm:$0xff]  ;;  %v2742_v9 = vpack.c.bf16 %v587_v63, %v582_v62  ;;  %v610_v21 = vld [vmem:[%s5485_s1 + $0x720] sm:$0xff]  ;;  %v604_v28 = vld [vmem:[%s5485_s1 + $0x6f0] sm:$0xff] }
  0x3d   :  { %v2872_v15 = vpack.c.bf16 %v600_v7, %v595_v6  ;;  %v599_v16 = vld [vmem:[%s5485_s1 + $0x6c8] sm:$0xff]  ;;  %v602_v26 = vld [vmem:[%s5485_s1 + $0x6e0] sm:$0xff]  ;;  %v2876_v29 = vpack.c.bf16 %v610_v21, %v605_v20  ;;  %v620_v35 = vld [vmem:[%s5485_s1 + $0x770] sm:$0xff] }
  0x3e   :  { %2719 = vmatpush1.bf16.msra.mxu0 %v2718_v55  ;;  %2847 = vmatpush1.bf16.msra.mxu1 %v2846_v56  ;;  %v290_v55 = vld [vmem:[%s5486_s0 + $0x60] sm:$0xff]  ;;  %v585_v56 = vld [vmem:[%s5485_s1 + $0x658] sm:$0xff]  ;;  %v303_v22 = vld [vmem:[%s5486_s0 + $0xc8] sm:$0xff] }
  0x3f   :  { %2721 = vmatprep.subr.bf16.mxu0 %v2720_v57  ;;  %2849 = vmatprep.subr.bf16.mxu1 %v2848_v61  ;;  %v590_v57 = vld [vmem:[%s5485_s1 + $0x680] sm:$0xff]  ;;  %v2740_v61 = vpack.c.bf16 %v588_v54, %v583_v53  ;;  %v615_v34 = vld [vmem:[%s5485_s1 + $0x748] sm:$0xff]  ;;  %v612_v40 = vld [vmem:[%s5485_s1 + $0x730] sm:$0xff] }
  0x40   :  { %v2868_v1 = vpack.c.bf16 %v590_v57, %v585_v56  ;;  %v307_v36 = vld [vmem:[%s5486_s0 + $0xe8] sm:$0xff]  ;;  %v614_v42 = vld [vmem:[%s5485_s1 + $0x740] sm:$0xff]  ;;  %v2880_v43 = vpack.c.bf16 %v620_v35, %v615_v34  ;;  %v625_v48 = vld [vmem:[%s5485_s1 + $0x798] sm:$0xff] }
  0x41   :  { %v630_v49 = vld [vmem:[%s5485_s1 + $0x7c0] sm:$0xff]  ;;  %v311_v50 = vld [vmem:[%s5486_s0 + $0x108] sm:$0xff]  ;;  %v624_v56 = vld [vmem:[%s5485_s1 + $0x790] sm:$0xff] }
  0x42   :  { %2723 = vmatpush1.bf16.msra.mxu0 %v2722_v3  ;;  %2851 = vmatpush1.bf16.msra.mxu1 %v2850_v4  ;;  %v593_v3 = vld [vmem:[%s5485_s1 + $0x698] sm:$0xff]  ;;  %v598_v4 = vld [vmem:[%s5485_s1 + $0x6c0] sm:$0xff]  ;;  %v2884_v57 = vpack.c.bf16 %v630_v49, %v625_v48  ;;  %v635_v62 = vld [vmem:[%s5485_s1 + $0x7e8] sm:$0xff] }
  0x43   :  { %2725 = vmatprep.subr.bf16.mxu0 %v2724_v5  ;;  %2853 = vmatprep.subr.bf16.mxu1 %v2852_v8  ;;  %v294_v5 = vld [vmem:[%s5486_s0 + $0x80] sm:$0xff]  ;;  %v299_v8 = vld [vmem:[%s5486_s0 + $0xa8] sm:$0xff]  ;;  %v2744_v11 = vpack.c.bf16 %v598_v4, %v593_v3  ;;  %v640_v63 = vld [vmem:[%s5485_s1 + $0x810] sm:$0xff] }
  0x44   :  { %v622_v54 = vld [vmem:[%s5485_s1 + $0x780] sm:$0xff]  ;;  %v315_v0 = vld [vmem:[%s5486_s0 + $0x128] sm:$0xff]  ;;  %v632_v4 = vld [vmem:[%s5485_s1 + $0x7d0] sm:$0xff]  ;;  %v2888_v7 = vpack.c.bf16 %v640_v63, %v635_v62 }
  0x45   :  { %767 = vmatmul.mubr.f32.vlgmr.msra.gmra.mrb[0].mxu0 %v278_v13  ;;  %1209 = vmatmul.mubr.f32.vlgmr.msra.gmra.mrb[0].mxu1 %v278_v13  ;;  %v597_v13 = vld [vmem:[%s5485_s1 + $0x6b8] sm:$0xff]  ;;  %v634_v6 = vld [vmem:[%s5485_s1 + $0x7e0] sm:$0xff]  ;;  %v644_v20 = vld [vmem:[%s5485_s1 + $0x830] sm:$0xff] }
  0x46   :  { %2727 = vmatpush1.bf16.msra.mxu0 %v2726_v14  ;;  %2855 = vmatpush1.bf16.msra.mxu1 %v2854_v17  ;;  %v594_v14 = vld [vmem:[%s5485_s1 + $0x6a0] sm:$0xff]  ;;  %v603_v17 = vld [vmem:[%s5485_s1 + $0x6e8] sm:$0xff]  ;;  %v664_v48 = vld [vmem:[%s5485_s1 + $0x8d0] sm:$0xff] }
  0x47   :  { %772 = vmatprep.mubr.f32.mxu0 %v283_v18  ;;  %1214 = vmatprep.mubr.f32.mxu1 %v283_v18  ;;  %v608_v18 = vld [vmem:[%s5485_s1 + $0x710] sm:$0xff]  ;;  %v2874_v24 = vpack.c.bf16 %v599_v16, %v594_v14  ;;  %v319_v14 = vld [vmem:[%s5486_s0 + $0x148] sm:$0xff]  ;;  %v654_v34 = vld [vmem:[%s5485_s1 + $0x880] sm:$0xff] }
  0x48   :  { %2729 = vmatprep.subr.bf16.mxu0 %v2728_v19  ;;  %2857 = vmatprep.subr.bf16.mxu1 %v2856_v23  ;;  %v298_v19 = vld [vmem:[%s5486_s0 + $0xa0] sm:$0xff]  ;;  %v2746_v23 = vpack.c.bf16 %v597_v13, %v592_v12  ;;  %v2748_v25 = vpack.c.bf16 %v608_v18, %v603_v17  ;;  %v645_v12 = vld [vmem:[%s5485_s1 + $0x838] sm:$0xff] }
  0x49   :  { %773 = vmatmul.mubr.f32.gmra.mrb[2].mxu0 %v282_v27  ;;  %1215 = vmatmul.mubr.f32.gmra.mrb[2].mxu1 %v282_v27  ;;  %v607_v27 = vld [vmem:[%s5485_s1 + $0x708] sm:$0xff]  ;;  %v650_v13 = vld [vmem:[%s5485_s1 + $0x860] sm:$0xff] }
  0x4a   :  { %778 = vmatprep.mubr.f32.mxu0 %v287_v30  ;;  %1220 = vmatprep.mubr.f32.mxu1 %v287_v30  ;;  %v609_v30 = vld [vmem:[%s5485_s1 + $0x718] sm:$0xff]  ;;  %v642_v18 = vld [vmem:[%s5485_s1 + $0x820] sm:$0xff]  ;;  %v2892_v21 = vpack.c.bf16 %v650_v13, %v645_v12  ;;  %v684_v12 = vld [vmem:[%s5485_s1 + $0x970] sm:$0xff] }
  0x4b   :  { %2731 = vmatpush1.bf16.msra.mxu0 %v2730_v31  ;;  %2859 = vmatpush1.bf16.msra.mxu1 %v2858_v32  ;;  %v613_v31 = vld [vmem:[%s5485_s1 + $0x738] sm:$0xff]  ;;  %v618_v32 = vld [vmem:[%s5485_s1 + $0x760] sm:$0xff]  ;;  %v2878_v38 = vpack.c.bf16 %v609_v30, %v604_v28  ;;  %v323_v28 = vld [vmem:[%s5486_s0 + $0x168] sm:$0xff] }
  0x4c   :  { %2733 = vmatprep.subr.bf16.mxu0 %v2732_v33  ;;  %2861 = vmatprep.subr.bf16.mxu1 %v2860_v37  ;;  %v302_v33 = vld [vmem:[%s5486_s0 + $0xc0] sm:$0xff]  ;;  %v2750_v37 = vpack.c.bf16 %v607_v27, %v602_v26  ;;  %v2752_v39 = vpack.c.bf16 %v618_v32, %v613_v31  ;;  %v655_v26 = vld [vmem:[%s5485_s1 + $0x888] sm:$0xff]  ;;  %v660_v27 = vld [vmem:[%s5485_s1 + $0x8b0] sm:$0xff] }
  0x4d   :  { %779 = vmatmul.mubr.f32.gmra.mrb[4].mxu0 %v286_v41  ;;  %1221 = vmatmul.mubr.f32.gmra.mrb[4].mxu1 %v286_v41  ;;  %v617_v41 = vld [vmem:[%s5485_s1 + $0x758] sm:$0xff]  ;;  %v652_v32 = vld [vmem:[%s5485_s1 + $0x870] sm:$0xff]  ;;  %v2896_v35 = vpack.c.bf16 %v660_v27, %v655_v26  ;;  %v674_v62 = vld [vmem:[%s5485_s1 + $0x920] sm:$0xff] }
  0x4e   :  { %784 = vmatprep.mubr.f32.mxu0 %v291_v44  ;;  %1226 = vmatprep.mubr.f32.mxu1 %v291_v44  ;;  %v619_v44 = vld [vmem:[%s5485_s1 + $0x768] sm:$0xff]  ;;  %v694_v27 = vld [vmem:[%s5485_s1 + $0x9c0] sm:$0xff] }
  0x4f   :  { %2735 = vmatpush1.bf16.msra.mxu0 %v2734_v45  ;;  %2863 = vmatpush1.bf16.msra.mxu1 %v2862_v46  ;;  %v623_v45 = vld [vmem:[%s5485_s1 + $0x788] sm:$0xff]  ;;  %v628_v46 = vld [vmem:[%s5485_s1 + $0x7b0] sm:$0xff]  ;;  %v2882_v52 = vpack.c.bf16 %v619_v44, %v614_v42 }
  0x50   :  { %2737 = vmatprep.subr.bf16.mxu0 %v2736_v47  ;;  %2865 = vmatprep.subr.bf16.mxu1 %v2864_v51  ;;  %v306_v47 = vld [vmem:[%s5486_s0 + $0xe0] sm:$0xff]  ;;  %v2754_v51 = vpack.c.bf16 %v617_v41, %v612_v40  ;;  %v2756_v53 = vpack.c.bf16 %v628_v46, %v623_v45  ;;  %v665_v40 = vld [vmem:[%s5485_s1 + $0x8d8] sm:$0xff]  ;;  %v327_v42 = vld [vmem:[%s5486_s0 + $0x188] sm:$0xff] }
  0x51   :  { %785 = vmatmul.mubr.f32.gmra.mrb[6].mxu0 %v290_v55  ;;  %1227 = vmatmul.mubr.f32.gmra.mrb[6].mxu1 %v290_v55  ;;  %v627_v55 = vld [vmem:[%s5485_s1 + $0x7a8] sm:$0xff]  ;;  %v670_v41 = vld [vmem:[%s5485_s1 + $0x900] sm:$0xff] }
  0x52   :  { %790 = vmatprep.mubr.f32.mxu0 %v295_v58  ;;  %1232 = vmatprep.mubr.f32.mxu1 %v295_v58  ;;  %v629_v58 = vld [vmem:[%s5485_s1 + $0x7b8] sm:$0xff]  ;;  %v662_v46 = vld [vmem:[%s5485_s1 + $0x8c0] sm:$0xff]  ;;  %v2900_v49 = vpack.c.bf16 %v670_v41, %v665_v40  ;;  %v4115_v41 = vld [vmem:[%s5486_s0 + $0x288] sm:$0xff] }
  0x53   :  { %2739 = vmatpush1.bf16.msra.mxu0 %v2738_v59  ;;  %2867 = vmatpush1.bf16.msra.mxu1 %v2866_v60  ;;  %v633_v59 = vld [vmem:[%s5485_s1 + $0x7d8] sm:$0xff]  ;;  %v638_v60 = vld [vmem:[%s5485_s1 + $0x800] sm:$0xff]  ;;  %v2886_v2 = vpack.c.bf16 %v629_v58, %v624_v56  ;;  %v3955_v56 = vld [vmem:[%s5486_s0 + $0x1a8] sm:$0xff] }
  0x54   :  { %2741 = vmatprep.subr.bf16.mxu0 %v2740_v61  ;;  %2869 = vmatprep.subr.bf16.mxu1 %v2868_v1  ;;  %v310_v61 = vld [vmem:[%s5486_s0 + $0x100] sm:$0xff]  ;;  %v2758_v1 = vpack.c.bf16 %v627_v55, %v622_v54  ;;  %v2760_v3 = vpack.c.bf16 %v638_v60, %v633_v59  ;;  %v675_v54 = vld [vmem:[%s5485_s1 + $0x928] sm:$0xff]  ;;  %v680_v55 = vld [vmem:[%s5485_s1 + $0x950] sm:$0xff] }
  0x55   :  { %791 = vmatmul.mubr.f32.gmra.mrb[8].mxu0 %v294_v5  ;;  %1233 = vmatmul.mubr.f32.gmra.mrb[8].mxu1 %v294_v5  ;;  %v637_v5 = vld [vmem:[%s5485_s1 + $0x7f8] sm:$0xff]  ;;  %v672_v60 = vld [vmem:[%s5485_s1 + $0x910] sm:$0xff]  ;;  %v2904_v63 = vpack.c.bf16 %v680_v55, %v675_v54  ;;  %v4109_v40 = vld [vmem:[%s5486_s0 + $0x260] sm:$0xff] }
  0x56   :  { %796 = vmatprep.mubr.f32.mxu0 %v299_v8  ;;  %1238 = vmatprep.mubr.f32.mxu1 %v299_v8  ;;  %v639_v8 = vld [vmem:[%s5485_s1 + $0x808] sm:$0xff]  ;;  %v4199_v54 = vld [vmem:[%s5486_s0 + $0x18] sm:$0xff]  ;;  %v386_v55 = vld [vmem:[%s5485_s1 + $0x20] sm:$0xff] }
  0x57   :  { %2743 = vmatpush1.bf16.msra.mxu0 %v2742_v9  ;;  %2871 = vmatpush1.bf16.msra.mxu1 %v2870_v10  ;;  %v643_v9 = vld [vmem:[%s5485_s1 + $0x828] sm:$0xff]  ;;  %v648_v10 = vld [vmem:[%s5485_s1 + $0x850] sm:$0xff]  ;;  %v2890_v16 = vpack.c.bf16 %v639_v8, %v634_v6 }
  0x58   :  { %2745 = vmatprep.subr.bf16.mxu0 %v2744_v11  ;;  %2873 = vmatprep.subr.bf16.mxu1 %v2872_v15  ;;  %v314_v11 = vld [vmem:[%s5486_s0 + $0x120] sm:$0xff]  ;;  %v2762_v15 = vpack.c.bf16 %v637_v5, %v632_v4  ;;  %v2764_v17 = vpack.c.bf16 %v648_v10, %v643_v9  ;;  %v685_v4 = vld [vmem:[%s5485_s1 + $0x978] sm:$0xff]  ;;  %v3993_v6 = vld [vmem:[%s5486_s0 + $0x1c8] sm:$0xff] }
  0x59   :  { %797 = vmatmul.mubr.f32.gmra.mrb[10].mxu0 %v298_v19  ;;  %1239 = vmatmul.mubr.f32.gmra.mrb[10].mxu1 %v298_v19  ;;  %v647_v19 = vld [vmem:[%s5485_s1 + $0x848] sm:$0xff]  ;;  %v690_v5 = vld [vmem:[%s5485_s1 + $0x9a0] sm:$0xff] }
  0x5a   :  { %802 = vmatprep.mubr.f32.mxu0 %v303_v22  ;;  %1244 = vmatprep.mubr.f32.mxu1 %v303_v22  ;;  %v649_v22 = vld [vmem:[%s5485_s1 + $0x858] sm:$0xff]  ;;  %v682_v10 = vld [vmem:[%s5485_s1 + $0x960] sm:$0xff]  ;;  %v2908_v13 = vpack.c.bf16 %v690_v5, %v685_v4  ;;  %v4244_v5 = vld [vmem:[%s5486_s0 + $0x30] sm:$0xff] }
  0x5b   :  { %2747 = vmatpush1.bf16.msra.mxu0 %v2746_v23  ;;  %2875 = vmatpush1.bf16.msra.mxu1 %v2874_v24  ;;  %v653_v23 = vld [vmem:[%s5485_s1 + $0x878] sm:$0xff]  ;;  %v658_v24 = vld [vmem:[%s5485_s1 + $0x8a0] sm:$0xff]  ;;  %v2894_v30 = vpack.c.bf16 %v649_v22, %v644_v20  ;;  %v4031_v20 = vld [vmem:[%s5486_s0 + $0x1e8] sm:$0xff] }
  0x5c   :  { %2749 = vmatprep.subr.bf16.mxu0 %v2748_v25  ;;  %2877 = vmatprep.subr.bf16.mxu1 %v2876_v29  ;;  %v318_v25 = vld [vmem:[%s5486_s0 + $0x140] sm:$0xff]  ;;  %v2766_v29 = vpack.c.bf16 %v647_v19, %v642_v18  ;;  %v2768_v31 = vpack.c.bf16 %v658_v24, %v653_v23  ;;  %v695_v18 = vld [vmem:[%s5485_s1 + $0x9c8] sm:$0xff]  ;;  %v700_v19 = vld [vmem:[%s5485_s1 + $0x9f0] sm:$0xff] }
  0x5d   :  { %803 = vmatmul.mubr.f32.gmra.mrb[12].mxu0 %v302_v33  ;;  %1245 = vmatmul.mubr.f32.gmra.mrb[12].mxu1 %v302_v33  ;;  %v657_v33 = vld [vmem:[%s5485_s1 + $0x898] sm:$0xff]  ;;  %v692_v24 = vld [vmem:[%s5485_s1 + $0x9b0] sm:$0xff]  ;;  %v2912_v26 = vpack.c.bf16 %v700_v19, %v695_v18 }
  0x5e   :  { %808 = vmatprep.mubr.f32.mxu0 %v307_v36  ;;  %1250 = vmatprep.mubr.f32.mxu1 %v307_v36  ;;  %v659_v36 = vld [vmem:[%s5485_s1 + $0x8a8] sm:$0xff]  ;;  %v561_v4 = vld [vmem:[%s5485_s1 + $0x598] sm:$0xff]  ;;  %v416_v19 = vld [vmem:[%s5485_s1 + $0x110] sm:$0xff] }
  0x5f   :  { %2751 = vmatpush1.bf16.msra.mxu0 %v2750_v37  ;;  %2879 = vmatpush1.bf16.msra.mxu1 %v2878_v38  ;;  %v663_v37 = vld [vmem:[%s5485_s1 + $0x8c8] sm:$0xff]  ;;  %v668_v38 = vld [vmem:[%s5485_s1 + $0x8f0] sm:$0xff]  ;;  %v2898_v44 = vpack.c.bf16 %v659_v36, %v654_v34  ;;  %v4081_v36 = vld [vmem:[%s5486_s0 + $0x220] sm:$0xff] }
  0x60   :  { %2753 = vmatprep.subr.bf16.mxu0 %v2752_v39  ;;  %2881 = vmatprep.subr.bf16.mxu1 %v2880_v43  ;;  %v322_v39 = vld [vmem:[%s5486_s0 + $0x160] sm:$0xff]  ;;  %v2770_v43 = vpack.c.bf16 %v657_v33, %v652_v32  ;;  %v2772_v45 = vpack.c.bf16 %v668_v38, %v663_v37  ;;  %v4071_v34 = vld [vmem:[%s5486_s0 + $0x228] sm:$0xff] }
  0x61   :  { %809 = vmatmul.mubr.f32.gmra.mrb[14].mxu0 %v306_v47  ;;  %1251 = vmatmul.mubr.f32.gmra.mrb[14].mxu1 %v306_v47  ;;  %v667_v47 = vld [vmem:[%s5485_s1 + $0x8e8] sm:$0xff]  ;;  %v4065_v33 = vld [vmem:[%s5486_s0 + $0x200] sm:$0xff] }
  0x62   :  { %814 = vmatprep.mubr.f32.mxu0 %v311_v50  ;;  %1256 = vmatprep.mubr.f32.mxu1 %v311_v50  ;;  %v669_v50 = vld [vmem:[%s5485_s1 + $0x8f8] sm:$0xff]  ;;  %v4087_v37 = vld [vmem:[%s5486_s0 + $0x248] sm:$0xff]  ;;  %v4095_v38 = vld [vmem:[%s5486_s0 + $0x240] sm:$0xff] }
  0x63   :  { %2755 = vmatpush1.bf16.msra.mxu0 %v2754_v51  ;;  %2883 = vmatpush1.bf16.msra.mxu1 %v2882_v52  ;;  %v673_v51 = vld [vmem:[%s5485_s1 + $0x918] sm:$0xff]  ;;  %v678_v52 = vld [vmem:[%s5485_s1 + $0x940] sm:$0xff]  ;;  %v2902_v58 = vpack.c.bf16 %v669_v50, %v664_v48 }
  0x64   :  { %2757 = vmatprep.subr.bf16.mxu0 %v2756_v53  ;;  %2885 = vmatprep.subr.bf16.mxu1 %v2884_v57  ;;  %v3944_v53 = vld [vmem:[%s5486_s0 + $0x180] sm:$0xff]  ;;  %v2774_v57 = vpack.c.bf16 %v667_v47, %v662_v46  ;;  %v2776_v59 = vpack.c.bf16 %v678_v52, %v673_v51  ;;  %v4157_v47 = vld [vmem:[%s5486_s0 + $0x2e8] sm:$0xff] }
  0x65   :  { %815 = vmatmul.mubr.f32.gmra.mrb[16].mxu0 %v310_v61  ;;  %1257 = vmatmul.mubr.f32.gmra.mrb[16].mxu1 %v310_v61  ;;  %v677_v61 = vld [vmem:[%s5485_s1 + $0x938] sm:$0xff]  ;;  %v4151_v46 = vld [vmem:[%s5486_s0 + $0x2c0] sm:$0xff]  ;;  %5510 = vst [vmem:[#allocation5_spill] sm:$0xff] %v4157_v47  ;;  %v4185_v51 = vld [vmem:[%s5486_s0 + $0x328] sm:$0xff] }
  0x66   :  { %820 = vmatprep.mubr.f32.mxu0 %v315_v0  ;;  %1262 = vmatprep.mubr.f32.mxu1 %v315_v0  ;;  %v679_v0 = vld [vmem:[%s5485_s1 + $0x948] sm:$0xff]  ;;  %5509 = vst [vmem:[#allocation4_spill] sm:$0xff] %v4151_v46  ;;  %v4165_v48 = vld [vmem:[%s5486_s0 + $0x2e0] sm:$0xff]  ;;  %5514 = vst [vmem:[#allocation9_spill] sm:$0xff] %v4185_v51 }
  0x67   :  { %2759 = vmatpush1.bf16.msra.mxu0 %v2758_v1  ;;  %2887 = vmatpush1.bf16.msra.mxu1 %v2886_v2  ;;  %v683_v1 = vld [vmem:[%s5485_s1 + $0x968] sm:$0xff]  ;;  %v688_v2 = vld [vmem:[%s5485_s1 + $0x990] sm:$0xff]  ;;  %v2906_v8 = vpack.c.bf16 %v679_v0, %v674_v62  ;;  %5511 = vst [vmem:[#allocation6_spill] sm:$0xff] %v4165_v48  ;;  %v4179_v50 = vld [vmem:[%s5486_s0 + $0x300] sm:$0xff] }
  0x68   :  { %2761 = vmatprep.subr.bf16.mxu0 %v2760_v3  ;;  %2889 = vmatprep.subr.bf16.mxu1 %v2888_v7  ;;  %v3981_v3 = vld [vmem:[%s5486_s0 + $0x1a0] sm:$0xff]  ;;  %v2778_v7 = vpack.c.bf16 %v677_v61, %v672_v60  ;;  %v2780_v9 = vpack.c.bf16 %v688_v2, %v683_v1  ;;  %5513 = vst [vmem:[#allocation8_spill] sm:$0xff] %v4179_v50  ;;  %v4219_v60 = vld [vmem:[%s5486_s0 + $0x10] sm:$0xff]  ;;  %v401_v1 = vld [vmem:[%s5485_s1 + $0x98] sm:$0xff] }
  0x69   :  { %821 = vmatmul.mubr.f32.gmra.mrb[18].mxu0 %v314_v11  ;;  %1263 = vmatmul.mubr.f32.gmra.mrb[18].mxu1 %v314_v11  ;;  %v687_v11 = vld [vmem:[%s5485_s1 + $0x988] sm:$0xff]  ;;  %v4193_v52 = vld [vmem:[%s5486_s0 + $0x320] sm:$0xff]  ;;  %v396_v0 = vld [vmem:[%s5485_s1 + $0x70] sm:$0xff] }
  0x6a   :  { %826 = vmatprep.mubr.f32.mxu0 %v319_v14  ;;  %1268 = vmatprep.mubr.f32.mxu1 %v319_v14  ;;  %v689_v14 = vld [vmem:[%s5485_s1 + $0x998] sm:$0xff]  ;;  %5515 = vst [vmem:[#allocation10_spill] sm:$0xff] %v4193_v52  ;;  %v556_v2 = vld [vmem:[%s5485_s1 + $0x570] sm:$0xff] }
  0x6b   :  { %2763 = vmatpush1.bf16.msra.mxu0 %v2762_v15  ;;  %2891 = vmatpush1.bf16.msra.mxu1 %v2890_v16  ;;  %v693_v15 = vld [vmem:[%s5485_s1 + $0x9b8] sm:$0xff]  ;;  %v698_v16 = vld [vmem:[%s5485_s1 + $0x9e0] sm:$0xff]  ;;  %v2910_v22 = vpack.c.bf16 %v689_v14, %v684_v12  ;;  %v4273_v14 = vld [vmem:[%s5486_s0 + $0x50] sm:$0xff] }
  0x6c   :  { %2765 = vmatprep.subr.bf16.mxu0 %v2764_v17  ;;  %2893 = vmatprep.subr.bf16.mxu1 %v2892_v21  ;;  %v4019_v17 = vld [vmem:[%s5486_s0 + $0x1c0] sm:$0xff]  ;;  %v2782_v21 = vpack.c.bf16 %v687_v11, %v682_v10  ;;  %v2784_v23 = vpack.c.bf16 %v698_v16, %v693_v15  ;;  %v411_v11 = vld [vmem:[%s5485_s1 + $0xe8] sm:$0xff]  ;;  %v4279_v15 = vld [vmem:[%s5486_s0 + $0x78] sm:$0xff] }
  0x6d   :  { %827 = vmatmul.mubr.f32.gmra.mrb[20].mxu0 %v318_v25  ;;  %1269 = vmatmul.mubr.f32.gmra.mrb[20].mxu1 %v318_v25  ;;  %v697_v25 = vld [vmem:[%s5485_s1 + $0x9d8] sm:$0xff]  ;;  %v406_v10 = vld [vmem:[%s5485_s1 + $0xc0] sm:$0xff] }
  0x6e   :  { %832 = vmatprep.mubr.f32.mxu0 %v323_v28  ;;  %1274 = vmatprep.mubr.f32.mxu1 %v323_v28  ;;  %v699_v28 = vld [vmem:[%s5485_s1 + $0x9e8] sm:$0xff]  ;;  %v566_v12 = vld [vmem:[%s5485_s1 + $0x5c0] sm:$0xff]  ;;  %v2923_v16 = vpack.c.bf16 %v411_v11, %v406_v10 }
  0x6f   :  { %2767 = vmatpush1.bf16.msra.mxu0 %v2766_v29  ;;  %2895 = vmatpush1.bf16.msra.mxu1 %v2894_v30  ;;  %v4051_v29 = vld [vmem:[%s5486_s0 + $0x1e0] sm:$0xff]  ;;  %v4057_v30 = vld [vmem:[%s5486_s0 + $0x208] sm:$0xff]  ;;  %v2914_v32 = vpack.c.bf16 %v699_v28, %v694_v27 }
  0x70   :  { %2769 = vmatprep.subr.bf16.mxu0 %v2768_v31  ;;  %2897 = vmatprep.subr.bf16.mxu1 %v2896_v35  ;;  %v2786_v31 = vpack.c.bf16 %v697_v25, %v692_v24  ;;  %v3143_v35 = vmov 0.0|0.0   ;;  %v4301_v24 = vld [vmem:[%s5486_s0 + $0x70] sm:$0xff]  ;;  %v4307_v25 = vld [vmem:[%s5486_s0 + $0x98] sm:$0xff]  ;;  %v426_v28 = vld [vmem:[%s5485_s1 + $0x160] sm:$0xff] }
  0x71   :  { %833 = vmatmul.mubr.f32.gmra.mrb[22].mxu0 %v322_v39  ;;  %1275 = vmatmul.mubr.f32.gmra.mrb[22].mxu1 %v322_v39  ;;  %v4101_v39 = vld [vmem:[%s5486_s0 + $0x268] sm:$0xff]  ;;  %v446_v11 = vld [vmem:[%s5485_s1 + $0x200] sm:$0xff] }
  0x72   :  { %838 = vmatprep.mubr.f32.mxu0 %v327_v42  ;;  %1280 = vmatprep.mubr.f32.mxu1 %v327_v42  ;;  %v4123_v42 = vld [vmem:[%s5486_s0 + $0x280] sm:$0xff] }
  0x73   :  { %2771 = vmatpush1.bf16.msra.mxu0 %v2770_v43  ;;  %2899 = vmatpush1.bf16.msra.mxu1 %v2898_v44  ;;  %v4129_v43 = vld [vmem:[%s5486_s0 + $0x2a8] sm:$0xff]  ;;  %v4137_v44 = vld [vmem:[%s5486_s0 + $0x2a0] sm:$0xff] }
  0x74   :  { %2773 = vmatprep.subr.bf16.mxu0 %v2772_v45  ;;  %2901 = vmatprep.subr.bf16.mxu1 %v2900_v49  ;;  %5507 = vst [vmem:[#allocation2_spill] sm:$0xff] %v4137_v44  ;;  %v4143_v45 = vld [vmem:[%s5486_s0 + $0x2c8] sm:$0xff] }
  0x75   :  { %839 = vmatmul.mubr.f32.gmra.mrb[24].mxu0 %v3944_v53  ;;  %1281 = vmatmul.mubr.f32.gmra.mrb[24].mxu1 %v3944_v53  ;;  %5508 = vst [vmem:[#allocation3_spill] sm:$0xff] %v4143_v45  ;;  %v4171_v49 = vld [vmem:[%s5486_s0 + $0x308] sm:$0xff] }
  0x76   :  { %844 = vmatprep.mubr.f32.mxu0 %v3955_v56  ;;  %1286 = vmatprep.mubr.f32.mxu1 %v3955_v56  ;;  %5512 = vst [vmem:[#allocation7_spill] sm:$0xff] %v4171_v49 }
  0x77   :  { %2775 = vmatpush1.bf16.msra.mxu0 %v2774_v57  ;;  %2903 = vmatpush1.bf16.msra.mxu1 %v2902_v58  ;;  %v391_v57 = vld [vmem:[%s5485_s1 + $0x48] sm:$0xff]  ;;  %v546_v58 = vld [vmem:[%s5485_s1 + $0x520] sm:$0xff] }
  0x78   :  { %2777 = vmatprep.subr.bf16.mxu0 %v2776_v59  ;;  %2905 = vmatprep.subr.bf16.mxu1 %v2904_v63  ;;  %v551_v59 = vld [vmem:[%s5485_s1 + $0x548] sm:$0xff]  ;;  %v2917_v61 = vpack.c.bf16 %v391_v57, %v386_v55  ;;  %v4225_v63 = vld [vmem:[%s5486_s0 + $0x38] sm:$0xff]  ;;  %v4329_v57 = vld [vmem:[%s5486_s0 + $0x90] sm:$0xff] }
  0x79   :  { %845 = vmatmul.mubr.f32.gmra.mrb[26].mxu0 %v3981_v3  ;;  %1287 = vmatmul.mubr.f32.gmra.mrb[26].mxu1 %v3981_v3  ;;  %v2965_v62 = vpack.c.bf16 %v551_v59, %v546_v58  ;;  %v591_v55 = vld [vmem:[%s5485_s1 + $0x688] sm:$0xff]  ;;  %v4335_v58 = vld [vmem:[%s5486_s0 + $0xb8] sm:$0xff] }
  0x7a   :  { %850 = vmatprep.mubr.f32.mxu0 %v3993_v6  ;;  %1292 = vmatprep.mubr.f32.mxu1 %v3993_v6 }
  0x7b   :  { %2779 = vmatpush1.bf16.msra.mxu0 %v2778_v7  ;;  %2907 = vmatpush1.bf16.msra.mxu1 %v2906_v8  ;;  %v4250_v7 = vld [vmem:[%s5486_s0 + $0x58] sm:$0xff]  ;;  %v2920_v8 = vpack.c.bf16 %v401_v1, %v396_v0  ;;  %v596_v1 = vld [vmem:[%s5485_s1 + $0x6b0] sm:$0xff] }
  0x7c   :  { %2781 = vmatprep.subr.bf16.mxu0 %v2780_v9  ;;  %2909 = vmatprep.subr.bf16.mxu1 %v2908_v13  ;;  %v2968_v9 = vpack.c.bf16 %v561_v4, %v556_v2  ;;  %v571_v13 = vld [vmem:[%s5485_s1 + $0x5e8] sm:$0xff]  ;;  %v441_v0 = vld [vmem:[%s5485_s1 + $0x1d8] sm:$0xff]  ;;  %v4357_v4 = vld [vmem:[%s5486_s0 + $0xb0] sm:$0xff] }
  0x7d   :  { %851 = vmatmul.mubr.f32.gmra.mrb[28].mxu0 %v4019_v17  ;;  %1293 = vmatmul.mubr.f32.gmra.mrb[28].mxu1 %v4019_v17  ;;  %v2971_v18 = vpack.c.bf16 %v571_v13, %v566_v12  ;;  %v601_v2 = vld [vmem:[%s5485_s1 + $0x6d8] sm:$0xff]  ;;  %v451_v12 = vld [vmem:[%s5485_s1 + $0x228] sm:$0xff]  ;;  %v606_v13 = vld [vmem:[%s5485_s1 + $0x700] sm:$0xff] }
  0x7e   :  { %856 = vmatprep.mubr.f32.mxu0 %v4031_v20  ;;  %1298 = vmatprep.mubr.f32.mxu1 %v4031_v20  ;;  %v2980_v10 = vpack.c.bf16 %v601_v2, %v596_v1  ;;  %v631_v1 = vld [vmem:[%s5485_s1 + $0x7c8] sm:$0xff]  ;;  %v4441_v2 = vld [vmem:[%s5486_s0 + $0x110] sm:$0xff] }
  0x7f   :  { %2783 = vmatpush1.bf16.msra.mxu0 %v2782_v21  ;;  %2911 = vmatpush1.bf16.msra.mxu1 %v2910_v22  ;;  %v421_v21 = vld [vmem:[%s5485_s1 + $0x138] sm:$0xff]  ;;  %v576_v22 = vld [vmem:[%s5485_s1 + $0x610] sm:$0xff] }
  0x80   :  { %2785 = vmatprep.subr.bf16.mxu0 %v2784_v23  ;;  %2913 = vmatprep.subr.bf16.mxu1 %v2912_v26  ;;  %v581_v23 = vld [vmem:[%s5485_s1 + $0x638] sm:$0xff]  ;;  %v2926_v26 = vpack.c.bf16 %v421_v21, %v416_v19  ;;  %v2935_v21 = vpack.c.bf16 %v451_v12, %v446_v11  ;;  %v476_v12 = vld [vmem:[%s5485_s1 + $0x2f0] sm:$0xff] }
  0x81   :  { %857 = vmatmul.mubr.f32.gmra.mrb[30].mxu0 %v4051_v29  ;;  %1299 = vmatmul.mubr.f32.gmra.mrb[30].mxu1 %v4051_v29  ;;  %v2974_v27 = vpack.c.bf16 %v581_v23, %v576_v22  ;;  %v4391_v19 = vld [vmem:[%s5486_s0 + $0xf8] sm:$0xff]  ;;  %v456_v23 = vld [vmem:[%s5485_s1 + $0x250] sm:$0xff] }
  0x82   :  { %862 = vmatprep.mubr.f32.mxu0 %v4057_v30  ;;  %1304 = vmatprep.mubr.f32.mxu1 %v4057_v30 }
  0x83   :  { %2787 = vmatpush1.bf16.msra.mxu0 %v2786_v31  ;;  %2915 = vmatpush1.bf16.msra.mxu1 %v2914_v32  ;;  %v431_v31 = vld [vmem:[%s5485_s1 + $0x188] sm:$0xff]  ;;  %v586_v32 = vld [vmem:[%s5485_s1 + $0x660] sm:$0xff] }
  0x84   :  { %2916 = vmatprep.subr.bf16.mxu0 %v3143_v35  ;;  %2964 = vmatprep.subr.bf16.mxu1 %v3143_v35  ;;  %v2929_v59 = vpack.c.bf16 %v431_v31, %v426_v28  ;;  %v621_v28 = vld [vmem:[%s5485_s1 + $0x778] sm:$0xff]  ;;  %v4413_v31 = vld [vmem:[%s5486_s0 + $0xf0] sm:$0xff] }
  0x85   :  { %863 = vmatmul.mubr.f32.gmra.mrb[32].mxu0 %v4065_v33  ;;  %1305 = vmatmul.mubr.f32.gmra.mrb[32].mxu1 %v4065_v33 }
  0x86   :  { %868 = vmatprep.mubr.f32.mxu0 %v4071_v34  ;;  %1310 = vmatprep.mubr.f32.mxu1 %v4071_v34 }
  0x89   :  { %869 = vmatmul.mubr.f32.gmra.mrb[34].mxu0 %v4081_v36  ;;  %1311 = vmatmul.mubr.f32.gmra.mrb[34].mxu1 %v4081_v36 }
  0x8a   :  { %874 = vmatprep.mubr.f32.mxu0 %v4087_v37  ;;  %1316 = vmatprep.mubr.f32.mxu1 %v4087_v37 }
  0x8d   :  { %875 = vmatmul.mubr.f32.gmra.mrb[36].mxu0 %v4095_v38  ;;  %1317 = vmatmul.mubr.f32.gmra.mrb[36].mxu1 %v4095_v38 }
  0x8e   :  { %880 = vmatprep.mubr.f32.mxu0 %v4101_v39  ;;  %1322 = vmatprep.mubr.f32.mxu1 %v4101_v39 }
  0x91   :  { %881 = vmatmul.mubr.f32.gmra.mrb[38].mxu0 %v4109_v40  ;;  %1323 = vmatmul.mubr.f32.gmra.mrb[38].mxu1 %v4109_v40 }
  0x92   :  { %886 = vmatprep.mubr.f32.mxu0 %v4115_v41  ;;  %1328 = vmatprep.mubr.f32.mxu1 %v4115_v41 }
  0x95   :  { %887 = vmatmul.mubr.f32.gmra.mrb[40].mxu0 %v4123_v42  ;;  %1329 = vmatmul.mubr.f32.gmra.mrb[40].mxu1 %v4123_v42 }
  0x96   :  { %892 = vmatprep.mubr.f32.mxu0 %v4129_v43  ;;  %1334 = vmatprep.mubr.f32.mxu1 %v4129_v43 }
  0x99   :  { %893 = vmatmul.mubr.f32.gmra.mrb[42].mxu0 %v4137_v44  ;;  %1335 = vmatmul.mubr.f32.gmra.mrb[42].mxu1 %v4137_v44  ;;  %v4737_v44 = vld [vmem:[%s5486_s0 + $0x2d0] sm:$0xff] }
  0x9a   :  { %898 = vmatprep.mubr.f32.mxu0 %v4143_v45  ;;  %1340 = vmatprep.mubr.f32.mxu1 %v4143_v45  ;;  %v4729_v45 = vld [vmem:[%s5486_s0 + $0x2d8] sm:$0xff]  ;;  %5519 = vst [vmem:[#allocation14_spill] sm:$0xff] %v4737_v44 }
  0x9b   :  { %5518 = vst [vmem:[#allocation13_spill] sm:$0xff] %v4729_v45 }
  0x9d   :  { %899 = vmatmul.mubr.f32.gmra.mrb[44].mxu0 %v4151_v46  ;;  %1341 = vmatmul.mubr.f32.gmra.mrb[44].mxu1 %v4151_v46  ;;  %v4723_v46 = vld [vmem:[%s5486_s0 + $0x2b0] sm:$0xff] }
  0x9e   :  { %904 = vmatprep.mubr.f32.mxu0 %v4157_v47  ;;  %1346 = vmatprep.mubr.f32.mxu1 %v4157_v47  ;;  %v4653_v47 = vld [vmem:[%s5486_s0 + $0x210] sm:$0xff]  ;;  %5517 = vst [vmem:[#allocation12_spill] sm:$0xff] %v4723_v46 }
  0xa1   :  { %905 = vmatmul.mubr.f32.gmra.mrb[46].mxu0 %v4165_v48  ;;  %1347 = vmatmul.mubr.f32.gmra.mrb[46].mxu1 %v4165_v48  ;;  %v541_v48 = vld [vmem:[%s5485_s1 + $0x4f8] sm:$0xff] }
  0xa2   :  { %910 = vmatprep.mubr.f32.mxu0 %v4171_v49  ;;  %1352 = vmatprep.mubr.f32.mxu1 %v4171_v49  ;;  %v536_v49 = vld [vmem:[%s5485_s1 + $0x4d0] sm:$0xff] }
  0xa5   :  { %911 = vmatmul.mubr.f32.gmra.mrb[48].mxu0 %v4179_v50  ;;  %1353 = vmatmul.mubr.f32.gmra.mrb[48].mxu1 %v4179_v50  ;;  %v531_v50 = vld [vmem:[%s5485_s1 + $0x4a8] sm:$0xff] }
  0xa6   :  { %916 = vmatprep.mubr.f32.mxu0 %v4185_v51  ;;  %1358 = vmatprep.mubr.f32.mxu1 %v4185_v51  ;;  %v526_v51 = vld [vmem:[%s5485_s1 + $0x480] sm:$0xff] }
  0xa9   :  { %917 = vmatmul.mubr.f32.gmra.mrb[50].mxu0 %v4193_v52  ;;  %1359 = vmatmul.mubr.f32.gmra.mrb[50].mxu1 %v4193_v52  ;;  %v521_v52 = vld [vmem:[%s5485_s1 + $0x458] sm:$0xff] }
  0xaa   :  { %987 = vmatprep.mubr.f32.mxu0 %v4199_v54  ;;  %1429 = vmatprep.mubr.f32.mxu1 %v4199_v54 }
  0xad   :  { %988 = vmatmul.mubr.f32.vlgmr.msra.gmra.mrb[0].mxu0 %v4219_v60  ;;  %1430 = vmatmul.mubr.f32.vlgmr.msra.gmra.mrb[0].mxu1 %v4219_v60 }
  0xae   :  { %2918 = vmatpush1.bf16.msra.mxu0 %v2917_v61  ;;  %2966 = vmatpush1.bf16.msra.mxu1 %v2965_v62  ;;  %v2977_v61 = vpack.c.bf16 %v591_v55, %v586_v32  ;;  %v436_v62 = vld [vmem:[%s5485_s1 + $0x1b0] sm:$0xff]  ;;  %v4419_v32 = vld [vmem:[%s5486_s0 + $0x118] sm:$0xff] }
  0xaf   :  { %993 = vmatprep.mubr.f32.mxu0 %v4225_v63  ;;  %1435 = vmatprep.mubr.f32.mxu1 %v4225_v63 }
  0xb0   :  { %2919 = vmatprep.subr.bf16.mxu0 %v3143_v35  ;;  %2967 = vmatprep.subr.bf16.mxu1 %v3143_v35 }
  0xb1   :  { %994 = vmatmul.mubr.f32.gmra.mrb[2].mxu0 %v4244_v5  ;;  %1436 = vmatmul.mubr.f32.gmra.mrb[2].mxu1 %v4244_v5 }
  0xb2   :  { %999 = vmatprep.mubr.f32.mxu0 %v4250_v7  ;;  %1441 = vmatprep.mubr.f32.mxu1 %v4250_v7 }
  0xb3   :  { %2921 = vmatpush1.bf16.msra.mxu0 %v2920_v8  ;;  %2969 = vmatpush1.bf16.msra.mxu1 %v2968_v9  ;;  %v4363_v8 = vld [vmem:[%s5486_s0 + $0xd8] sm:$0xff]  ;;  %v2932_v9 = vpack.c.bf16 %v441_v0, %v436_v62  ;;  %v471_v62 = vld [vmem:[%s5485_s1 + $0x2c8] sm:$0xff]  ;;  %v626_v0 = vld [vmem:[%s5485_s1 + $0x7a0] sm:$0xff] }
  0xb4   :  { %2922 = vmatprep.subr.bf16.mxu0 %v3143_v35  ;;  %2970 = vmatprep.subr.bf16.mxu1 %v3143_v35  ;;  %v2989_v11 = vpack.c.bf16 %v631_v1, %v626_v0  ;;  %v4503_v0 = vld [vmem:[%s5486_s0 + $0x178] sm:$0xff] }
  0xb5   :  { %1000 = vmatmul.mubr.f32.gmra.mrb[4].mxu0 %v4273_v14  ;;  %1442 = vmatmul.mubr.f32.gmra.mrb[4].mxu1 %v4273_v14 }
  0xb6   :  { %1005 = vmatprep.mubr.f32.mxu0 %v4279_v15  ;;  %1447 = vmatprep.mubr.f32.mxu1 %v4279_v15 }
  0xb7   :  { %2924 = vmatpush1.bf16.msra.mxu0 %v2923_v16  ;;  %2972 = vmatpush1.bf16.msra.mxu1 %v2971_v18  ;;  %v611_v16 = vld [vmem:[%s5485_s1 + $0x728] sm:$0xff]  ;;  %v4385_v18 = vld [vmem:[%s5486_s0 + $0xd0] sm:$0xff] }
  0xb8   :  { %2925 = vmatprep.subr.bf16.mxu0 %v3143_v35  ;;  %2973 = vmatprep.subr.bf16.mxu1 %v3143_v35  ;;  %v2983_v22 = vpack.c.bf16 %v611_v16, %v606_v13  ;;  %v481_v13 = vld [vmem:[%s5485_s1 + $0x318] sm:$0xff]  ;;  %v636_v16 = vld [vmem:[%s5485_s1 + $0x7f0] sm:$0xff] }
  0xb9   :  { %1006 = vmatmul.mubr.f32.gmra.mrb[6].mxu0 %v4301_v24  ;;  %1448 = vmatmul.mubr.f32.gmra.mrb[6].mxu1 %v4301_v24 }
  0xba   :  { %1011 = vmatprep.mubr.f32.mxu0 %v4307_v25  ;;  %1453 = vmatprep.mubr.f32.mxu1 %v4307_v25 }
  0xbb   :  { %2927 = vmatpush1.bf16.msra.mxu0 %v2926_v26  ;;  %2975 = vmatpush1.bf16.msra.mxu1 %v2974_v27  ;;  %v461_v26 = vld [vmem:[%s5485_s1 + $0x278] sm:$0xff]  ;;  %v616_v27 = vld [vmem:[%s5485_s1 + $0x750] sm:$0xff] }
  0xbc   :  { %2928 = vmatprep.subr.bf16.mxu0 %v3143_v35  ;;  %2976 = vmatprep.subr.bf16.mxu1 %v3143_v35  ;;  %v2938_v55 = vpack.c.bf16 %v461_v26, %v456_v23  ;;  %v4475_v23 = vld [vmem:[%s5486_s0 + $0x158] sm:$0xff]  ;;  %v2944_v26 = vpack.c.bf16 %v481_v13, %v476_v12  ;;  %v656_v13 = vld [vmem:[%s5485_s1 + $0x890] sm:$0xff] }
  0xbd   :  { %1012 = vmatmul.mubr.f32.gmra.mrb[8].mxu0 %v4329_v57  ;;  %1454 = vmatmul.mubr.f32.gmra.mrb[8].mxu1 %v4329_v57  ;;  %v501_v12 = vld [vmem:[%s5485_s1 + $0x3b8] sm:$0xff] }
  0xbe   :  { %1017 = vmatprep.mubr.f32.mxu0 %v4335_v58  ;;  %1459 = vmatprep.mubr.f32.mxu1 %v4335_v58 }
  0xbf   :  { %2930 = vmatpush1.bf16.msra.mxu0 %v2929_v59  ;;  %2978 = vmatpush1.bf16.msra.mxu1 %v2977_v61  ;;  %v2986_v59 = vpack.c.bf16 %v621_v28, %v616_v27  ;;  %v466_v61 = vld [vmem:[%s5485_s1 + $0x2a0] sm:$0xff] }
  0xc0   :  { %2931 = vmatprep.subr.bf16.mxu0 %v3143_v35  ;;  %2979 = vmatprep.subr.bf16.mxu1 %v3143_v35  ;;  %v486_v28 = vld [vmem:[%s5485_s1 + $0x340] sm:$0xff] }
  0xc1   :  { %1018 = vmatmul.mubr.f32.gmra.mrb[10].mxu0 %v4357_v4  ;;  %1460 = vmatmul.mubr.f32.gmra.mrb[10].mxu1 %v4357_v4 }
  0xc2   :  { %1023 = vmatprep.mubr.f32.mxu0 %v4363_v8  ;;  %1465 = vmatprep.mubr.f32.mxu1 %v4363_v8 }
  0xc3   :  { %2933 = vmatpush1.bf16.msra.mxu0 %v2932_v9  ;;  %2981 = vmatpush1.bf16.msra.mxu1 %v2980_v10  ;;  %v4447_v9 = vld [vmem:[%s5486_s0 + $0x138] sm:$0xff]  ;;  %v2941_v10 = vpack.c.bf16 %v471_v62, %v466_v61  ;;  %v651_v61 = vld [vmem:[%s5485_s1 + $0x868] sm:$0xff]  ;;  %v4497_v62 = vld [vmem:[%s5486_s0 + $0x150] sm:$0xff] }
  0xc4   :  { %2934 = vmatprep.subr.bf16.mxu0 %v3143_v35  ;;  %2982 = vmatprep.subr.bf16.mxu1 %v3143_v35 }
  0xc5   :  { %1024 = vmatmul.mubr.f32.gmra.mrb[12].mxu0 %v4385_v18  ;;  %1466 = vmatmul.mubr.f32.gmra.mrb[12].mxu1 %v4385_v18 }
  0xc6   :  { %1029 = vmatprep.mubr.f32.mxu0 %v4391_v19  ;;  %1471 = vmatprep.mubr.f32.mxu1 %v4391_v19 }
  0xc7   :  { %2936 = vmatpush1.bf16.msra.mxu0 %v2935_v21  ;;  %2984 = vmatpush1.bf16.msra.mxu1 %v2983_v22  ;;  %v641_v21 = vld [vmem:[%s5485_s1 + $0x818] sm:$0xff]  ;;  %v4469_v22 = vld [vmem:[%s5486_s0 + $0x130] sm:$0xff] }
  0xc8   :  { %2937 = vmatprep.subr.bf16.mxu0 %v3143_v35  ;;  %2985 = vmatprep.subr.bf16.mxu1 %v3143_v35  ;;  %v2992_v27 = vpack.c.bf16 %v641_v21, %v636_v16  ;;  %v661_v16 = vld [vmem:[%s5485_s1 + $0x8b8] sm:$0xff]  ;;  %v4525_v21 = vld [vmem:[%s5486_s0 + $0x170] sm:$0xff] }
  0xc9   :  { %1030 = vmatmul.mubr.f32.gmra.mrb[14].mxu0 %v4413_v31  ;;  %1472 = vmatmul.mubr.f32.gmra.mrb[14].mxu1 %v4413_v31 }
  0xca   :  { %1035 = vmatprep.mubr.f32.mxu0 %v4419_v32  ;;  %1477 = vmatprep.mubr.f32.mxu1 %v4419_v32 }
  0xcb   :  { %2939 = vmatpush1.bf16.msra.mxu0 %v2938_v55  ;;  %2987 = vmatpush1.bf16.msra.mxu1 %v2986_v59  ;;  %v491_v55 = vld [vmem:[%s5485_s1 + $0x368] sm:$0xff]  ;;  %v646_v59 = vld [vmem:[%s5485_s1 + $0x840] sm:$0xff] }
  0xcc   :  { %2940 = vmatprep.subr.bf16.mxu0 %v3143_v35  ;;  %2988 = vmatprep.subr.bf16.mxu1 %v3143_v35  ;;  %v2947_v1 = vpack.c.bf16 %v491_v55, %v486_v28  ;;  %v2998_v28 = vpack.c.bf16 %v661_v16, %v656_v13  ;;  %v506_v55 = vld [vmem:[%s5485_s1 + $0x3e0] sm:$0xff]  ;;  %v516_v16 = vld [vmem:[%s5485_s1 + $0x430] sm:$0xff] }
  0xcd   :  { %1036 = vmatmul.mubr.f32.gmra.mrb[16].mxu0 %v4441_v2  ;;  %1478 = vmatmul.mubr.f32.gmra.mrb[16].mxu1 %v4441_v2 }
  0xce   :  { %1041 = vmatprep.mubr.f32.mxu0 %v4447_v9  ;;  %1483 = vmatprep.mubr.f32.mxu1 %v4447_v9 }
  0xcf   :  { %2942 = vmatpush1.bf16.msra.mxu0 %v2941_v10  ;;  %2990 = vmatpush1.bf16.msra.mxu1 %v2989_v11  ;;  %v2995_v10 = vpack.c.bf16 %v651_v61, %v646_v59  ;;  %v496_v11 = vld [vmem:[%s5485_s1 + $0x390] sm:$0xff]  ;;  %v511_v59 = vld [vmem:[%s5485_s1 + $0x408] sm:$0xff]  ;;  %v666_v61 = vld [vmem:[%s5485_s1 + $0x8e0] sm:$0xff] }
  0xd0   :  { %2943 = vmatprep.subr.bf16.mxu0 %v3143_v35  ;;  %2991 = vmatprep.subr.bf16.mxu1 %v3143_v35 }
  0xd1   :  { %1042 = vmatmul.mubr.f32.gmra.mrb[18].mxu0 %v4469_v22  ;;  %1484 = vmatmul.mubr.f32.gmra.mrb[18].mxu1 %v4469_v22 }
  0xd2   :  { %1047 = vmatprep.mubr.f32.mxu0 %v4475_v23  ;;  %1489 = vmatprep.mubr.f32.mxu1 %v4475_v23 }
  0xd3   :  { %2945 = vmatpush1.bf16.msra.mxu0 %v2944_v26  ;;  %2993 = vmatpush1.bf16.msra.mxu1 %v2992_v27  ;;  %v4531_v26 = vld [vmem:[%s5486_s0 + $0x198] sm:$0xff]  ;;  %v2950_v27 = vpack.c.bf16 %v501_v12, %v496_v11  ;;  %v2953_v12 = vpack.c.bf16 %v511_v59, %v506_v55  ;;  %v4581_v55 = vld [vmem:[%s5486_s0 + $0x1b0] sm:$0xff] }
  0xd4   :  { %2946 = vmatprep.subr.bf16.mxu0 %v3143_v35  ;;  %2994 = vmatprep.subr.bf16.mxu1 %v3143_v35  ;;  %v4559_v11 = vld [vmem:[%s5486_s0 + $0x1b8] sm:$0xff] }
  0xd5   :  { %1048 = vmatmul.mubr.f32.gmra.mrb[20].mxu0 %v4497_v62  ;;  %1490 = vmatmul.mubr.f32.gmra.mrb[20].mxu1 %v4497_v62  ;;  %v4587_v59 = vld [vmem:[%s5486_s0 + $0x1d8] sm:$0xff] }
  0xd6   :  { %1053 = vmatprep.mubr.f32.mxu0 %v4503_v0  ;;  %1495 = vmatprep.mubr.f32.mxu1 %v4503_v0 }
  0xd7   :  { %2948 = vmatpush1.bf16.msra.mxu0 %v2947_v1  ;;  %2996 = vmatpush1.bf16.msra.mxu1 %v2995_v10  ;;  %v671_v1 = vld [vmem:[%s5485_s1 + $0x908] sm:$0xff]  ;;  %v4553_v10 = vld [vmem:[%s5486_s0 + $0x190] sm:$0xff] }
  0xd8   :  { %2949 = vmatprep.subr.bf16.mxu0 %v3143_v35  ;;  %2997 = vmatprep.subr.bf16.mxu1 %v3143_v35  ;;  %v3001_v13 = vpack.c.bf16 %v671_v1, %v666_v61  ;;  %v2956_v61 = vpack.c.bf16 %v521_v52, %v516_v16  ;;  %v686_v52 = vld [vmem:[%s5485_s1 + $0x980] sm:$0xff]  ;;  %v4615_v16 = vld [vmem:[%s5486_s0 + $0x1f8] sm:$0xff] }
  0xd9   :  { %1054 = vmatmul.mubr.f32.gmra.mrb[22].mxu0 %v4525_v21  ;;  %1496 = vmatmul.mubr.f32.gmra.mrb[22].mxu1 %v4525_v21 }
  0xda   :  { %1059 = vmatprep.mubr.f32.mxu0 %v4531_v26  ;;  %1501 = vmatprep.mubr.f32.mxu1 %v4531_v26 }
  0xdb   :  { %2951 = vmatpush1.bf16.msra.mxu0 %v2950_v27  ;;  %2999 = vmatpush1.bf16.msra.mxu1 %v2998_v28  ;;  %v676_v27 = vld [vmem:[%s5485_s1 + $0x930] sm:$0xff]  ;;  %v681_v28 = vld [vmem:[%s5485_s1 + $0x958] sm:$0xff] }
  0xdc   :  { %2952 = vmatprep.subr.bf16.mxu0 %v3143_v35  ;;  %3000 = vmatprep.subr.bf16.mxu1 %v3143_v35  ;;  %v3004_v1 = vpack.c.bf16 %v681_v28, %v676_v27  ;;  %v2959_v27 = vpack.c.bf16 %v531_v50, %v526_v51  ;;  %v696_v50 = vld [vmem:[%s5485_s1 + $0x9d0] sm:$0xff]  ;;  %v701_v51 = vld [vmem:[%s5485_s1 + $0x9f8] sm:$0xff] }
  0xdd   :  { %1060 = vmatmul.mubr.f32.gmra.mrb[24].mxu0 %v4553_v10  ;;  %1502 = vmatmul.mubr.f32.gmra.mrb[24].mxu1 %v4553_v10 }
  0xde   :  { %1065 = vmatprep.mubr.f32.mxu0 %v4559_v11  ;;  %1507 = vmatprep.mubr.f32.mxu1 %v4559_v11 }
  0xdf   :  { %2954 = vmatpush1.bf16.msra.mxu0 %v2953_v12  ;;  %3002 = vmatpush1.bf16.msra.mxu1 %v3001_v13  ;;  %v691_v12 = vld [vmem:[%s5485_s1 + $0x9a8] sm:$0xff]  ;;  %v4609_v13 = vld [vmem:[%s5486_s0 + $0x1d0] sm:$0xff] }
  0xe0   :  { %2955 = vmatprep.subr.bf16.mxu0 %v3143_v35  ;;  %3003 = vmatprep.subr.bf16.mxu1 %v3143_v35  ;;  %v3007_v28 = vpack.c.bf16 %v691_v12, %v686_v52  ;;  %v2962_v52 = vpack.c.bf16 %v541_v48, %v536_v49  ;;  %v3010_v12 = vpack.c.bf16 %v701_v51, %v696_v50  ;;  %v4659_v48 = vld [vmem:[%s5486_s0 + $0x238] sm:$0xff]  ;;  %v4695_v50 = vld [vmem:[%s5486_s0 + $0x270] sm:$0xff] }
  0xe1   :  { %1066 = vmatmul.mubr.f32.gmra.mrb[26].mxu0 %v4581_v55  ;;  %1508 = vmatmul.mubr.f32.gmra.mrb[26].mxu1 %v4581_v55  ;;  %v4673_v49 = vld [vmem:[%s5486_s0 + $0x258] sm:$0xff] }
  0xe2   :  { %1071 = vmatprep.mubr.f32.mxu0 %v4587_v59  ;;  %1513 = vmatprep.mubr.f32.mxu1 %v4587_v59  ;;  %v4701_v51 = vld [vmem:[%s5486_s0 + $0x298] sm:$0xff] }
  0xe3   :  { %2957 = vmatpush1.bf16.msra.mxu0 %v2956_v61  ;;  %3005 = vmatpush1.bf16.msra.mxu1 %v3004_v1  ;;  %v4637_v61 = vld [vmem:[%s5486_s0 + $0x1f0] sm:$0xff]  ;;  %v4643_v1 = vld [vmem:[%s5486_s0 + $0x218] sm:$0xff] }
  0xe4   :  { %2958 = vmatprep.subr.bf16.mxu0 %v3143_v35  ;;  %3006 = vmatprep.subr.bf16.mxu1 %v3143_v35 }
  0xe5   :  { %1072 = vmatmul.mubr.f32.gmra.mrb[28].mxu0 %v4609_v13  ;;  %1514 = vmatmul.mubr.f32.gmra.mrb[28].mxu1 %v4609_v13 }
  0xe6   :  { %1077 = vmatprep.mubr.f32.mxu0 %v4615_v16  ;;  %1519 = vmatprep.mubr.f32.mxu1 %v4615_v16 }
  0xe7   :  { %2960 = vmatpush1.bf16.msra.mxu0 %v2959_v27  ;;  %3008 = vmatpush1.bf16.msra.mxu1 %v3007_v28  ;;  %v4681_v27 = vld [vmem:[%s5486_s0 + $0x250] sm:$0xff]  ;;  %v4687_v28 = vld [vmem:[%s5486_s0 + $0x278] sm:$0xff] }
  0xe8   :  { %2961 = vmatprep.subr.bf16.mxu0 %v3143_v35  ;;  %3009 = vmatprep.subr.bf16.mxu1 %v3143_v35  ;;  %v4667_v35 = vld [vmem:[%s5486_s0 + $0x230] sm:$0xff] }
  0xe9   :  { %1078 = vmatmul.mubr.f32.gmra.mrb[30].mxu0 %v4637_v61  ;;  %1520 = vmatmul.mubr.f32.gmra.mrb[30].mxu1 %v4637_v61 }
  0xea   :  { %1083 = vmatprep.mubr.f32.mxu0 %v4643_v1  ;;  %1525 = vmatprep.mubr.f32.mxu1 %v4643_v1 }
  0xeb   :  { %2963 = vmatpush1.bf16.msra.mxu0 %v2962_v52  ;;  %3011 = vmatpush1.bf16.msra.mxu1 %v3010_v12  ;;  %v4709_v52 = vld [vmem:[%s5486_s0 + $0x290] sm:$0xff]  ;;  %v4715_v12 = vld [vmem:[%s5486_s0 + $0x2b8] sm:$0xff] }
  0xec   :  { %5516 = vst [vmem:[#allocation11_spill] sm:$0xff] %v4715_v12 }
  0xed   :  { %1084 = vmatmul.mubr.f32.gmra.mrb[32].mxu0 %v4653_v47  ;;  %1526 = vmatmul.mubr.f32.gmra.mrb[32].mxu1 %v4653_v47 }
  0xee   :  { %1089 = vmatprep.mubr.f32.mxu0 %v4659_v48  ;;  %1531 = vmatprep.mubr.f32.mxu1 %v4659_v48 }
  0xf1   :  { %1090 = vmatmul.mubr.f32.gmra.mrb[34].mxu0 %v4667_v35  ;;  %1532 = vmatmul.mubr.f32.gmra.mrb[34].mxu1 %v4667_v35 }
  0xf2   :  { %1095 = vmatprep.mubr.f32.mxu0 %v4673_v49  ;;  %1537 = vmatprep.mubr.f32.mxu1 %v4673_v49 }
  0xf5   :  { %1096 = vmatmul.mubr.f32.gmra.mrb[36].mxu0 %v4681_v27  ;;  %1538 = vmatmul.mubr.f32.gmra.mrb[36].mxu1 %v4681_v27 }
  0xf6   :  { %1101 = vmatprep.mubr.f32.mxu0 %v4687_v28  ;;  %1543 = vmatprep.mubr.f32.mxu1 %v4687_v28 }
  0xf9   :  { %1102 = vmatmul.mubr.f32.gmra.mrb[38].mxu0 %v4695_v50  ;;  %1544 = vmatmul.mubr.f32.gmra.mrb[38].mxu1 %v4695_v50 }
  0xfa   :  { %1107 = vmatprep.mubr.f32.mxu0 %v4701_v51  ;;  %1549 = vmatprep.mubr.f32.mxu1 %v4701_v51 }
  0xfd   :  { %1108 = vmatmul.mubr.f32.gmra.mrb[40].mxu0 %v4709_v52  ;;  %1550 = vmatmul.mubr.f32.gmra.mrb[40].mxu1 %v4709_v52 }
  0xfe   :  { %1113 = vmatprep.mubr.f32.mxu0 %v4715_v12  ;;  %1555 = vmatprep.mubr.f32.mxu1 %v4715_v12  ;;  %v4743_v12 = vld [vmem:[%s5486_s0 + $0x2f8] sm:$0xff] }
  0xff   :  { %5520 = vst [vmem:[#allocation15_spill] sm:$0xff] %v4743_v12 }
 0x101   :  { %1114 = vmatmul.mubr.f32.gmra.mrb[42].mxu0 %v4723_v46  ;;  %1556 = vmatmul.mubr.f32.gmra.mrb[42].mxu1 %v4723_v46  ;;  %v4751_v46 = vld [vmem:[%s5486_s0 + $0x2f0] sm:$0xff] }
 0x102   :  { %1119 = vmatprep.mubr.f32.mxu0 %v4729_v45  ;;  %1561 = vmatprep.mubr.f32.mxu1 %v4729_v45  ;;  %5521 = vst [vmem:[#allocation16_spill] sm:$0xff] %v4751_v46  ;;  %v4757_v45 = vld [vmem:[%s5486_s0 + $0x318] sm:$0xff] }
 0x103   :  { %5522 = vst [vmem:[#allocation17_spill] sm:$0xff] %v4757_v45 }
 0x105   :  { %1120 = vmatmul.mubr.f32.gmra.mrb[44].mxu0 %v4737_v44  ;;  %1562 = vmatmul.mubr.f32.gmra.mrb[44].mxu1 %v4737_v44  ;;  %v4765_v44 = vld [vmem:[%s5486_s0 + $0x310] sm:$0xff] }
 0x106   :  { %1125 = vmatprep.mubr.f32.mxu0 %v4743_v12  ;;  %1567 = vmatprep.mubr.f32.mxu1 %v4743_v12  ;;  %5523 = vst [vmem:[#allocation18_spill] sm:$0xff] %v4765_v44  ;;  %v4771_v12 = vld [vmem:[%s5486_s0 + $0x338] sm:$0xff] }
 0x107   :  { %5524 = vst [vmem:[#allocation19_spill] sm:$0xff] %v4771_v12 }
 0x109   :  { %1126 = vmatmul.mubr.f32.gmra.mrb[46].mxu0 %v4751_v46  ;;  %1568 = vmatmul.mubr.f32.gmra.mrb[46].mxu1 %v4751_v46  ;;  %v4779_v46 = vld [vmem:[%s5486_s0 + $0x330] sm:$0xff] }
 0x10a   :  { %1131 = vmatprep.mubr.f32.mxu0 %v4757_v45  ;;  %1573 = vmatprep.mubr.f32.mxu1 %v4757_v45  ;;  %v3118_v45 = vld [vmem:[%s5486_s0 + $0x8] sm:$0xff] }
 0x10d   :  { %1132 = vmatmul.mubr.f32.gmra.mrb[48].mxu0 %v4765_v44  ;;  %1574 = vmatmul.mubr.f32.gmra.mrb[48].mxu1 %v4765_v44  ;;  %v3119_v44 = vld [vmem:[%s5486_s0] sm:$0xff] }
 0x10e   :  { %1137 = vmatprep.mubr.f32.mxu0 %v4771_v12  ;;  %1579 = vmatprep.mubr.f32.mxu1 %v4771_v12  ;;  %v3120_v12 = vld [vmem:[%s5486_s0 + $0x28] sm:$0xff] }
 0x111   :  { %1138 = vmatmul.mubr.f32.gmra.mrb[50].mxu0 %v4779_v46  ;;  %1580 = vmatmul.mubr.f32.gmra.mrb[50].mxu1 %v4779_v46 }
 0x112   :  { %1650 = vmatprep.mubr.f32.mxu0 %v3118_v45  ;;  %1845 = vmatprep.mubr.f32.mxu1 %v4199_v54  ;;  %v3121_v45 = vld [vmem:[%s5486_s0 + $0x20] sm:$0xff] }
 0x113   :  { %v3123_v54 = vld [vmem:[%s5486_s0 + $0x40] sm:$0xff] }
 0x115   :  { %1651 = vmatmul.mubr.f32.vlgmr.msra.gmra.mrb[52].mxu0 %v3119_v44  ;;  %1846 = vmatmul.mubr.f32.vlgmr.msra.gmra.mrb[52].mxu1 %v4219_v60  ;;  %v3122_v44 = vld [vmem:[%s5486_s0 + $0x48] sm:$0xff] }
 0x116   :  { %1655 = vmatprep.mubr.f32.mxu0 %v3120_v12  ;;  %1850 = vmatprep.mubr.f32.mxu1 %v4225_v63  ;;  %v3124_v60 = vld [vmem:[%s5486_s0 + $0x68] sm:$0xff]  ;;  %v3125_v63 = vld [vmem:[%s5486_s0 + $0x60] sm:$0xff] }
 0x119   :  { %1656 = vmatmul.mubr.f32.gmra.mrb[54].mxu0 %v3121_v45  ;;  %1851 = vmatmul.mubr.f32.gmra.mrb[54].mxu1 %v4244_v5  ;;  %v3126_v5 = vld [vmem:[%s5486_s0 + $0x88] sm:$0xff] }
 0x11a   :  { %1660 = vmatprep.mubr.f32.mxu0 %v3122_v44  ;;  %1855 = vmatprep.mubr.f32.mxu1 %v4250_v7  ;;  %v3127_v7 = vld [vmem:[%s5486_s0 + $0x80] sm:$0xff] }
 0x11d   :  { %1661 = vmatmul.mubr.f32.gmra.mrb[56].mxu0 %v3123_v54  ;;  %1856 = vmatmul.mubr.f32.gmra.mrb[56].mxu1 %v4273_v14  ;;  %v3128_v14 = vld [vmem:[%s5486_s0 + $0xa8] sm:$0xff] }
 0x11e   :  { %1665 = vmatprep.mubr.f32.mxu0 %v3124_v60  ;;  %1860 = vmatprep.mubr.f32.mxu1 %v4279_v15  ;;  %v3129_v15 = vld [vmem:[%s5486_s0 + $0xa0] sm:$0xff] }
 0x121   :  { %1666 = vmatmul.mubr.f32.gmra.mrb[58].mxu0 %v3125_v63  ;;  %1861 = vmatmul.mubr.f32.gmra.mrb[58].mxu1 %v4301_v24  ;;  %v3130_v24 = vld [vmem:[%s5486_s0 + $0xc8] sm:$0xff] }
 0x122   :  { %1670 = vmatprep.mubr.f32.mxu0 %v3126_v5  ;;  %1865 = vmatprep.mubr.f32.mxu1 %v4307_v25  ;;  %v3131_v25 = vld [vmem:[%s5486_s0 + $0xc0] sm:$0xff] }
 0x125   :  { %1671 = vmatmul.mubr.f32.gmra.mrb[60].mxu0 %v3127_v7  ;;  %1866 = vmatmul.mubr.f32.gmra.mrb[60].mxu1 %v4329_v57  ;;  %v3132_v57 = vld [vmem:[%s5486_s0 + $0xe8] sm:$0xff] }
 0x126   :  { %1675 = vmatprep.mubr.f32.mxu0 %v3128_v14  ;;  %1870 = vmatprep.mubr.f32.mxu1 %v4335_v58  ;;  %v3133_v58 = vld [vmem:[%s5486_s0 + $0xe0] sm:$0xff] }
 0x129   :  { %1676 = vmatmul.mubr.f32.gmra.mrb[62].mxu0 %v3129_v15  ;;  %1871 = vmatmul.mubr.f32.gmra.mrb[62].mxu1 %v4357_v4  ;;  %v3134_v4 = vld [vmem:[%s5486_s0 + $0x108] sm:$0xff] }
 0x12a   :  { %1680 = vmatprep.mubr.f32.mxu0 %v3130_v24  ;;  %1875 = vmatprep.mubr.f32.mxu1 %v4363_v8  ;;  %v3135_v8 = vld [vmem:[%s5486_s0 + $0x100] sm:$0xff] }
 0x12d   :  { %1681 = vmatmul.mubr.f32.gmra.mrb[64].mxu0 %v3131_v25  ;;  %1876 = vmatmul.mubr.f32.gmra.mrb[64].mxu1 %v4385_v18  ;;  %v3136_v18 = vld [vmem:[%s5486_s0 + $0x128] sm:$0xff] }
 0x12e   :  { %1685 = vmatprep.mubr.f32.mxu0 %v3132_v57  ;;  %1880 = vmatprep.mubr.f32.mxu1 %v4391_v19  ;;  %v3137_v19 = vld [vmem:[%s5486_s0 + $0x120] sm:$0xff] }
 0x131   :  { %1686 = vmatmul.mubr.f32.gmra.mrb[66].mxu0 %v3133_v58  ;;  %1881 = vmatmul.mubr.f32.gmra.mrb[66].mxu1 %v4413_v31  ;;  %v3138_v31 = vld [vmem:[%s5486_s0 + $0x148] sm:$0xff] }
 0x132   :  { %1690 = vmatprep.mubr.f32.mxu0 %v3134_v4  ;;  %1885 = vmatprep.mubr.f32.mxu1 %v4419_v32  ;;  %v3139_v32 = vld [vmem:[%s5486_s0 + $0x140] sm:$0xff] }
 0x135   :  { %1691 = vmatmul.mubr.f32.gmra.mrb[68].mxu0 %v3135_v8  ;;  %1886 = vmatmul.mubr.f32.gmra.mrb[68].mxu1 %v4441_v2  ;;  %v3140_v2 = vld [vmem:[%s5486_s0 + $0x168] sm:$0xff] }
 0x136   :  { %1695 = vmatprep.mubr.f32.mxu0 %v3136_v18  ;;  %1890 = vmatprep.mubr.f32.mxu1 %v4447_v9  ;;  %v3141_v9 = vld [vmem:[%s5486_s0 + $0x160] sm:$0xff] }
 0x139   :  { %1696 = vmatmul.mubr.f32.gmra.mrb[70].mxu0 %v3137_v19  ;;  %1891 = vmatmul.mubr.f32.gmra.mrb[70].mxu1 %v4469_v22  ;;  %v3142_v22 = vld [vmem:[%s5486_s0 + $0x188] sm:$0xff] }
 0x13a   :  { %1700 = vmatprep.mubr.f32.mxu0 %v3138_v31  ;;  %1895 = vmatprep.mubr.f32.mxu1 %v4475_v23  ;;  %v5542_v23 = vld [vmem:[#allocation10_spill] sm:$0xff] }
 0x13d   :  { %1701 = vmatmul.mubr.f32.gmra.mrb[72].mxu0 %v3139_v32  ;;  %1896 = vmatmul.mubr.f32.gmra.mrb[72].mxu1 %v4497_v62 }
 0x13e   :  { %1705 = vmatprep.mubr.f32.mxu0 %v3140_v2  ;;  %1900 = vmatprep.mubr.f32.mxu1 %v4503_v0  ;;  %v4944_v0 = vld [vmem:[%s5487_s2] sm:$0x1f] }
 0x141   :  { %1706 = vmatmul.mubr.f32.gmra.mrb[74].mxu0 %v3141_v9  ;;  %1901 = vmatmul.mubr.f32.gmra.mrb[74].mxu1 %v4525_v21 }
 0x142   :  { %1710 = vmatprep.mubr.f32.mxu0 %v3142_v22  ;;  %1905 = vmatprep.mubr.f32.mxu1 %v4531_v26 }
 0x145   :  { %1711 = vmatmul.mubr.f32.gmra.mrb[76].mxu0 %v3944_v53  ;;  %1906 = vmatmul.mubr.f32.gmra.mrb[76].mxu1 %v4553_v10  ;;  %v5525_v53 = vld [vmem:[#allocation11_spill] sm:$0xff] }
 0x146   :  { %1715 = vmatprep.mubr.f32.mxu0 %v3955_v56  ;;  %1910 = vmatprep.mubr.f32.mxu1 %v4559_v11  ;;  %v5526_v56 = vld [vmem:[#allocation2_spill] sm:$0xff] }
 0x149   :  { %1716 = vmatmul.mubr.f32.gmra.mrb[78].mxu0 %v3981_v3  ;;  %1911 = vmatmul.mubr.f32.gmra.mrb[78].mxu1 %v4581_v55  ;;  %v5527_v3 = vld [vmem:[#allocation12_spill] sm:$0xff] }
 0x14a   :  { %1720 = vmatprep.mubr.f32.mxu0 %v3993_v6  ;;  %1915 = vmatprep.mubr.f32.mxu1 %v4587_v59  ;;  %v5528_v6 = vld [vmem:[#allocation3_spill] sm:$0xff] }
 0x14d   :  { %1721 = vmatmul.mubr.f32.gmra.mrb[80].mxu0 %v4019_v17  ;;  %1916 = vmatmul.mubr.f32.gmra.mrb[80].mxu1 %v4609_v13  ;;  %v5529_v17 = vld [vmem:[#allocation13_spill] sm:$0xff] }
 0x14e   :  { %1725 = vmatprep.mubr.f32.mxu0 %v4031_v20  ;;  %1920 = vmatprep.mubr.f32.mxu1 %v4615_v16  ;;  %v5530_v20 = vld [vmem:[#allocation4_spill] sm:$0xff] }
 0x151   :  { %1726 = vmatmul.mubr.f32.gmra.mrb[82].mxu0 %v4051_v29  ;;  %1921 = vmatmul.mubr.f32.gmra.mrb[82].mxu1 %v4637_v61  ;;  %v5531_v29 = vld [vmem:[#allocation14_spill] sm:$0xff] }
 0x152   :  { %1730 = vmatprep.mubr.f32.mxu0 %v4057_v30  ;;  %1925 = vmatprep.mubr.f32.mxu1 %v4643_v1  ;;  %v5532_v30 = vld [vmem:[#allocation5_spill] sm:$0xff] }
 0x155   :  { %1731 = vmatmul.mubr.f32.gmra.mrb[84].mxu0 %v4065_v33  ;;  %1926 = vmatmul.mubr.f32.gmra.mrb[84].mxu1 %v4653_v47  ;;  %v5533_v33 = vld [vmem:[#allocation15_spill] sm:$0xff] }
 0x156   :  { %1735 = vmatprep.mubr.f32.mxu0 %v4071_v34  ;;  %1930 = vmatprep.mubr.f32.mxu1 %v4659_v48  ;;  %v5534_v34 = vld [vmem:[#allocation6_spill] sm:$0xff] }
 0x159   :  { %1736 = vmatmul.mubr.f32.gmra.mrb[86].mxu0 %v4081_v36  ;;  %1931 = vmatmul.mubr.f32.gmra.mrb[86].mxu1 %v4667_v35  ;;  %v5535_v36 = vld [vmem:[#allocation16_spill] sm:$0xff] }
 0x15a   :  { %1740 = vmatprep.mubr.f32.mxu0 %v4087_v37  ;;  %1935 = vmatprep.mubr.f32.mxu1 %v4673_v49  ;;  %v5536_v37 = vld [vmem:[#allocation7_spill] sm:$0xff] }
 0x15d   :  { %1741 = vmatmul.mubr.f32.gmra.mrb[88].mxu0 %v4095_v38  ;;  %1936 = vmatmul.mubr.f32.gmra.mrb[88].mxu1 %v4681_v27  ;;  %v5537_v38 = vld [vmem:[#allocation17_spill] sm:$0xff] }
 0x15e   :  { %1745 = vmatprep.mubr.f32.mxu0 %v4101_v39  ;;  %1940 = vmatprep.mubr.f32.mxu1 %v4687_v28  ;;  %v2371_v39 = vlaneseq }
 0x160   :  { %v4936_v47 = vshrl.u32 %v2371_v39, 7 }
 0x161   :  { %1746 = vmatmul.mubr.f32.gmra.mrb[90].mxu0 %v4109_v40  ;;  %1941 = vmatmul.mubr.f32.gmra.mrb[90].mxu1 %v4695_v50  ;;  %v5538_v40 = vld [vmem:[#allocation8_spill] sm:$0xff] }
 0x162   :  { %1750 = vmatprep.mubr.f32.mxu0 %v4115_v41  ;;  %1945 = vmatprep.mubr.f32.mxu1 %v4701_v51  ;;  %v5539_v41 = vld [vmem:[#allocation18_spill] sm:$0xff]  ;;  %v2373_v62 = vsub.s32 0, %v4936_v47  ;;  %v2381_v21 = vsub.s32 2, %v4936_v47  ;;  %v2377_v26 = vsub.s32 1, %v4936_v47  ;;  %v2385_v10 = vsub.s32 3, %v4936_v47 }
 0x164   :  { %v4950_v11 = vrot.slane %v4944_v0, %v2373_v62  ;;  %v4953_v59 = vrot.slane %v4944_v0, %v2381_v21  ;;  %v4959_v61 = vrot.slane %v4944_v0, %v2385_v10 }
 0x165   :  { %1751 = vmatmul.mubr.f32.gmra.mrb[92].mxu0 %v4123_v42  ;;  %1946 = vmatmul.mubr.f32.gmra.mrb[92].mxu1 %v4709_v52  ;;  %v5540_v42 = vld [vmem:[#allocation9_spill] sm:$0xff] }
 0x166   :  { %1755 = vmatprep.mubr.f32.mxu0 %v4129_v43  ;;  %1950 = vmatprep.mubr.f32.mxu1 %v5525_v53  ;;  %v5541_v43 = vld [vmem:[#allocation19_spill] sm:$0xff] }
 0x169   :  { %1756 = vmatmul.mubr.f32.gmra.mrb[94].mxu0 %v5526_v56  ;;  %1951 = vmatmul.mubr.f32.gmra.mrb[94].mxu1 %v5527_v3 }
 0x16a   :  { %1760 = vmatprep.mubr.f32.mxu0 %v5528_v6  ;;  %1955 = vmatprep.mubr.f32.mxu1 %v5529_v17 }
 0x16d   :  { %1761 = vmatmul.mubr.f32.gmra.mrb[96].mxu0 %v5530_v20  ;;  %1956 = vmatmul.mubr.f32.gmra.mrb[96].mxu1 %v5531_v29 }
 0x16e   :  { %1765 = vmatprep.mubr.f32.mxu0 %v5532_v30  ;;  %1960 = vmatprep.mubr.f32.mxu1 %v5533_v33 }
 0x171   :  { %1766 = vmatmul.mubr.f32.gmra.mrb[98].mxu0 %v5534_v34  ;;  %1961 = vmatmul.mubr.f32.gmra.mrb[98].mxu1 %v5535_v36 }
 0x172   :  { %1770 = vmatprep.mubr.f32.mxu0 %v5536_v37  ;;  %1965 = vmatprep.mubr.f32.mxu1 %v5537_v38 }
 0x175   :  { %1771 = vmatmul.mubr.f32.gmra.mrb[100].mxu0 %v5538_v40  ;;  %1966 = vmatmul.mubr.f32.gmra.mrb[100].mxu1 %v5539_v41 }
 0x176   :  { %1775 = vmatprep.mubr.f32.mxu0 %v5540_v42  ;;  %1970 = vmatprep.mubr.f32.mxu1 %v5541_v43 }
 0x179   :  { %1776 = vmatmul.mubr.f32.gmra.mrb[102].mxu0 %v5542_v23  ;;  %1971 = vmatmul.mubr.f32.gmra.mrb[102].mxu1 %v4779_v46  ;;  %v4956_v46 = vrot.slane %v4944_v0, %v2377_v26 }
 0x180   :  { %v989_v55 = vpop.f32.mrb[0].mxu0  ;;  %v1431_v13 = vpop.f32.mrb[0].mxu1 }
 0x181   :  { %v991_v16 = vpop.f32.mrb[1].mxu0  ;;  %v1433_v1 = vpop.f32.mrb[1].mxu1  ;;  %v2396_v48 = vadd.f32 %v4950_v11, %v989_v55  ;;  %v2398_v35 = vadd.f32 %v4953_v59, %v1431_v13 }
 0x182   :  { %v2397_v49 = vadd.f32 %v4956_v46, %v991_v16  ;;  %v2399_v28 = vadd.f32 %v4959_v61, %v1433_v1 }
 0x183   :  { %2526 = vst [vmem:[%s5488_s3] sm:$0xff] %v2396_v48  ;;  %2528 = vst [vmem:[%s5488_s3 + $0x10] sm:$0xff] %v2398_v35 }
 0x184   :  { %v995_v27 = vpop.f32.mrb[2].mxu0  ;;  %v1437_v50 = vpop.f32.mrb[2].mxu1  ;;  %2527 = vst [vmem:[%s5488_s3 + $0x8] sm:$0xff] %v2397_v49  ;;  %2529 = vst [vmem:[%s5488_s3 + $0x18] sm:$0xff] %v2399_v28 }
 0x185   :  { %v997_v51 = vpop.f32.mrb[3].mxu0  ;;  %v1439_v52 = vpop.f32.mrb[3].mxu1  ;;  %v2401_v12 = vadd.f32 %v4950_v11, %v995_v27  ;;  %v2403_v45 = vadd.f32 %v4953_v59, %v1437_v50 }
 0x186   :  { %v2402_v44 = vadd.f32 %v4956_v46, %v997_v51  ;;  %v2404_v60 = vadd.f32 %v4959_v61, %v1439_v52 }
 0x187   :  { %2531 = vst [vmem:[%s5488_s3 + $0x28] sm:$0xff] %v2401_v12  ;;  %2533 = vst [vmem:[%s5488_s3 + $0x38] sm:$0xff] %v2403_v45 }
 0x188   :  { %v1001_v54 = vpop.f32.mrb[4].mxu0  ;;  %v1443_v63 = vpop.f32.mrb[4].mxu1  ;;  %2532 = vst [vmem:[%s5488_s3 + $0x30] sm:$0xff] %v2402_v44  ;;  %2534 = vst [vmem:[%s5488_s3 + $0x40] sm:$0xff] %v2404_v60 }
 0x189   :  { %v1003_v5 = vpop.f32.mrb[5].mxu0  ;;  %v1445_v7 = vpop.f32.mrb[5].mxu1  ;;  %v2406_v14 = vadd.f32 %v4950_v11, %v1001_v54  ;;  %v2408_v15 = vadd.f32 %v4953_v59, %v1443_v63 }
 0x18a   :  { %v2407_v24 = vadd.f32 %v4956_v46, %v1003_v5  ;;  %v2409_v57 = vadd.f32 %v4959_v61, %v1445_v7 }
 0x18b   :  { %2536 = vst [vmem:[%s5488_s3 + $0x50] sm:$0xff] %v2406_v14  ;;  %2538 = vst [vmem:[%s5488_s3 + $0x60] sm:$0xff] %v2408_v15 }
 0x18c   :  { %v1007_v25 = vpop.f32.mrb[6].mxu0  ;;  %v1449_v58 = vpop.f32.mrb[6].mxu1  ;;  %2537 = vst [vmem:[%s5488_s3 + $0x58] sm:$0xff] %v2407_v24  ;;  %2539 = vst [vmem:[%s5488_s3 + $0x68] sm:$0xff] %v2409_v57 }
 0x18d   :  { %v1009_v4 = vpop.f32.mrb[7].mxu0  ;;  %v1451_v8 = vpop.f32.mrb[7].mxu1  ;;  %v2411_v18 = vadd.f32 %v4950_v11, %v1007_v25  ;;  %v2413_v19 = vadd.f32 %v4953_v59, %v1449_v58 }
 0x18e   :  { %v2412_v31 = vadd.f32 %v4956_v46, %v1009_v4  ;;  %v2414_v2 = vadd.f32 %v4959_v61, %v1451_v8 }
 0x18f   :  { %2541 = vst [vmem:[%s5488_s3 + $0x78] sm:$0xff] %v2411_v18  ;;  %2543 = vst [vmem:[%s5488_s3 + $0x88] sm:$0xff] %v2413_v19 }
 0x190   :  { %v1013_v32 = vpop.f32.mrb[8].mxu0  ;;  %v1455_v9 = vpop.f32.mrb[8].mxu1  ;;  %2542 = vst [vmem:[%s5488_s3 + $0x80] sm:$0xff] %v2412_v31  ;;  %2544 = vst [vmem:[%s5488_s3 + $0x90] sm:$0xff] %v2414_v2 }
 0x191   :  { %v1015_v22 = vpop.f32.mrb[9].mxu0  ;;  %v1457_v53 = vpop.f32.mrb[9].mxu1  ;;  %v2416_v56 = vadd.f32 %v4950_v11, %v1013_v32  ;;  %v2418_v3 = vadd.f32 %v4953_v59, %v1455_v9 }
 0x192   :  { %v2417_v6 = vadd.f32 %v4956_v46, %v1015_v22  ;;  %v2419_v20 = vadd.f32 %v4959_v61, %v1457_v53 }
 0x193   :  { %2546 = vst [vmem:[%s5488_s3 + $0xa0] sm:$0xff] %v2416_v56  ;;  %2548 = vst [vmem:[%s5488_s3 + $0xb0] sm:$0xff] %v2418_v3 }
 0x194   :  { %v1019_v17 = vpop.f32.mrb[10].mxu0  ;;  %v1461_v29 = vpop.f32.mrb[10].mxu1  ;;  %2547 = vst [vmem:[%s5488_s3 + $0xa8] sm:$0xff] %v2417_v6  ;;  %2549 = vst [vmem:[%s5488_s3 + $0xb8] sm:$0xff] %v2419_v20 }
 0x195   :  { %v1021_v30 = vpop.f32.mrb[11].mxu0  ;;  %v1463_v33 = vpop.f32.mrb[11].mxu1  ;;  %v2421_v34 = vadd.f32 %v4950_v11, %v1019_v17  ;;  %v2423_v36 = vadd.f32 %v4953_v59, %v1461_v29 }
 0x196   :  { %v2422_v37 = vadd.f32 %v4956_v46, %v1021_v30  ;;  %v2424_v39 = vadd.f32 %v4959_v61, %v1463_v33 }
 0x197   :  { %2551 = vst [vmem:[%s5488_s3 + $0xc8] sm:$0xff] %v2421_v34  ;;  %2553 = vst [vmem:[%s5488_s3 + $0xd8] sm:$0xff] %v2423_v36 }
 0x198   :  { %v1025_v38 = vpop.f32.mrb[12].mxu0  ;;  %v1467_v40 = vpop.f32.mrb[12].mxu1  ;;  %2552 = vst [vmem:[%s5488_s3 + $0xd0] sm:$0xff] %v2422_v37  ;;  %2554 = vst [vmem:[%s5488_s3 + $0xe0] sm:$0xff] %v2424_v39 }
 0x199   :  { %v1027_v41 = vpop.f32.mrb[13].mxu0  ;;  %v1469_v42 = vpop.f32.mrb[13].mxu1  ;;  %v2426_v43 = vadd.f32 %v4950_v11, %v1025_v38  ;;  %v2428_v23 = vadd.f32 %v4953_v59, %v1467_v40 }
 0x19a   :  { %v2427_v62 = vadd.f32 %v4956_v46, %v1027_v41  ;;  %v2429_v26 = vadd.f32 %v4959_v61, %v1469_v42 }
 0x19b   :  { %2556 = vst [vmem:[%s5488_s3 + $0xf0] sm:$0xff] %v2426_v43  ;;  %2558 = vst [vmem:[%s5488_s3 + $0x100] sm:$0xff] %v2428_v23 }
 0x19c   :  { %v1031_v21 = vpop.f32.mrb[14].mxu0  ;;  %v1473_v10 = vpop.f32.mrb[14].mxu1  ;;  %2557 = vst [vmem:[%s5488_s3 + $0xf8] sm:$0xff] %v2427_v62  ;;  %2559 = vst [vmem:[%s5488_s3 + $0x108] sm:$0xff] %v2429_v26 }
 0x19d   :  { %v1033_v55 = vpop.f32.mrb[15].mxu0  ;;  %v1475_v13 = vpop.f32.mrb[15].mxu1  ;;  %v2431_v16 = vadd.f32 %v4950_v11, %v1031_v21  ;;  %v2433_v1 = vadd.f32 %v4953_v59, %v1473_v10 }
 0x19e   :  { %v2432_v48 = vadd.f32 %v4956_v46, %v1033_v55  ;;  %v2434_v49 = vadd.f32 %v4959_v61, %v1475_v13 }
 0x19f   :  { %2561 = vst [vmem:[%s5488_s3 + $0x118] sm:$0xff] %v2431_v16  ;;  %2563 = vst [vmem:[%s5488_s3 + $0x128] sm:$0xff] %v2433_v1 }
 0x1a0   :  { %v1037_v35 = vpop.f32.mrb[16].mxu0  ;;  %v1479_v27 = vpop.f32.mrb[16].mxu1  ;;  %2562 = vst [vmem:[%s5488_s3 + $0x120] sm:$0xff] %v2432_v48  ;;  %2564 = vst [vmem:[%s5488_s3 + $0x130] sm:$0xff] %v2434_v49 }
 0x1a1   :  { %v1039_v28 = vpop.f32.mrb[17].mxu0  ;;  %v1481_v50 = vpop.f32.mrb[17].mxu1  ;;  %v2436_v51 = vadd.f32 %v4950_v11, %v1037_v35  ;;  %v2438_v52 = vadd.f32 %v4953_v59, %v1479_v27 }
 0x1a2   :  { %v2437_v12 = vadd.f32 %v4956_v46, %v1039_v28  ;;  %v2439_v44 = vadd.f32 %v4959_v61, %v1481_v50 }
 0x1a3   :  { %2566 = vst [vmem:[%s5488_s3 + $0x140] sm:$0xff] %v2436_v51  ;;  %2568 = vst [vmem:[%s5488_s3 + $0x150] sm:$0xff] %v2438_v52 }
 0x1a4   :  { %v1043_v45 = vpop.f32.mrb[18].mxu0  ;;  %v1485_v54 = vpop.f32.mrb[18].mxu1  ;;  %2567 = vst [vmem:[%s5488_s3 + $0x148] sm:$0xff] %v2437_v12  ;;  %2569 = vst [vmem:[%s5488_s3 + $0x158] sm:$0xff] %v2439_v44 }
 0x1a5   :  { %v1045_v60 = vpop.f32.mrb[19].mxu0  ;;  %v1487_v63 = vpop.f32.mrb[19].mxu1  ;;  %v2441_v5 = vadd.f32 %v4950_v11, %v1043_v45  ;;  %v2443_v7 = vadd.f32 %v4953_v59, %v1485_v54 }
 0x1a6   :  { %v2442_v14 = vadd.f32 %v4956_v46, %v1045_v60  ;;  %v2444_v24 = vadd.f32 %v4959_v61, %v1487_v63 }
 0x1a7   :  { %2571 = vst [vmem:[%s5488_s3 + $0x168] sm:$0xff] %v2441_v5  ;;  %2573 = vst [vmem:[%s5488_s3 + $0x178] sm:$0xff] %v2443_v7 }
 0x1a8   :  { %v1049_v15 = vpop.f32.mrb[20].mxu0  ;;  %v1491_v25 = vpop.f32.mrb[20].mxu1  ;;  %2572 = vst [vmem:[%s5488_s3 + $0x170] sm:$0xff] %v2442_v14  ;;  %2574 = vst [vmem:[%s5488_s3 + $0x180] sm:$0xff] %v2444_v24 }
 0x1a9   :  { %v1051_v57 = vpop.f32.mrb[21].mxu0  ;;  %v1493_v58 = vpop.f32.mrb[21].mxu1  ;;  %v2446_v4 = vadd.f32 %v4950_v11, %v1049_v15  ;;  %v2448_v8 = vadd.f32 %v4953_v59, %v1491_v25 }
 0x1aa   :  { %v2447_v18 = vadd.f32 %v4956_v46, %v1051_v57  ;;  %v2449_v31 = vadd.f32 %v4959_v61, %v1493_v58 }
 0x1ab   :  { %2576 = vst [vmem:[%s5488_s3 + $0x190] sm:$0xff] %v2446_v4  ;;  %2578 = vst [vmem:[%s5488_s3 + $0x1a0] sm:$0xff] %v2448_v8 }
 0x1ac   :  { %v1055_v19 = vpop.f32.mrb[22].mxu0  ;;  %v1497_v32 = vpop.f32.mrb[22].mxu1  ;;  %2577 = vst [vmem:[%s5488_s3 + $0x198] sm:$0xff] %v2447_v18  ;;  %2579 = vst [vmem:[%s5488_s3 + $0x1a8] sm:$0xff] %v2449_v31 }
 0x1ad   :  { %v1057_v2 = vpop.f32.mrb[23].mxu0  ;;  %v1499_v9 = vpop.f32.mrb[23].mxu1  ;;  %v2451_v22 = vadd.f32 %v4950_v11, %v1055_v19  ;;  %v2453_v53 = vadd.f32 %v4953_v59, %v1497_v32 }
 0x1ae   :  { %v2452_v56 = vadd.f32 %v4956_v46, %v1057_v2  ;;  %v2454_v6 = vadd.f32 %v4959_v61, %v1499_v9 }
 0x1af   :  { %2581 = vst [vmem:[%s5488_s3 + $0x1b8] sm:$0xff] %v2451_v22  ;;  %2583 = vst [vmem:[%s5488_s3 + $0x1c8] sm:$0xff] %v2453_v53 }
 0x1b0   :  { %v1061_v3 = vpop.f32.mrb[24].mxu0  ;;  %v1503_v17 = vpop.f32.mrb[24].mxu1  ;;  %2582 = vst [vmem:[%s5488_s3 + $0x1c0] sm:$0xff] %v2452_v56  ;;  %2584 = vst [vmem:[%s5488_s3 + $0x1d0] sm:$0xff] %v2454_v6 }
 0x1b1   :  { %v1063_v20 = vpop.f32.mrb[25].mxu0  ;;  %v1505_v29 = vpop.f32.mrb[25].mxu1  ;;  %v2456_v30 = vadd.f32 %v4950_v11, %v1061_v3  ;;  %v2458_v33 = vadd.f32 %v4953_v59, %v1503_v17 }
 0x1b2   :  { %v2457_v34 = vadd.f32 %v4956_v46, %v1063_v20  ;;  %v2459_v37 = vadd.f32 %v4959_v61, %v1505_v29 }
 0x1b3   :  { %2586 = vst [vmem:[%s5488_s3 + $0x1e0] sm:$0xff] %v2456_v30  ;;  %2588 = vst [vmem:[%s5488_s3 + $0x1f0] sm:$0xff] %v2458_v33 }
 0x1b4   :  { %v1067_v36 = vpop.f32.mrb[26].mxu0  ;;  %v1509_v38 = vpop.f32.mrb[26].mxu1  ;;  %2587 = vst [vmem:[%s5488_s3 + $0x1e8] sm:$0xff] %v2457_v34  ;;  %2589 = vst [vmem:[%s5488_s3 + $0x1f8] sm:$0xff] %v2459_v37 }
 0x1b5   :  { %v1069_v39 = vpop.f32.mrb[27].mxu0  ;;  %v1511_v40 = vpop.f32.mrb[27].mxu1  ;;  %v2461_v41 = vadd.f32 %v4950_v11, %v1067_v36  ;;  %v2463_v42 = vadd.f32 %v4953_v59, %v1509_v38 }
 0x1b6   :  { %v2462_v43 = vadd.f32 %v4956_v46, %v1069_v39  ;;  %v2464_v62 = vadd.f32 %v4959_v61, %v1511_v40 }
 0x1b7   :  { %2591 = vst [vmem:[%s5488_s3 + $0x208] sm:$0xff] %v2461_v41  ;;  %2593 = vst [vmem:[%s5488_s3 + $0x218] sm:$0xff] %v2463_v42 }
 0x1b8   :  { %v1073_v23 = vpop.f32.mrb[28].mxu0  ;;  %v1515_v21 = vpop.f32.mrb[28].mxu1  ;;  %2592 = vst [vmem:[%s5488_s3 + $0x210] sm:$0xff] %v2462_v43  ;;  %2594 = vst [vmem:[%s5488_s3 + $0x220] sm:$0xff] %v2464_v62 }
 0x1b9   :  { %v1075_v26 = vpop.f32.mrb[29].mxu0  ;;  %v1517_v10 = vpop.f32.mrb[29].mxu1  ;;  %v2466_v55 = vadd.f32 %v4950_v11, %v1073_v23  ;;  %v2468_v13 = vadd.f32 %v4953_v59, %v1515_v21 }
 0x1ba   :  { %v2467_v16 = vadd.f32 %v4956_v46, %v1075_v26  ;;  %v2469_v48 = vadd.f32 %v4959_v61, %v1517_v10 }
 0x1bb   :  { %2596 = vst [vmem:[%s5488_s3 + $0x230] sm:$0xff] %v2466_v55  ;;  %2598 = vst [vmem:[%s5488_s3 + $0x240] sm:$0xff] %v2468_v13 }
 0x1bc   :  { %v1079_v1 = vpop.f32.mrb[30].mxu0  ;;  %v1521_v35 = vpop.f32.mrb[30].mxu1  ;;  %2597 = vst [vmem:[%s5488_s3 + $0x238] sm:$0xff] %v2467_v16  ;;  %2599 = vst [vmem:[%s5488_s3 + $0x248] sm:$0xff] %v2469_v48 }
 0x1bd   :  { %v1081_v49 = vpop.f32.mrb[31].mxu0  ;;  %v1523_v27 = vpop.f32.mrb[31].mxu1  ;;  %v2471_v28 = vadd.f32 %v4950_v11, %v1079_v1  ;;  %v2473_v50 = vadd.f32 %v4953_v59, %v1521_v35 }
 0x1be   :  { %v2472_v51 = vadd.f32 %v4956_v46, %v1081_v49  ;;  %v2474_v12 = vadd.f32 %v4959_v61, %v1523_v27 }
 0x1bf   :  { %2601 = vst [vmem:[%s5488_s3 + $0x258] sm:$0xff] %v2471_v28  ;;  %2603 = vst [vmem:[%s5488_s3 + $0x268] sm:$0xff] %v2473_v50 }
 0x1c0   :  { %v1085_v52 = vpop.f32.mrb[32].mxu0  ;;  %v1527_v45 = vpop.f32.mrb[32].mxu1  ;;  %2602 = vst [vmem:[%s5488_s3 + $0x260] sm:$0xff] %v2472_v51  ;;  %2604 = vst [vmem:[%s5488_s3 + $0x270] sm:$0xff] %v2474_v12 }
 0x1c1   :  { %v1087_v44 = vpop.f32.mrb[33].mxu0  ;;  %v1529_v54 = vpop.f32.mrb[33].mxu1  ;;  %v2476_v60 = vadd.f32 %v4950_v11, %v1085_v52  ;;  %v2478_v63 = vadd.f32 %v4953_v59, %v1527_v45 }
 0x1c2   :  { %v2477_v5 = vadd.f32 %v4956_v46, %v1087_v44  ;;  %v2479_v14 = vadd.f32 %v4959_v61, %v1529_v54 }
 0x1c3   :  { %2606 = vst [vmem:[%s5488_s3 + $0x280] sm:$0xff] %v2476_v60  ;;  %2608 = vst [vmem:[%s5488_s3 + $0x290] sm:$0xff] %v2478_v63 }
 0x1c4   :  { %v1091_v7 = vpop.f32.mrb[34].mxu0  ;;  %v1533_v15 = vpop.f32.mrb[34].mxu1  ;;  %2607 = vst [vmem:[%s5488_s3 + $0x288] sm:$0xff] %v2477_v5  ;;  %2609 = vst [vmem:[%s5488_s3 + $0x298] sm:$0xff] %v2479_v14 }
 0x1c5   :  { %v1093_v24 = vpop.f32.mrb[35].mxu0  ;;  %v1535_v25 = vpop.f32.mrb[35].mxu1  ;;  %v2481_v57 = vadd.f32 %v4950_v11, %v1091_v7  ;;  %v2483_v58 = vadd.f32 %v4953_v59, %v1533_v15 }
 0x1c6   :  { %v2482_v4 = vadd.f32 %v4956_v46, %v1093_v24  ;;  %v2484_v18 = vadd.f32 %v4959_v61, %v1535_v25 }
 0x1c7   :  { %2611 = vst [vmem:[%s5488_s3 + $0x2a8] sm:$0xff] %v2481_v57  ;;  %2613 = vst [vmem:[%s5488_s3 + $0x2b8] sm:$0xff] %v2483_v58 }
 0x1c8   :  { %v1097_v8 = vpop.f32.mrb[36].mxu0  ;;  %v1539_v19 = vpop.f32.mrb[36].mxu1  ;;  %2612 = vst [vmem:[%s5488_s3 + $0x2b0] sm:$0xff] %v2482_v4  ;;  %2614 = vst [vmem:[%s5488_s3 + $0x2c0] sm:$0xff] %v2484_v18 }
 0x1c9   :  { %v1099_v31 = vpop.f32.mrb[37].mxu0  ;;  %v1541_v32 = vpop.f32.mrb[37].mxu1  ;;  %v2486_v2 = vadd.f32 %v4950_v11, %v1097_v8  ;;  %v2488_v9 = vadd.f32 %v4953_v59, %v1539_v19 }
 0x1ca   :  { %v2487_v22 = vadd.f32 %v4956_v46, %v1099_v31  ;;  %v2489_v56 = vadd.f32 %v4959_v61, %v1541_v32  ;;  %v2389_v31 = vsub.s32 4, %v4936_v47 }
 0x1cb   :  { %2616 = vst [vmem:[%s5488_s3 + $0x2d0] sm:$0xff] %v2486_v2  ;;  %2618 = vst [vmem:[%s5488_s3 + $0x2e0] sm:$0xff] %v2488_v9 }
 0x1cc   :  { %v1103_v53 = vpop.f32.mrb[38].mxu0  ;;  %v1545_v3 = vpop.f32.mrb[38].mxu1  ;;  %2617 = vst [vmem:[%s5488_s3 + $0x2d8] sm:$0xff] %v2487_v22  ;;  %2619 = vst [vmem:[%s5488_s3 + $0x2e8] sm:$0xff] %v2489_v56 }
 0x1cd   :  { %v1105_v6 = vpop.f32.mrb[39].mxu0  ;;  %v1547_v17 = vpop.f32.mrb[39].mxu1  ;;  %v2491_v20 = vadd.f32 %v4950_v11, %v1103_v53  ;;  %v2493_v29 = vadd.f32 %v4953_v59, %v1545_v3 }
 0x1ce   :  { %v2492_v30 = vadd.f32 %v4956_v46, %v1105_v6  ;;  %v2494_v34 = vadd.f32 %v4959_v61, %v1547_v17 }
 0x1cf   :  { %2621 = vst [vmem:[%s5488_s3 + $0x2f8] sm:$0xff] %v2491_v20  ;;  %2623 = vst [vmem:[%s5488_s3 + $0x308] sm:$0xff] %v2493_v29 }
 0x1d0   :  { %v1109_v33 = vpop.f32.mrb[40].mxu0  ;;  %v1551_v36 = vpop.f32.mrb[40].mxu1  ;;  %2622 = vst [vmem:[%s5488_s3 + $0x300] sm:$0xff] %v2492_v30  ;;  %2624 = vst [vmem:[%s5488_s3 + $0x310] sm:$0xff] %v2494_v34 }
 0x1d1   :  { %v1111_v37 = vpop.f32.mrb[41].mxu0  ;;  %v1553_v38 = vpop.f32.mrb[41].mxu1  ;;  %v2496_v39 = vadd.f32 %v4950_v11, %v1109_v33  ;;  %v2498_v40 = vadd.f32 %v4953_v59, %v1551_v36 }
 0x1d2   :  { %v2497_v41 = vadd.f32 %v4956_v46, %v1111_v37  ;;  %v2499_v43 = vadd.f32 %v4959_v61, %v1553_v38 }
 0x1d3   :  { %2626 = vst [vmem:[%s5488_s3 + $0x320] sm:$0xff] %v2496_v39  ;;  %2628 = vst [vmem:[%s5488_s3 + $0x330] sm:$0xff] %v2498_v40 }
 0x1d4   :  { %v1115_v42 = vpop.f32.mrb[42].mxu0  ;;  %v1557_v23 = vpop.f32.mrb[42].mxu1  ;;  %2627 = vst [vmem:[%s5488_s3 + $0x328] sm:$0xff] %v2497_v41  ;;  %2629 = vst [vmem:[%s5488_s3 + $0x338] sm:$0xff] %v2499_v43 }
 0x1d5   :  { %v1117_v62 = vpop.f32.mrb[43].mxu0  ;;  %v1559_v21 = vpop.f32.mrb[43].mxu1  ;;  %v2501_v26 = vadd.f32 %v4950_v11, %v1115_v42  ;;  %v2503_v10 = vadd.f32 %v4953_v59, %v1557_v23 }
 0x1d6   :  { %v2502_v55 = vadd.f32 %v4956_v46, %v1117_v62  ;;  %v2504_v16 = vadd.f32 %v4959_v61, %v1559_v21 }
 0x1d7   :  { %2631 = vst [vmem:[%s5488_s3 + $0x348] sm:$0xff] %v2501_v26  ;;  %2633 = vst [vmem:[%s5488_s3 + $0x358] sm:$0xff] %v2503_v10 }
 0x1d8   :  { %v1121_v13 = vpop.f32.mrb[44].mxu0  ;;  %v1563_v1 = vpop.f32.mrb[44].mxu1  ;;  %2632 = vst [vmem:[%s5488_s3 + $0x350] sm:$0xff] %v2502_v55  ;;  %2634 = vst [vmem:[%s5488_s3 + $0x360] sm:$0xff] %v2504_v16 }
 0x1d9   :  { %v1123_v48 = vpop.f32.mrb[45].mxu0  ;;  %v1565_v35 = vpop.f32.mrb[45].mxu1  ;;  %v2506_v49 = vadd.f32 %v4950_v11, %v1121_v13  ;;  %v2508_v27 = vadd.f32 %v4953_v59, %v1563_v1 }
 0x1da   :  { %v2507_v28 = vadd.f32 %v4956_v46, %v1123_v48  ;;  %v2509_v51 = vadd.f32 %v4959_v61, %v1565_v35 }
 0x1db   :  { %2636 = vst [vmem:[%s5488_s3 + $0x370] sm:$0xff] %v2506_v49  ;;  %2638 = vst [vmem:[%s5488_s3 + $0x380] sm:$0xff] %v2508_v27 }
 0x1dc   :  { %v1127_v50 = vpop.f32.mrb[46].mxu0  ;;  %v1569_v52 = vpop.f32.mrb[46].mxu1  ;;  %2637 = vst [vmem:[%s5488_s3 + $0x378] sm:$0xff] %v2507_v28  ;;  %2639 = vst [vmem:[%s5488_s3 + $0x388] sm:$0xff] %v2509_v51 }
 0x1dd   :  { %v1129_v12 = vpop.f32.mrb[47].mxu0  ;;  %v1571_v45 = vpop.f32.mrb[47].mxu1  ;;  %v2511_v44 = vadd.f32 %v4950_v11, %v1127_v50  ;;  %v2513_v54 = vadd.f32 %v4953_v59, %v1569_v52 }
 0x1de   :  { %v2512_v60 = vadd.f32 %v4956_v46, %v1129_v12  ;;  %v2514_v5 = vadd.f32 %v4959_v61, %v1571_v45 }
 0x1df   :  { %2641 = vst [vmem:[%s5488_s3 + $0x398] sm:$0xff] %v2511_v44  ;;  %2643 = vst [vmem:[%s5488_s3 + $0x3a8] sm:$0xff] %v2513_v54 }
 0x1e0   :  { %v1133_v63 = vpop.f32.mrb[48].mxu0  ;;  %v1575_v7 = vpop.f32.mrb[48].mxu1  ;;  %2642 = vst [vmem:[%s5488_s3 + $0x3a0] sm:$0xff] %v2512_v60  ;;  %2644 = vst [vmem:[%s5488_s3 + $0x3b0] sm:$0xff] %v2514_v5 }
 0x1e1   :  { %v1135_v14 = vpop.f32.mrb[49].mxu0  ;;  %v1577_v15 = vpop.f32.mrb[49].mxu1  ;;  %v2516_v24 = vadd.f32 %v4950_v11, %v1133_v63  ;;  %v2518_v25 = vadd.f32 %v4953_v59, %v1575_v7 }
 0x1e2   :  { %v2517_v57 = vadd.f32 %v4956_v46, %v1135_v14  ;;  %v2519_v4 = vadd.f32 %v4959_v61, %v1577_v15 }
 0x1e3   :  { %2646 = vst [vmem:[%s5488_s3 + $0x3c0] sm:$0xff] %v2516_v24  ;;  %2648 = vst [vmem:[%s5488_s3 + $0x3d0] sm:$0xff] %v2518_v25 }
 0x1e4   :  { %v1139_v58 = vpop.f32.mrb[50].mxu0  ;;  %v1581_v8 = vpop.f32.mrb[50].mxu1  ;;  %2647 = vst [vmem:[%s5488_s3 + $0x3c8] sm:$0xff] %v2517_v57  ;;  %2649 = vst [vmem:[%s5488_s3 + $0x3d8] sm:$0xff] %v2519_v4 }
 0x1e5   :  { %v1141_v18 = vpop.f32.mrb[51].mxu0  ;;  %v1583_v19 = vpop.f32.mrb[51].mxu1  ;;  %v2521_v32 = vadd.f32 %v4950_v11, %v1139_v58  ;;  %v2523_v2 = vadd.f32 %v4953_v59, %v1581_v8  ;;  %v5376_v11 = vrot.slane %v4944_v0, %v2389_v31 }
 0x1e6   :  { %v2522_v9 = vadd.f32 %v4956_v46, %v1141_v18  ;;  %v2524_v53 = vadd.f32 %v4959_v61, %v1583_v19 }
 0x1e7   :  { %2651 = vst [vmem:[%s5488_s3 + $0x3e8] sm:$0xff] %v2521_v32  ;;  %2653 = vst [vmem:[%s5488_s3 + $0x3f8] sm:$0xff] %v2523_v2 }
 0x1e8   :  { %v1652_v22 = vpop.f32.mrb[52].mxu0  ;;  %v1847_v56 = vpop.f32.mrb[52].mxu1  ;;  %2652 = vst [vmem:[%s5488_s3 + $0x3f0] sm:$0xff] %v2522_v9  ;;  %2654 = vst [vmem:[%s5488_s3 + $0x400] sm:$0xff] %v2524_v53 }
 0x1e9   :  { %v1654_v3 = vpop.f32.mrb[53].mxu0  ;;  %v1848_v47 = vadd.f32 %v1847_v56, %v1652_v22  ;;  %v1849_v59 = vpop.f32.mrb[53].mxu1 }
 0x1eb   :  { %v2400_v17 = vadd.f32 %v5376_v11, %v1848_v47 }
 0x1ec   :  { %v1657_v46 = vpop.f32.mrb[54].mxu0  ;;  %v1852_v61 = vpop.f32.mrb[54].mxu1 }
 0x1ed   :  { %v1659_v6 = vpop.f32.mrb[55].mxu0  ;;  %v1853_v20 = vadd.f32 %v1852_v61, %v1657_v46  ;;  %v1854_v29 = vpop.f32.mrb[55].mxu1  ;;  %2530 = vst [vmem:[%s5488_s3 + $0x20] sm:$0xff] %v2400_v17 }
 0x1ef   :  { %v2405_v34 = vadd.f32 %v5376_v11, %v1853_v20 }
 0x1f0   :  { %v1662_v30 = vpop.f32.mrb[56].mxu0  ;;  %v1857_v33 = vpop.f32.mrb[56].mxu1 }
 0x1f1   :  { %v1664_v0 = vpop.f32.mrb[57].mxu0  ;;  %v1858_v36 = vadd.f32 %v1857_v33, %v1662_v30  ;;  %v1859_v37 = vpop.f32.mrb[57].mxu1  ;;  %2535 = vst [vmem:[%s5488_s3 + $0x48] sm:$0xff] %v2405_v34 }
 0x1f3   :  { %v2410_v41 = vadd.f32 %v5376_v11, %v1858_v36 }
 0x1f4   :  { %v1667_v38 = vpop.f32.mrb[58].mxu0  ;;  %v1862_v39 = vpop.f32.mrb[58].mxu1 }
 0x1f5   :  { %v1669_v40 = vpop.f32.mrb[59].mxu0  ;;  %v1863_v42 = vadd.f32 %v1862_v39, %v1667_v38  ;;  %v1864_v43 = vpop.f32.mrb[59].mxu1  ;;  %2540 = vst [vmem:[%s5488_s3 + $0x70] sm:$0xff] %v2410_v41 }
 0x1f7   :  { %v2415_v26 = vadd.f32 %v5376_v11, %v1863_v42 }
 0x1f8   :  { %v1672_v23 = vpop.f32.mrb[60].mxu0  ;;  %v1867_v62 = vpop.f32.mrb[60].mxu1 }
 0x1f9   :  { %v1674_v21 = vpop.f32.mrb[61].mxu0  ;;  %v1868_v10 = vadd.f32 %v1867_v62, %v1672_v23  ;;  %v1869_v55 = vpop.f32.mrb[61].mxu1  ;;  %2545 = vst [vmem:[%s5488_s3 + $0x98] sm:$0xff] %v2415_v26 }
 0x1fb   :  { %v2420_v48 = vadd.f32 %v5376_v11, %v1868_v10 }
 0x1fc   :  { %v1677_v13 = vpop.f32.mrb[62].mxu0  ;;  %v1872_v16 = vpop.f32.mrb[62].mxu1 }
 0x1fd   :  { %v1679_v1 = vpop.f32.mrb[63].mxu0  ;;  %v1873_v35 = vadd.f32 %v1872_v16, %v1677_v13  ;;  %v1874_v49 = vpop.f32.mrb[63].mxu1  ;;  %2550 = vst [vmem:[%s5488_s3 + $0xc0] sm:$0xff] %v2420_v48 }
 0x1ff   :  { %v2425_v51 = vadd.f32 %v5376_v11, %v1873_v35 }
 0x200   :  { %v1682_v27 = vpop.f32.mrb[64].mxu0  ;;  %v1877_v28 = vpop.f32.mrb[64].mxu1 }
 0x201   :  { %v1684_v50 = vpop.f32.mrb[65].mxu0  ;;  %v1878_v52 = vadd.f32 %v1877_v28, %v1682_v27  ;;  %v1879_v12 = vpop.f32.mrb[65].mxu1  ;;  %2555 = vst [vmem:[%s5488_s3 + $0xe8] sm:$0xff] %v2425_v51 }
 0x203   :  { %v2430_v60 = vadd.f32 %v5376_v11, %v1878_v52 }
 0x204   :  { %v1687_v45 = vpop.f32.mrb[66].mxu0  ;;  %v1882_v44 = vpop.f32.mrb[66].mxu1 }
 0x205   :  { %v1689_v54 = vpop.f32.mrb[67].mxu0  ;;  %v1883_v63 = vadd.f32 %v1882_v44, %v1687_v45  ;;  %v1884_v5 = vpop.f32.mrb[67].mxu1  ;;  %2560 = vst [vmem:[%s5488_s3 + $0x110] sm:$0xff] %v2430_v60 }
 0x207   :  { %v2435_v24 = vadd.f32 %v5376_v11, %v1883_v63 }
 0x208   :  { %v1692_v7 = vpop.f32.mrb[68].mxu0  ;;  %v1887_v14 = vpop.f32.mrb[68].mxu1 }
 0x209   :  { %v1694_v15 = vpop.f32.mrb[69].mxu0  ;;  %v1888_v25 = vadd.f32 %v1887_v14, %v1692_v7  ;;  %v1889_v57 = vpop.f32.mrb[69].mxu1  ;;  %2565 = vst [vmem:[%s5488_s3 + $0x138] sm:$0xff] %v2435_v24 }
 0x20b   :  { %v2440_v18 = vadd.f32 %v5376_v11, %v1888_v25 }
 0x20c   :  { %v1697_v58 = vpop.f32.mrb[70].mxu0  ;;  %v1892_v4 = vpop.f32.mrb[70].mxu1 }
 0x20d   :  { %v1699_v8 = vpop.f32.mrb[71].mxu0  ;;  %v1893_v19 = vadd.f32 %v1892_v4, %v1697_v58  ;;  %v1894_v31 = vpop.f32.mrb[71].mxu1  ;;  %2570 = vst [vmem:[%s5488_s3 + $0x160] sm:$0xff] %v2440_v18 }
 0x20f   :  { %v2445_v22 = vadd.f32 %v5376_v11, %v1893_v19 }
 0x210   :  { %v1702_v32 = vpop.f32.mrb[72].mxu0  ;;  %v1897_v2 = vpop.f32.mrb[72].mxu1 }
 0x211   :  { %v1704_v9 = vpop.f32.mrb[73].mxu0  ;;  %v1898_v53 = vadd.f32 %v1897_v2, %v1702_v32  ;;  %v1899_v56 = vpop.f32.mrb[73].mxu1  ;;  %2575 = vst [vmem:[%s5488_s3 + $0x188] sm:$0xff] %v2445_v22 }
 0x213   :  { %v2450_v46 = vadd.f32 %v5376_v11, %v1898_v53 }
 0x214   :  { %v1707_v3 = vpop.f32.mrb[74].mxu0  ;;  %v1902_v47 = vpop.f32.mrb[74].mxu1 }
 0x215   :  { %v1709_v59 = vpop.f32.mrb[75].mxu0  ;;  %v1903_v61 = vadd.f32 %v1902_v47, %v1707_v3  ;;  %v1904_v6 = vpop.f32.mrb[75].mxu1  ;;  %2580 = vst [vmem:[%s5488_s3 + $0x1b0] sm:$0xff] %v2450_v46 }
 0x217   :  { %v2455_v30 = vadd.f32 %v5376_v11, %v1903_v61 }
 0x218   :  { %v1712_v17 = vpop.f32.mrb[76].mxu0  ;;  %v1907_v20 = vpop.f32.mrb[76].mxu1 }
 0x219   :  { %v1714_v29 = vpop.f32.mrb[77].mxu0  ;;  %v1908_v33 = vadd.f32 %v1907_v20, %v1712_v17  ;;  %v1909_v0 = vpop.f32.mrb[77].mxu1  ;;  %2585 = vst [vmem:[%s5488_s3 + $0x1d8] sm:$0xff] %v2455_v30 }
 0x21b   :  { %v2460_v38 = vadd.f32 %v5376_v11, %v1908_v33 }
 0x21c   :  { %v1717_v34 = vpop.f32.mrb[78].mxu0  ;;  %v1912_v36 = vpop.f32.mrb[78].mxu1 }
 0x21d   :  { %v1719_v37 = vpop.f32.mrb[79].mxu0  ;;  %v1913_v39 = vadd.f32 %v1912_v36, %v1717_v34  ;;  %v1914_v40 = vpop.f32.mrb[79].mxu1  ;;  %2590 = vst [vmem:[%s5488_s3 + $0x200] sm:$0xff] %v2460_v38 }
 0x21f   :  { %v2465_v23 = vadd.f32 %v5376_v11, %v1913_v39 }
 0x220   :  { %v1722_v41 = vpop.f32.mrb[80].mxu0  ;;  %v1917_v42 = vpop.f32.mrb[80].mxu1 }
 0x221   :  { %v1724_v43 = vpop.f32.mrb[81].mxu0  ;;  %v1918_v62 = vadd.f32 %v1917_v42, %v1722_v41  ;;  %v1919_v21 = vpop.f32.mrb[81].mxu1  ;;  %2595 = vst [vmem:[%s5488_s3 + $0x228] sm:$0xff] %v2465_v23 }
 0x223   :  { %v2470_v13 = vadd.f32 %v5376_v11, %v1918_v62 }
 0x224   :  { %v1727_v26 = vpop.f32.mrb[82].mxu0  ;;  %v1922_v10 = vpop.f32.mrb[82].mxu1 }
 0x225   :  { %v1729_v55 = vpop.f32.mrb[83].mxu0  ;;  %v1923_v16 = vadd.f32 %v1922_v10, %v1727_v26  ;;  %v1924_v1 = vpop.f32.mrb[83].mxu1  ;;  %2600 = vst [vmem:[%s5488_s3 + $0x250] sm:$0xff] %v2470_v13 }
 0x227   :  { %v2475_v27 = vadd.f32 %v5376_v11, %v1923_v16 }
 0x228   :  { %v1732_v48 = vpop.f32.mrb[84].mxu0  ;;  %v1927_v35 = vpop.f32.mrb[84].mxu1 }
 0x229   :  { %v1734_v49 = vpop.f32.mrb[85].mxu0  ;;  %v1928_v28 = vadd.f32 %v1927_v35, %v1732_v48  ;;  %v1929_v50 = vpop.f32.mrb[85].mxu1  ;;  %2605 = vst [vmem:[%s5488_s3 + $0x278] sm:$0xff] %v2475_v27 }
 0x22b   :  { %v2480_v45 = vadd.f32 %v5376_v11, %v1928_v28 }
 0x22c   :  { %v1737_v51 = vpop.f32.mrb[86].mxu0  ;;  %v1932_v52 = vpop.f32.mrb[86].mxu1 }
 0x22d   :  { %v1739_v12 = vpop.f32.mrb[87].mxu0  ;;  %v1933_v44 = vadd.f32 %v1932_v52, %v1737_v51  ;;  %v1934_v54 = vpop.f32.mrb[87].mxu1  ;;  %2610 = vst [vmem:[%s5488_s3 + $0x2a0] sm:$0xff] %v2480_v45 }
 0x22f   :  { %v2485_v7 = vadd.f32 %v5376_v11, %v1933_v44 }
 0x230   :  { %v1742_v60 = vpop.f32.mrb[88].mxu0  ;;  %v1937_v63 = vpop.f32.mrb[88].mxu1 }
 0x231   :  { %v1744_v5 = vpop.f32.mrb[89].mxu0  ;;  %v1938_v14 = vadd.f32 %v1937_v63, %v1742_v60  ;;  %v1939_v15 = vpop.f32.mrb[89].mxu1  ;;  %2615 = vst [vmem:[%s5488_s3 + $0x2c8] sm:$0xff] %v2485_v7 }
 0x233   :  { %v2490_v58 = vadd.f32 %v5376_v11, %v1938_v14 }
 0x234   :  { %v1747_v24 = vpop.f32.mrb[90].mxu0  ;;  %v1942_v25 = vpop.f32.mrb[90].mxu1 }
 0x235   :  { %v1749_v57 = vpop.f32.mrb[91].mxu0  ;;  %v1943_v4 = vadd.f32 %v1942_v25, %v1747_v24  ;;  %v1944_v8 = vpop.f32.mrb[91].mxu1  ;;  %2620 = vst [vmem:[%s5488_s3 + $0x2f0] sm:$0xff] %v2490_v58 }
 0x237   :  { %v2495_v32 = vadd.f32 %v5376_v11, %v1943_v4 }
 0x238   :  { %v1752_v18 = vpop.f32.mrb[92].mxu0  ;;  %v1947_v19 = vpop.f32.mrb[92].mxu1 }
 0x239   :  { %v1754_v31 = vpop.f32.mrb[93].mxu0  ;;  %v1948_v2 = vadd.f32 %v1947_v19, %v1752_v18  ;;  %v1949_v9 = vpop.f32.mrb[93].mxu1  ;;  %2625 = vst [vmem:[%s5488_s3 + $0x318] sm:$0xff] %v2495_v32 }
 0x23b   :  { %v2500_v3 = vadd.f32 %v5376_v11, %v1948_v2 }
 0x23c   :  { %v1757_v22 = vpop.f32.mrb[94].mxu0  ;;  %v1952_v53 = vpop.f32.mrb[94].mxu1 }
 0x23d   :  { %v1759_v56 = vpop.f32.mrb[95].mxu0  ;;  %v1953_v47 = vadd.f32 %v1952_v53, %v1757_v22  ;;  %v1954_v59 = vpop.f32.mrb[95].mxu1  ;;  %2630 = vst [vmem:[%s5488_s3 + $0x340] sm:$0xff] %v2500_v3 }
 0x23f   :  { %v2505_v17 = vadd.f32 %v5376_v11, %v1953_v47 }
 0x240   :  { %v1762_v46 = vpop.f32.mrb[96].mxu0  ;;  %v1957_v61 = vpop.f32.mrb[96].mxu1 }
 0x241   :  { %v1764_v6 = vpop.f32.mrb[97].mxu0  ;;  %v1958_v20 = vadd.f32 %v1957_v61, %v1762_v46  ;;  %v1959_v29 = vpop.f32.mrb[97].mxu1  ;;  %2635 = vst [vmem:[%s5488_s3 + $0x368] sm:$0xff] %v2505_v17 }
 0x243   :  { %v2510_v34 = vadd.f32 %v5376_v11, %v1958_v20 }
 0x244   :  { %v1767_v30 = vpop.f32.mrb[98].mxu0  ;;  %v1962_v33 = vpop.f32.mrb[98].mxu1 }
 0x245   :  { %v1769_v0 = vpop.f32.mrb[99].mxu0  ;;  %v1963_v36 = vadd.f32 %v1962_v33, %v1767_v30  ;;  %v1964_v37 = vpop.f32.mrb[99].mxu1  ;;  %2640 = vst [vmem:[%s5488_s3 + $0x390] sm:$0xff] %v2510_v34 }
 0x247   :  { %v2515_v41 = vadd.f32 %v5376_v11, %v1963_v36 }
 0x248   :  { %v1772_v38 = vpop.f32.mrb[100].mxu0  ;;  %v1967_v39 = vpop.f32.mrb[100].mxu1 }
 0x249   :  { %v1774_v40 = vpop.f32.mrb[101].mxu0  ;;  %v1968_v42 = vadd.f32 %v1967_v39, %v1772_v38  ;;  %v1969_v43 = vpop.f32.mrb[101].mxu1  ;;  %2645 = vst [vmem:[%s5488_s3 + $0x3b8] sm:$0xff] %v2515_v41 }
 0x24b   :  { %v2520_v26 = vadd.f32 %v5376_v11, %v1968_v42 }
 0x24c   :  { %v1777_v23 = vpop.f32.mrb[102].mxu0  ;;  %v1972_v62 = vpop.f32.mrb[102].mxu1 }
 0x24d   :  { %v1779_v21 = vpop.f32.mrb[103].mxu0  ;;  %v1973_v10 = vadd.f32 %v1972_v62, %v1777_v23  ;;  %v1974_v55 = vpop.f32.mrb[103].mxu1  ;;  %2650 = vst [vmem:[%s5488_s3 + $0x3e0] sm:$0xff] %v2520_v26 }
 0x24f   :  { %v2525_v13 = vadd.f32 %v5376_v11, %v1973_v10 }
 0x251   :  { %2655 = vst [vmem:[%s5488_s3 + $0x408] sm:$0xff] %v2525_v13 }

// kernel: conformer_forward.31
= control target key start
LH: loop header
LB: loop body
LE: loop exit
PB: predicated region body
PF: predicated region fallthrough
CT: control target
= control target key end

     0   :  { %v300_v0 = vmov 0.0   ;;  %vm301_vm0 = vmmov 0   ;;  %s379_s1 = inlined_call_operand.vmem [shape: bf16[128,128], index: 1, kind: input, shape index: {}]   ;;  %s380_s0 = inlined_call_operand.vmem [shape: bf16[48,128], index: 0, kind: input, shape index: {}]   ;;  %s381_s2 = inlined_call_operand.vmem [shape: f32[1,128], index: 2, kind: input, shape index: {}]   ;;  %s382_s3 = inlined_call_operand.vmem [shape: f32[48,128], index: 3, kind: output, shape index: {}]  }
   0x1   :  { %271 = vmatprep.subr.bf16.mxu1 %v300_v0  ;;  %v289_v1 = vld [vmem:[%s379_s1] sm:$0xff]   ;;  %243 = vmatprep.subr.bf16.mxu0 %v300_v0  ;;  %v290_v2 = vld [vmem:[%s379_s1 + $0x8] sm:$0xff]   ;;  %v291_v3 = vld [vmem:[%s379_s1 + $0x10] sm:$0xff]  }
   0x2   :  { %263 = vmatprep.mubr.msk.bf16.mxu1 %vm301_vm0, %v300_v0  ;;  %259 = vmatprep.mubr.msk.bf16.mxu0 %vm301_vm0, %v300_v0  ;;  %v292_v4 = vld [vmem:[%s379_s1 + $0x18] sm:$0xff]   ;;  %v293_v5 = vld [vmem:[%s379_s1 + $0x20] sm:$0xff]   ;;  %v294_v6 = vld [vmem:[%s379_s1 + $0x28] sm:$0xff]  }
   0x3   :  { %279 = vmatpush3.bf16.msra.mxu1 %v289_v1  ;;  %244 = vmatpush3.bf16.msra.mxu0 %v289_v1  ;;  %v295_v7 = vld [vmem:[%s379_s1 + $0x30] sm:$0xff]   ;;  %v296_v8 = vld [vmem:[%s379_s1 + $0x38] sm:$0xff]   ;;  %v297_v9 = vld [vmem:[%s380_s0 + $0x8] sm:$0xff]  }
   0x4   :  { %272 = vmatprep.subr.bf16.mxu1 %v300_v0  ;;  %245 = vmatprep.subr.bf16.mxu0 %v300_v0  ;;  %v298_v10 = vld [vmem:[%s380_s0] sm:$0xff]   ;;  %v299_v11 = vld [vmem:[%s380_s0 + $0x10] sm:$0xff]  }
   0x5   :  { %v231_v13 = vld [vmem:[%s381_s2] ss:$0 sm:$0xff] }
   0x7   :  { %280 = vmatpush3.bf16.msra.mxu1 %v290_v2  ;;  %246 = vmatpush3.bf16.msra.mxu0 %v290_v2 }
   0x8   :  { %273 = vmatprep.subr.bf16.mxu1 %v300_v0  ;;  %247 = vmatprep.subr.bf16.mxu0 %v300_v0 }
   0xb   :  { %281 = vmatpush3.bf16.msra.mxu1 %v291_v3  ;;  %248 = vmatpush3.bf16.msra.mxu0 %v291_v3 }
   0xc   :  { %274 = vmatprep.subr.bf16.mxu1 %v300_v0  ;;  %249 = vmatprep.subr.bf16.mxu0 %v300_v0 }
   0xf   :  { %282 = vmatpush3.bf16.msra.mxu1 %v292_v4  ;;  %250 = vmatpush3.bf16.msra.mxu0 %v292_v4 }
  0x10   :  { %275 = vmatprep.subr.bf16.mxu1 %v300_v0  ;;  %251 = vmatprep.subr.bf16.mxu0 %v300_v0 }
  0x13   :  { %283 = vmatpush3.bf16.msra.mxu1 %v293_v5  ;;  %252 = vmatpush3.bf16.msra.mxu0 %v293_v5 }
  0x14   :  { %276 = vmatprep.subr.bf16.mxu1 %v300_v0  ;;  %253 = vmatprep.subr.bf16.mxu0 %v300_v0 }
  0x17   :  { %284 = vmatpush3.bf16.msra.mxu1 %v294_v6  ;;  %254 = vmatpush3.bf16.msra.mxu0 %v294_v6 }
  0x18   :  { %277 = vmatprep.subr.bf16.mxu1 %v300_v0  ;;  %255 = vmatprep.subr.bf16.mxu0 %v300_v0 }
  0x1b   :  { %285 = vmatpush3.bf16.msra.mxu1 %v295_v7  ;;  %256 = vmatpush3.bf16.msra.mxu0 %v295_v7 }
  0x1c   :  { %278 = vmatprep.subr.bf16.mxu1 %v300_v0  ;;  %257 = vmatprep.subr.bf16.mxu0 %v300_v0 }
  0x1f   :  { %286 = vmatpush3.bf16.msra.mxu1 %v296_v8  ;;  %258 = vmatpush3.bf16.msra.mxu0 %v296_v8 }
  0x22   :  { %264 = vmatmul.mubr.bf16.vlgmr.msra.gmra.mrb[0].mxu1 %v297_v9  ;;  %260 = vmatmul.mubr.bf16.vlgmr.msra.gmra.mrb[0].mxu0 %v298_v10 }
  0x23   :  { %267 = vmatprep.mubr.msk.bf16.mxu1 %vm301_vm0, %v300_v0 }
  0x2a   :  { %268 = vmatmul.mubr.bf16.gmra.mrb[4].mxu1 %v299_v11 }
  0xf5   :  { %v161_v12 = vpop.f32.mrb[0].mxu1  ;;  %v153_v14 = vpop.f32.mrb[0].mxu0 }
  0xf6   :  { %v265_v15 = vpop.f32.mrb[1].mxu1  ;;  %v261_v16 = vpop.f32.mrb[1].mxu0  ;;  %v206_v19 = vadd.f32 %v231_v13, %v161_v12  ;;  %v204_v21 = vadd.f32 %v231_v13, %v153_v14 }
  0xf7   :  { %v164_v17 = vpop.f32.mrb[2].mxu1  ;;  %v156_v18 = vpop.f32.mrb[2].mxu0 }
  0xf8   :  { %v266_v20 = vpop.f32.mrb[3].mxu1  ;;  %v262_v22 = vpop.f32.mrb[3].mxu0  ;;  %212 = vst [vmem:[%s382_s3 + $0x10] sm:$0xff] %v206_v19  ;;  %v207_v23 = vadd.f32 %v231_v13, %v164_v17  ;;  %210 = vst [vmem:[%s382_s3] sm:$0xff] %v204_v21  ;;  %v205_v24 = vadd.f32 %v231_v13, %v156_v18 }
  0xfa   :  { %213 = vst [vmem:[%s382_s3 + $0x18] sm:$0xff] %v207_v23  ;;  %211 = vst [vmem:[%s382_s3 + $0x8] sm:$0xff] %v205_v24 }
  0xfd   :  { %v169_v25 = vpop.f32.mrb[4].mxu1 }
  0xfe   :  { %v269_v26 = vpop.f32.mrb[5].mxu1  ;;  %v208_v28 = vadd.f32 %v231_v13, %v169_v25 }
  0xff   :  { %v172_v27 = vpop.f32.mrb[6].mxu1 }
 0x100   :  { %v270_v29 = vpop.f32.mrb[7].mxu1  ;;  %214 = vst [vmem:[%s382_s3 + $0x20] sm:$0xff] %v208_v28  ;;  %v209_v30 = vadd.f32 %v231_v13, %v172_v27 }
 0x102   :  { %215 = vst [vmem:[%s382_s3 + $0x28] sm:$0xff] %v209_v30 }

// kernel: conformer_forward.32
= control target key start
LH: loop header
LB: loop body
LE: loop exit
PB: predicated region body
PF: predicated region fallthrough
CT: control target
= control target key end

     0   :  { %v372_v0 = vmov 0.0   ;;  %vm373_vm0 = vmmov 0   ;;  %s451_s1 = inlined_call_operand.vmem [shape: bf16[128,128], index: 1, kind: input, shape index: {}]   ;;  %s452_s0 = inlined_call_operand.vmem [shape: bf16[48,128], index: 0, kind: input, shape index: {}]   ;;  %s453_s2 = inlined_call_operand.vmem [shape: f32[1,128], index: 2, kind: input, shape index: {}]   ;;  %s454_s3 = inlined_call_operand.vmem [shape: f32[48,128], index: 3, kind: output, shape index: {}]  }
   0x1   :  { %291 = vmatprep.subr.bf16.mxu0 %v372_v0  ;;  %319 = vmatprep.subr.bf16.mxu1 %v372_v0  ;;  %v337_v1 = vld [vmem:[%s451_s1] sm:$0xff]   ;;  %v338_v2 = vld [vmem:[%s451_s1 + $0x8] sm:$0xff]   ;;  %v339_v3 = vld [vmem:[%s451_s1 + $0x10] sm:$0xff]  }
   0x2   :  { %307 = vmatprep.mubr.msk.bf16.mxu0 %vm373_vm0, %v372_v0  ;;  %311 = vmatprep.mubr.msk.bf16.mxu1 %vm373_vm0, %v372_v0  ;;  %v340_v4 = vld [vmem:[%s451_s1 + $0x18] sm:$0xff]   ;;  %v341_v5 = vld [vmem:[%s451_s1 + $0x20] sm:$0xff]   ;;  %v342_v6 = vld [vmem:[%s451_s1 + $0x28] sm:$0xff]  }
   0x3   :  { %292 = vmatpush3.bf16.msra.mxu0 %v337_v1  ;;  %327 = vmatpush3.bf16.msra.mxu1 %v337_v1  ;;  %v343_v7 = vld [vmem:[%s451_s1 + $0x30] sm:$0xff]   ;;  %v344_v8 = vld [vmem:[%s451_s1 + $0x38] sm:$0xff]   ;;  %v345_v9 = vld [vmem:[%s452_s0] sm:$0xff]  }
   0x4   :  { %293 = vmatprep.subr.bf16.mxu0 %v372_v0  ;;  %320 = vmatprep.subr.bf16.mxu1 %v372_v0  ;;  %v346_v10 = vld [vmem:[%s452_s0 + $0x8] sm:$0xff]   ;;  %v347_v11 = vld [vmem:[%s452_s0 + $0x10] sm:$0xff]   ;;  %v273_v13 = vld [vmem:[%s453_s2] ss:$0 sm:$0xff] }
   0x7   :  { %294 = vmatpush3.bf16.msra.mxu0 %v338_v2  ;;  %328 = vmatpush3.bf16.msra.mxu1 %v338_v2 }
   0x8   :  { %295 = vmatprep.subr.bf16.mxu0 %v372_v0  ;;  %321 = vmatprep.subr.bf16.mxu1 %v372_v0 }
   0xb   :  { %296 = vmatpush3.bf16.msra.mxu0 %v339_v3  ;;  %329 = vmatpush3.bf16.msra.mxu1 %v339_v3 }
   0xc   :  { %297 = vmatprep.subr.bf16.mxu0 %v372_v0  ;;  %322 = vmatprep.subr.bf16.mxu1 %v372_v0 }
   0xf   :  { %298 = vmatpush3.bf16.msra.mxu0 %v340_v4  ;;  %330 = vmatpush3.bf16.msra.mxu1 %v340_v4 }
  0x10   :  { %299 = vmatprep.subr.bf16.mxu0 %v372_v0  ;;  %323 = vmatprep.subr.bf16.mxu1 %v372_v0 }
  0x13   :  { %300 = vmatpush3.bf16.msra.mxu0 %v341_v5  ;;  %331 = vmatpush3.bf16.msra.mxu1 %v341_v5 }
  0x14   :  { %301 = vmatprep.subr.bf16.mxu0 %v372_v0  ;;  %324 = vmatprep.subr.bf16.mxu1 %v372_v0 }
  0x17   :  { %302 = vmatpush3.bf16.msra.mxu0 %v342_v6  ;;  %332 = vmatpush3.bf16.msra.mxu1 %v342_v6 }
  0x18   :  { %303 = vmatprep.subr.bf16.mxu0 %v372_v0  ;;  %325 = vmatprep.subr.bf16.mxu1 %v372_v0 }
  0x1b   :  { %304 = vmatpush3.bf16.msra.mxu0 %v343_v7  ;;  %333 = vmatpush3.bf16.msra.mxu1 %v343_v7 }
  0x1c   :  { %305 = vmatprep.subr.bf16.mxu0 %v372_v0  ;;  %326 = vmatprep.subr.bf16.mxu1 %v372_v0 }
  0x1f   :  { %306 = vmatpush3.bf16.msra.mxu0 %v344_v8  ;;  %334 = vmatpush3.bf16.msra.mxu1 %v344_v8 }
  0x22   :  { %308 = vmatmul.mubr.bf16.vlgmr.msra.gmra.mrb[0].mxu0 %v345_v9  ;;  %312 = vmatmul.mubr.bf16.vlgmr.msra.gmra.mrb[0].mxu1 %v346_v10 }
  0x23   :  { %315 = vmatprep.mubr.msk.bf16.mxu1 %vm373_vm0, %v372_v0 }
  0x2a   :  { %316 = vmatmul.mubr.bf16.gmra.mrb[4].mxu1 %v347_v11 }
  0xf5   :  { %v153_v12 = vpop.f32.mrb[0].mxu0  ;;  %v161_v14 = vpop.f32.mrb[0].mxu1 }
  0xf6   :  { %v309_v15 = vpop.f32.mrb[1].mxu0  ;;  %v313_v16 = vpop.f32.mrb[1].mxu1  ;;  %v204_v19 = vadd.f32 %v273_v13, %v153_v12  ;;  %v206_v20 = vadd.f32 %v273_v13, %v161_v14 }
  0xf7   :  { %v156_v17 = vpop.f32.mrb[2].mxu0  ;;  %v164_v18 = vpop.f32.mrb[2].mxu1 }
  0xf8   :  { %v314_v21 = vpop.f32.mrb[3].mxu1  ;;  %v310_v22 = vpop.f32.mrb[3].mxu0  ;;  %v274_v23 = vmul.f32 -1.442695, %v204_v19  ;;  %v276_v24 = vmul.f32 -1.442695, %v206_v20  ;;  %v205_v25 = vadd.f32 %v273_v13, %v156_v17  ;;  %v207_v26 = vadd.f32 %v273_v13, %v164_v18 }
  0xfa   :  { %348 = vpow2.f32 %v274_v23  ;;  %v275_v27 = vmul.f32 -1.442695, %v205_v25  ;;  %v277_v28 = vmul.f32 -1.442695, %v207_v26 }
  0xfb   :  { %350 = vpow2.f32 %v276_v24 }
  0xfc   :  { %352 = vpow2.f32 %v275_v27 }
  0xfd   :  { %v169_v29 = vpop.f32.mrb[4].mxu1  ;;  %354 = vpow2.f32 %v277_v28 }
  0xfe   :  { %v317_v30 = vpop.f32.mrb[5].mxu1  ;;  %v208_v32 = vadd.f32 %v273_v13, %v169_v29 }
  0xff   :  { %v172_v31 = vpop.f32.mrb[6].mxu1 }
 0x100   :  { %v318_v33 = vpop.f32.mrb[7].mxu1  ;;  %v278_v34 = vmul.f32 -1.442695, %v208_v32  ;;  %v209_v35 = vadd.f32 %v273_v13, %v172_v31 }
 0x102   :  { %356 = vpow2.f32 %v278_v34  ;;  %v279_v36 = vmul.f32 -1.442695, %v209_v35 }
 0x104   :  { %v349_v37 = vpop.eup %348  ;;  %358 = vpow2.f32 %v279_v36 }
 0x105   :  { %v351_v38 = vpop.eup %350  ;;  %v228_v39 = vadd.f32 1.0, %v349_v37 }
 0x106   :  { %v353_v40 = vpop.eup %352  ;;  %v230_v41 = vadd.f32 1.0, %v351_v38 }
 0x107   :  { %v355_v42 = vpop.eup %354  ;;  %360 = vrcp.f32 %v228_v39  ;;  %v229_v43 = vadd.f32 1.0, %v353_v40 }
 0x108   :  { %362 = vrcp.f32 %v230_v41  ;;  %v231_v44 = vadd.f32 1.0, %v355_v42 }
 0x109   :  { %364 = vrcp.f32 %v229_v43 }
 0x10a   :  { %366 = vrcp.f32 %v231_v44 }
 0x10c   :  { %v357_v45 = vpop.eup %356 }
 0x10d   :  { %v232_v46 = vadd.f32 1.0, %v357_v45 }
 0x10e   :  { %v359_v47 = vpop.eup %358 }
 0x10f   :  { %368 = vrcp.f32 %v232_v46  ;;  %v233_v48 = vadd.f32 1.0, %v359_v47 }
 0x111   :  { %v361_v49 = vpop.eup %360  ;;  %370 = vrcp.f32 %v233_v48 }
 0x112   :  { %v363_v50 = vpop.eup %362  ;;  %v246_v51 = vmul.f32 %v361_v49, %v204_v19 }
 0x113   :  { %v365_v52 = vpop.eup %364  ;;  %v248_v53 = vmul.f32 %v363_v50, %v206_v20 }
 0x114   :  { %v367_v54 = vpop.eup %366  ;;  %252 = vst [vmem:[%s454_s3] sm:$0xff] %v246_v51  ;;  %v247_v55 = vmul.f32 %v365_v52, %v205_v25 }
 0x115   :  { %254 = vst [vmem:[%s454_s3 + $0x10] sm:$0xff] %v248_v53  ;;  %v249_v56 = vmul.f32 %v367_v54, %v207_v26 }
 0x116   :  { %253 = vst [vmem:[%s454_s3 + $0x8] sm:$0xff] %v247_v55 }
 0x117   :  { %255 = vst [vmem:[%s454_s3 + $0x18] sm:$0xff] %v249_v56 }
 0x119   :  { %v369_v57 = vpop.eup %368 }
 0x11a   :  { %v250_v58 = vmul.f32 %v369_v57, %v208_v32 }
 0x11b   :  { %v371_v59 = vpop.eup %370 }
 0x11c   :  { %256 = vst [vmem:[%s454_s3 + $0x20] sm:$0xff] %v250_v58  ;;  %v251_v60 = vmul.f32 %v371_v59, %v209_v35 }
 0x11e   :  { %257 = vst [vmem:[%s454_s3 + $0x28] sm:$0xff] %v251_v60 }

// kernel: conformer_forward.34
= control target key start
LH: loop header
LB: loop body
LE: loop exit
PB: predicated region body
PF: predicated region fallthrough
CT: control target
= control target key end

     0   :  { %8 = vsyncpa [#allocation3], 0  ;;  %s401_s12 = smov [#allocation2]   ;;  %s507_s0 = inlined_call_operand.vmem [shape: bf16[72,128], index: 0, kind: input, shape index: {}]   ;;  %s508_s1 = inlined_call_operand.vmem [shape: bf16[128,128], index: 1, kind: input, shape index: {}]   ;;  %s509_s2 = inlined_call_operand.hbm [shape: f32[1,128], index: 2, kind: input, shape index: {}]   ;;  %s510_s3 = inlined_call_operand.vmem [shape: f32[72,128], index: 3, kind: output, shape index: {}]  }
   0x1   :  { %s19_s13 = sshll.u32 %s401_s12, 4  ;;  %s377_s16 = scalar_lea.hbm %s509_s2, 16  ;;  %s20_s13 = int_to_ptr.vmem [resolvable:$true] %s19_s13 }
   0x2   :  { %p378_p0 = scmp.ne.s32.totalorder %s509_s2, %s377_s16  ;;  %p381_p1 = scmp.lt.u32.totalorder %s377_s16, %s509_s2 }
   0x4   :  { %p383_p2 = pnand %p381_p1, %p378_p0 }
   0x6   :  { %386 = shalt.err (!%p383_p2)
}
   0x7   :  { %s387_s21 = scalar_lea.vmem %s20_s13, 16  ;;  %s391_s22 = scalar_lea.vmem %s20_s13, 32 }
   0x8   :  { %p388_p3 = scmp.ne.s32.totalorder %s20_s13, %s387_s21  ;;  %p392_p4 = scmp.lt.s32.totalorder %s20_s13, %s20_s13 }
   0x9   :  { %p393_p5 = scmp.lt.s32.totalorder %s391_s22, %s387_s21 }
   0xb   :  { %p394_p6 = por %p393_p5, %p392_p4 }
   0xd   :  { %p395_p7 = pnand %p394_p6, %p388_p3 }
   0xf   :  { %398 = shalt.err (!%p395_p7)
}
  0x10   :  { %22 = dma.hbm_to_vmem [thread:$0]  %s509_s2, 16, %s20_s13, [#allocation3]  }
  0x11   :  { %399 = dma.done.wait [#allocation3], 16  }
  0x12   :  { %400 = vsyncadd [#allocation3], 4294967280  ;;  %v402_v0 = vmov 0.0   ;;  %vm403_vm0 = vmmov 0   ;;  %v364_v1 = vld [vmem:[%s508_s1] sm:$0xff]   ;;  %v365_v2 = vld [vmem:[%s508_s1 + $0x8] sm:$0xff]  }
  0x13   :  { %309 = vmatprep.subr.bf16.mxu0 %v402_v0  ;;  %345 = vmatprep.subr.bf16.mxu1 %v402_v0  ;;  %v366_v3 = vld [vmem:[%s508_s1 + $0x10] sm:$0xff]   ;;  %v367_v4 = vld [vmem:[%s508_s1 + $0x18] sm:$0xff]   ;;  %v368_v5 = vld [vmem:[%s508_s1 + $0x20] sm:$0xff]  }
  0x14   :  { %325 = vmatprep.mubr.msk.bf16.mxu0 %vm403_vm0, %v402_v0  ;;  %337 = vmatprep.mubr.msk.bf16.mxu1 %vm403_vm0, %v402_v0  ;;  %v369_v6 = vld [vmem:[%s508_s1 + $0x28] sm:$0xff]   ;;  %v370_v7 = vld [vmem:[%s508_s1 + $0x30] sm:$0xff]   ;;  %v371_v8 = vld [vmem:[%s508_s1 + $0x38] sm:$0xff]  }
  0x15   :  { %310 = vmatpush3.bf16.msra.mxu0 %v364_v1  ;;  %353 = vmatpush3.bf16.msra.mxu1 %v364_v1  ;;  %v372_v9 = vld [vmem:[%s507_s0] sm:$0xff]   ;;  %v373_v10 = vld [vmem:[%s507_s0 + $0x18] sm:$0xff]   ;;  %v374_v11 = vld [vmem:[%s507_s0 + $0x8] sm:$0xff]  }
  0x16   :  { %311 = vmatprep.subr.bf16.mxu0 %v402_v0  ;;  %346 = vmatprep.subr.bf16.mxu1 %v402_v0  ;;  %v375_v12 = vld [vmem:[%s507_s0 + $0x20] ss:$0 sps:$4 sm:$0xff]   ;;  %v376_v13 = vld [vmem:[%s507_s0 + $0x10] sm:$0xff]  }
  0x17   :  { %v295_v15 = vld [vmem:[#allocation2] ss:$0 sm:$0xff] }
  0x19   :  { %312 = vmatpush3.bf16.msra.mxu0 %v365_v2  ;;  %354 = vmatpush3.bf16.msra.mxu1 %v365_v2 }
  0x1a   :  { %313 = vmatprep.subr.bf16.mxu0 %v402_v0  ;;  %347 = vmatprep.subr.bf16.mxu1 %v402_v0 }
  0x1d   :  { %314 = vmatpush3.bf16.msra.mxu0 %v366_v3  ;;  %355 = vmatpush3.bf16.msra.mxu1 %v366_v3 }
  0x1e   :  { %315 = vmatprep.subr.bf16.mxu0 %v402_v0  ;;  %348 = vmatprep.subr.bf16.mxu1 %v402_v0 }
  0x21   :  { %316 = vmatpush3.bf16.msra.mxu0 %v367_v4  ;;  %356 = vmatpush3.bf16.msra.mxu1 %v367_v4 }
  0x22   :  { %317 = vmatprep.subr.bf16.mxu0 %v402_v0  ;;  %349 = vmatprep.subr.bf16.mxu1 %v402_v0 }
  0x25   :  { %318 = vmatpush3.bf16.msra.mxu0 %v368_v5  ;;  %357 = vmatpush3.bf16.msra.mxu1 %v368_v5 }
  0x26   :  { %319 = vmatprep.subr.bf16.mxu0 %v402_v0  ;;  %350 = vmatprep.subr.bf16.mxu1 %v402_v0 }
  0x29   :  { %320 = vmatpush3.bf16.msra.mxu0 %v369_v6  ;;  %358 = vmatpush3.bf16.msra.mxu1 %v369_v6 }
  0x2a   :  { %321 = vmatprep.subr.bf16.mxu0 %v402_v0  ;;  %351 = vmatprep.subr.bf16.mxu1 %v402_v0 }
  0x2d   :  { %322 = vmatpush3.bf16.msra.mxu0 %v370_v7  ;;  %359 = vmatpush3.bf16.msra.mxu1 %v370_v7 }
  0x2e   :  { %323 = vmatprep.subr.bf16.mxu0 %v402_v0  ;;  %352 = vmatprep.subr.bf16.mxu1 %v402_v0 }
  0x31   :  { %324 = vmatpush3.bf16.msra.mxu0 %v371_v8  ;;  %360 = vmatpush3.bf16.msra.mxu1 %v371_v8 }
  0x34   :  { %326 = vmatmul.mubr.bf16.vlgmr.msra.gmra.mrb[0].mxu0 %v372_v9  ;;  %338 = vmatmul.mubr.bf16.vlgmr.msra.gmra.mrb[0].mxu1 %v373_v10 }
  0x35   :  { %329 = vmatprep.mubr.msk.bf16.mxu0 %vm403_vm0, %v402_v0  ;;  %341 = vmatprep.mubr.msk.bf16.mxu1 %vm403_vm0, %v402_v0 }
  0x3c   :  { %330 = vmatmul.mubr.bf16.gmra.mrb[4].mxu0 %v374_v11  ;;  %342 = vmatmul.mubr.bf16.gmra.mrb[4].mxu1 %v375_v12 }
  0x3d   :  { %333 = vmatprep.mubr.msk.bf16.mxu0 %vm403_vm0, %v402_v0 }
  0x44   :  { %334 = vmatmul.mubr.bf16.gmra.mrb[8].mxu0 %v376_v13 }
 0x107   :  { %v184_v14 = vpop.f32.mrb[0].mxu0  ;;  %v208_v16 = vpop.f32.mrb[0].mxu1 }
 0x108   :  { %v327_v17 = vpop.f32.mrb[1].mxu0  ;;  %v339_v18 = vpop.f32.mrb[1].mxu1  ;;  %v259_v21 = vadd.f32 %v295_v15, %v184_v14  ;;  %v265_v23 = vadd.f32 %v295_v15, %v208_v16 }
 0x109   :  { %v187_v19 = vpop.f32.mrb[2].mxu0  ;;  %v211_v20 = vpop.f32.mrb[2].mxu1 }
 0x10a   :  { %v328_v22 = vpop.f32.mrb[3].mxu0  ;;  %v340_v24 = vpop.f32.mrb[3].mxu1  ;;  %268 = vst [vmem:[%s510_s3] sm:$0xff] %v259_v21  ;;  %v260_v25 = vadd.f32 %v295_v15, %v187_v19  ;;  %274 = vst [vmem:[%s510_s3 + $0x30] sm:$0xff] %v265_v23  ;;  %v266_v26 = vadd.f32 %v295_v15, %v211_v20 }
 0x10c   :  { %269 = vst [vmem:[%s510_s3 + $0x8] sm:$0xff] %v260_v25  ;;  %275 = vst [vmem:[%s510_s3 + $0x38] sm:$0xff] %v266_v26 }
 0x10f   :  { %v192_v27 = vpop.f32.mrb[4].mxu0  ;;  %v216_v28 = vpop.f32.mrb[4].mxu1 }
 0x110   :  { %v331_v29 = vpop.f32.mrb[5].mxu0  ;;  %v343_v30 = vpop.f32.mrb[5].mxu1  ;;  %v261_v33 = vadd.f32 %v295_v15, %v192_v27  ;;  %v267_v35 = vadd.f32 %v295_v15, %v216_v28 }
 0x111   :  { %v195_v31 = vpop.f32.mrb[6].mxu0  ;;  %v219_v32 = vpop.f32.mrb[6].mxu1 }
 0x112   :  { %v332_v34 = vpop.f32.mrb[7].mxu0  ;;  %v344_v36 = vpop.f32.mrb[7].mxu1  ;;  %270 = vst [vmem:[%s510_s3 + $0x10] sm:$0xff] %v261_v33  ;;  %v262_v37 = vadd.f32 %v295_v15, %v195_v31  ;;  %276 = vst [vmem:[%s510_s3 + $0x40] sm:$0xff] %v267_v35 }
 0x114   :  { %271 = vst [vmem:[%s510_s3 + $0x18] sm:$0xff] %v262_v37 }
 0x117   :  { %v200_v38 = vpop.f32.mrb[8].mxu0 }
 0x118   :  { %v335_v39 = vpop.f32.mrb[9].mxu0  ;;  %v263_v41 = vadd.f32 %v295_v15, %v200_v38 }
 0x119   :  { %v203_v40 = vpop.f32.mrb[10].mxu0 }
 0x11a   :  { %v336_v42 = vpop.f32.mrb[11].mxu0  ;;  %272 = vst [vmem:[%s510_s3 + $0x20] sm:$0xff] %v263_v41  ;;  %v264_v43 = vadd.f32 %v295_v15, %v203_v40 }
 0x11c   :  { %273 = vst [vmem:[%s510_s3 + $0x28] sm:$0xff] %v264_v43 }
 0x11d   :  { %281 = vsyncpa [#allocation3], 1 }

// kernel: conformer_forward.35
= control target key start
LH: loop header
LB: loop body
LE: loop exit
PB: predicated region body
PF: predicated region fallthrough
CT: control target
= control target key end

     0   :  { %s455_s9 = smov 0   ;;  %s480_s0 = inlined_call_operand.vmem [shape: bf16[8,24,128], index: 0, kind: input, shape index: {}]   ;;  %s481_s1 = inlined_call_operand.vmem [shape: bf16[8,128,128], index: 1, kind: input, shape index: {}]   ;;  %s482_s2 = inlined_call_operand.vmem [shape: f32[8,24,128], index: 2, kind: output, shape index: {}]  }
   0x1 LB: > { %s360_s10 = sadd.s32 4294967295, %s438_s9   ;;  %p364_p0 = scmp.ge.s32.totalorder %s438_s9, 1  ;;  %s438_s9 = sphi %s455_s9, %s12_s9  }
   0x2   : > { %p122_p1 = scmp.lt.s32.totalorder %s438_s9, 9 }
   0x4   : > { %p123_p2 = pnand %p364_p0, %p122_p1 }
   0x5   : > { %p149_p3 = scmp.lt.s32.totalorder (!%p123_p2), %s360_s10, 7 }
   0x6   : > { %126 = sbr.rel (%p123_p2) target bundleno = 265 (0x109), region = 28 }
   0xd   : > { %s484_s10 = smov (!%p149_p3, %s360_s10), 7 }
   0xe   : > { %s381_s11 = sshll.u32 %s484_s10, 6  ;;  %s412_s15 = smul.u32 12, %s484_s10 }
   0xf   : > { %s158_s14 = scalar_lea.vmem %s481_s1, %s381_s11  ;;  %s413_s19 = smul.u32 24, %s484_s10 }
  0x10   : > { %v422_v0 = vld [vmem:[%s158_s14] sm:$0xff]   ;;  %v423_v1 = vld [vmem:[%s158_s14 + $0x8] sm:$0xff]   ;;  %v424_v2 = vld [vmem:[%s158_s14 + $0x10] sm:$0xff]   ;;  %s153_s18 = scalar_lea.vmem %s480_s0, %s412_s15 }
  0x11   : > { %392 = vmatprep.subr.bf16.mxu0 %v422_v0  ;;  %v425_v3 = vld [vmem:[%s158_s14 + $0x18] sm:$0xff]   ;;  %v430_v4 = vld [vmem:[%s153_s18] sm:$0xff]   ;;  %v427_v6 = vld [vmem:[%s158_s14 + $0x28] sm:$0xff]   ;;  %s163_s22 = scalar_lea.vmem %s482_s2, %s413_s19 }
  0x12   : > { %393 = vmatpush3.bf16.msra.mxu0 %v422_v0  ;;  %408 = vmatprep.mubr.bf16.mxu0 %v430_v4  ;;  %v426_v5 = vld [vmem:[%s158_s14 + $0x20] sm:$0xff]   ;;  %v428_v7 = vld [vmem:[%s158_s14 + $0x30] sm:$0xff]   ;;  %v429_v8 = vld [vmem:[%s158_s14 + $0x38] sm:$0xff]  }
  0x13   : > { %394 = vmatprep.subr.bf16.mxu0 %v423_v1  ;;  %v431_v9 = vld [vmem:[%s153_s18 + $0x8] ss:$0 sps:$4 sm:$0xff]  }
  0x16   : > { %395 = vmatpush3.bf16.msra.mxu0 %v423_v1 }
  0x17   : > { %396 = vmatprep.subr.bf16.mxu0 %v424_v2 }
  0x1a   : > { %397 = vmatpush3.bf16.msra.mxu0 %v424_v2 }
  0x1b   : > { %398 = vmatprep.subr.bf16.mxu0 %v425_v3 }
  0x1e   : > { %399 = vmatpush3.bf16.msra.mxu0 %v425_v3 }
  0x1f   : > { %400 = vmatprep.subr.bf16.mxu0 %v426_v5 }
  0x22   : > { %401 = vmatpush3.bf16.msra.mxu0 %v426_v5 }
  0x23   : > { %402 = vmatprep.subr.bf16.mxu0 %v427_v6 }
  0x26   : > { %403 = vmatpush3.bf16.msra.mxu0 %v427_v6 }
  0x27   : > { %404 = vmatprep.subr.bf16.mxu0 %v428_v7 }
  0x2a   : > { %405 = vmatpush3.bf16.msra.mxu0 %v428_v7 }
  0x2b   : > { %406 = vmatprep.subr.bf16.mxu0 %v429_v8 }
  0x2e   : > { %407 = vmatpush3.bf16.msra.mxu0 %v429_v8 }
  0x31   : > { %409 = vmatmul.mubr.bf16.vlgmr.msra.gmra.mrb[0].mxu0 %v431_v9 }
 0x104   : > { %v410_v10 = vpop.f32.mrb[0].mxu0 }
 0x105   : > { %292 = vst [vmem:[%s163_s22 + $0x10] sm:$0xff] %v410_v10  ;;  %v276_v11 = vpop.f32.mrb[1].mxu0 }
 0x106   : > { %290 = vst [vmem:[%s163_s22] sm:$0xff] %v276_v11  ;;  %v411_v12 = vpop.f32.mrb[2].mxu0 }
 0x107   : > { %v279_v13 = vpop.f32.mrb[3].mxu0 }
 0x108   : > { %291 = vst [vmem:[%s163_s22 + $0x8] sm:$0xff] %v279_v13 }
 0x109 PF: > { %s12_s9 = sadd.s32 1, %s438_s9  }
 0x10a   : > { %p9_p4 = scmp.ge.s32.totalorder %s12_s9, 10  }
 0x10c   :  { %11 = sbr.rel (!%p9_p4) target bundleno = 1 (0x1), region = 61 }

// kernel: conformer_forward.36
= control target key start
LH: loop header
LB: loop body
LE: loop exit
PB: predicated region body
PF: predicated region fallthrough
CT: control target
= control target key end

     0   :  { %s455_s9 = smov 0   ;;  %s480_s0 = inlined_call_operand.vmem [shape: bf16[4,24,128], index: 0, kind: input, shape index: {}]   ;;  %s481_s1 = inlined_call_operand.vmem [shape: bf16[4,128,128], index: 1, kind: input, shape index: {}]   ;;  %s482_s2 = inlined_call_operand.vmem [shape: f32[4,24,128], index: 2, kind: output, shape index: {}]  }
   0x1 LB: > { %s360_s10 = sadd.s32 4294967295, %s438_s9   ;;  %p364_p0 = scmp.ge.s32.totalorder %s438_s9, 1  ;;  %s438_s9 = sphi %s455_s9, %s12_s9  }
   0x2   : > { %p122_p1 = scmp.lt.s32.totalorder %s438_s9, 5 }
   0x4   : > { %p123_p2 = pnand %p364_p0, %p122_p1 }
   0x5   : > { %p149_p3 = scmp.lt.s32.totalorder (!%p123_p2), %s360_s10, 3 }
   0x6   : > { %126 = sbr.rel (%p123_p2) target bundleno = 265 (0x109), region = 28 }
   0xd   : > { %s484_s10 = smov (!%p149_p3, %s360_s10), 3 }
   0xe   : > { %s381_s11 = sshll.u32 %s484_s10, 6  ;;  %s412_s15 = smul.u32 12, %s484_s10 }
   0xf   : > { %s158_s14 = scalar_lea.vmem %s481_s1, %s381_s11  ;;  %s413_s19 = smul.u32 24, %s484_s10 }
  0x10   : > { %v422_v0 = vld [vmem:[%s158_s14] sm:$0xff]   ;;  %v423_v1 = vld [vmem:[%s158_s14 + $0x8] sm:$0xff]   ;;  %v424_v2 = vld [vmem:[%s158_s14 + $0x10] sm:$0xff]   ;;  %s153_s18 = scalar_lea.vmem %s480_s0, %s412_s15 }
  0x11   : > { %392 = vmatprep.subr.bf16.mxu0 %v422_v0  ;;  %v425_v3 = vld [vmem:[%s158_s14 + $0x18] sm:$0xff]   ;;  %v430_v4 = vld [vmem:[%s153_s18] sm:$0xff]   ;;  %v427_v6 = vld [vmem:[%s158_s14 + $0x28] sm:$0xff]   ;;  %s163_s22 = scalar_lea.vmem %s482_s2, %s413_s19 }
  0x12   : > { %393 = vmatpush3.bf16.msra.mxu0 %v422_v0  ;;  %408 = vmatprep.mubr.bf16.mxu0 %v430_v4  ;;  %v426_v5 = vld [vmem:[%s158_s14 + $0x20] sm:$0xff]   ;;  %v428_v7 = vld [vmem:[%s158_s14 + $0x30] sm:$0xff]   ;;  %v429_v8 = vld [vmem:[%s158_s14 + $0x38] sm:$0xff]  }
  0x13   : > { %394 = vmatprep.subr.bf16.mxu0 %v423_v1  ;;  %v431_v9 = vld [vmem:[%s153_s18 + $0x8] ss:$0 sps:$4 sm:$0xff]  }
  0x16   : > { %395 = vmatpush3.bf16.msra.mxu0 %v423_v1 }
  0x17   : > { %396 = vmatprep.subr.bf16.mxu0 %v424_v2 }
  0x1a   : > { %397 = vmatpush3.bf16.msra.mxu0 %v424_v2 }
  0x1b   : > { %398 = vmatprep.subr.bf16.mxu0 %v425_v3 }
  0x1e   : > { %399 = vmatpush3.bf16.msra.mxu0 %v425_v3 }
  0x1f   : > { %400 = vmatprep.subr.bf16.mxu0 %v426_v5 }
  0x22   : > { %401 = vmatpush3.bf16.msra.mxu0 %v426_v5 }
  0x23   : > { %402 = vmatprep.subr.bf16.mxu0 %v427_v6 }
  0x26   : > { %403 = vmatpush3.bf16.msra.mxu0 %v427_v6 }
  0x27   : > { %404 = vmatprep.subr.bf16.mxu0 %v428_v7 }
  0x2a   : > { %405 = vmatpush3.bf16.msra.mxu0 %v428_v7 }
  0x2b   : > { %406 = vmatprep.subr.bf16.mxu0 %v429_v8 }
  0x2e   : > { %407 = vmatpush3.bf16.msra.mxu0 %v429_v8 }
  0x31   : > { %409 = vmatmul.mubr.bf16.vlgmr.msra.gmra.mrb[0].mxu0 %v431_v9 }
 0x104   : > { %v410_v10 = vpop.f32.mrb[0].mxu0 }
 0x105   : > { %292 = vst [vmem:[%s163_s22 + $0x10] sm:$0xff] %v410_v10  ;;  %v276_v11 = vpop.f32.mrb[1].mxu0 }
 0x106   : > { %290 = vst [vmem:[%s163_s22] sm:$0xff] %v276_v11  ;;  %v411_v12 = vpop.f32.mrb[2].mxu0 }
 0x107   : > { %v279_v13 = vpop.f32.mrb[3].mxu0 }
 0x108   : > { %291 = vst [vmem:[%s163_s22 + $0x8] sm:$0xff] %v279_v13 }
 0x109 PF: > { %s12_s9 = sadd.s32 1, %s438_s9  }
 0x10a   : > { %p9_p4 = scmp.ge.s32.totalorder %s12_s9, 6  }
 0x10c   :  { %11 = sbr.rel (!%p9_p4) target bundleno = 1 (0x1), region = 61 }

// kernel: conformer_forward.39
= control target key start
LH: loop header
LB: loop body
LE: loop exit
PB: predicated region body
PF: predicated region fallthrough
CT: control target
= control target key end

     0   :  { %s504_s12 = smov 0   ;;  %s634_s0 = inlined_call_operand.vmem [shape: f32[2,38,32], index: 0, kind: input, shape index: {}]   ;;  %s635_s1 = inlined_call_operand.vmem [shape: f32[15,32], index: 1, kind: input, shape index: {}]   ;;  %s636_s2 = inlined_call_operand.vmem [shape: f32[1,32], index: 2, kind: input, shape index: {}]   ;;  %s637_s3 = inlined_call_operand.vmem [shape: f32[2,24,32], index: 3, kind: output, shape index: {}]  }
   0x1 LB: > { %s441_s13 = sadd.s32 4294967295, %s482_s12   ;;  %p445_p0 = scmp.ge.s32.totalorder %s482_s12, 1  ;;  %s482_s12 = sphi %s504_s12, %s13_s12  }
   0x2   : > { %p137_p1 = scmp.lt.s32.totalorder %s482_s12, 3 }
   0x4   : > { %p138_p2 = pnand %p445_p0, %p137_p1 }
   0x5   : > { %p161_p3 = scmp.lt.s32.totalorder (!%p138_p2), %s441_s13, 1  ;;  %v176_v0 = vlaneseq (!%p138_p2)  ;;  %v171_v2 = vld [vmem:[%s635_s1] sm:$0xff] (!%p138_p2)  ;;  %v574_v41 = vld [vmem:[%s635_s1 + $0x8] sm:$0x7f] (!%p138_p2)  ;;  %vm382_vm0 = vcmask (!%p138_p2), 261120  }
   0x6   : > { %141 = sbr.rel (%p138_p2) target bundleno = 82 (0x52), region = 32 }
   0x7   : > { %v514_v1 = vshrl.u32 (!%p138_p2), %v176_v0, 7 }
   0x9   : > { %v178_v3 = vsub.s32 (!%p138_p2), 0, %v514_v1  ;;  %v188_v4 = vsub.s32 (!%p138_p2), 1, %v514_v1  ;;  %v201_v5 = vsub.s32 (!%p138_p2), 2, %v514_v1  ;;  %v214_v6 = vsub.s32 (!%p138_p2), 3, %v514_v1 }
   0xa   : > { %v227_v7 = vsub.s32 (!%p138_p2), 4, %v514_v1  ;;  %v240_v11 = vsub.s32 (!%p138_p2), 5, %v514_v1  ;;  %v253_v20 = vsub.s32 (!%p138_p2), 6, %v514_v1  ;;  %v266_v32 = vsub.s32 (!%p138_p2), 7, %v514_v1 }
   0xb   : > { %v179_v8 = vrot.slane (!%p138_p2), %v171_v2, %v178_v3  ;;  %v189_v9 = vrot.slane (!%p138_p2), %v171_v2, %v188_v4  ;;  %v202_v10 = vrot.slane (!%p138_p2), %v171_v2, %v201_v5  ;;  %v215_v14 = vrot.slane (!%p138_p2), %v171_v2, %v214_v6 }
   0xc   : > { %v228_v27 = vrot.slane (!%p138_p2), %v171_v2, %v227_v7  ;;  %v241_v31 = vrot.slane (!%p138_p2), %v171_v2, %v240_v11  ;;  %v254_v40 = vrot.slane (!%p138_p2), %v171_v2, %v253_v20  ;;  %v267_v50 = vrot.slane (!%p138_p2), %v171_v2, %v266_v32 }
   0xd   : > { %s639_s13 = smov (!%p161_p3, %s441_s13), 1  ;;  %v278_v59 = vrot.slane %v574_v41, %v178_v3  ;;  %v289_v2 = vrot.slane %v574_v41, %v188_v4  ;;  %v300_v4 = vrot.slane %v574_v41, %v201_v5 }
   0xe   : > { %s454_s16 = smul.u32 40, %s639_s13 }
   0xf   : > { %s455_s24 = smul.u32 24, %s639_s13 }
  0x10   : > { %s528_s19 = scalar_lea.vmem %s634_s0, %s454_s16 }
  0x11   : > { %v173_v12 = vld [vmem:[%s528_s19] sm:$0xff]  ;;  %v174_v13 = vld [vmem:[%s528_s19 + $0x8] sm:$0xff]  ;;  %v175_v33 = vld [vmem:[%s528_s19 + $0x10] sm:$0xff]  ;;  %s170_s27 = scalar_lea.vmem %s637_s3, %s455_s24 }
  0x12   : > { %v180_v15 = vmul.f32 %v179_v8, %v173_v12  ;;  %v181_v16 = vmul.f32 %v179_v8, %v174_v13  ;;  %v183_v17 = vld [vmem:[%s528_s19 + $0x1] sm:$0xff]  ;;  %v541_v18 = vld [vmem:[%s528_s19 + $0x9] sm:$0xff]  ;;  %v185_v46 = vld [vmem:[%s528_s19 + $0x11] sm:$0xff]  ;;  %v182_v47 = vmul.f32 %v179_v8, %v175_v33  ;;  %v280_v32 = vmul.f32 %v278_v59, %v175_v33 }
  0x13   : > { %v196_v19 = vld [vmem:[%s528_s19 + $0x2] sm:$0xff]  ;;  %v190_v21 = vmul.f32 %v189_v9, %v183_v17  ;;  %v191_v22 = vmul.f32 %v189_v9, %v541_v18  ;;  %v547_v23 = vld [vmem:[%s528_s19 + $0xa] sm:$0xff]  ;;  %v198_v55 = vld [vmem:[%s528_s19 + $0x12] sm:$0xff]  ;;  %v192_v60 = vmul.f32 %v189_v9, %v185_v46  ;;  %v279_v9 = vmul.f32 %v278_v59, %v174_v13 }
  0x14   : > { %v203_v24 = vmul.f32 %v202_v10, %v196_v19  ;;  %v209_v25 = vld [vmem:[%s528_s19 + $0x3] sm:$0xff]  ;;  %v551_v26 = vld [vmem:[%s528_s19 + $0xb] sm:$0xff]  ;;  %v204_v28 = vmul.f32 %v202_v10, %v547_v23  ;;  %v211_v56 = vld [vmem:[%s528_s19 + $0x13] sm:$0xff]  ;;  %v311_v13 = vrot.slane %v574_v41, %v214_v6  ;;  %v322_v33 = vrot.slane %v574_v41, %v227_v7 }
  0x15   : > { %v222_v29 = vld [vmem:[%s528_s19 + $0x4] sm:$0xff]  ;;  %v558_v30 = vld [vmem:[%s528_s19 + $0xc] sm:$0xff]  ;;  %v193_v34 = vadd.f32 %v190_v21, %v180_v15  ;;  %v194_v35 = vadd.f32 %v191_v22, %v181_v16  ;;  %v216_v36 = vmul.f32 %v215_v14, %v209_v25  ;;  %v217_v37 = vmul.f32 %v215_v14, %v551_v26  ;;  %v224_v8 = vld [vmem:[%s528_s19 + $0x14] sm:$0xff] }
  0x16   : > { %v235_v38 = vld [vmem:[%s528_s19 + $0x5] sm:$0xff]  ;;  %v567_v39 = vld [vmem:[%s528_s19 + $0xd] sm:$0xff]  ;;  %v229_v44 = vmul.f32 %v228_v27, %v222_v29  ;;  %v230_v45 = vmul.f32 %v228_v27, %v558_v30  ;;  %v195_v12 = vadd.f32 %v192_v60, %v182_v47  ;;  %v205_v15 = vmul.f32 %v202_v10, %v198_v55  ;;  %v237_v3 = vld [vmem:[%s528_s19 + $0x15] sm:$0xff] }
  0x17   : > { %v206_v42 = vadd.f32 %v203_v24, %v193_v34  ;;  %v207_v43 = vadd.f32 %v204_v28, %v194_v35  ;;  %v248_v48 = vld [vmem:[%s528_s19 + $0x6] sm:$0xff]  ;;  %v580_v49 = vld [vmem:[%s528_s19 + $0xe] sm:$0xff]  ;;  %v242_v53 = vmul.f32 %v241_v31, %v235_v38  ;;  %v243_v54 = vmul.f32 %v241_v31, %v567_v39  ;;  %v250_v34 = vld [vmem:[%s528_s19 + $0x16] sm:$0xff] }
  0x18   : > { %v261_v57 = vld [vmem:[%s528_s19 + $0x7] sm:$0xff]  ;;  %v262_v58 = vld [vmem:[%s528_s19 + $0xf] sm:$0xff]  ;;  %v255_v63 = vmul.f32 %v254_v40, %v248_v48  ;;  %v256_v0 = vmul.f32 %v254_v40, %v580_v49  ;;  %v218_v16 = vmul.f32 %v215_v14, %v211_v56  ;;  %v208_v24 = vadd.f32 %v205_v15, %v195_v12  ;;  %v307_v1 = vld [vmem:[%s528_s19 + $0x1b] sm:$0xff] }
  0x19   : > { %v219_v51 = vadd.f32 %v216_v36, %v206_v42  ;;  %v220_v52 = vadd.f32 %v217_v37, %v207_v43  ;;  %v268_v21 = vmul.f32 %v267_v50, %v261_v57  ;;  %v269_v22 = vmul.f32 %v267_v50, %v262_v58  ;;  %v318_v15 = vld [vmem:[%s528_s19 + $0x1c] sm:$0xff] }
  0x1a   : > { %v231_v25 = vmul.f32 %v228_v27, %v224_v8  ;;  %v290_v10 = vmul.f32 %v289_v2, %v541_v18  ;;  %v221_v14 = vadd.f32 %v218_v16, %v208_v24  ;;  %v244_v35 = vmul.f32 %v241_v31, %v237_v3  ;;  %v263_v27 = vld [vmem:[%s528_s19 + $0x17] sm:$0xff] }
  0x1b   : > { %v232_v61 = vadd.f32 %v229_v44, %v219_v51  ;;  %v233_v62 = vadd.f32 %v230_v45, %v220_v52  ;;  %v291_v38 = vmul.f32 %v289_v2, %v185_v46  ;;  %v257_v42 = vmul.f32 %v254_v40, %v250_v34  ;;  %v274_v31 = vld [vmem:[%s528_s19 + $0x18] sm:$0xff] }
  0x1c   : > { %v234_v5 = vadd.f32 %v231_v25, %v221_v14  ;;  %v301_v18 = vmul.f32 %v300_v4, %v547_v23  ;;  %v302_v45 = vmul.f32 %v300_v4, %v198_v55  ;;  %v333_v6 = vrot.slane %v574_v41, %v240_v11  ;;  %v285_v40 = vld [vmem:[%s528_s19 + $0x19] sm:$0xff] }
  0x1d   : > { %v245_v17 = vadd.f32 %v242_v53, %v232_v61  ;;  %v246_v19 = vadd.f32 %v243_v54, %v233_v62  ;;  %v270_v46 = vmul.f32 %v267_v50, %v263_v27  ;;  %v312_v51 = vmul.f32 %v311_v13, %v551_v26  ;;  %v296_v50 = vld [vmem:[%s528_s19 + $0x1a] sm:$0xff] }
  0x1e   : > { %v247_v47 = vadd.f32 %v244_v35, %v234_v5  ;;  %v313_v7 = vmul.f32 %v311_v13, %v211_v56  ;;  %v344_v23 = vrot.slane %v574_v41, %v253_v20  ;;  %v281_v54 = vmul.f32 %v278_v59, %v274_v31  ;;  %v340_v24 = vld [vmem:[%s528_s19 + $0x1e] sm:$0xff] }
  0x1f   : > { %v258_v28 = vadd.f32 %v255_v63, %v245_v17  ;;  %v259_v29 = vadd.f32 %v256_v0, %v246_v19  ;;  %v323_v57 = vmul.f32 %v322_v33, %v558_v30  ;;  %v324_v11 = vmul.f32 %v322_v33, %v224_v8  ;;  %v329_v19 = vld [vmem:[%s528_s19 + $0x1d] sm:$0xff] }
  0x20   : > { %v260_v53 = vadd.f32 %v257_v42, %v247_v47  ;;  %v292_v61 = vmul.f32 %v289_v2, %v285_v40  ;;  %v334_v56 = vmul.f32 %v333_v6, %v567_v39  ;;  %v335_v63 = vmul.f32 %v333_v6, %v237_v3  ;;  %v448_v39 = vld [vmem:[%s636_s2] ss:$0 sm:$0xff] }
  0x21   : > { %v271_v36 = vadd.f32 %v268_v21, %v258_v28  ;;  %v272_v37 = vadd.f32 %v269_v22, %v259_v29  ;;  %v303_v20 = vmul.f32 %v300_v4, %v296_v50  ;;  %v345_v59 = vmul.f32 %v344_v23, %v580_v49 }
  0x22   : > { %v273_v60 = vadd.f32 %v270_v46, %v260_v53  ;;  %v346_v12 = vmul.f32 %v344_v23, %v250_v34  ;;  %v314_v16 = vmul.f32 %v311_v13, %v307_v1  ;;  %v325_v22 = vmul.f32 %v322_v33, %v318_v15 }
  0x23   : > { %v282_v43 = vadd.f32 %v279_v9, %v271_v36  ;;  %v283_v44 = vadd.f32 %v280_v32, %v272_v37  ;;  %v336_v28 = vmul.f32 %v333_v6, %v329_v19  ;;  %v347_v4 = vmul.f32 %v344_v23, %v340_v24 }
  0x24   : > { %v284_v0 = vadd.f32 %v281_v54, %v273_v60 }
  0x25   : > { %v293_v48 = vadd.f32 %v290_v10, %v282_v43  ;;  %v294_v52 = vadd.f32 %v291_v38, %v283_v44 }
  0x26   : > { %v295_v8 = vadd.f32 %v292_v61, %v284_v0 }
  0x27   : > { %v304_v55 = vadd.f32 %v301_v18, %v293_v48  ;;  %v305_v58 = vadd.f32 %v302_v45, %v294_v52 }
  0x28   : > { %v306_v21 = vadd.f32 %v303_v20, %v295_v8 }
  0x29   : > { %v315_v26 = vadd.f32 %v312_v51, %v304_v55  ;;  %v316_v62 = vadd.f32 %v313_v7, %v305_v58 }
  0x2a   : > { %v317_v25 = vadd.f32 %v314_v16, %v306_v21 }
  0x2b   : > { %v326_v41 = vadd.f32 %v323_v57, %v315_v26  ;;  %v327_v30 = vadd.f32 %v324_v11, %v316_v62 }
  0x2c   : > { %v328_v32 = vadd.f32 %v325_v22, %v317_v25 }
  0x2d   : > { %v337_v17 = vadd.f32 %v334_v56, %v326_v41  ;;  %v338_v2 = vadd.f32 %v335_v63, %v327_v30 }
  0x2e   : > { %v339_v14 = vadd.f32 %v336_v28, %v328_v32 }
  0x2f   : > { %v348_v3 = vadd.f32 %v345_v59, %v337_v17  ;;  %v349_v9 = vadd.f32 %v346_v12, %v338_v2 }
  0x30   : > { %v350_v35 = vadd.f32 %v347_v4, %v339_v14 }
  0x31   : > { %v358_v49 = vadd.f32 %v448_v39, %v348_v3  ;;  %v359_v29 = vadd.f32 %v448_v39, %v349_v9 }
  0x32   : > { %v360_v36 = vadd.f32 %v448_v39, %v350_v35 }
  0x33   : > { %v449_v34 = vmul.f32 -1.442695, %v358_v49  ;;  %v450_v10 = vmul.f32 -1.442695, %v359_v29 }
  0x34   : > { %v451_v37 = vmul.f32 -1.442695, %v360_v36 }
  0x35   : > { %464 = vpow2.f32 %v449_v34 }
  0x36   : > { %466 = vpow2.f32 %v450_v10 }
  0x37   : > { %468 = vpow2.f32 %v451_v37 }
  0x3f   : > { %v465_v13 = vpop.eup %464 }
  0x40   : > { %v467_v27 = vpop.eup %466  ;;  %v370_v38 = vadd.f32 1.0, %v465_v13 }
  0x41   : > { %v371_v33 = vadd.f32 1.0, %v467_v27  ;;  %v469_v5 = vpop.eup %468 }
  0x42   : > { %470 = vrcp.f32 %v370_v38  ;;  %v372_v42 = vadd.f32 1.0, %v469_v5 }
  0x43   : > { %472 = vrcp.f32 %v371_v33 }
  0x44   : > { %474 = vrcp.f32 %v372_v42 }
  0x4c   : > { %v471_v43 = vpop.eup %470 }
  0x4d   : > { %v473_v44 = vpop.eup %472  ;;  %v379_v18 = vmul.f32 %v471_v43, %v358_v49 }
  0x4e   : > { %v380_v31 = vmul.f32 %v473_v44, %v359_v29  ;;  %v475_v45 = vpop.eup %474 }
  0x4f   : > { %383 = vst.msk [vmem:[%s170_s27] sm:$0xff] %vm382_vm0, %v379_v18  ;;  %v381_v6 = vmul.f32 %v475_v45, %v360_v36 }
  0x50   : > { %384 = vst.msk [vmem:[%s170_s27 + $0x8] sm:$0xff] %vm382_vm0, %v380_v31 }
  0x51   : > { %385 = vst.msk [vmem:[%s170_s27 + $0x10] sm:$0xff] %vm382_vm0, %v381_v6 }
  0x52 PF: > { %s13_s12 = sadd.s32 1, %s482_s12  }
  0x53   : > { %p10_p4 = scmp.ge.s32.totalorder %s13_s12, 4  }
  0x55   :  { %12 = sbr.rel (!%p10_p4) target bundleno = 1 (0x1), region = 62 }

// kernel: conformer_forward.54
= control target key start
LH: loop header
LB: loop body
LE: loop exit
PB: predicated region body
PF: predicated region fallthrough
CT: control target
= control target key end

     0   :  { %v374_v38 = vlaneseq  ;;  %s725_s1 = inlined_call_operand.vmem [shape: bf16[256,256], index: 1, kind: input, shape index: {}]   ;;  %s726_s0 = inlined_call_operand.vmem [shape: bf16[48,256], index: 0, kind: input, shape index: {}]   ;;  %s727_s2 = inlined_call_operand.vmem [shape: f32[1,256], index: 2, kind: input, shape index: {}]   ;;  %s728_s3 = inlined_call_operand.vmem [shape: f32[48,256], index: 3, kind: output, shape index: {}]  }
   0x1   :  { %v495_v0 = vld [vmem:[%s725_s1 + $0x4] ss:$8 sps:$4 sm:$0xff]   ;;  %v497_v1 = vld [vmem:[%s725_s1] ss:$8 sps:$4 sm:$0xff]   ;;  %v498_v2 = vld [vmem:[%s725_s1 + $0x14] ss:$8 sps:$4 sm:$0xff]  }
   0x2   :  { %462 = vmatprep.subr.bf16.mxu1 %v495_v0  ;;  %270 = vmatprep.subr.bf16.mxu0 %v495_v0  ;;  %v500_v3 = vld [vmem:[%s725_s1 + $0x10] ss:$8 sps:$4 sm:$0xff]   ;;  %v501_v4 = vld [vmem:[%s725_s1 + $0x24] ss:$8 sps:$4 sm:$0xff]   ;;  %v503_v5 = vld [vmem:[%s725_s1 + $0x20] ss:$8 sps:$4 sm:$0xff]  }
   0x3   :  { %478 = vmatpush1.bf16.msra.mxu1 %v497_v1  ;;  %271 = vmatpush1.bf16.msra.mxu0 %v497_v1  ;;  %v504_v6 = vld [vmem:[%s725_s1 + $0x34] ss:$8 sps:$4 sm:$0xff]   ;;  %v506_v7 = vld [vmem:[%s725_s1 + $0x30] ss:$8 sps:$4 sm:$0xff]   ;;  %v507_v8 = vld [vmem:[%s725_s1 + $0x44] ss:$8 sps:$4 sm:$0xff]  }
   0x4   :  { %463 = vmatprep.subr.bf16.mxu1 %v498_v2  ;;  %272 = vmatprep.subr.bf16.mxu0 %v498_v2  ;;  %v509_v9 = vld [vmem:[%s725_s1 + $0x40] ss:$8 sps:$4 sm:$0xff]   ;;  %v510_v10 = vld [vmem:[%s725_s1 + $0x54] ss:$8 sps:$4 sm:$0xff]   ;;  %v512_v11 = vld [vmem:[%s725_s1 + $0x50] ss:$8 sps:$4 sm:$0xff]  }
   0x5   :  { %v513_v12 = vld [vmem:[%s725_s1 + $0x64] ss:$8 sps:$4 sm:$0xff]   ;;  %v545_v13 = vld [vmem:[%s726_s0 + $0x14] ss:$8 sps:$4 sm:$0xff]   ;;  %v515_v14 = vld [vmem:[%s725_s1 + $0x60] ss:$8 sps:$4 sm:$0xff]  }
   0x6   :  { %v548_v15 = vld [vmem:[%s726_s0 + $0x4] ss:$8 sps:$4 sm:$0xff]   ;;  %v516_v16 = vld [vmem:[%s725_s1 + $0x74] ss:$8 sps:$4 sm:$0xff]   ;;  %312 = vmatprep.mubr.bf16.mxu1 %v545_v13  ;;  %v518_v17 = vld [vmem:[%s725_s1 + $0x70] ss:$8 sps:$4 sm:$0xff]  }
   0x7   :  { %479 = vmatpush1.bf16.msra.mxu1 %v500_v3  ;;  %273 = vmatpush1.bf16.msra.mxu0 %v500_v3  ;;  %v519_v18 = vld [vmem:[%s725_s1 + $0x84] ss:$8 sps:$4 sm:$0xff]   ;;  %v521_v19 = vld [vmem:[%s725_s1 + $0x80] ss:$8 sps:$4 sm:$0xff]   ;;  %v522_v20 = vld [vmem:[%s725_s1 + $0x94] ss:$8 sps:$4 sm:$0xff]  }
   0x8   :  { %464 = vmatprep.subr.bf16.mxu1 %v501_v4  ;;  %274 = vmatprep.subr.bf16.mxu0 %v501_v4  ;;  %v524_v21 = vld [vmem:[%s725_s1 + $0x90] ss:$8 sps:$4 sm:$0xff]   ;;  %v525_v22 = vld [vmem:[%s725_s1 + $0xa4] ss:$8 sps:$4 sm:$0xff]   ;;  %v527_v23 = vld [vmem:[%s725_s1 + $0xa0] ss:$8 sps:$4 sm:$0xff]  }
   0x9   :  { %302 = vmatprep.mubr.bf16.mxu0 %v548_v15  ;;  %v528_v24 = vld [vmem:[%s725_s1 + $0xb4] ss:$8 sps:$4 sm:$0xff]   ;;  %v530_v25 = vld [vmem:[%s725_s1 + $0xb0] ss:$8 sps:$4 sm:$0xff]   ;;  %v531_v26 = vld [vmem:[%s725_s1 + $0xc4] ss:$8 sps:$4 sm:$0xff]  }
   0xa   :  { %v533_v27 = vld [vmem:[%s725_s1 + $0xc0] ss:$8 sps:$4 sm:$0xff]   ;;  %v534_v28 = vld [vmem:[%s725_s1 + $0xd4] ss:$8 sps:$4 sm:$0xff]   ;;  %v536_v29 = vld [vmem:[%s725_s1 + $0xd0] ss:$8 sps:$4 sm:$0xff]  }
   0xb   :  { %480 = vmatpush1.bf16.msra.mxu1 %v503_v5  ;;  %275 = vmatpush1.bf16.msra.mxu0 %v503_v5  ;;  %v537_v30 = vld [vmem:[%s725_s1 + $0xe4] ss:$8 sps:$4 sm:$0xff]   ;;  %v539_v31 = vld [vmem:[%s725_s1 + $0xe0] ss:$8 sps:$4 sm:$0xff]   ;;  %v540_v32 = vld [vmem:[%s725_s1 + $0xf4] ss:$8 sps:$4 sm:$0xff]  }
   0xc   :  { %465 = vmatprep.subr.bf16.mxu1 %v504_v6  ;;  %276 = vmatprep.subr.bf16.mxu0 %v504_v6  ;;  %v542_v33 = vld [vmem:[%s725_s1 + $0xf0] ss:$8 sps:$4 sm:$0xff]   ;;  %v546_v35 = vld [vmem:[%s726_s0] ss:$8 sps:$4 sm:$0xff]   ;;  %v549_v36 = vld [vmem:[%s726_s0 + $0x24] ss:$8 sps:$4 sm:$0xff]  }
   0xd   :  { %v543_v34 = vld [vmem:[%s726_s0 + $0x10] ss:$8 sps:$4 sm:$0xff]   ;;  %v551_v37 = vld [vmem:[%s726_s0 + $0x20] ss:$8 sps:$4 sm:$0xff]   ;;  %v375_v39 = vshrl.u32 %v374_v38, 7 }
   0xe   :  { %v372_v41 = vld [vmem:[%s727_s2] sm:$0x3] }
   0xf   :  { %481 = vmatpush1.bf16.msra.mxu1 %v506_v7  ;;  %277 = vmatpush1.bf16.msra.mxu0 %v506_v7  ;;  %v376_v40 = vsub.s32 0, %v375_v39  ;;  %v380_v42 = vsub.s32 1, %v375_v39 }
  0x10   :  { %466 = vmatprep.subr.bf16.mxu1 %v507_v8  ;;  %278 = vmatprep.subr.bf16.mxu0 %v507_v8 }
  0x11   :  { %v377_v43 = vrot.slane %v372_v41, %v376_v40  ;;  %v381_v45 = vrot.slane %v372_v41, %v380_v42 }
  0x13   :  { %482 = vmatpush1.bf16.msra.mxu1 %v509_v9  ;;  %279 = vmatpush1.bf16.msra.mxu0 %v509_v9 }
  0x14   :  { %467 = vmatprep.subr.bf16.mxu1 %v510_v10  ;;  %280 = vmatprep.subr.bf16.mxu0 %v510_v10 }
  0x17   :  { %483 = vmatpush1.bf16.msra.mxu1 %v512_v11  ;;  %281 = vmatpush1.bf16.msra.mxu0 %v512_v11 }
  0x18   :  { %468 = vmatprep.subr.bf16.mxu1 %v513_v12  ;;  %282 = vmatprep.subr.bf16.mxu0 %v513_v12 }
  0x1b   :  { %484 = vmatpush1.bf16.msra.mxu1 %v515_v14  ;;  %283 = vmatpush1.bf16.msra.mxu0 %v515_v14 }
  0x1c   :  { %469 = vmatprep.subr.bf16.mxu1 %v516_v16  ;;  %284 = vmatprep.subr.bf16.mxu0 %v516_v16 }
  0x1f   :  { %485 = vmatpush1.bf16.msra.mxu1 %v518_v17  ;;  %285 = vmatpush1.bf16.msra.mxu0 %v518_v17 }
  0x20   :  { %470 = vmatprep.subr.bf16.mxu1 %v519_v18  ;;  %286 = vmatprep.subr.bf16.mxu0 %v519_v18 }
  0x23   :  { %486 = vmatpush1.bf16.msra.mxu1 %v521_v19  ;;  %287 = vmatpush1.bf16.msra.mxu0 %v521_v19 }
  0x24   :  { %471 = vmatprep.subr.bf16.mxu1 %v522_v20  ;;  %288 = vmatprep.subr.bf16.mxu0 %v522_v20 }
  0x27   :  { %487 = vmatpush1.bf16.msra.mxu1 %v524_v21  ;;  %289 = vmatpush1.bf16.msra.mxu0 %v524_v21 }
  0x28   :  { %472 = vmatprep.subr.bf16.mxu1 %v525_v22  ;;  %290 = vmatprep.subr.bf16.mxu0 %v525_v22 }
  0x2b   :  { %488 = vmatpush1.bf16.msra.mxu1 %v527_v23  ;;  %291 = vmatpush1.bf16.msra.mxu0 %v527_v23 }
  0x2c   :  { %473 = vmatprep.subr.bf16.mxu1 %v528_v24  ;;  %292 = vmatprep.subr.bf16.mxu0 %v528_v24 }
  0x2f   :  { %489 = vmatpush1.bf16.msra.mxu1 %v530_v25  ;;  %293 = vmatpush1.bf16.msra.mxu0 %v530_v25 }
  0x30   :  { %474 = vmatprep.subr.bf16.mxu1 %v531_v26  ;;  %294 = vmatprep.subr.bf16.mxu0 %v531_v26 }
  0x33   :  { %490 = vmatpush1.bf16.msra.mxu1 %v533_v27  ;;  %295 = vmatpush1.bf16.msra.mxu0 %v533_v27 }
  0x34   :  { %475 = vmatprep.subr.bf16.mxu1 %v534_v28  ;;  %296 = vmatprep.subr.bf16.mxu0 %v534_v28 }
  0x37   :  { %491 = vmatpush1.bf16.msra.mxu1 %v536_v29  ;;  %297 = vmatpush1.bf16.msra.mxu0 %v536_v29 }
  0x38   :  { %476 = vmatprep.subr.bf16.mxu1 %v537_v30  ;;  %298 = vmatprep.subr.bf16.mxu0 %v537_v30 }
  0x3b   :  { %492 = vmatpush1.bf16.msra.mxu1 %v539_v31  ;;  %299 = vmatpush1.bf16.msra.mxu0 %v539_v31 }
  0x3c   :  { %477 = vmatprep.subr.bf16.mxu1 %v540_v32  ;;  %300 = vmatprep.subr.bf16.mxu0 %v540_v32 }
  0x3f   :  { %493 = vmatpush1.bf16.msra.mxu1 %v542_v33  ;;  %301 = vmatpush1.bf16.msra.mxu0 %v542_v33 }
  0x42   :  { %313 = vmatmul.mubr.bf16.vlgmr.msra.gmra.mrb[0].mxu1 %v543_v34  ;;  %303 = vmatmul.mubr.bf16.vlgmr.msra.gmra.mrb[0].mxu0 %v546_v35 }
  0x43   :  { %322 = vmatprep.mubr.bf16.mxu1 %v549_v36 }
  0x4a   :  { %323 = vmatmul.mubr.bf16.gmra.mrb[4].mxu1 %v551_v37 }
 0x115   :  { %v314_v44 = vpop.f32.mrb[0].mxu1  ;;  %v304_v46 = vpop.f32.mrb[0].mxu0 }
 0x116   :  { %v316_v47 = vpop.f32.mrb[1].mxu1  ;;  %v306_v48 = vpop.f32.mrb[1].mxu0  ;;  %v388_v51 = vadd.f32 %v377_v43, %v314_v44  ;;  %v384_v53 = vadd.f32 %v377_v43, %v304_v46 }
 0x117   :  { %v318_v49 = vpop.f32.mrb[2].mxu1  ;;  %v308_v50 = vpop.f32.mrb[2].mxu0  ;;  %v389_v55 = vadd.f32 %v381_v45, %v316_v47  ;;  %v385_v56 = vadd.f32 %v381_v45, %v306_v48 }
 0x118   :  { %v320_v52 = vpop.f32.mrb[3].mxu1  ;;  %v310_v54 = vpop.f32.mrb[3].mxu0  ;;  %v400_v57 = vmax.f32 %v388_v51, 0.0  ;;  %v390_v58 = vadd.f32 %v377_v43, %v318_v49  ;;  %v396_v59 = vmax.f32 %v384_v53, 0.0  ;;  %v386_v60 = vadd.f32 %v377_v43, %v308_v50 }
 0x119   :  { %v401_v61 = vmax.f32 %v389_v55, 0.0  ;;  %v391_v62 = vadd.f32 %v381_v45, %v320_v52  ;;  %v397_v63 = vmax.f32 %v385_v56, 0.0  ;;  %v387_v0 = vadd.f32 %v381_v45, %v310_v54 }
 0x11a   :  { %412 = vst [vmem:[%s728_s3 + $0x20] sm:$0xff] %v400_v57  ;;  %v402_v1 = vmax.f32 %v390_v58, 0.0  ;;  %408 = vst [vmem:[%s728_s3] sm:$0xff] %v396_v59  ;;  %v398_v2 = vmax.f32 %v386_v60, 0.0 }
 0x11b   :  { %413 = vst [vmem:[%s728_s3 + $0x28] sm:$0xff] %v401_v61  ;;  %v403_v3 = vmax.f32 %v391_v62, 0.0  ;;  %409 = vst [vmem:[%s728_s3 + $0x8] sm:$0xff] %v397_v63  ;;  %v399_v4 = vmax.f32 %v387_v0, 0.0 }
 0x11c   :  { %414 = vst [vmem:[%s728_s3 + $0x30] sm:$0xff] %v402_v1  ;;  %410 = vst [vmem:[%s728_s3 + $0x10] sm:$0xff] %v398_v2 }
 0x11d   :  { %v324_v5 = vpop.f32.mrb[4].mxu1  ;;  %415 = vst [vmem:[%s728_s3 + $0x38] sm:$0xff] %v403_v3  ;;  %411 = vst [vmem:[%s728_s3 + $0x18] sm:$0xff] %v399_v4 }
 0x11e   :  { %v326_v6 = vpop.f32.mrb[5].mxu1  ;;  %v392_v8 = vadd.f32 %v377_v43, %v324_v5 }
 0x11f   :  { %v328_v7 = vpop.f32.mrb[6].mxu1  ;;  %v393_v10 = vadd.f32 %v381_v45, %v326_v6 }
 0x120   :  { %v330_v9 = vpop.f32.mrb[7].mxu1  ;;  %v404_v11 = vmax.f32 %v392_v8, 0.0  ;;  %v394_v12 = vadd.f32 %v377_v43, %v328_v7 }
 0x121   :  { %v405_v13 = vmax.f32 %v393_v10, 0.0  ;;  %v395_v14 = vadd.f32 %v381_v45, %v330_v9 }
 0x122   :  { %416 = vst [vmem:[%s728_s3 + $0x40] sm:$0xff] %v404_v11  ;;  %v406_v15 = vmax.f32 %v394_v12, 0.0 }
 0x123   :  { %417 = vst [vmem:[%s728_s3 + $0x48] sm:$0xff] %v405_v13  ;;  %v407_v16 = vmax.f32 %v395_v14, 0.0 }
 0x124   :  { %418 = vst [vmem:[%s728_s3 + $0x50] sm:$0xff] %v406_v15 }
 0x125   :  { %419 = vst [vmem:[%s728_s3 + $0x58] sm:$0xff] %v407_v16 }

// kernel: conformer_forward.55
= control target key start
LH: loop header
LB: loop body
LE: loop exit
PB: predicated region body
PF: predicated region fallthrough
CT: control target
= control target key end

     0   :  { %s502_s1 = inlined_call_operand.vmem [shape: bf16[256,128], index: 1, kind: input, shape index: {}]   ;;  %s503_s0 = inlined_call_operand.vmem [shape: bf16[48,256], index: 0, kind: input, shape index: {}]   ;;  %s504_s2 = inlined_call_operand.vmem [shape: f32[1,128], index: 2, kind: input, shape index: {}]   ;;  %s505_s3 = inlined_call_operand.vmem [shape: f32[48,128], index: 3, kind: output, shape index: {}]  }
   0x1   :  { %v370_v0 = vld [vmem:[%s502_s1 + $0x40] sm:$0xff]   ;;  %v372_v2 = vld [vmem:[%s502_s1 + $0x48] sm:$0xff]   ;;  %v374_v4 = vld [vmem:[%s502_s1 + $0x50] sm:$0xff]  }
   0x2   :  { %v371_v1 = vld [vmem:[%s502_s1] sm:$0xff]   ;;  %353 = vmatprep.subr.bf16.mxu1 %v370_v0  ;;  %319 = vmatprep.subr.bf16.mxu0 %v370_v0  ;;  %v373_v3 = vld [vmem:[%s502_s1 + $0x8] sm:$0xff]   ;;  %v375_v5 = vld [vmem:[%s502_s1 + $0x10] sm:$0xff]  }
   0x3   :  { %361 = vmatpush3.bf16.msra.mxu1 %v371_v1  ;;  %320 = vmatpush3.bf16.msra.mxu0 %v371_v1  ;;  %v376_v6 = vld [vmem:[%s502_s1 + $0x58] sm:$0xff]   ;;  %v378_v8 = vld [vmem:[%s502_s1 + $0x60] sm:$0xff]   ;;  %v380_v10 = vld [vmem:[%s502_s1 + $0x68] sm:$0xff]  }
   0x4   :  { %354 = vmatprep.subr.bf16.mxu1 %v372_v2  ;;  %321 = vmatprep.subr.bf16.mxu0 %v372_v2  ;;  %v377_v7 = vld [vmem:[%s502_s1 + $0x18] sm:$0xff]   ;;  %v379_v9 = vld [vmem:[%s502_s1 + $0x20] sm:$0xff]   ;;  %v381_v13 = vld [vmem:[%s502_s1 + $0x28] sm:$0xff]  }
   0x5   :  { %v388_v11 = vld [vmem:[%s503_s0 + $0x14] ss:$8 sps:$4 sm:$0xff]   ;;  %v391_v12 = vld [vmem:[%s503_s0 + $0x4] ss:$8 sps:$4 sm:$0xff]   ;;  %v386_v18 = vld [vmem:[%s503_s0 + $0x10] ss:$8 sps:$4 sm:$0xff]  }
   0x6   :  { %v382_v14 = vld [vmem:[%s502_s1 + $0x70] sm:$0xff]   ;;  %235 = vmatprep.mubr.bf16.mxu1 %v388_v11  ;;  %227 = vmatprep.mubr.bf16.mxu0 %v391_v12  ;;  %v384_v16 = vld [vmem:[%s502_s1 + $0x78] sm:$0xff]   ;;  %v389_v19 = vld [vmem:[%s503_s0] ss:$8 sps:$4 sm:$0xff]  }
   0x7   :  { %362 = vmatpush3.bf16.msra.mxu1 %v373_v3  ;;  %322 = vmatpush3.bf16.msra.mxu0 %v373_v3  ;;  %v383_v15 = vld [vmem:[%s502_s1 + $0x30] sm:$0xff]   ;;  %v385_v17 = vld [vmem:[%s502_s1 + $0x38] sm:$0xff]   ;;  %v392_v20 = vld [vmem:[%s503_s0 + $0x24] ss:$8 sps:$4 sm:$0xff]  }
   0x8   :  { %355 = vmatprep.subr.bf16.mxu1 %v374_v4  ;;  %323 = vmatprep.subr.bf16.mxu0 %v374_v4  ;;  %v394_v21 = vld [vmem:[%s503_s0 + $0x20] ss:$8 sps:$4 sm:$0xff]  }
   0x9   :  { %v318_v30 = vld [vmem:[%s504_s2] ss:$0 sm:$0xff] }
   0xb   :  { %363 = vmatpush3.bf16.msra.mxu1 %v375_v5  ;;  %324 = vmatpush3.bf16.msra.mxu0 %v375_v5 }
   0xc   :  { %356 = vmatprep.subr.bf16.mxu1 %v376_v6  ;;  %325 = vmatprep.subr.bf16.mxu0 %v376_v6 }
   0xf   :  { %364 = vmatpush3.bf16.msra.mxu1 %v377_v7  ;;  %326 = vmatpush3.bf16.msra.mxu0 %v377_v7 }
  0x10   :  { %357 = vmatprep.subr.bf16.mxu1 %v378_v8  ;;  %327 = vmatprep.subr.bf16.mxu0 %v378_v8 }
  0x13   :  { %365 = vmatpush3.bf16.msra.mxu1 %v379_v9  ;;  %328 = vmatpush3.bf16.msra.mxu0 %v379_v9 }
  0x14   :  { %358 = vmatprep.subr.bf16.mxu1 %v380_v10  ;;  %329 = vmatprep.subr.bf16.mxu0 %v380_v10 }
  0x17   :  { %366 = vmatpush3.bf16.msra.mxu1 %v381_v13  ;;  %330 = vmatpush3.bf16.msra.mxu0 %v381_v13 }
  0x18   :  { %359 = vmatprep.subr.bf16.mxu1 %v382_v14  ;;  %331 = vmatprep.subr.bf16.mxu0 %v382_v14 }
  0x1b   :  { %367 = vmatpush3.bf16.msra.mxu1 %v383_v15  ;;  %332 = vmatpush3.bf16.msra.mxu0 %v383_v15 }
  0x1c   :  { %360 = vmatprep.subr.bf16.mxu1 %v384_v16  ;;  %333 = vmatprep.subr.bf16.mxu0 %v384_v16 }
  0x1f   :  { %368 = vmatpush3.bf16.msra.mxu1 %v385_v17  ;;  %334 = vmatpush3.bf16.msra.mxu0 %v385_v17 }
  0x22   :  { %236 = vmatmul.mubr.bf16.vlgmr.msra.gmra.mrb[0].mxu1 %v386_v18  ;;  %228 = vmatmul.mubr.bf16.vlgmr.msra.gmra.mrb[0].mxu0 %v389_v19 }
  0x23   :  { %243 = vmatprep.mubr.bf16.mxu1 %v392_v20 }
  0x2a   :  { %244 = vmatmul.mubr.bf16.gmra.mrb[4].mxu1 %v394_v21 }
  0xf5   :  { %v341_v22 = vpop.f32.mrb[0].mxu1  ;;  %v335_v23 = vpop.f32.mrb[0].mxu0 }
  0xf6   :  { %v342_v24 = vpop.f32.mrb[1].mxu1  ;;  %v336_v25 = vpop.f32.mrb[1].mxu0 }
  0xf7   :  { %v343_v26 = vadd.f32 %v342_v24, %v341_v22  ;;  %v344_v27 = vpop.f32.mrb[2].mxu1  ;;  %v337_v28 = vadd.f32 %v336_v25, %v335_v23  ;;  %v338_v29 = vpop.f32.mrb[2].mxu0 }
  0xf8   :  { %v345_v31 = vpop.f32.mrb[3].mxu1  ;;  %v339_v32 = vpop.f32.mrb[3].mxu0 }
  0xf9   :  { %v346_v33 = vadd.f32 %v345_v31, %v344_v27  ;;  %v340_v34 = vadd.f32 %v339_v32, %v338_v29  ;;  %v282_v35 = vadd.f32 %v343_v26, %v318_v30  ;;  %v280_v36 = vadd.f32 %v337_v28, %v318_v30 }
  0xfb   :  { %288 = vst [vmem:[%s505_s3 + $0x10] sm:$0xff] %v282_v35  ;;  %v283_v37 = vadd.f32 %v346_v33, %v318_v30  ;;  %286 = vst [vmem:[%s505_s3] sm:$0xff] %v280_v36  ;;  %v281_v38 = vadd.f32 %v340_v34, %v318_v30 }
  0xfd   :  { %v347_v39 = vpop.f32.mrb[4].mxu1  ;;  %289 = vst [vmem:[%s505_s3 + $0x18] sm:$0xff] %v283_v37  ;;  %287 = vst [vmem:[%s505_s3 + $0x8] sm:$0xff] %v281_v38 }
  0xfe   :  { %v348_v40 = vpop.f32.mrb[5].mxu1 }
  0xff   :  { %v349_v41 = vadd.f32 %v348_v40, %v347_v39  ;;  %v350_v42 = vpop.f32.mrb[6].mxu1 }
 0x100   :  { %v351_v43 = vpop.f32.mrb[7].mxu1 }
 0x101   :  { %v352_v44 = vadd.f32 %v351_v43, %v350_v42  ;;  %v284_v45 = vadd.f32 %v349_v41, %v318_v30 }
 0x103   :  { %290 = vst [vmem:[%s505_s3 + $0x20] sm:$0xff] %v284_v45  ;;  %v285_v46 = vadd.f32 %v352_v44, %v318_v30 }
 0x105   :  { %291 = vst [vmem:[%s505_s3 + $0x28] sm:$0xff] %v285_v46 }

// kernel: conformer_forward.56
= control target key start
LH: loop header
LB: loop body
LE: loop exit
PB: predicated region body
PF: predicated region fallthrough
CT: control target
= control target key end

     0   :  { %vm31_vm0 = vcmask 523264   ;;  %vm90_vm1 = vcmask 1041409   ;;  %vm93_vm2 = vcmask 517120   ;;  %s210_s0 = inlined_call_operand.vmem [shape: f32[2,24,64], index: 0, kind: input, shape index: {}]   ;;  %s211_s1 = inlined_call_operand.vmem [shape: f32[2,24,64], index: 1, kind: input, shape index: {}]   ;;  %s212_s2 = inlined_call_operand.vmem [shape: f32[2,64], index: 2, kind: output, shape index: {0}]   ;;  %s213_s3 = inlined_call_operand.vmem [shape: f32[2,64], index: 3, kind: output, shape index: {1}]  }
   0x1   :  { %v13_v0 = vld [vmem:[%s210_s0] sm:$0xff]  ;;  %v14_v1 = vld [vmem:[%s210_s0 + $0x8] sm:$0xff]  ;;  %v15_v2 = vld [vmem:[%s210_s0 + $0x10] sm:$0xff] }
   0x2   :  { %v16_v3 = vld [vmem:[%s210_s0 + $0x18] sm:$0xff]  ;;  %v17_v4 = vld [vmem:[%s210_s0 + $0x20] sm:$0xff]  ;;  %v18_v5 = vld [vmem:[%s210_s0 + $0x28] sm:$0xff]  ;;  %v54_v6 = vmul.f32 %v13_v0, %v13_v0  ;;  %v55_v7 = vmul.f32 %v14_v1, %v14_v1  ;;  %v56_v8 = vmul.f32 %v15_v2, %v15_v2 }
   0x3   :  { %v19_v9 = vld [vmem:[%s211_s1] sm:$0xff]  ;;  %v20_v10 = vld [vmem:[%s211_s1 + $0x8] sm:$0xff]  ;;  %v21_v11 = vld [vmem:[%s211_s1 + $0x10] sm:$0xff]  ;;  %v57_v12 = vmul.f32 %v16_v3, %v16_v3  ;;  %v58_v13 = vmul.f32 %v17_v4, %v17_v4  ;;  %v59_v14 = vmul.f32 %v18_v5, %v18_v5 }
   0x4   :  { %v22_v15 = vld [vmem:[%s211_s1 + $0x18] sm:$0xff]  ;;  %v23_v16 = vld [vmem:[%s211_s1 + $0x20] sm:$0xff]  ;;  %v24_v17 = vld [vmem:[%s211_s1 + $0x28] sm:$0xff]  ;;  %v25_v18 = vmul.f32 %v19_v9, %v13_v0  ;;  %v26_v19 = vmul.f32 %v20_v10, %v14_v1  ;;  %v27_v20 = vmul.f32 %v21_v11, %v15_v2  ;;  %v60_v21 = vmul.f32 %v54_v6, %v19_v9 }
   0x5   :  { %v28_v22 = vmul.f32 %v22_v15, %v16_v3  ;;  %v29_v23 = vmul.f32 %v23_v16, %v17_v4  ;;  %v30_v24 = vmul.f32 %v24_v17, %v18_v5  ;;  %v61_v25 = vmul.f32 %v55_v7, %v20_v10 }
   0x6   :  { %v32_v26 = vsel %vm31_vm0, %v25_v18, 0.0  ;;  %v33_v27 = vsel %vm31_vm0, %v26_v19, 0.0  ;;  %v35_v28 = vsel %vm31_vm0, %v27_v20, 0.0  ;;  %v62_v29 = vmul.f32 %v56_v8, %v21_v11 }
   0x7   :  { %v34_v30 = vadd.f32 %v33_v27, %v32_v26  ;;  %v43_v31 = vsel %vm31_vm0, %v28_v22, 0.0  ;;  %v44_v32 = vsel %vm31_vm0, %v29_v23, 0.0  ;;  %v46_v33 = vsel %vm31_vm0, %v30_v24, 0.0 }
   0x8   :  { %v45_v34 = vadd.f32 %v44_v32, %v43_v31  ;;  %v63_v35 = vmul.f32 %v57_v12, %v22_v15  ;;  %v64_v36 = vmul.f32 %v58_v13, %v23_v16  ;;  %v65_v37 = vmul.f32 %v59_v14, %v24_v17 }
   0x9   :  { %v36_v38 = vadd.f32 %v35_v28, %v34_v30  ;;  %v66_v39 = vsel %vm31_vm0, %v60_v21, 0.0  ;;  %v67_v40 = vsel %vm31_vm0, %v61_v25, 0.0  ;;  %v69_v41 = vsel %vm31_vm0, %v62_v29, 0.0 }
   0xa   :  { %v47_v42 = vadd.f32 %v46_v33, %v45_v34  ;;  %v68_v43 = vadd.f32 %v67_v40, %v66_v39  ;;  %v77_v44 = vsel %vm31_vm0, %v63_v35, 0.0  ;;  %v78_v45 = vsel %vm31_vm0, %v64_v36, 0.0 }
   0xb   :  { %v37_v46 = vrot.slane %v36_v38, 4  ;;  %v79_v47 = vadd.f32 %v78_v45, %v77_v44  ;;  %v80_v48 = vsel %vm31_vm0, %v65_v37, 0.0 }
   0xc   :  { %v48_v49 = vrot.slane %v47_v42, 4  ;;  %v70_v50 = vadd.f32 %v69_v41, %v68_v43 }
   0xd   :  { %v38_v51 = vadd.f32 %v37_v46, %v36_v38  ;;  %v81_v52 = vadd.f32 %v80_v48, %v79_v47 }
   0xe   :  { %v49_v53 = vadd.f32 %v48_v49, %v47_v42  ;;  %v71_v54 = vrot.slane %v70_v50, 4 }
   0xf   :  { %v39_v55 = vrot.slane %v38_v51, 2  ;;  %v82_v56 = vrot.slane %v81_v52, 4 }
  0x10   :  { %v50_v57 = vrot.slane %v49_v53, 2  ;;  %v72_v58 = vadd.f32 %v71_v54, %v70_v50 }
  0x11   :  { %v40_v59 = vadd.f32 %v39_v55, %v38_v51  ;;  %v83_v60 = vadd.f32 %v82_v56, %v81_v52 }
  0x12   :  { %v51_v61 = vadd.f32 %v50_v57, %v49_v53  ;;  %v73_v62 = vrot.slane %v72_v58, 2 }
  0x13   :  { %v41_v63 = vrot.slane %v40_v59, 1  ;;  %v84_v0 = vrot.slane %v83_v60, 2 }
  0x14   :  { %v52_v1 = vrot.slane %v51_v61, 1  ;;  %v74_v2 = vadd.f32 %v73_v62, %v72_v58 }
  0x15   :  { %v42_v3 = vadd.f32 %v41_v63, %v40_v59  ;;  %v85_v4 = vadd.f32 %v84_v0, %v83_v60 }
  0x16   :  { %v53_v5 = vadd.f32 %v52_v1, %v51_v61  ;;  %v75_v6 = vrot.slane %v74_v2, 1 }
  0x17   :  { %v86_v7 = vrot.slane %v85_v4, 1  ;;  %v95_v8 = vmul.f32 %v42_v3, %v42_v3 }
  0x18   :  { %v76_v9 = vadd.f32 %v75_v6, %v74_v2  ;;  %v91_v10 = vsel %vm90_vm1, %v53_v5, %v42_v3  ;;  %v96_v11 = vmul.f32 %v53_v5, %v53_v5 }
  0x19   :  { %v87_v12 = vadd.f32 %v86_v7, %v85_v4  ;;  %94 = vst.msk [vmem:[%s212_s2] sm:$0x3] %vm93_vm2, %v91_v10 }
  0x1a   :  { %v97_v13 = vsub.f32 %v76_v9, %v95_v8 }
  0x1b   :  { %v98_v14 = vsub.f32 %v87_v12, %v96_v11 }
  0x1c   :  { %v99_v15 = vmax.f32 %v97_v13, 0.0001 }
  0x1d   :  { %v100_v16 = vmax.f32 %v98_v14, 0.0001 }
  0x1e   :  { %128 = vrsqrt.f32 %v99_v15  ;;  %vm103_vm3 = vcmp.eq.f32.partialorder %v99_v15, inf  ;;  %v106_v18 = vand.u32 2147483648, %v99_v15  ;;  %vm105_vm4 = vcmp.eq.f32.partialorder %v99_v15, 0.0 }
  0x1f   :  { %130 = vrsqrt.f32 %v100_v16  ;;  %vm110_vm5 = vcmp.eq.f32.partialorder %v100_v16, inf  ;;  %v113_v21 = vand.u32 2147483648, %v100_v16  ;;  %vm112_vm6 = vcmp.eq.f32.partialorder %v100_v16, 0.0 }
  0x28   :  { %v129_v17 = vpop.eup %128 }
  0x29   :  { %v131_v19 = vpop.eup %130  ;;  %v102_v20 = vmul.f32 %v129_v17, %v99_v15 }
  0x2a   :  { %v109_v22 = vmul.f32 %v131_v19, %v100_v16 }
  0x2b   :  { %v104_v23 = vsel %vm103_vm3, %v99_v15, %v102_v20 }
  0x2c   :  { %v107_v24 = vsel %vm105_vm4, %v106_v18, %v104_v23  ;;  %v111_v25 = vsel %vm110_vm5, %v100_v16, %v109_v22 }
  0x2d   :  { %v114_v26 = vsel %vm112_vm6, %v113_v21, %v111_v25 }
  0x2e   :  { %v117_v27 = vsel %vm90_vm1, %v114_v26, %v107_v24 }
  0x2f   :  { %119 = vst.msk [vmem:[%s213_s3] sm:$0x3] %vm93_vm2, %v117_v27 }

// kernel: conformer_forward.57
= control target key start
LH: loop header
LB: loop body
LE: loop exit
PB: predicated region body
PF: predicated region fallthrough
CT: control target
= control target key end

     0   :  { %v193_v0 = vmov 0.0   ;;  %vm194_vm0 = vmmov 0   ;;  %s248_s1 = inlined_call_operand.vmem [shape: bf16[128,128], index: 1, kind: input, shape index: {}]   ;;  %s249_s0 = inlined_call_operand.vmem [shape: bf16[8,128], index: 0, kind: input, shape index: {}]   ;;  %s250_s2 = inlined_call_operand.vmem [shape: f32[1,128], index: 2, kind: input, shape index: {}]   ;;  %s251_s3 = inlined_call_operand.vmem [shape: f32[8,128], index: 3, kind: output, shape index: {}]  }
   0x1   :  { %163 = vmatprep.subr.bf16.mxu0 %v193_v0  ;;  %v185_v1 = vld [vmem:[%s248_s1] sm:$0xff]   ;;  %179 = vmatprep.mubr.msk.bf16.mxu0 %vm194_vm0, %v193_v0  ;;  %v186_v2 = vld [vmem:[%s248_s1 + $0x8] sm:$0xff]   ;;  %v187_v3 = vld [vmem:[%s248_s1 + $0x10] sm:$0xff]  }
   0x2   :  { %164 = vmatpush3.bf16.msra.mxu0 %v185_v1  ;;  %v188_v4 = vld [vmem:[%s248_s1 + $0x18] sm:$0xff]   ;;  %v189_v5 = vld [vmem:[%s248_s1 + $0x20] sm:$0xff]   ;;  %v190_v6 = vld [vmem:[%s248_s1 + $0x28] sm:$0xff]  }
   0x3   :  { %165 = vmatprep.subr.bf16.mxu0 %v193_v0  ;;  %v191_v7 = vld [vmem:[%s248_s1 + $0x30] sm:$0xff]   ;;  %v192_v8 = vld [vmem:[%s248_s1 + $0x38] sm:$0xff]   ;;  %v21_v9 = vld [vmem:[%s249_s0] sm:$0xf] }
   0x4   :  { %v153_v11 = vld [vmem:[%s250_s2] ss:$0 sm:$0xff] }
   0x6   :  { %166 = vmatpush3.bf16.msra.mxu0 %v186_v2 }
   0x7   :  { %167 = vmatprep.subr.bf16.mxu0 %v193_v0 }
   0xa   :  { %168 = vmatpush3.bf16.msra.mxu0 %v187_v3 }
   0xb   :  { %169 = vmatprep.subr.bf16.mxu0 %v193_v0 }
   0xe   :  { %170 = vmatpush3.bf16.msra.mxu0 %v188_v4 }
   0xf   :  { %171 = vmatprep.subr.bf16.mxu0 %v193_v0 }
  0x12   :  { %172 = vmatpush3.bf16.msra.mxu0 %v189_v5 }
  0x13   :  { %173 = vmatprep.subr.bf16.mxu0 %v193_v0 }
  0x16   :  { %174 = vmatpush3.bf16.msra.mxu0 %v190_v6 }
  0x17   :  { %175 = vmatprep.subr.bf16.mxu0 %v193_v0 }
  0x1a   :  { %176 = vmatpush3.bf16.msra.mxu0 %v191_v7 }
  0x1b   :  { %177 = vmatprep.subr.bf16.mxu0 %v193_v0 }
  0x1e   :  { %178 = vmatpush3.bf16.msra.mxu0 %v192_v8 }
  0x21   :  { %180 = vmatmul.mubr.bf16.vlgmr.msra.gmra.mrb[0].mxu0 %v21_v9 }
  0xf4   :  { %v120_v10 = vpop.f32.mrb[0].mxu0 }
  0xf5   :  { %v181_v12 = vpop.f32.mrb[1].mxu0  ;;  %v139_v14 = vadd.f32 %v153_v11, %v120_v10 }
  0xf6   :  { %v123_v13 = vpop.f32.mrb[2].mxu0 }
  0xf7   :  { %v182_v15 = vpop.f32.mrb[3].mxu0  ;;  %140 = vst [vmem:[%s251_s3] sm:$0xff] %v139_v14 }

</bundles_post_ra>
